<compile_context>
chip_gen: v7x
topology: tpu7x:2x2x1
jax: 0.10.0
libtpu: 0.0.40
codegen_flags: <defaults>
</compile_context>

<pallas_src>
import functools
import math

import jax
import jax.numpy as jnp
from jax.experimental import pallas as pl
from jax.experimental.pallas import tpu as pltpu

BN_EPS = 1e-5
OUTPUT_DIMS = 3


def _head_kernel(
    # ---- inputs --------------------------------------------------------------
    act_emb_ref,   # (emb, tq)  bf16  action embedding tile (channels-first)
    anc_emb_ref,   # (emb, nb)  bf16  anchor embedding (full)
    act_pts_ref,   # (3, tq)    f32
    anc_pts_ref,   # (3, nb)    f32
    w1_ref, b1_ref,      # fused first layer of both towers: (320, emb) bf16, (320, 1) f32
    fw2_ref, fb2_ref,    # proj_flow:        (emb/4, emb/2) bf16, (emb/4, 1) f32
    fw3_ref, fb3_ref,    #                   (emb/8, emb/4), (emb/8, 1)
    fw4_ref,             #                   (3, emb/8) bf16 (final conv, no BN/bias)
    ww2_ref, wb2_ref,    # proj_flow_weight: (64, 64),  (64, 1)
    ww3_ref, wb3_ref,    #                   (64, 64),  (64, 1)
    ww4_ref, wb4_ref,    #                   (128, 64), (128, 1)
    ww5_ref, wb5_ref,    #                   (512, 128),(512, 1)
    ww6_ref,             #                   (1, 512) bf16 (final conv, no BN/bias)
    # ---- outputs -------------------------------------------------------------
    scores_ref,     # (tq, nb) f32
    packed_ref,     # (13, tq) f32:  [0:4]=full_flow, [4:7]=residual_flow,
                    #                [7:10]=corr_flow, [10:13]=corr_points
):
    """One (batch b, action-point tile i) step of the fused ResidualMLPHead."""
    f32 = jnp.float32
    bf16 = jnp.bfloat16

    x_bf = act_emb_ref[...]                                  # (emb, tq) bf16
    k_bf = anc_emb_ref[...]                                  # (emb, nb) bf16
    d_k = x_bf.shape[0]

    # -------- attention scores + soft correspondence (scores=None path) -------
    # Contract over the embedding axis directly -> no materialized transpose.
    logits = jax.lax.dot_general(
        x_bf, k_bf,
        dimension_numbers=(((0,), (0,)), ((), ())),
        preferred_element_type=f32)                          # (tq, nb) f32
    logits = logits * (1.0 / math.sqrt(d_k))
    logits = logits - jnp.max(logits, axis=-1, keepdims=True)
    p = jnp.exp(logits)
    inv_l = pl.reciprocal(jnp.sum(p, axis=-1, keepdims=True), approx=True)
    scores = p * inv_l                                       # softmax rows, f32
    scores_ref[...] = scores.astype(scores_ref.dtype)

    # corr_points = anchor_points @ scores^T   (tiny matmul -> keep f32)
    corr = jax.lax.dot_general(
        anc_pts_ref[...], scores,
        dimension_numbers=(((1,), (1,)), ((), ())),
        preferred_element_type=f32)                          # (3, tq)
    corr_flow = corr - act_pts_ref[...]                      # (3, tq)

    # -------- PointNet towers: bias-free 1x1 conv + folded BN + ReLU ----------
    # bf16 operands, f32 accumulation; bias add and ReLU stay f32 (v5e VPU).
    def layer(h_bf, w_ref, b_ref):
        y = jnp.dot(w_ref[...], h_bf, preferred_element_type=f32)
        return jnp.maximum(y + b_ref[...], 0.0).astype(bf16)

    # Fused first layer of both towers (shared input x_bf): rows [0:emb/2] feed
    # proj_flow, rows [emb/2:emb/2+64] feed proj_flow_weight.
    h1 = layer(x_bf, w1_ref, b1_ref)                         # (emb/2 + 64, tq) bf16
    n_flow1 = fw2_ref.shape[1]
    h_f = h1[:n_flow1]                                       # (emb/2, tq)
    h_w = h1[n_flow1:]                                       # (64, tq)

    # proj_flow tail: emb/2 -> emb/4 -> emb/8 -> 3
    h = layer(h_f, fw2_ref, fb2_ref)
    h = layer(h, fw3_ref, fb3_ref)
    res = jnp.dot(fw4_ref[...], h, preferred_element_type=f32)   # (3, tq) f32

    # proj_flow_weight tail: 64 -> 64 -> 64 -> 128 -> 512 -> 1
    g = layer(h_w, ww2_ref, wb2_ref)
    g = layer(g, ww3_ref, wb3_ref)
    g = layer(g, ww4_ref, wb4_ref)
    g = layer(g, ww5_ref, wb5_ref)
    wt = jnp.dot(ww6_ref[...], g, preferred_element_type=f32)    # (1, tq) f32

    flow = res + corr_flow                                   # residual_on=True

    # Pack all narrow outputs into one lane-dense block (single output DMA).
    packed_ref[0:3, :] = flow.astype(packed_ref.dtype)
    packed_ref[3:4, :] = wt.astype(packed_ref.dtype)
    packed_ref[4:7, :] = res.astype(packed_ref.dtype)
    packed_ref[7:10, :] = corr_flow.astype(packed_ref.dtype)
    packed_ref[10:13, :] = corr.astype(packed_ref.dtype)


@functools.partial(jax.jit, static_argnames=("tq",))
def residual_mlp_head_forward(action_emb, anchor_emb, action_pts, anchor_pts,
                              folded_params, *, tq=512):
    """Fused ResidualMLPHead forward (default config, inference-mode BN)."""
    B, emb, na = action_emb.shape
    nb = anchor_emb.shape[2]
    assert tq % 128 == 0, "point tile must be lane-aligned (multiple of 128)"

    # Heavy matmul operands go to bf16 BEFORE padding -> half the HBM traffic
    # and half the pad copy.  Points stay f32 (tiny, geometry-critical).
    act_emb_bf = action_emb.astype(jnp.bfloat16)
    anc_emb_bf = anchor_emb.astype(jnp.bfloat16)

    # Pad the action-point axis up to a tile multiple; zero columns are sliced
    # off below, so any B*N works.
    n_tiles = pl.cdiv(na, tq)
    na_pad = n_tiles * tq
    if na_pad != na:
        pad = ((0, 0), (0, 0), (0, na_pad - na))
        act_emb_bf = jnp.pad(act_emb_bf, pad)
        action_pts = jnp.pad(action_pts, pad)

    # Weight / bias blocks are grid-invariant (index_map == (0, 0)), so they are
    # only DMA'd once.
    w_specs = [pl.BlockSpec(tuple(p.shape), lambda b, i: (0, 0))
               for p in folded_params]

    in_specs = [
        pl.BlockSpec((None, emb, tq), lambda b, i: (b, 0, i)),   # action embedding tile (bf16)
        pl.BlockSpec((None, emb, nb), lambda b, i: (b, 0, 0)),   # anchor embedding (bf16, full)
        pl.BlockSpec((None, 3, tq), lambda b, i: (b, 0, i)),     # action points tile
        pl.BlockSpec((None, 3, nb), lambda b, i: (b, 0, 0)),     # anchor points (full)
    ] + w_specs

    out_shape = (
        jax.ShapeDtypeStruct((B, na_pad, nb), jnp.float32),      # scores
        jax.ShapeDtypeStruct((B, 13, na_pad), jnp.float32),      # packed narrow outputs
    )
    out_specs = (
        pl.BlockSpec((None, tq, nb), lambda b, i: (b, i, 0)),
        pl.BlockSpec((None, 13, tq), lambda b, i: (b, 0, i)),
    )

    # Explicit VMEM budget from the actual buffer math: double-buffered I/O and
    # weight blocks plus headroom for in-kernel f32 intermediates.
    in_bytes = (emb * tq * 2 + emb * nb * 2          # bf16 embeddings
                + 3 * tq * 4 + 3 * nb * 4)           # f32 points
    out_bytes = (tq * nb + 13 * tq) * 4
    w_bytes = sum(int(p.size) * p.dtype.itemsize for p in folded_params)
    vmem_limit = int(2 * (in_bytes + out_bytes + w_bytes) + (24 << 20))

    scores, packed = pl.pallas_call(
        _head_kernel,
        out_shape=out_shape,
        grid_spec=pltpu.PrefetchScalarGridSpec(
            num_scalar_prefetch=0,
            grid=(B, n_tiles),
            in_specs=in_specs,
            out_specs=out_specs,
        ),
        compiler_params=pltpu.CompilerParams(
            dimension_semantics=("parallel", "parallel"),
            vmem_limit_bytes=vmem_limit,
        ),
    )(act_emb_bf, anc_emb_bf, action_pts, anchor_pts, *folded_params)

    # Strip point-axis padding and unpack (no-ops / cheap slices only).
    scores = scores[:, :na, :]
    full_flow = packed[:, 0:4, :na]
    residual_flow = packed[:, 4:7, :na]
    corr_flow = packed[:, 7:10, :na]
    corr_points = packed[:, 10:13, :na]
    return {
        "full_flow": full_flow,
        "residual_flow": residual_flow,
        "corr_flow": corr_flow,
        "corr_points": corr_points,
        "scores": scores,
    }


# ----------------------------- parameters -------------------------------------
def init_raw_params(key, emb_dims, output_dims=OUTPUT_DIMS):
    """Synthetic parameters matching the PyTorch module layout (eval mode)."""
    flow_dims = [emb_dims, emb_dims // 2, emb_dims // 4, emb_dims // 8]
    weight_dims = [emb_dims, 64, 64, 64, 128, 512]

    def conv_w(k, out_c, in_c):
        bound = 1.0 / math.sqrt(in_c)
        return jax.random.uniform(k, (out_c, in_c), jnp.float32, -bound, bound)

    def bn_params(k, c):
        kg, kb, km, kv = jax.random.split(k, 4)
        gamma = jax.random.uniform(kg, (c,), jnp.float32, 0.5, 1.5)
        beta = jax.random.uniform(kb, (c,), jnp.float32, -0.2, 0.2)
        mean = 0.1 * jax.random.normal(km, (c,), jnp.float32)
        var = jax.random.uniform(kv, (c,), jnp.float32, 0.5, 1.5)
        return gamma, beta, mean, var

    def make_tower(k, dims, final_out):
        layers = []
        for j in range(len(dims) - 1):
            k, kw, kb = jax.random.split(k, 3)
            layers.append((conv_w(kw, dims[j + 1], dims[j]),
                           bn_params(kb, dims[j + 1])))
        k, kf = jax.random.split(k)
        return layers, conv_w(kf, final_out, dims[-1])

    kf, kw = jax.random.split(key)
    flow_layers, flow_final = make_tower(kf, flow_dims, output_dims)
    weight_layers, weight_final = make_tower(kw, weight_dims, 1)
    return (flow_layers, flow_final, weight_layers, weight_final)


def _fold_bn(w, gamma, beta, mean, var):
    """Fold inference-mode BatchNorm1d into a preceding bias-free 1x1 conv."""
    scale = gamma / jnp.sqrt(var + BN_EPS)
    w_f = (w * scale[:, None]).astype(jnp.bfloat16)             # (out, in) bf16
    b_f = (beta - scale * mean).astype(jnp.float32)[:, None]    # (out, 1)  f32
    return w_f, b_f


def fold_params(raw):
    """Fold BN, cast conv weights to bf16, fuse the shared first layer,
    flatten into kernel arg order."""
    flow_layers, flow_final, weight_layers, weight_final = raw
    folded_flow = [_fold_bn(w, *bn) for w, bn in flow_layers]
    folded_weight = [_fold_bn(w, *bn) for w, bn in weight_layers]

    # Fuse the first layer of both towers (they consume the same action tile).
    w1 = jnp.concatenate([folded_flow[0][0], folded_weight[0][0]], axis=0)
    b1 = jnp.concatenate([folded_flow[0][1], folded_weight[0][1]], axis=0)

    flat = [w1, b1]
    for w, b in folded_flow[1:]:
        flat.extend([w, b])
    flat.append(flow_final.astype(jnp.bfloat16))      # tiny (3, emb/8) final conv
    for w, b in folded_weight[1:]:
        flat.extend([w, b])
    flat.append(weight_final.astype(jnp.bfloat16))    # tiny (1, 512) final conv
    return tuple(flat)


# ----------------------------- pure-JAX reference -----------------------------
def reference_forward(action_emb, anchor_emb, action_pts, anchor_pts, raw):
    flow_layers, flow_final, weight_layers, weight_final = raw
    d_k = action_emb.shape[1]

    scores = jnp.einsum("bdi,bdj->bij", action_emb, anchor_emb) / math.sqrt(d_k)
    scores = jax.nn.softmax(scores, axis=2)
    corr_points = jnp.einsum("bdj,bij->bdi", anchor_pts, scores)
    corr_flow = corr_points - action_pts

    def pointnet(x, layers):
        for w, (gamma, beta, mean, var) in layers:
            y = jnp.einsum("oi,bip->bop", w, x)
            y = (y - mean[None, :, None]) / jnp.sqrt(var[None, :, None] + BN_EPS)
            y = gamma[None, :, None] * y + beta[None, :, None]
            x = jax.nn.relu(y)
        return x

    residual_flow = jnp.einsum("oi,bip->bop", flow_final,
                               pointnet(action_emb, flow_layers))
    flow = residual_flow + corr_flow
    weight = jnp.einsum("oi,bip->bop", weight_final,
                        pointnet(action_emb, weight_layers))
    full_flow = jnp.concatenate([flow, weight], axis=1)
    return {
        "full_flow": full_flow,
        "residual_flow": residual_flow,
        "corr_flow": corr_flow,
        "corr_points": corr_points,
        "scores": scores,
    }


if __name__ == "__main__":
    key = jax.random.PRNGKey(0)
    k_ae, k_ne, k_ap, k_np, k_par = jax.random.split(key, 5)

    # Default module config; n_action is deliberately NOT a tile multiple to
    # exercise the cdiv + padding path.  grid = (B, n_tiles) = (2, 1): both v7x
    # TensorCores still get one step each.
    B, emb, n_action, n_anchor = 2, 512, 320, 256
    action_emb = jax.random.normal(k_ae, (B, emb, n_action), jnp.float32)
    anchor_emb = jax.random.normal(k_ne, (B, emb, n_anchor), jnp.float32)
    action_pts = jax.random.normal(k_ap, (B, 3, n_action), jnp.float32)
    anchor_pts = jax.random.normal(k_np, (B, 3, n_anchor), jnp.float32)

    raw_params = init_raw_params(k_par, emb)
    folded = fold_params(raw_params)

    out = residual_mlp_head_forward(action_emb, anchor_emb, action_pts,
                                    anchor_pts, folded, tq=512)
    out = jax.block_until_ready(out)

    ref = reference_forward(action_emb, anchor_emb, action_pts, anchor_pts,
                            raw_params)

    # bf16 matmul operands with f32 accumulation -> loosened tolerance.
    for name in ("full_flow", "residual_flow", "corr_flow", "corr_points",
                 "scores"):
        assert out[name].shape == ref[name].shape, name
        assert jnp.allclose(out[name], ref[name], atol=4e-2, rtol=4e-2), (
            name, float(jnp.max(jnp.abs(out[name] - ref[name]))))

    print("KERNEL_OK")
</pallas_src>

<mosaic_0001>
module attributes {stable_mosaic.version = 11 : i64} {
  func.func @_head_kernel(%arg0: i32, %arg1: i32, %arg2: memref<1x512x512xbf16, #tpu.memory_space<vmem>>, %arg3: memref<1x512x256xbf16, #tpu.memory_space<vmem>>, %arg4: memref<1x3x512xf32, #tpu.memory_space<vmem>>, %arg5: memref<1x3x256xf32, #tpu.memory_space<vmem>>, %arg6: memref<320x512xbf16, #tpu.memory_space<vmem>>, %arg7: memref<320x1xf32, #tpu.memory_space<vmem>>, %arg8: memref<128x256xbf16, #tpu.memory_space<vmem>>, %arg9: memref<128x1xf32, #tpu.memory_space<vmem>>, %arg10: memref<64x128xbf16, #tpu.memory_space<vmem>>, %arg11: memref<64x1xf32, #tpu.memory_space<vmem>>, %arg12: memref<3x64xbf16, #tpu.memory_space<vmem>>, %arg13: memref<64x64xbf16, #tpu.memory_space<vmem>>, %arg14: memref<64x1xf32, #tpu.memory_space<vmem>>, %arg15: memref<64x64xbf16, #tpu.memory_space<vmem>>, %arg16: memref<64x1xf32, #tpu.memory_space<vmem>>, %arg17: memref<128x64xbf16, #tpu.memory_space<vmem>>, %arg18: memref<128x1xf32, #tpu.memory_space<vmem>>, %arg19: memref<512x128xbf16, #tpu.memory_space<vmem>>, %arg20: memref<512x1xf32, #tpu.memory_space<vmem>>, %arg21: memref<1x512xbf16, #tpu.memory_space<vmem>>, %arg22: memref<1x512x256xf32, #tpu.memory_space<vmem>>, %arg23: memref<1x13x512xf32, #tpu.memory_space<vmem>>) attributes {dimension_semantics = [#tpu.dimension_semantics<parallel>, #tpu.dimension_semantics<parallel>], iteration_bounds = array<i64: 2, 1>, scalar_prefetch = 0 : i64, scratch_operands = 0 : i64, tpu.core_type = #tpu.core_type<tc>, window_params = [{transform_indices = @transform_0, window_bounds = array<i64: 1, 512, 512>}, {transform_indices = @transform_1, window_bounds = array<i64: 1, 512, 256>}, {transform_indices = @transform_2, window_bounds = array<i64: 1, 3, 512>}, {transform_indices = @transform_3, window_bounds = array<i64: 1, 3, 256>}, {pipeline_mode = #tpu.pipeline_mode<synchronous>, transform_indices = @transform_4, window_bounds = array<i64: 320, 512>}, {pipeline_mode = #tpu.pipeline_mode<synchronous>, transform_indices = @transform_5, window_bounds = array<i64: 320, 1>}, {pipeline_mode = #tpu.pipeline_mode<synchronous>, transform_indices = @transform_6, window_bounds = array<i64: 128, 256>}, {pipeline_mode = #tpu.pipeline_mode<synchronous>, transform_indices = @transform_7, window_bounds = array<i64: 128, 1>}, {pipeline_mode = #tpu.pipeline_mode<synchronous>, transform_indices = @transform_8, window_bounds = array<i64: 64, 128>}, {pipeline_mode = #tpu.pipeline_mode<synchronous>, transform_indices = @transform_9, window_bounds = array<i64: 64, 1>}, {pipeline_mode = #tpu.pipeline_mode<synchronous>, transform_indices = @transform_10, window_bounds = array<i64: 3, 64>}, {pipeline_mode = #tpu.pipeline_mode<synchronous>, transform_indices = @transform_11, window_bounds = array<i64: 64, 64>}, {pipeline_mode = #tpu.pipeline_mode<synchronous>, transform_indices = @transform_12, window_bounds = array<i64: 64, 1>}, {pipeline_mode = #tpu.pipeline_mode<synchronous>, transform_indices = @transform_13, window_bounds = array<i64: 64, 64>}, {pipeline_mode = #tpu.pipeline_mode<synchronous>, transform_indices = @transform_14, window_bounds = array<i64: 64, 1>}, {pipeline_mode = #tpu.pipeline_mode<synchronous>, transform_indices = @transform_15, window_bounds = array<i64: 128, 64>}, {pipeline_mode = #tpu.pipeline_mode<synchronous>, transform_indices = @transform_16, window_bounds = array<i64: 128, 1>}, {pipeline_mode = #tpu.pipeline_mode<synchronous>, transform_indices = @transform_17, window_bounds = array<i64: 512, 128>}, {pipeline_mode = #tpu.pipeline_mode<synchronous>, transform_indices = @transform_18, window_bounds = array<i64: 512, 1>}, {pipeline_mode = #tpu.pipeline_mode<synchronous>, transform_indices = @transform_19, window_bounds = array<i64: 1, 512>}, {transform_indices = @transform_20, window_bounds = array<i64: 1, 512, 256>}, {transform_indices = @transform_21, window_bounds = array<i64: 1, 13, 512>}]} {
    %c0 = arith.constant 0 : index
    %c0_0 = arith.constant 0 : index
    %c0_1 = arith.constant 0 : index
    %0 = vector.load %arg2[%c0, %c0_0, %c0_1] : memref<1x512x512xbf16, #tpu.memory_space<vmem>>, vector<1x512x512xbf16>
    %1 = vector.shape_cast %0 : vector<1x512x512xbf16> to vector<512x512xbf16>
    %c0_2 = arith.constant 0 : index
    %c0_3 = arith.constant 0 : index
    %c0_4 = arith.constant 0 : index
    %2 = vector.load %arg3[%c0_2, %c0_3, %c0_4] : memref<1x512x256xbf16, #tpu.memory_space<vmem>>, vector<1x512x256xbf16>
    %3 = vector.shape_cast %2 : vector<1x512x256xbf16> to vector<512x256xbf16>
    %cst = arith.constant dense<0.000000e+00> : vector<512x256xf32>
    %4 = tpu.matmul %1, %3, %cst {dimension_numbers = #tpu.dot_dimension_numbers<[0], [0], [1], [1], [0, 1, 1, 1], [], []>} : vector<512x512xbf16>, vector<512x256xbf16>, vector<512x256xf32> -> vector<512x256xf32>
    %cst_5 = arith.constant 0.0441941731 : f32
    %5 = vector.broadcast %cst_5 : f32 to vector<512x256xf32>
    %6 = arith.mulf %4, %5 : vector<512x256xf32>
    %cst_6 = arith.constant dense<0xFF800000> : vector<512xf32>
    %7 = vector.multi_reduction <maximumf>, %6, %cst_6 [1] : vector<512x256xf32> to vector<512xf32>
    %8 = vector.shape_cast %7 : vector<512xf32> to vector<512x1xf32>
    %9 = vector.broadcast %8 : vector<512x1xf32> to vector<512x256xf32>
    %10 = arith.subf %6, %9 : vector<512x256xf32>
    %11 = math.exp %10 : vector<512x256xf32>
    %cst_7 = arith.constant dense<0.000000e+00> : vector<512xf32>
    %12 = vector.multi_reduction <add>, %11, %cst_7 [1] : vector<512x256xf32> to vector<512xf32>
    %13 = vector.shape_cast %12 : vector<512xf32> to vector<512x1xf32>
    %14 = tpu.reciprocal %13 {approx = true} : vector<512x1xf32> -> vector<512x1xf32>
    %15 = vector.broadcast %14 : vector<512x1xf32> to vector<512x256xf32>
    %16 = arith.mulf %11, %15 : vector<512x256xf32>
    %c0_8 = arith.constant 0 : index
    %c0_9 = arith.constant 0 : index
    %c0_10 = arith.constant 0 : index
    %17 = vector.load %arg22[%c0_8, %c0_9, %c0_10] : memref<1x512x256xf32, #tpu.memory_space<vmem>>, vector<1x512x256xf32>
    %18 = vector.shape_cast %17 : vector<1x512x256xf32> to vector<512x256xf32>
    %19 = vector.shape_cast %16 : vector<512x256xf32> to vector<1x512x256xf32>
    tpu.vector_store %arg22[%c0_8, %c0_9, %c0_10], %19 {strides = array<i32>} : memref<1x512x256xf32, #tpu.memory_space<vmem>>, vector<1x512x256xf32>,
    %c0_11 = arith.constant 0 : index
    %c0_12 = arith.constant 0 : index
    %c0_13 = arith.constant 0 : index
    %20 = vector.load %arg5[%c0_11, %c0_12, %c0_13] : memref<1x3x256xf32, #tpu.memory_space<vmem>>, vector<1x3x256xf32>
    %21 = vector.shape_cast %20 : vector<1x3x256xf32> to vector<3x256xf32>
    %cst_14 = arith.constant dense<0.000000e+00> : vector<3x512xf32>
    %22 = tpu.matmul %21, %16, %cst_14 {dimension_numbers = #tpu.dot_dimension_numbers<[1], [1], [0], [0], [0, 0, 1, 0], [], []>} : vector<3x256xf32>, vector<512x256xf32>, vector<3x512xf32> -> vector<3x512xf32>
    %c0_15 = arith.constant 0 : index
    %c0_16 = arith.constant 0 : index
    %c0_17 = arith.constant 0 : index
    %23 = vector.load %arg4[%c0_15, %c0_16, %c0_17] : memref<1x3x512xf32, #tpu.memory_space<vmem>>, vector<1x3x512xf32>
    %24 = vector.shape_cast %23 : vector<1x3x512xf32> to vector<3x512xf32>
    %25 = arith.subf %22, %24 : vector<3x512xf32>
    %c0_18 = arith.constant 0 : index
    %c0_19 = arith.constant 0 : index
    %26 = vector.load %arg6[%c0_18, %c0_19] : memref<320x512xbf16, #tpu.memory_space<vmem>>, vector<320x512xbf16>
    %cst_20 = arith.constant dense<0.000000e+00> : vector<320x512xf32>
    %27 = tpu.matmul %26, %1, %cst_20 {dimension_numbers = #tpu.dot_dimension_numbers<[1], [0], [0], [1], [0, 0, 1, 1], [], []>} : vector<320x512xbf16>, vector<512x512xbf16>, vector<320x512xf32> -> vector<320x512xf32>
    %c0_21 = arith.constant 0 : index
    %c0_22 = arith.constant 0 : index
    %28 = vector.load %arg7[%c0_21, %c0_22] : memref<320x1xf32, #tpu.memory_space<vmem>>, vector<320x1xf32>
    %29 = vector.broadcast %28 : vector<320x1xf32> to vector<320x512xf32>
    %30 = arith.addf %27, %29 : vector<320x512xf32>
    %cst_23 = arith.constant 0.000000e+00 : f32
    %31 = vector.broadcast %cst_23 : f32 to vector<320x512xf32>
    %32 = arith.maximumf %30, %31 : vector<320x512xf32>
    %33 = arith.truncf %32 : vector<320x512xf32> to vector<320x512xbf16>
    %34 = vector.extract_strided_slice %33 {offsets = [0, 0], sizes = [256, 512], strides = [1, 1]} : vector<320x512xbf16> to vector<256x512xbf16>
    %35 = vector.extract_strided_slice %33 {offsets = [256, 0], sizes = [64, 512], strides = [1, 1]} : vector<320x512xbf16> to vector<64x512xbf16>
    %c0_24 = arith.constant 0 : index
    %c0_25 = arith.constant 0 : index
    %36 = vector.load %arg8[%c0_24, %c0_25] : memref<128x256xbf16, #tpu.memory_space<vmem>>, vector<128x256xbf16>
    %cst_26 = arith.constant dense<0.000000e+00> : vector<128x512xf32>
    %37 = tpu.matmul %36, %34, %cst_26 {dimension_numbers = #tpu.dot_dimension_numbers<[1], [0], [0], [1], [0, 0, 1, 1], [], []>} : vector<128x256xbf16>, vector<256x512xbf16>, vector<128x512xf32> -> vector<128x512xf32>
    %c0_27 = arith.constant 0 : index
    %c0_28 = arith.constant 0 : index
    %38 = vector.load %arg9[%c0_27, %c0_28] : memref<128x1xf32, #tpu.memory_space<vmem>>, vector<128x1xf32>
    %39 = vector.broadcast %38 : vector<128x1xf32> to vector<128x512xf32>
    %40 = arith.addf %37, %39 : vector<128x512xf32>
    %cst_29 = arith.constant 0.000000e+00 : f32
    %41 = vector.broadcast %cst_29 : f32 to vector<128x512xf32>
    %42 = arith.maximumf %40, %41 : vector<128x512xf32>
    %43 = arith.truncf %42 : vector<128x512xf32> to vector<128x512xbf16>
    %c0_30 = arith.constant 0 : index
    %c0_31 = arith.constant 0 : index
    %44 = vector.load %arg10[%c0_30, %c0_31] : memref<64x128xbf16, #tpu.memory_space<vmem>>, vector<64x128xbf16>
    %cst_32 = arith.constant dense<0.000000e+00> : vector<64x512xf32>
    %45 = tpu.matmul %44, %43, %cst_32 {dimension_numbers = #tpu.dot_dimension_numbers<[1], [0], [0], [1], [0, 0, 1, 1], [], []>} : vector<64x128xbf16>, vector<128x512xbf16>, vector<64x512xf32> -> vector<64x512xf32>
    %c0_33 = arith.constant 0 : index
    %c0_34 = arith.constant 0 : index
    %46 = vector.load %arg11[%c0_33, %c0_34] : memref<64x1xf32, #tpu.memory_space<vmem>>, vector<64x1xf32>
    %47 = vector.broadcast %46 : vector<64x1xf32> to vector<64x512xf32>
    %48 = arith.addf %45, %47 : vector<64x512xf32>
    %cst_35 = arith.constant 0.000000e+00 : f32
    %49 = vector.broadcast %cst_35 : f32 to vector<64x512xf32>
    %50 = arith.maximumf %48, %49 : vector<64x512xf32>
    %51 = arith.truncf %50 : vector<64x512xf32> to vector<64x512xbf16>
    %c0_36 = arith.constant 0 : index
    %c0_37 = arith.constant 0 : index
    %52 = vector.load %arg12[%c0_36, %c0_37] : memref<3x64xbf16, #tpu.memory_space<vmem>>, vector<3x64xbf16>
    %cst_38 = arith.constant dense<0.000000e+00> : vector<3x512xf32>
    %53 = tpu.matmul %52, %51, %cst_38 {dimension_numbers = #tpu.dot_dimension_numbers<[1], [0], [0], [1], [0, 0, 1, 1], [], []>} : vector<3x64xbf16>, vector<64x512xbf16>, vector<3x512xf32> -> vector<3x512xf32>
    %c0_39 = arith.constant 0 : index
    %c0_40 = arith.constant 0 : index
    %54 = vector.load %arg13[%c0_39, %c0_40] : memref<64x64xbf16, #tpu.memory_space<vmem>>, vector<64x64xbf16>
    %cst_41 = arith.constant dense<0.000000e+00> : vector<64x512xf32>
    %55 = tpu.matmul %54, %35, %cst_41 {dimension_numbers = #tpu.dot_dimension_numbers<[1], [0], [0], [1], [0, 0, 1, 1], [], []>} : vector<64x64xbf16>, vector<64x512xbf16>, vector<64x512xf32> -> vector<64x512xf32>
    %c0_42 = arith.constant 0 : index
    %c0_43 = arith.constant 0 : index
    %56 = vector.load %arg14[%c0_42, %c0_43] : memref<64x1xf32, #tpu.memory_space<vmem>>, vector<64x1xf32>
    %57 = vector.broadcast %56 : vector<64x1xf32> to vector<64x512xf32>
    %58 = arith.addf %55, %57 : vector<64x512xf32>
    %cst_44 = arith.constant 0.000000e+00 : f32
    %59 = vector.broadcast %cst_44 : f32 to vector<64x512xf32>
    %60 = arith.maximumf %58, %59 : vector<64x512xf32>
    %61 = arith.truncf %60 : vector<64x512xf32> to vector<64x512xbf16>
    %c0_45 = arith.constant 0 : index
    %c0_46 = arith.constant 0 : index
    %62 = vector.load %arg15[%c0_45, %c0_46] : memref<64x64xbf16, #tpu.memory_space<vmem>>, vector<64x64xbf16>
    %cst_47 = arith.constant dense<0.000000e+00> : vector<64x512xf32>
    %63 = tpu.matmul %62, %61, %cst_47 {dimension_numbers = #tpu.dot_dimension_numbers<[1], [0], [0], [1], [0, 0, 1, 1], [], []>} : vector<64x64xbf16>, vector<64x512xbf16>, vector<64x512xf32> -> vector<64x512xf32>
    %c0_48 = arith.constant 0 : index
    %c0_49 = arith.constant 0 : index
    %64 = vector.load %arg16[%c0_48, %c0_49] : memref<64x1xf32, #tpu.memory_space<vmem>>, vector<64x1xf32>
    %65 = vector.broadcast %64 : vector<64x1xf32> to vector<64x512xf32>
    %66 = arith.addf %63, %65 : vector<64x512xf32>
    %cst_50 = arith.constant 0.000000e+00 : f32
    %67 = vector.broadcast %cst_50 : f32 to vector<64x512xf32>
    %68 = arith.maximumf %66, %67 : vector<64x512xf32>
    %69 = arith.truncf %68 : vector<64x512xf32> to vector<64x512xbf16>
    %c0_51 = arith.constant 0 : index
    %c0_52 = arith.constant 0 : index
    %70 = vector.load %arg17[%c0_51, %c0_52] : memref<128x64xbf16, #tpu.memory_space<vmem>>, vector<128x64xbf16>
    %cst_53 = arith.constant dense<0.000000e+00> : vector<128x512xf32>
    %71 = tpu.matmul %70, %69, %cst_53 {dimension_numbers = #tpu.dot_dimension_numbers<[1], [0], [0], [1], [0, 0, 1, 1], [], []>} : vector<128x64xbf16>, vector<64x512xbf16>, vector<128x512xf32> -> vector<128x512xf32>
    %c0_54 = arith.constant 0 : index
    %c0_55 = arith.constant 0 : index
    %72 = vector.load %arg18[%c0_54, %c0_55] : memref<128x1xf32, #tpu.memory_space<vmem>>, vector<128x1xf32>
    %73 = vector.broadcast %72 : vector<128x1xf32> to vector<128x512xf32>
    %74 = arith.addf %71, %73 : vector<128x512xf32>
    %cst_56 = arith.constant 0.000000e+00 : f32
    %75 = vector.broadcast %cst_56 : f32 to vector<128x512xf32>
    %76 = arith.maximumf %74, %75 : vector<128x512xf32>
    %77 = arith.truncf %76 : vector<128x512xf32> to vector<128x512xbf16>
    %c0_57 = arith.constant 0 : index
    %c0_58 = arith.constant 0 : index
    %78 = vector.load %arg19[%c0_57, %c0_58] : memref<512x128xbf16, #tpu.memory_space<vmem>>, vector<512x128xbf16>
    %cst_59 = arith.constant dense<0.000000e+00> : vector<512x512xf32>
    %79 = tpu.matmul %78, %77, %cst_59 {dimension_numbers = #tpu.dot_dimension_numbers<[1], [0], [0], [1], [0, 0, 1, 1], [], []>} : vector<512x128xbf16>, vector<128x512xbf16>, vector<512x512xf32> -> vector<512x512xf32>
    %c0_60 = arith.constant 0 : index
    %c0_61 = arith.constant 0 : index
    %80 = vector.load %arg20[%c0_60, %c0_61] : memref<512x1xf32, #tpu.memory_space<vmem>>, vector<512x1xf32>
    %81 = vector.broadcast %80 : vector<512x1xf32> to vector<512x512xf32>
    %82 = arith.addf %79, %81 : vector<512x512xf32>
    %cst_62 = arith.constant 0.000000e+00 : f32
    %83 = vector.broadcast %cst_62 : f32 to vector<512x512xf32>
    %84 = arith.maximumf %82, %83 : vector<512x512xf32>
    %85 = arith.truncf %84 : vector<512x512xf32> to vector<512x512xbf16>
    %c0_63 = arith.constant 0 : index
    %c0_64 = arith.constant 0 : index
    %86 = vector.load %arg21[%c0_63, %c0_64] : memref<1x512xbf16, #tpu.memory_space<vmem>>, vector<1x512xbf16>
    %cst_65 = arith.constant dense<0.000000e+00> : vector<1x512xf32>
    %87 = tpu.matmul %86, %85, %cst_65 {dimension_numbers = #tpu.dot_dimension_numbers<[1], [0], [0], [1], [0, 0, 1, 1], [], []>} : vector<1x512xbf16>, vector<512x512xbf16>, vector<1x512xf32> -> vector<1x512xf32>
    %88 = arith.addf %53, %25 : vector<3x512xf32>
    %c0_66 = arith.constant 0 : index
    %c0_67 = arith.constant 0 : index
    %c0_68 = arith.constant 0 : index
    %89 = vector.load %arg23[%c0_66, %c0_67, %c0_68] : memref<1x13x512xf32, #tpu.memory_space<vmem>>, vector<1x3x512xf32>
    %90 = vector.shape_cast %89 : vector<1x3x512xf32> to vector<3x512xf32>
    %91 = vector.shape_cast %88 : vector<3x512xf32> to vector<1x3x512xf32>
    tpu.vector_store %arg23[%c0_66, %c0_67, %c0_68], %91 {strides = array<i32>} : memref<1x13x512xf32, #tpu.memory_space<vmem>>, vector<1x3x512xf32>,
    %c0_69 = arith.constant 0 : index
    %c3 = arith.constant 3 : index
    %c0_70 = arith.constant 0 : index
    %92 = vector.load %arg23[%c0_69, %c3, %c0_70] : memref<1x13x512xf32, #tpu.memory_space<vmem>>, vector<1x1x512xf32>
    %93 = vector.shape_cast %92 : vector<1x1x512xf32> to vector<1x512xf32>
    %94 = vector.shape_cast %87 : vector<1x512xf32> to vector<1x1x512xf32>
    tpu.vector_store %arg23[%c0_69, %c3, %c0_70], %94 {strides = array<i32>} : memref<1x13x512xf32, #tpu.memory_space<vmem>>, vector<1x1x512xf32>,
    %c0_71 = arith.constant 0 : index
    %c4 = arith.constant 4 : index
    %c0_72 = arith.constant 0 : index
    %95 = vector.load %arg23[%c0_71, %c4, %c0_72] : memref<1x13x512xf32, #tpu.memory_space<vmem>>, vector<1x3x512xf32>
    %96 = vector.shape_cast %95 : vector<1x3x512xf32> to vector<3x512xf32>
    %97 = vector.shape_cast %53 : vector<3x512xf32> to vector<1x3x512xf32>
    tpu.vector_store %arg23[%c0_71, %c4, %c0_72], %97 {strides = array<i32>} : memref<1x13x512xf32, #tpu.memory_space<vmem>>, vector<1x3x512xf32>,
    %c0_73 = arith.constant 0 : index
    %c7 = arith.constant 7 : index
    %c0_74 = arith.constant 0 : index
    %98 = vector.load %arg23[%c0_73, %c7, %c0_74] : memref<1x13x512xf32, #tpu.memory_space<vmem>>, vector<1x3x512xf32>
    %99 = vector.shape_cast %98 : vector<1x3x512xf32> to vector<3x512xf32>
    %100 = vector.shape_cast %25 : vector<3x512xf32> to vector<1x3x512xf32>
    tpu.vector_store %arg23[%c0_73, %c7, %c0_74], %100 {strides = array<i32>} : memref<1x13x512xf32, #tpu.memory_space<vmem>>, vector<1x3x512xf32>,
    %c0_75 = arith.constant 0 : index
    %c10 = arith.constant 10 : index
    %c0_76 = arith.constant 0 : index
    %101 = vector.load %arg23[%c0_75, %c10, %c0_76] : memref<1x13x512xf32, #tpu.memory_space<vmem>>, vector<1x3x512xf32>
    %102 = vector.shape_cast %101 : vector<1x3x512xf32> to vector<3x512xf32>
    %103 = vector.shape_cast %22 : vector<3x512xf32> to vector<1x3x512xf32>
    tpu.vector_store %arg23[%c0_75, %c10, %c0_76], %103 {strides = array<i32>} : memref<1x13x512xf32, #tpu.memory_space<vmem>>, vector<1x3x512xf32>,
    return
  }
  func.func @transform_0(%arg0: i32, %arg1: i32) -> (i32, i32, i32) {
    %c0_i32 = arith.constant 0 : i32
    %c0_i32_0 = arith.constant 0 : i32
    return %arg0, %c0_i32, %arg1 : i32, i32, i32
  }
  func.func @transform_1(%arg0: i32, %arg1: i32) -> (i32, i32, i32) {
    %c0_i32 = arith.constant 0 : i32
    %c0_i32_0 = arith.constant 0 : i32
    %c0_i32_1 = arith.constant 0 : i32
    return %arg0, %c0_i32, %c0_i32_0 : i32, i32, i32
  }
  func.func @transform_2(%arg0: i32, %arg1: i32) -> (i32, i32, i32) {
    %c0_i32 = arith.constant 0 : i32
    %c0_i32_0 = arith.constant 0 : i32
    return %arg0, %c0_i32, %arg1 : i32, i32, i32
  }
  func.func @transform_3(%arg0: i32, %arg1: i32) -> (i32, i32, i32) {
    %c0_i32 = arith.constant 0 : i32
    %c0_i32_0 = arith.constant 0 : i32
    %c0_i32_1 = arith.constant 0 : i32
    return %arg0, %c0_i32, %c0_i32_0 : i32, i32, i32
  }
  func.func @transform_4(%arg0: i32, %arg1: i32) -> (i32, i32) {
    %c0_i32 = arith.constant 0 : i32
    %c0_i32_0 = arith.constant 0 : i32
    %c0_i32_1 = arith.constant 0 : i32
    return %c0_i32, %c0_i32_0 : i32, i32
  }
  func.func @transform_5(%arg0: i32, %arg1: i32) -> (i32, i32) {
    %c0_i32 = arith.constant 0 : i32
    %c0_i32_0 = arith.constant 0 : i32
    %c0_i32_1 = arith.constant 0 : i32
    return %c0_i32, %c0_i32_0 : i32, i32
  }
  func.func @transform_6(%arg0: i32, %arg1: i32) -> (i32, i32) {
    %c0_i32 = arith.constant 0 : i32
    %c0_i32_0 = arith.constant 0 : i32
    %c0_i32_1 = arith.constant 0 : i32
    return %c0_i32, %c0_i32_0 : i32, i32
  }
  func.func @transform_7(%arg0: i32, %arg1: i32) -> (i32, i32) {
    %c0_i32 = arith.constant 0 : i32
    %c0_i32_0 = arith.constant 0 : i32
    %c0_i32_1 = arith.constant 0 : i32
    return %c0_i32, %c0_i32_0 : i32, i32
  }
  func.func @transform_8(%arg0: i32, %arg1: i32) -> (i32, i32) {
    %c0_i32 = arith.constant 0 : i32
    %c0_i32_0 = arith.constant 0 : i32
    %c0_i32_1 = arith.constant 0 : i32
    return %c0_i32, %c0_i32_0 : i32, i32
  }
  func.func @transform_9(%arg0: i32, %arg1: i32) -> (i32, i32) {
    %c0_i32 = arith.constant 0 : i32
    %c0_i32_0 = arith.constant 0 : i32
    %c0_i32_1 = arith.constant 0 : i32
    return %c0_i32, %c0_i32_0 : i32, i32
  }
  func.func @transform_10(%arg0: i32, %arg1: i32) -> (i32, i32) {
    %c0_i32 = arith.constant 0 : i32
    %c0_i32_0 = arith.constant 0 : i32
    %c0_i32_1 = arith.constant 0 : i32
    return %c0_i32, %c0_i32_0 : i32, i32
  }
  func.func @transform_11(%arg0: i32, %arg1: i32) -> (i32, i32) {
    %c0_i32 = arith.constant 0 : i32
    %c0_i32_0 = arith.constant 0 : i32
    %c0_i32_1 = arith.constant 0 : i32
    return %c0_i32, %c0_i32_0 : i32, i32
  }
  func.func @transform_12(%arg0: i32, %arg1: i32) -> (i32, i32) {
    %c0_i32 = arith.constant 0 : i32
    %c0_i32_0 = arith.constant 0 : i32
    %c0_i32_1 = arith.constant 0 : i32
    return %c0_i32, %c0_i32_0 : i32, i32
  }
  func.func @transform_13(%arg0: i32, %arg1: i32) -> (i32, i32) {
    %c0_i32 = arith.constant 0 : i32
    %c0_i32_0 = arith.constant 0 : i32
    %c0_i32_1 = arith.constant 0 : i32
    return %c0_i32, %c0_i32_0 : i32, i32
  }
  func.func @transform_14(%arg0: i32, %arg1: i32) -> (i32, i32) {
    %c0_i32 = arith.constant 0 : i32
    %c0_i32_0 = arith.constant 0 : i32
    %c0_i32_1 = arith.constant 0 : i32
    return %c0_i32, %c0_i32_0 : i32, i32
  }
  func.func @transform_15(%arg0: i32, %arg1: i32) -> (i32, i32) {
    %c0_i32 = arith.constant 0 : i32
    %c0_i32_0 = arith.constant 0 : i32
    %c0_i32_1 = arith.constant 0 : i32
    return %c0_i32, %c0_i32_0 : i32, i32
  }
  func.func @transform_16(%arg0: i32, %arg1: i32) -> (i32, i32) {
    %c0_i32 = arith.constant 0 : i32
    %c0_i32_0 = arith.constant 0 : i32
    %c0_i32_1 = arith.constant 0 : i32
    return %c0_i32, %c0_i32_0 : i32, i32
  }
  func.func @transform_17(%arg0: i32, %arg1: i32) -> (i32, i32) {
    %c0_i32 = arith.constant 0 : i32
    %c0_i32_0 = arith.constant 0 : i32
    %c0_i32_1 = arith.constant 0 : i32
    return %c0_i32, %c0_i32_0 : i32, i32
  }
  func.func @transform_18(%arg0: i32, %arg1: i32) -> (i32, i32) {
    %c0_i32 = arith.constant 0 : i32
    %c0_i32_0 = arith.constant 0 : i32
    %c0_i32_1 = arith.constant 0 : i32
    return %c0_i32, %c0_i32_0 : i32, i32
  }
  func.func @transform_19(%arg0: i32, %arg1: i32) -> (i32, i32) {
    %c0_i32 = arith.constant 0 : i32
    %c0_i32_0 = arith.constant 0 : i32
    %c0_i32_1 = arith.constant 0 : i32
    return %c0_i32, %c0_i32_0 : i32, i32
  }
  func.func @transform_20(%arg0: i32, %arg1: i32) -> (i32, i32, i32) {
    %c0_i32 = arith.constant 0 : i32
    %c0_i32_0 = arith.constant 0 : i32
    return %arg0, %arg1, %c0_i32 : i32, i32, i32
  }
  func.func @transform_21(%arg0: i32, %arg1: i32) -> (i32, i32, i32) {
    %c0_i32 = arith.constant 0 : i32
    %c0_i32_0 = arith.constant 0 : i32
    return %arg0, %c0_i32, %arg1 : i32, i32, i32
  }
}

</mosaic_0001>

<bundles_post_ra>
// kernel: residual_mlp_head_forward.1
= control target key start
LH: loop header
LB: loop body
LE: loop exit
PB: predicated region body
PF: predicated region fallthrough
CT: control target
= control target key end

     0   :  { %s12553_s25 = smov 0   ;;  %s12555_s26 = smov 0   ;;  %s16869_s0 = inlined_call_operand.vmem [shape: bf16[2,512,512], index: 0, kind: input, shape index: {}]   ;;  %s16870_s1 = inlined_call_operand.vmem [shape: bf16[2,512,256], index: 1, kind: input, shape index: {}]   ;;  %s16871_s2 = inlined_call_operand.vmem [shape: f32[2,3,512], index: 2, kind: input, shape index: {}]   ;;  %s16872_s3 = inlined_call_operand.vmem [shape: f32[2,3,256], index: 3, kind: input, shape index: {}]   ;;  %s16873_s4 = inlined_call_operand.vmem [shape: bf16[320,512], index: 4, kind: input, shape index: {}]   ;;  %s16874_s5 = inlined_call_operand.vmem [shape: f32[320,1], index: 5, kind: input, shape index: {}]   ;;  %s16875_s6 = inlined_call_operand.vmem [shape: bf16[128,256], index: 6, kind: input, shape index: {}]   ;;  %s16876_s7 = inlined_call_operand.vmem [shape: f32[128,1], index: 7, kind: input, shape index: {}]   ;;  %s16877_s8 = inlined_call_operand.vmem [shape: bf16[64,128], index: 8, kind: input, shape index: {}]   ;;  %s16878_s9 = inlined_call_operand.vmem [shape: f32[64,1], index: 9, kind: input, shape index: {}]   ;;  %s16879_s10 = inlined_call_operand.vmem [shape: bf16[3,64], index: 10, kind: input, shape index: {}]   ;;  %s16880_s11 = inlined_call_operand.vmem [shape: bf16[64,64], index: 11, kind: input, shape index: {}]   ;;  %s16881_s12 = inlined_call_operand.vmem [shape: f32[64,1], index: 12, kind: input, shape index: {}]   ;;  %s16882_s13 = inlined_call_operand.vmem [shape: bf16[64,64], index: 13, kind: input, shape index: {}]   ;;  %s16883_s14 = inlined_call_operand.vmem [shape: f32[64,1], index: 14, kind: input, shape index: {}]   ;;  %s16884_s15 = inlined_call_operand.vmem [shape: bf16[128,64], index: 15, kind: input, shape index: {}]   ;;  %s16885_s16 = inlined_call_operand.vmem [shape: f32[128,1], index: 16, kind: input, shape index: {}]   ;;  %s16886_s17 = inlined_call_operand.vmem [shape: bf16[512,128], index: 17, kind: input, shape index: {}]   ;;  %s16887_s18 = inlined_call_operand.vmem [shape: f32[512,1], index: 18, kind: input, shape index: {}]   ;;  %s16888_s19 = inlined_call_operand.vmem [shape: bf16[1,512], index: 19, kind: input, shape index: {}]   ;;  %s16889_s20 = inlined_call_operand.vmem [shape: f32[2,512,256], index: 20, kind: output, shape index: {0}]   ;;  %s16890_s21 = inlined_call_operand.vmem [shape: f32[2,13,512], index: 21, kind: output, shape index: {1}]  }
   0x1   :  { %17067 = sst [smem:[#allocation83_spill]] %s16869_s0 }
   0x2   :  { %17068 = sst [smem:[#allocation84_spill]] %s16870_s1 }
   0x3   :  { %17069 = sst [smem:[#allocation85_spill]] %s16871_s2  ;;  %s12551_s2 = smov 0  }
   0x4   :  { %17070 = sst [smem:[#allocation86_spill]] %s16872_s3 }
   0x5   :  { %17071 = sst [smem:[#allocation87_spill]] %s16873_s4 }
   0x6   :  { %17072 = sst [smem:[#allocation88_spill]] %s16874_s5 }
   0x7   :  { %17073 = sst [smem:[#allocation89_spill]] %s16889_s20 }
   0x8 LB: > { %17074 = sst [smem:[#allocation2_spill]] %s12433_s25  ;;  %s44_s27 = sadd.s32 1, %s12433_s25  ;;  %s12437_s26 = sphi %s12555_s26, %s32_s26   ;;  %s12433_s25 = sphi %s12553_s25, %s17487_s25   ;;  %s12429_s2 = sphi %s12551_s2, %s17486_s2  }
   0x9   : > { %17075 = sst [smem:[#allocation3_spill]] %s12437_s26  ;;  %p10325_p0 = scmp.ge.s32.totalorder %s12437_s26, 1 }
   0xa   : > { %p46_p1 = scmp.ge.s32.totalorder %s44_s27, 2  ;;  %p650_p2 = scmp.lt.s32.totalorder %s12437_s26, 3 }
   0xc   : > { %s17489_s27 = smov (%p46_p1, %s44_s27), 0  ;;  %p651_p3 = pnand %p10325_p0, %p650_p2 }
   0xd   : > { %17076 = sst [smem:[#allocation4_spill]] %s17489_s27 }
   0xe   : > { %654 = sbr.rel (%p651_p3) target bundleno = 3988 (0xf94), region = 100 }
  0x15   : > { %p748_p4 = scmp.lt.s32.totalorder %s12429_s2, 1  ;;  %s17077_s0 = sld [smem:[#allocation83_spill]]  ;;  %vm6968_vm0 = vcmask 523264  }
  0x16   : > { %s17078_s23 = sld [smem:[#allocation84_spill]]  ;;  %s17209_s29 = sld [smem:[#allocation87_spill]] }
  0x17   : > { %s17491_s2 = smov (!%p748_p4, %s12429_s2), 1  ;;  %s17211_s20 = sld [smem:[#allocation89_spill]] }
  0x18   : > { %s10716_s3 = sshll.u32 %s17491_s2, 10  ;;  %s10717_s30 = sshll.u32 %s17491_s2, 9 }
  0x19   : > { %s17299_s22 = sld [smem:[#allocation86_spill]]  ;;  %s17351_s24 = sld [smem:[#allocation85_spill]] }
  0x1b   : > { %s12577_s4 = scalar_lea.vmem %s17077_s0, %s10716_s3  ;;  %s10719_s0 = sshll.u32 %s17491_s2, 3 }
  0x1c   : > { %v11342_v0 = vld [vmem:[%s12577_s4 + $0x100] ss:$16 sps:$4 sm:$0xff]   ;;  %s12594_s1 = scalar_lea.vmem %s17078_s23, %s10717_s30  ;;  %v11408_v23 = vld [vmem:[%s12577_s4 + $0x104] ss:$16 sps:$4 sm:$0xff]   ;;  %v11438_v55 = vld [vmem:[%s12577_s4 + $0x108] ss:$16 sps:$4 sm:$0xff]  }
  0x1d   : > { %v11344_v1 = vld [vmem:[%s12577_s4] ss:$16 sps:$4 sm:$0xff]   ;;  %1695 = vxpose.xlu0.c.b16.start [1/8] %v11342_v0, 128  ;;  %v11388_v13 = vld [vmem:[%s12594_s1 + $0x4] ss:$8 sps:$4 sm:$0xff]   ;;  %v11391_v15 = vld [vmem:[%s12594_s1 + $0x14] ss:$8 sps:$4 sm:$0xff]   ;;  %s13572_s5 = scalar_lea.vmem %s17211_s20, %s10716_s3 }
  0x1e   : > { %v11346_v2 = vld [vmem:[%s12577_s4 + $0x120] ss:$16 sps:$4 sm:$0xff]   ;;  %1631 = vxpose.xlu1.c.b16.start [1/8] %v11344_v1, 128  ;;  %2207 = vmatprep.subr.bf16.mxu0 %v11388_v13  ;;  %v11394_v18 = vld [vmem:[%s12594_s1 + $0x24] ss:$8 sps:$4 sm:$0xff]   ;;  %v11397_v22 = vld [vmem:[%s12594_s1 + $0x34] ss:$8 sps:$4 sm:$0xff]  }
  0x1f   : > { %v11349_v3 = vld [vmem:[%s12577_s4 + $0x20] ss:$16 sps:$4 sm:$0xff]   ;;  %v11410_v24 = vld [vmem:[%s12577_s4 + $0x4] ss:$16 sps:$4 sm:$0xff]   ;;  %v11440_v56 = vld [vmem:[%s12577_s4 + $0x8] ss:$16 sps:$4 sm:$0xff]   ;;  %s13983_s23 = scalar_lea.vmem %s17299_s22, %s10719_s0 }
  0x20   : > { %v11352_v4 = vld [vmem:[%s12577_s4 + $0x140] ss:$16 sps:$4 sm:$0xff]   ;;  %v11400_v26 = vld [vmem:[%s12594_s1 + $0x44] ss:$8 sps:$4 sm:$0xff]   ;;  %v11403_v30 = vld [vmem:[%s12594_s1 + $0x54] ss:$8 sps:$4 sm:$0xff]  }
  0x21   : > { %1696 = vxpose.xlu0.c.b16.cont [2/8] %v11346_v2, 128  ;;  %v11355_v5 = vld [vmem:[%s12577_s4 + $0x40] ss:$16 sps:$4 sm:$0xff]   ;;  %v11348_v27 = vld [vmem:[%s12577_s4 + $0x124] ss:$16 sps:$4 sm:$0xff]   ;;  %v11442_v60 = vld [vmem:[%s12577_s4 + $0x128] ss:$16 sps:$4 sm:$0xff]  }
  0x22   : > { %1632 = vxpose.xlu1.c.b16.cont [2/8] %v11349_v3, 128  ;;  %v11358_v6 = vld [vmem:[%s12577_s4 + $0x160] ss:$16 sps:$4 sm:$0xff]   ;;  %v11351_v28 = vld [vmem:[%s12577_s4 + $0x24] ss:$16 sps:$4 sm:$0xff]   ;;  %v11444_v62 = vld [vmem:[%s12577_s4 + $0x28] ss:$16 sps:$4 sm:$0xff]  }
  0x23   : > { %v11361_v7 = vld [vmem:[%s12577_s4 + $0x60] ss:$16 sps:$4 sm:$0xff]   ;;  %v11354_v31 = vld [vmem:[%s12577_s4 + $0x144] ss:$16 sps:$4 sm:$0xff]   ;;  %v11446_v63 = vld [vmem:[%s12577_s4 + $0x148] ss:$16 sps:$4 sm:$0xff]  }
  0x24   : > { %v11364_v8 = vld [vmem:[%s12577_s4 + $0x180] ss:$16 sps:$4 sm:$0xff]   ;;  %v11357_v32 = vld [vmem:[%s12577_s4 + $0x44] ss:$16 sps:$4 sm:$0xff]   ;;  %v11448_v0 = vld [vmem:[%s12577_s4 + $0x48] ss:$16 sps:$4 sm:$0xff]  }
  0x25   : > { %1697 = vxpose.xlu0.c.b16.cont [3/8] %v11352_v4, 128  ;;  %v11367_v9 = vld [vmem:[%s12577_s4 + $0x80] ss:$16 sps:$4 sm:$0xff]   ;;  %v11406_v34 = vld [vmem:[%s12594_s1 + $0x64] ss:$8 sps:$4 sm:$0xff]   ;;  %v11411_v38 = vld [vmem:[%s12594_s1 + $0x74] ss:$8 sps:$4 sm:$0xff]  }
  0x26   : > { %1633 = vxpose.xlu1.c.b16.cont [3/8] %v11355_v5, 128  ;;  %v11370_v10 = vld [vmem:[%s12577_s4 + $0x1a0] ss:$16 sps:$4 sm:$0xff]   ;;  %v11360_v35 = vld [vmem:[%s12577_s4 + $0x164] ss:$16 sps:$4 sm:$0xff]   ;;  %v11450_v4 = vld [vmem:[%s12577_s4 + $0x168] ss:$16 sps:$4 sm:$0xff]  }
  0x27   : > { %v11373_v11 = vld [vmem:[%s12577_s4 + $0xa0] ss:$16 sps:$4 sm:$0xff]   ;;  %v11363_v36 = vld [vmem:[%s12577_s4 + $0x64] ss:$16 sps:$4 sm:$0xff]   ;;  %v11462_v13 = vld [vmem:[%s12577_s4 + $0x1c8] ss:$16 sps:$4 sm:$0xff]  }
  0x28   : > { %v11376_v12 = vld [vmem:[%s12577_s4 + $0x1c0] ss:$16 sps:$4 sm:$0xff]   ;;  %v11366_v39 = vld [vmem:[%s12577_s4 + $0x184] ss:$16 sps:$4 sm:$0xff]   ;;  %s17348_s20 = sld [smem:[#allocation88_spill]]  ;;  %s10721_s0 = sshll.u32 %s17491_s2, 6 }
  0x29   : > { %1698 = vxpose.xlu0.c.b16.cont [4/8] %v11358_v6, 128  ;;  %v11390_v14 = vld [vmem:[%s12594_s1] ss:$8 sps:$4 sm:$0xff]   ;;  %v11393_v17 = vld [vmem:[%s12594_s1 + $0x10] ss:$8 sps:$4 sm:$0xff]   ;;  %v11369_v40 = vld [vmem:[%s12577_s4 + $0x84] ss:$16 sps:$4 sm:$0xff]   ;;  %s14775_s3 = scalar_lea.vmem %s16890_s21, %s10721_s0 }
  0x2a   : > { %1634 = vxpose.xlu1.c.b16.cont [4/8] %v11361_v7, 128  ;;  %v11379_v16 = vld [vmem:[%s12577_s4 + $0xc0] ss:$16 sps:$4 sm:$0xff]   ;;  %2208 = vmatpush1.bf16.msra.mxu0 %v11390_v14  ;;  %v11414_v42 = vld [vmem:[%s12594_s1 + $0x84] ss:$8 sps:$4 sm:$0xff]   ;;  %v11417_v46 = vld [vmem:[%s12594_s1 + $0x94] ss:$8 sps:$4 sm:$0xff]  }
  0x2b   : > { %2209 = vmatprep.subr.bf16.mxu0 %v11391_v15  ;;  %v11382_v19 = vld [vmem:[%s12577_s4 + $0x1e0] ss:$16 sps:$4 sm:$0xff]   ;;  %v11372_v43 = vld [vmem:[%s12577_s4 + $0x1a4] ss:$16 sps:$4 sm:$0xff]   ;;  %v11452_v6 = vld [vmem:[%s12577_s4 + $0x68] ss:$16 sps:$4 sm:$0xff]  }
  0x2c   : > { %v11385_v20 = vld [vmem:[%s12577_s4 + $0xe0] ss:$16 sps:$4 sm:$0xff]   ;;  %v11375_v44 = vld [vmem:[%s12577_s4 + $0xa4] ss:$16 sps:$4 sm:$0xff]   ;;  %v11454_v7 = vld [vmem:[%s12577_s4 + $0x188] ss:$16 sps:$4 sm:$0xff]  }
  0x2d   : > { %1699 = vxpose.xlu0.c.b16.cont [5/8] %v11364_v8, 128  ;;  %v11396_v21 = vld [vmem:[%s12594_s1 + $0x20] ss:$8 sps:$4 sm:$0xff]   ;;  %v11399_v25 = vld [vmem:[%s12594_s1 + $0x30] ss:$8 sps:$4 sm:$0xff]   ;;  %v11378_v47 = vld [vmem:[%s12577_s4 + $0x1c4] ss:$16 sps:$4 sm:$0xff]  }
  0x2e   : > { %1635 = vxpose.xlu1.c.b16.cont [5/8] %v11367_v9, 128  ;;  %2210 = vmatpush1.bf16.msra.mxu0 %v11393_v17  ;;  %v11402_v29 = vld [vmem:[%s12594_s1 + $0x40] ss:$8 sps:$4 sm:$0xff]   ;;  %v11405_v33 = vld [vmem:[%s12594_s1 + $0x50] ss:$8 sps:$4 sm:$0xff]   ;;  %v11381_v48 = vld [vmem:[%s12577_s4 + $0xc4] ss:$16 sps:$4 sm:$0xff]  }
  0x2f   : > { %2211 = vmatprep.subr.bf16.mxu0 %v11394_v18  ;;  %v11409_v37 = vld [vmem:[%s12594_s1 + $0x60] ss:$8 sps:$4 sm:$0xff]   ;;  %v11413_v41 = vld [vmem:[%s12594_s1 + $0x70] ss:$8 sps:$4 sm:$0xff]   ;;  %v11420_v50 = vld [vmem:[%s12594_s1 + $0xa4] ss:$8 sps:$4 sm:$0xff]  }
  0x30   : > { %v11416_v45 = vld [vmem:[%s12594_s1 + $0x80] ss:$8 sps:$4 sm:$0xff]   ;;  %v11419_v49 = vld [vmem:[%s12594_s1 + $0x90] ss:$8 sps:$4 sm:$0xff]   ;;  %v11384_v51 = vld [vmem:[%s12577_s4 + $0x1e4] ss:$16 sps:$4 sm:$0xff]  }
  0x31   : > { %1700 = vxpose.xlu0.c.b16.cont [6/8] %v11370_v10, 128  ;;  %v11387_v52 = vld [vmem:[%s12577_s4 + $0xe4] ss:$16 sps:$4 sm:$0xff]   ;;  %v11422_v53 = vld [vmem:[%s12594_s1 + $0xa0] ss:$8 sps:$4 sm:$0xff]   ;;  %v11425_v57 = vld [vmem:[%s12594_s1 + $0xb0] ss:$8 sps:$4 sm:$0xff]  }
  0x32   : > { %1636 = vxpose.xlu1.c.b16.cont [6/8] %v11373_v11, 128  ;;  %2212 = vmatpush1.bf16.msra.mxu0 %v11396_v21  ;;  %v11423_v54 = vld [vmem:[%s12594_s1 + $0xb4] ss:$8 sps:$4 sm:$0xff]   ;;  %v11426_v58 = vld [vmem:[%s12594_s1 + $0xc4] ss:$8 sps:$4 sm:$0xff]   ;;  %v11428_v59 = vld [vmem:[%s12594_s1 + $0xc0] ss:$8 sps:$4 sm:$0xff]  }
  0x33   : > { %2213 = vmatprep.subr.bf16.mxu0 %v11397_v22  ;;  %v11429_v61 = vld [vmem:[%s12594_s1 + $0xd4] ss:$8 sps:$4 sm:$0xff]   ;;  %v11431_v1 = vld [vmem:[%s12594_s1 + $0xd0] ss:$8 sps:$4 sm:$0xff]   ;;  %v11432_v2 = vld [vmem:[%s12594_s1 + $0xe4] ss:$8 sps:$4 sm:$0xff]  }
  0x34   : > { %v11434_v3 = vld [vmem:[%s12594_s1 + $0xe0] ss:$8 sps:$4 sm:$0xff]   ;;  %v11435_v5 = vld [vmem:[%s12594_s1 + $0xf4] ss:$8 sps:$4 sm:$0xff]   ;;  %v11437_v9 = vld [vmem:[%s12594_s1 + $0xf0] ss:$8 sps:$4 sm:$0xff]  }
  0x35   : > { %1701 = vxpose.xlu0.c.b16.cont [7/8] %v11376_v12, 128  ;;  %v11456_v8 = vld [vmem:[%s12577_s4 + $0x88] ss:$16 sps:$4 sm:$0xff]   ;;  %v11472_v10 = vld [vmem:[%s12594_s1 + $0x104] ss:$8 sps:$4 sm:$0xff]  }
  0x36   : > { %1637 = vxpose.xlu1.c.b16.cont [7/8] %v11379_v16, 128  ;;  %2214 = vmatpush1.bf16.msra.mxu0 %v11399_v25  ;;  %v11458_v11 = vld [vmem:[%s12577_s4 + $0x1a8] ss:$16 sps:$4 sm:$0xff]   ;;  %v11476_v17 = vld [vmem:[%s12577_s4 + $0x10c] ss:$16 sps:$4 sm:$0xff]  }
  0x37   : > { %2215 = vmatprep.subr.bf16.mxu0 %v11400_v26  ;;  %v11460_v12 = vld [vmem:[%s12577_s4 + $0xa8] ss:$16 sps:$4 sm:$0xff]   ;;  %v12668_v18 = vld [vmem:[%s12577_s4 + $0xc] ss:$16 sps:$4 sm:$0xff]  }
  0x38   : > { %v11464_v14 = vld [vmem:[%s12577_s4 + $0xc8] ss:$16 sps:$4 sm:$0xff]   ;;  %v11480_v21 = vld [vmem:[%s12577_s4 + $0x14c] ss:$16 sps:$4 sm:$0xff]  }
  0x39   : > { %1702 = vxpose.xlu0.c.b16.end [8/8] %v11382_v19, 128  ;;  %v11466_v15 = vld [vmem:[%s12577_s4 + $0x1e8] ss:$16 sps:$4 sm:$0xff]   ;;  %v11478_v19 = vld [vmem:[%s12577_s4 + $0x12c] ss:$16 sps:$4 sm:$0xff]  }
  0x3a   : > { %1638 = vxpose.xlu1.c.b16.end [8/8] %v11385_v20, 128  ;;  %2216 = vmatpush1.bf16.msra.mxu0 %v11402_v29  ;;  %v11468_v16 = vld [vmem:[%s12577_s4 + $0xe8] ss:$16 sps:$4 sm:$0xff]   ;;  %v11479_v20 = vld [vmem:[%s12577_s4 + $0x2c] ss:$16 sps:$4 sm:$0xff]  }
  0x3b   : > { %2217 = vmatprep.subr.bf16.mxu0 %v11403_v30  ;;  %v11470_v22 = vld [vmem:[%s12594_s1 + $0x100] ss:$8 sps:$4 sm:$0xff]   ;;  %v11485_v29 = vld [vmem:[%s12577_s4 + $0x16c] ss:$16 sps:$4 sm:$0xff]  }
  0x3c   : > { %v12681_v30 = vld [vmem:[%s12577_s4 + $0x6c] ss:$16 sps:$4 sm:$0xff]  }
  0x3d   : > { %1711 = vxpose.xlu0.c.b16.start [1/8] %v11408_v23, 128  ;;  %v11481_v23 = vld [vmem:[%s12577_s4 + $0x4c] ss:$16 sps:$4 sm:$0xff]  }
  0x3e   : > { %1647 = vxpose.xlu1.c.b16.start [1/8] %v11410_v24, 128  ;;  %2218 = vmatpush1.bf16.msra.mxu0 %v11405_v33  ;;  %v11475_v24 = vld [vmem:[%s12594_s1 + $0x114] ss:$8 sps:$4 sm:$0xff]   ;;  %v11482_v33 = vld [vmem:[%s12594_s1 + $0x120] ss:$8 sps:$4 sm:$0xff]  }
  0x3f   : > { %2219 = vmatprep.subr.bf16.mxu0 %v11406_v34  ;;  %v12686_v34 = vld [vmem:[%s12577_s4 + $0x8c] ss:$16 sps:$4 sm:$0xff]  }
  0x41   : > { %1712 = vxpose.xlu0.c.b16.cont [2/8] %v11348_v27, 128  ;;  %v11473_v27 = vld [vmem:[%s12594_s1 + $0x110] ss:$8 sps:$4 sm:$0xff]  }
  0x42   : > { %1648 = vxpose.xlu1.c.b16.cont [2/8] %v11351_v28, 128  ;;  %2220 = vmatpush1.bf16.msra.mxu0 %v11409_v37  ;;  %v11484_v28 = vld [vmem:[%s12594_s1 + $0x124] ss:$8 sps:$4 sm:$0xff]  }
  0x43   : > { %2221 = vmatprep.subr.bf16.mxu0 %v11411_v38  ;;  %v11489_v38 = vld [vmem:[%s12577_s4 + $0x1ac] ss:$16 sps:$4 sm:$0xff]  }
  0x45   : > { %1713 = vxpose.xlu0.c.b16.cont [3/8] %v11354_v31, 128 }
  0x46   : > { %1649 = vxpose.xlu1.c.b16.cont [3/8] %v11357_v32, 128  ;;  %2222 = vmatpush1.bf16.msra.mxu0 %v11413_v41  ;;  %v11487_v32 = vld [vmem:[%s12577_s4 + $0x18c] ss:$16 sps:$4 sm:$0xff]  }
  0x47   : > { %2223 = vmatprep.subr.bf16.mxu0 %v11414_v42  ;;  %v11500_v41 = vld [vmem:[%s12594_s1 + $0x144] ss:$8 sps:$4 sm:$0xff]  }
  0x48   : > { %v12698_v42 = vld [vmem:[%s12577_s4 + $0x1cc] ss:$16 sps:$4 sm:$0xff]  }
  0x49   : > { %1714 = vxpose.xlu0.c.b16.cont [4/8] %v11360_v35, 128  ;;  %v11495_v35 = vld [vmem:[%s12594_s1 + $0x134] ss:$8 sps:$4 sm:$0xff]  }
  0x4a   : > { %1650 = vxpose.xlu1.c.b16.cont [4/8] %v11363_v36, 128  ;;  %2224 = vmatpush1.bf16.msra.mxu0 %v11416_v45 }
  0x4b   : > { %2225 = vmatprep.subr.bf16.mxu0 %v11417_v46 }
  0x4d   : > { %1715 = vxpose.xlu0.c.b16.cont [5/8] %v11366_v39, 128  ;;  %v11493_v39 = vld [vmem:[%s12594_s1 + $0x130] ss:$8 sps:$4 sm:$0xff]  }
  0x4e   : > { %1651 = vxpose.xlu1.c.b16.cont [5/8] %v11369_v40, 128  ;;  %2226 = vmatpush1.bf16.msra.mxu0 %v11419_v49  ;;  %v12693_v40 = vld [vmem:[%s12577_s4 + $0xac] ss:$16 sps:$4 sm:$0xff]  }
  0x4f   : > { %2227 = vmatprep.subr.bf16.mxu0 %v11420_v50  ;;  %v11503_v49 = vld [vmem:[%s12594_s1 + $0x154] ss:$8 sps:$4 sm:$0xff]   ;;  %v11501_v50 = vld [vmem:[%s12594_s1 + $0x150] ss:$8 sps:$4 sm:$0xff]  }
  0x51   : > { %1716 = vxpose.xlu0.c.b16.cont [6/8] %v11372_v43, 128  ;;  %v11498_v43 = vld [vmem:[%s12594_s1 + $0x140] ss:$8 sps:$4 sm:$0xff]  }
  0x52   : > { %1652 = vxpose.xlu1.c.b16.cont [6/8] %v11375_v44, 128  ;;  %2228 = vmatpush1.bf16.msra.mxu0 %v11422_v53  ;;  %v12702_v44 = vld [vmem:[%s12577_s4 + $0xcc] ss:$16 sps:$4 sm:$0xff]  }
  0x53   : > { %2229 = vmatprep.subr.bf16.mxu0 %v11423_v54  ;;  %v11506_v54 = vld [vmem:[%s12577_s4 + $0x200] ss:$16 sps:$4 sm:$0xff]  }
  0x55   : > { %1717 = vxpose.xlu0.c.b16.cont [7/8] %v11378_v47, 128  ;;  %v12706_v47 = vld [vmem:[%s12577_s4 + $0x1ec] ss:$16 sps:$4 sm:$0xff]  }
  0x56   : > { %1653 = vxpose.xlu1.c.b16.cont [7/8] %v11381_v48, 128  ;;  %2230 = vmatpush1.bf16.msra.mxu0 %v11425_v57  ;;  %v12710_v48 = vld [vmem:[%s12577_s4 + $0xec] ss:$16 sps:$4 sm:$0xff]   ;;  %v11512_v57 = vld [vmem:[%s12577_s4 + $0x340] ss:$16 sps:$4 sm:$0xff]  }
  0x57   : > { %2231 = vmatprep.subr.bf16.mxu0 %v11426_v58 }
  0x59   : > { %1718 = vxpose.xlu0.c.b16.end [8/8] %v11384_v51, 128  ;;  %v11504_v51 = vld [vmem:[%s12577_s4 + $0x300] ss:$16 sps:$4 sm:$0xff]  }
  0x5a   : > { %1654 = vxpose.xlu1.c.b16.end [8/8] %v11387_v52, 128  ;;  %2232 = vmatpush1.bf16.msra.mxu0 %v11428_v59 }
  0x5b   : > { %2233 = vmatprep.subr.bf16.mxu0 %v11429_v61  ;;  %v11516_v61 = vld [vmem:[%s12594_s1 + $0x160] ss:$8 sps:$4 sm:$0xff]  }
  0x5d   : > { %1727 = vxpose.xlu0.c.b16.start [1/8] %v11438_v55, 128  ;;  %v11508_v55 = vld [vmem:[%s12577_s4 + $0x320] ss:$16 sps:$4 sm:$0xff]  }
  0x5e   : > { %1663 = vxpose.xlu1.c.b16.start [1/8] %v11440_v56, 128  ;;  %2234 = vmatpush1.bf16.msra.mxu0 %v11431_v1  ;;  %v11510_v56 = vld [vmem:[%s12577_s4 + $0x220] ss:$16 sps:$4 sm:$0xff]  }
  0x5f   : > { %2235 = vmatprep.subr.bf16.mxu0 %v11432_v2  ;;  %v11523_v1 = vld [vmem:[%s12577_s4 + $0x380] ss:$16 sps:$4 sm:$0xff]  }
  0x61   : > { %1728 = vxpose.xlu0.c.b16.cont [2/8] %v11442_v60, 128  ;;  %v11514_v60 = vld [vmem:[%s12577_s4 + $0x240] ss:$16 sps:$4 sm:$0xff]  }
  0x62   : > { %1664 = vxpose.xlu1.c.b16.cont [2/8] %v11444_v62, 128  ;;  %2236 = vmatpush1.bf16.msra.mxu0 %v11434_v3  ;;  %v11518_v62 = vld [vmem:[%s12594_s1 + $0x164] ss:$8 sps:$4 sm:$0xff]  }
  0x63   : > { %2237 = vmatprep.subr.bf16.mxu0 %v11435_v5  ;;  %v11527_v5 = vld [vmem:[%s12577_s4 + $0x3a0] ss:$16 sps:$4 sm:$0xff]  }
  0x65   : > { %1729 = vxpose.xlu0.c.b16.cont [3/8] %v11446_v63, 128  ;;  %v11519_v63 = vld [vmem:[%s12577_s4 + $0x360] ss:$16 sps:$4 sm:$0xff]  }
  0x66   : > { %1665 = vxpose.xlu1.c.b16.cont [3/8] %v11448_v0, 128  ;;  %2238 = vmatpush1.bf16.msra.mxu0 %v11437_v9  ;;  %v11521_v0 = vld [vmem:[%s12577_s4 + $0x260] ss:$16 sps:$4 sm:$0xff]  }
  0x67   : > { %2560 = vmatprep.subr.bf16.mxu0 %v11472_v10  ;;  %v11533_v10 = vld [vmem:[%s12577_s4 + $0x2c0] ss:$16 sps:$4 sm:$0xff]  }
  0x69   : > { %1730 = vxpose.xlu0.c.b16.cont [4/8] %v11450_v4, 128  ;;  %v11525_v4 = vld [vmem:[%s12577_s4 + $0x280] ss:$16 sps:$4 sm:$0xff]  }
  0x6a   : > { %1666 = vxpose.xlu1.c.b16.cont [4/8] %v11452_v6, 128  ;;  %v11529_v6 = vld [vmem:[%s12577_s4 + $0x2a0] ss:$16 sps:$4 sm:$0xff]  }
  0x6d   : > { %1731 = vxpose.xlu0.c.b16.cont [5/8] %v11454_v7, 128  ;;  %v11531_v7 = vld [vmem:[%s12577_s4 + $0x3c0] ss:$16 sps:$4 sm:$0xff]  }
  0x6e   : > { %1667 = vxpose.xlu1.c.b16.cont [5/8] %v11456_v8, 128 }
  0x71   : > { %1732 = vxpose.xlu0.c.b16.cont [6/8] %v11458_v11, 128  ;;  %v11535_v11 = vld [vmem:[%s12594_s1 + $0x170] ss:$8 sps:$4 sm:$0xff]  }
  0x72   : > { %1668 = vxpose.xlu1.c.b16.cont [6/8] %v11460_v12, 128  ;;  %v11537_v12 = vld [vmem:[%s12594_s1 + $0x174] ss:$8 sps:$4 sm:$0xff]  }
  0x75   : > { %1733 = vxpose.xlu0.c.b16.cont [7/8] %v11462_v13, 128  ;;  %v11538_v13 = vld [vmem:[%s12577_s4 + $0x3e0] ss:$16 sps:$4 sm:$0xff]  }
  0x76   : > { %1669 = vxpose.xlu1.c.b16.cont [7/8] %v11464_v14, 128  ;;  %v11540_v14 = vld [vmem:[%s12577_s4 + $0x2e0] ss:$16 sps:$4 sm:$0xff]  }
  0x79   : > { %1734 = vxpose.xlu0.c.b16.end [8/8] %v11466_v15, 128 }
  0x7a   : > { %1670 = vxpose.xlu1.c.b16.end [8/8] %v11468_v16, 128 }
  0x7d   : > { %1743 = vxpose.xlu0.c.b16.start [1/8] %v11476_v17, 128 }
  0x7e   : > { %1679 = vxpose.xlu1.c.b16.start [1/8] %v12668_v18, 128 }
  0x81   : > { %1744 = vxpose.xlu0.c.b16.cont [2/8] %v11478_v19, 128 }
  0x82   : > { %1680 = vxpose.xlu1.c.b16.cont [2/8] %v11479_v20, 128  ;;  %v11542_v20 = vld [vmem:[%s12594_s1 + $0x180] ss:$8 sps:$4 sm:$0xff]  }
  0x83   : > { %v1703_v25 = vpop.trf.xlu0 }
  0x84   : > { %2239 = vmatprep.mubr.bf16.mxu0 %v1703_v25  ;;  %v1639_v26 = vpop.trf.xlu1 }
  0x85   : > { %2240 = vmatmul.mubr.bf16.vlgmr.msra.gmra.mrb[0].mxu0 %v1639_v26  ;;  %1745 = vxpose.xlu0.c.b16.cont [3/8] %v11480_v21, 128  ;;  %v11544_v21 = vld [vmem:[%s12594_s1 + $0x184] ss:$8 sps:$4 sm:$0xff]   ;;  %v11545_v26 = vld [vmem:[%s12594_s1 + $0x190] ss:$8 sps:$4 sm:$0xff]  }
  0x86   : > { %2561 = vmatpush1.bf16.msra.mxu0 %v11470_v22  ;;  %1681 = vxpose.xlu1.c.b16.cont [3/8] %v11481_v23, 128 }
  0x87   : > { %v1704_v31 = vpop.trf.xlu0  ;;  %2562 = vmatprep.subr.bf16.mxu0 %v11475_v24 }
  0x88   : > { %2249 = vmatprep.mubr.bf16.mxu0 %v1704_v31  ;;  %v1640_v36 = vpop.trf.xlu1 }
  0x89   : > { %1746 = vxpose.xlu0.c.b16.cont [4/8] %v11485_v29, 128 }
  0x8a   : > { %2563 = vmatpush1.bf16.msra.mxu0 %v11473_v27  ;;  %1682 = vxpose.xlu1.c.b16.cont [4/8] %v12681_v30, 128  ;;  %v11547_v27 = vld [vmem:[%s12594_s1 + $0x194] ss:$8 sps:$4 sm:$0xff]  }
  0x8b   : > { %v1705_v37 = vpop.trf.xlu0  ;;  %2564 = vmatprep.subr.bf16.mxu0 %v11484_v28  ;;  %v11548_v28 = vld [vmem:[%s12577_s4 + $0x304] ss:$16 sps:$4 sm:$0xff]  }
  0x8c   : > { %v1641_v45 = vpop.trf.xlu1 }
  0x8d   : > { %2250 = vmatmul.mubr.bf16.gmra.mrb[4].mxu0 %v1640_v36  ;;  %1747 = vxpose.xlu0.c.b16.cont [5/8] %v11487_v32, 128  ;;  %v11549_v32 = vld [vmem:[%s12577_s4 + $0x204] ss:$16 sps:$4 sm:$0xff]  }
  0x8e   : > { %2259 = vmatprep.mubr.bf16.mxu0 %v1705_v37  ;;  %2565 = vmatpush1.bf16.msra.mxu0 %v11482_v33  ;;  %v11550_v33 = vld [vmem:[%s12577_s4 + $0x324] ss:$16 sps:$4 sm:$0xff]  }
  0x8f   : > { %1683 = vxpose.xlu1.c.b16.cont [5/8] %v12686_v34, 128  ;;  %2566 = vmatprep.subr.bf16.mxu0 %v11495_v35  ;;  %v1706_v46 = vpop.trf.xlu0  ;;  %v11551_v35 = vld [vmem:[%s12577_s4 + $0x224] ss:$16 sps:$4 sm:$0xff]  }
  0x90   : > { %v1642_v52 = vpop.trf.xlu1  ;;  %v11552_v36 = vld [vmem:[%s12577_s4 + $0x344] ss:$16 sps:$4 sm:$0xff]  }
  0x91   : > { %1748 = vxpose.xlu0.c.b16.cont [6/8] %v11489_v38, 128 }
  0x92   : > { %2567 = vmatpush1.bf16.msra.mxu0 %v11493_v39  ;;  %v11553_v39 = vld [vmem:[%s12577_s4 + $0x244] ss:$16 sps:$4 sm:$0xff]  }
  0x93   : > { %1684 = vxpose.xlu1.c.b16.cont [6/8] %v12693_v40, 128  ;;  %2568 = vmatprep.subr.bf16.mxu0 %v11500_v41  ;;  %v1707_v53 = vpop.trf.xlu0  ;;  %v11554_v41 = vld [vmem:[%s12594_s1 + $0x1a0] ss:$8 sps:$4 sm:$0xff]  }
  0x94   : > { %v1643_v58 = vpop.trf.xlu1 }
  0x95   : > { %2260 = vmatmul.mubr.bf16.gmra.mrb[8].mxu0 %v1641_v45  ;;  %1749 = vxpose.xlu0.c.b16.cont [7/8] %v12698_v42, 128  ;;  %v11557_v45 = vld [vmem:[%s12577_s4 + $0x364] ss:$16 sps:$4 sm:$0xff]  }
  0x96   : > { %2269 = vmatprep.mubr.bf16.mxu0 %v1706_v46  ;;  %2569 = vmatpush1.bf16.msra.mxu0 %v11498_v43  ;;  %v11556_v43 = vld [vmem:[%s12594_s1 + $0x1a4] ss:$8 sps:$4 sm:$0xff]  }
  0x97   : > { %1685 = vxpose.xlu1.c.b16.cont [7/8] %v12702_v44, 128  ;;  %2570 = vmatprep.subr.bf16.mxu0 %v11503_v49  ;;  %v1708_v59 = vpop.trf.xlu0  ;;  %v11558_v46 = vld [vmem:[%s12577_s4 + $0x264] ss:$16 sps:$4 sm:$0xff]  }
  0x98   : > { %v1644_v2 = vpop.trf.xlu1  ;;  %v11559_v49 = vld [vmem:[%s12577_s4 + $0x384] ss:$16 sps:$4 sm:$0xff]  }
  0x99   : > { %1750 = vxpose.xlu0.c.b16.end [8/8] %v12706_v47, 128 }
  0x9a   : > { %2571 = vmatpush1.bf16.msra.mxu0 %v11501_v50 }
  0x9b   : > { %1686 = vxpose.xlu1.c.b16.end [8/8] %v12710_v48, 128  ;;  %2572 = vmatprep.subr.bf16.mxu0 %v11518_v62  ;;  %v1709_v3 = vpop.trf.xlu0  ;;  %v11570_v62 = vld [vmem:[%s12577_s4 + $0x2c4] ss:$16 sps:$4 sm:$0xff]  }
  0x9c   : > { %v1645_v8 = vpop.trf.xlu1 }
  0x9d   : > { %2270 = vmatmul.mubr.bf16.gmra.mrb[12].mxu0 %v1642_v52  ;;  %1823 = vxpose.xlu0.c.b16.start [1/8] %v11504_v51, 128  ;;  %v11560_v52 = vld [vmem:[%s12577_s4 + $0x284] ss:$16 sps:$4 sm:$0xff]  }
  0x9e   : > { %2279 = vmatprep.mubr.bf16.mxu0 %v1707_v53  ;;  %2573 = vmatpush1.bf16.msra.mxu0 %v11516_v61  ;;  %v11561_v53 = vld [vmem:[%s12577_s4 + $0x3a4] ss:$16 sps:$4 sm:$0xff]   ;;  %v11567_v61 = vld [vmem:[%s12594_s1 + $0x1c0] ss:$8 sps:$4 sm:$0xff]  }
  0x9f   : > { %1759 = vxpose.xlu1.c.b16.start [1/8] %v11506_v54, 128  ;;  %v1710_v9 = vpop.trf.xlu0  ;;  %2574 = vmatprep.subr.bf16.mxu0 %v11537_v12  ;;  %v11562_v54 = vld [vmem:[%s12594_s1 + $0x1b0] ss:$8 sps:$4 sm:$0xff]  }
  0xa0   : > { %v1646_v15 = vpop.trf.xlu1 }
  0xa1   : > { %1824 = vxpose.xlu0.c.b16.cont [2/8] %v11508_v55, 128  ;;  %v11564_v55 = vld [vmem:[%s12594_s1 + $0x1b4] ss:$8 sps:$4 sm:$0xff]  }
  0xa2   : > { %2575 = vmatpush1.bf16.msra.mxu0 %v11535_v11 }
  0xa3   : > { %1760 = vxpose.xlu1.c.b16.cont [2/8] %v11510_v56, 128  ;;  %v1719_v16 = vpop.trf.xlu0  ;;  %2576 = vmatprep.subr.bf16.mxu0 %v11544_v21  ;;  %v11565_v56 = vld [vmem:[%s12577_s4 + $0x2a4] ss:$16 sps:$4 sm:$0xff]   ;;  %v11590_v21 = vld [vmem:[%s12577_s4 + $0x348] ss:$16 sps:$4 sm:$0xff]  }
  0xa4   : > { %v1655_v17 = vpop.trf.xlu1 }
  0xa5   : > { %2280 = vmatmul.mubr.bf16.gmra.mrb[16].mxu0 %v1643_v58  ;;  %1825 = vxpose.xlu0.c.b16.cont [3/8] %v11512_v57, 128  ;;  %v11566_v57 = vld [vmem:[%s12577_s4 + $0x3c4] ss:$16 sps:$4 sm:$0xff]  }
  0xa6   : > { %2289 = vmatprep.mubr.bf16.mxu0 %v1708_v59  ;;  %2577 = vmatpush1.bf16.msra.mxu0 %v11542_v20  ;;  %v11588_v20 = vld [vmem:[%s12577_s4 + $0x228] ss:$16 sps:$4 sm:$0xff]  }
  0xa7   : > { %1761 = vxpose.xlu1.c.b16.cont [3/8] %v11514_v60, 128  ;;  %v1720_v19 = vpop.trf.xlu0  ;;  %2578 = vmatprep.subr.bf16.mxu0 %v11547_v27  ;;  %v11569_v60 = vld [vmem:[%s12594_s1 + $0x1c4] ss:$8 sps:$4 sm:$0xff]   ;;  %v11598_v27 = vld [vmem:[%s12577_s4 + $0x388] ss:$16 sps:$4 sm:$0xff]  }
  0xa8   : > { %v1656_v22 = vpop.trf.xlu1 }
  0xa9   : > { %1826 = vxpose.xlu0.c.b16.cont [4/8] %v11519_v63, 128  ;;  %v11571_v63 = vld [vmem:[%s12577_s4 + $0x3e4] ss:$16 sps:$4 sm:$0xff]  }
  0xaa   : > { %2579 = vmatpush1.bf16.msra.mxu0 %v11545_v26  ;;  %v11596_v26 = vld [vmem:[%s12577_s4 + $0x268] ss:$16 sps:$4 sm:$0xff]  }
  0xab   : > { %1762 = vxpose.xlu1.c.b16.cont [4/8] %v11521_v0, 128  ;;  %v1721_v23 = vpop.trf.xlu0  ;;  %2580 = vmatprep.subr.bf16.mxu0 %v11556_v43  ;;  %v11574_v0 = vld [vmem:[%s12594_s1 + $0x1d4] ss:$8 sps:$4 sm:$0xff]  }
  0xac   : > { %v1657_v24 = vpop.trf.xlu1 }
  0xad   : > { %2290 = vmatmul.mubr.bf16.gmra.mrb[20].mxu0 %v1644_v2  ;;  %1827 = vxpose.xlu0.c.b16.cont [5/8] %v11523_v1, 128  ;;  %v11575_v1 = vld [vmem:[%s12577_s4 + $0x2e4] ss:$16 sps:$4 sm:$0xff]   ;;  %v11572_v2 = vld [vmem:[%s12594_s1 + $0x1d0] ss:$8 sps:$4 sm:$0xff]  }
  0xae   : > { %2299 = vmatprep.mubr.bf16.mxu0 %v1709_v3  ;;  %2581 = vmatpush1.bf16.msra.mxu0 %v11554_v41  ;;  %v11612_v41 = vld [vmem:[%s12577_s4 + $0x2e8] ss:$16 sps:$4 sm:$0xff]  }
  0xaf   : > { %1763 = vxpose.xlu1.c.b16.cont [5/8] %v11525_v4, 128  ;;  %v1722_v25 = vpop.trf.xlu0  ;;  %2582 = vmatprep.subr.bf16.mxu0 %v11564_v55 }
  0xb0   : > { %v1658_v29 = vpop.trf.xlu1 }
  0xb1   : > { %1828 = vxpose.xlu0.c.b16.cont [6/8] %v11527_v5, 128  ;;  %v11578_v5 = vld [vmem:[%s12594_s1 + $0x1e4] ss:$8 sps:$4 sm:$0xff]  }
  0xb2   : > { %2583 = vmatpush1.bf16.msra.mxu0 %v11562_v54  ;;  %v11614_v54 = vld [vmem:[%s12577_s4 + $0x30c] ss:$16 sps:$4 sm:$0xff]  }
  0xb3   : > { %1764 = vxpose.xlu1.c.b16.cont [6/8] %v11529_v6, 128  ;;  %v1723_v31 = vpop.trf.xlu0  ;;  %2584 = vmatprep.subr.bf16.mxu0 %v11569_v60  ;;  %v11576_v6 = vld [vmem:[%s12594_s1 + $0x1e0] ss:$8 sps:$4 sm:$0xff]   ;;  %v11618_v60 = vld [vmem:[%s12577_s4 + $0x34c] ss:$16 sps:$4 sm:$0xff]  }
  0xb4   : > { %v1659_v37 = vpop.trf.xlu1 }
  0xb5   : > { %2300 = vmatmul.mubr.bf16.gmra.mrb[24].mxu0 %v1645_v8  ;;  %1829 = vxpose.xlu0.c.b16.cont [7/8] %v11531_v7, 128  ;;  %v11581_v7 = vld [vmem:[%s12594_s1 + $0x1f4] ss:$8 sps:$4 sm:$0xff]   ;;  %v11579_v8 = vld [vmem:[%s12594_s1 + $0x1f0] ss:$8 sps:$4 sm:$0xff]  }
  0xb6   : > { %2309 = vmatprep.mubr.bf16.mxu0 %v1710_v9  ;;  %2585 = vmatpush1.bf16.msra.mxu0 %v11567_v61 }
  0xb7   : > { %1765 = vxpose.xlu1.c.b16.cont [7/8] %v11533_v10, 128  ;;  %v1724_v38 = vpop.trf.xlu0  ;;  %2586 = vmatprep.subr.bf16.mxu0 %v11574_v0  ;;  %v11620_v0 = vld [vmem:[%s12577_s4 + $0x36c] ss:$16 sps:$4 sm:$0xff]  }
  0xb8   : > { %v1660_v50 = vpop.trf.xlu1 }
  0xb9   : > { %1830 = vxpose.xlu0.c.b16.end [8/8] %v11538_v13, 128 }
  0xba   : > { %2587 = vmatpush1.bf16.msra.mxu0 %v11572_v2  ;;  %v11622_v2 = vld [vmem:[%s12577_s4 + $0x38c] ss:$16 sps:$4 sm:$0xff]  }
  0xbb   : > { %1766 = vxpose.xlu1.c.b16.end [8/8] %v11540_v14, 128  ;;  %v1725_v51 = vpop.trf.xlu0  ;;  %2588 = vmatprep.subr.bf16.mxu0 %v11578_v5  ;;  %v11623_v5 = vld [vmem:[%s12577_s4 + $0x28c] ss:$16 sps:$4 sm:$0xff]  }
  0xbc   : > { %v1661_v58 = vpop.trf.xlu1 }
  0xbd   : > { %2310 = vmatmul.mubr.bf16.gmra.mrb[28].mxu0 %v1646_v15  ;;  %1839 = vxpose.xlu0.c.b16.start [1/8] %v11548_v28, 128  ;;  %v11582_v15 = vld [vmem:[%s12577_s4 + $0x308] ss:$16 sps:$4 sm:$0xff]  }
  0xbe   : > { %2319 = vmatprep.mubr.bf16.mxu0 %v1719_v16  ;;  %2589 = vmatpush1.bf16.msra.mxu0 %v11576_v6  ;;  %v11624_v6 = vld [vmem:[%s12577_s4 + $0x3ac] ss:$16 sps:$4 sm:$0xff]  }
  0xbf   : > { %1775 = vxpose.xlu1.c.b16.start [1/8] %v11549_v32, 128  ;;  %v1726_v59 = vpop.trf.xlu0  ;;  %2590 = vmatprep.subr.bf16.mxu0 %v11581_v7  ;;  %v11602_v32 = vld [vmem:[%s12577_s4 + $0x3a8] ss:$16 sps:$4 sm:$0xff]   ;;  %v11625_v7 = vld [vmem:[%s12577_s4 + $0x2ac] ss:$16 sps:$4 sm:$0xff]  }
  0xc0   : > { %v1662_v3 = vpop.trf.xlu1 }
  0xc1   : > { %1840 = vxpose.xlu0.c.b16.cont [2/8] %v11550_v33, 128  ;;  %v11604_v33 = vld [vmem:[%s12577_s4 + $0x2a8] ss:$16 sps:$4 sm:$0xff]  }
  0xc2   : > { %2591 = vmatpush1.bf16.msra.mxu0 %v11579_v8  ;;  %v11626_v8 = vld [vmem:[%s12577_s4 + $0x3cc] ss:$16 sps:$4 sm:$0xff]  }
  0xc3   : > { %1776 = vxpose.xlu1.c.b16.cont [2/8] %v11551_v35, 128  ;;  %v1735_v4 = vpop.trf.xlu0  ;;  %5473 = vmatprep.subr.bf16.mxu0 %v12668_v18  ;;  %v11584_v18 = vld [vmem:[%s12577_s4 + $0x208] ss:$16 sps:$4 sm:$0xff]  }
  0xc4   : > { %v1671_v9 = vpop.trf.xlu1  ;;  %v11606_v35 = vld [vmem:[%s12577_s4 + $0x3c8] ss:$16 sps:$4 sm:$0xff]  }
  0xc5   : > { %2320 = vmatmul.mubr.bf16.gmra.mrb[32].mxu0 %v1655_v17  ;;  %1841 = vxpose.xlu0.c.b16.cont [3/8] %v11552_v36, 128 }
  0xc6   : > { %2329 = vmatprep.mubr.bf16.mxu0 %v1720_v19  ;;  %v11586_v19 = vld [vmem:[%s12577_s4 + $0x328] ss:$16 sps:$4 sm:$0xff]  }
  0xc7   : > { %1777 = vxpose.xlu1.c.b16.cont [3/8] %v11553_v39, 128  ;;  %v1736_v10 = vpop.trf.xlu0  ;;  %v11610_v39 = vld [vmem:[%s12577_s4 + $0x3e8] ss:$16 sps:$4 sm:$0xff]  }
  0xc8   : > { %v1672_v11 = vpop.trf.xlu1 }
  0xc9   : > { %1842 = vxpose.xlu0.c.b16.cont [4/8] %v11557_v45, 128 }
  0xcb   : > { %1778 = vxpose.xlu1.c.b16.cont [4/8] %v11558_v46, 128  ;;  %v1737_v12 = vpop.trf.xlu0 }
  0xcc   : > { %v1673_v13 = vpop.trf.xlu1 }
  0xcd   : > { %2330 = vmatmul.mubr.bf16.gmra.mrb[36].mxu0 %v1656_v22  ;;  %1843 = vxpose.xlu0.c.b16.cont [5/8] %v11559_v49, 128 }
  0xce   : > { %2339 = vmatprep.mubr.bf16.mxu0 %v1721_v23 }
  0xcf   : > { %1779 = vxpose.xlu1.c.b16.cont [5/8] %v11560_v52, 128  ;;  %v1738_v14 = vpop.trf.xlu0 }
  0xd0   : > { %v1674_v16 = vpop.trf.xlu1 }
  0xd1   : > { %1844 = vxpose.xlu0.c.b16.cont [6/8] %v11561_v53, 128 }
  0xd3   : > { %1780 = vxpose.xlu1.c.b16.cont [6/8] %v11565_v56, 128  ;;  %v1739_v17 = vpop.trf.xlu0 }
  0xd4   : > { %v1675_v22 = vpop.trf.xlu1 }
  0xd5   : > { %2340 = vmatmul.mubr.bf16.gmra.mrb[40].mxu0 %v1657_v24  ;;  %1845 = vxpose.xlu0.c.b16.cont [7/8] %v11566_v57, 128  ;;  %v11592_v24 = vld [vmem:[%s12577_s4 + $0x248] ss:$16 sps:$4 sm:$0xff]   ;;  %v12788_v57 = vld [vmem:[%s12577_s4 + $0x20c] ss:$16 sps:$4 sm:$0xff]  }
  0xd6   : > { %2349 = vmatprep.mubr.bf16.mxu0 %v1722_v25  ;;  %v11594_v25 = vld [vmem:[%s12577_s4 + $0x368] ss:$16 sps:$4 sm:$0xff]  }
  0xd7   : > { %1781 = vxpose.xlu1.c.b16.cont [7/8] %v11570_v62, 128  ;;  %v1740_v23 = vpop.trf.xlu0 }
  0xd8   : > { %v1676_v28 = vpop.trf.xlu1 }
  0xd9   : > { %1846 = vxpose.xlu0.c.b16.end [8/8] %v11571_v63, 128  ;;  %v11619_v63 = vld [vmem:[%s12577_s4 + $0x24c] ss:$16 sps:$4 sm:$0xff]  }
  0xdb   : > { %1782 = vxpose.xlu1.c.b16.end [8/8] %v11575_v1, 128  ;;  %v11621_v1 = vld [vmem:[%s12577_s4 + $0x26c] ss:$16 sps:$4 sm:$0xff]  }
  0xdc   : > { %v1677_v36 = vpop.trf.xlu1 }
  0xdd   : > { %2350 = vmatmul.mubr.bf16.gmra.mrb[44].mxu0 %v1658_v29  ;;  %1855 = vxpose.xlu0.c.b16.start [1/8] %v11582_v15, 128  ;;  %v1741_v29 = vpop.trf.xlu0 }
  0xde   : > { %2359 = vmatprep.mubr.bf16.mxu0 %v1723_v31  ;;  %v11600_v31 = vld [vmem:[%s12577_s4 + $0x288] ss:$16 sps:$4 sm:$0xff]  }
  0xdf   : > { %1791 = vxpose.xlu1.c.b16.start [1/8] %v11584_v18, 128  ;;  %v12213_v18 = vld [vmem:[%s12577_s4 + $0x8] ss:$16 sps:$4 sm:$0xff]  }
  0xe0   : > { %v1678_v43 = vpop.trf.xlu1 }
  0xe1   : > { %1856 = vxpose.xlu0.c.b16.cont [2/8] %v11586_v19, 128  ;;  %v12214_v19 = vld [vmem:[%s12577_s4 + $0x2c] ss:$16 sps:$4 sm:$0xff]  }
  0xe3   : > { %1792 = vxpose.xlu1.c.b16.cont [2/8] %v11588_v20, 128 }
  0xe5   : > { %2360 = vmatmul.mubr.bf16.gmra.mrb[48].mxu0 %v1659_v37  ;;  %1857 = vxpose.xlu0.c.b16.cont [3/8] %v11590_v21, 128  ;;  %v1742_v37 = vpop.trf.xlu0  ;;  %v1687_v46 = vpop.trf.xlu1  ;;  %v12215_v21 = vld [vmem:[%s12577_s4 + $0x28] ss:$16 sps:$4 sm:$0xff]  }
  0xe6   : > { %2369 = vmatprep.mubr.bf16.mxu0 %v1724_v38  ;;  %v11608_v38 = vld [vmem:[%s12577_s4 + $0x2c8] ss:$16 sps:$4 sm:$0xff]  }
  0xe7   : > { %1793 = vxpose.xlu1.c.b16.cont [3/8] %v11592_v24, 128  ;;  %v12217_v24 = vld [vmem:[%s12577_s4 + $0x48] ss:$16 sps:$4 sm:$0xff]  }
  0xe9   : > { %1858 = vxpose.xlu0.c.b16.cont [4/8] %v11594_v25, 128  ;;  %v1751_v45 = vpop.trf.xlu0 }
  0xeb   : > { %1794 = vxpose.xlu1.c.b16.cont [4/8] %v11596_v26, 128  ;;  %v12218_v26 = vld [vmem:[%s12577_s4 + $0x68] ss:$16 sps:$4 sm:$0xff]  }
  0xed   : > { %2370 = vmatmul.mubr.bf16.gmra.mrb[52].mxu0 %v1660_v50  ;;  %1859 = vxpose.xlu0.c.b16.cont [5/8] %v11598_v27, 128  ;;  %v1752_v49 = vpop.trf.xlu0  ;;  %v1688_v50 = vpop.trf.xlu1 }
  0xee   : > { %2379 = vmatprep.mubr.bf16.mxu0 %v1725_v51 }
  0xef   : > { %1795 = vxpose.xlu1.c.b16.cont [5/8] %v11600_v31, 128  ;;  %v12220_v31 = vld [vmem:[%s12577_s4 + $0xa8] ss:$16 sps:$4 sm:$0xff]  }
  0xf1   : > { %1860 = vxpose.xlu0.c.b16.cont [6/8] %v11602_v32, 128  ;;  %v1753_v51 = vpop.trf.xlu0  ;;  %v1689_v52 = vpop.trf.xlu1  ;;  %v12221_v32 = vld [vmem:[%s12577_s4 + $0xc8] ss:$16 sps:$4 sm:$0xff]  }
  0xf3   : > { %1796 = vxpose.xlu1.c.b16.cont [6/8] %v11604_v33, 128  ;;  %v12222_v33 = vld [vmem:[%s12577_s4 + $0xe8] ss:$16 sps:$4 sm:$0xff]  }
  0xf5   : > { %2380 = vmatmul.mubr.bf16.gmra.mrb[56].mxu0 %v1661_v58  ;;  %1861 = vxpose.xlu0.c.b16.cont [7/8] %v11606_v35, 128  ;;  %v1754_v53 = vpop.trf.xlu0  ;;  %v1690_v55 = vpop.trf.xlu1  ;;  %v11616_v58 = vld [vmem:[%s12577_s4 + $0x32c] ss:$16 sps:$4 sm:$0xff]  }
  0xf6   : > { %2389 = vmatprep.mubr.bf16.mxu0 %v1726_v59  ;;  %v11617_v59 = vld [vmem:[%s12577_s4 + $0x22c] ss:$16 sps:$4 sm:$0xff]  }
  0xf7   : > { %1797 = vxpose.xlu1.c.b16.cont [7/8] %v11608_v38, 128  ;;  %v12223_v35 = vld [vmem:[%s12577_s4 + $0x10c] ss:$16 sps:$4 sm:$0xff]   ;;  %v12226_v38 = vld [vmem:[%s12577_s4 + $0x128] ss:$16 sps:$4 sm:$0xff]  }
  0xf9   : > { %1862 = vxpose.xlu0.c.b16.end [8/8] %v11610_v39, 128  ;;  %v1755_v56 = vpop.trf.xlu0  ;;  %v1691_v61 = vpop.trf.xlu1  ;;  %v12227_v39 = vld [vmem:[%s12577_s4 + $0x14c] ss:$16 sps:$4 sm:$0xff]  }
  0xfb   : > { %1798 = vxpose.xlu1.c.b16.end [8/8] %v11612_v41, 128  ;;  %v12228_v41 = vld [vmem:[%s12577_s4 + $0x148] ss:$16 sps:$4 sm:$0xff]  }
  0xfd   : > { %2390 = vmatmul.mubr.bf16.gmra.mrb[60].mxu0 %v1662_v3  ;;  %1871 = vxpose.xlu0.c.b16.start [1/8] %v11614_v54, 128  ;;  %v1756_v62 = vpop.trf.xlu0  ;;  %v1692_v3 = vpop.trf.xlu1  ;;  %v12234_v54 = vld [vmem:[%s12577_s4 + $0x1a8] ss:$16 sps:$4 sm:$0xff]  }
  0xfe   : > { %2399 = vmatprep.mubr.bf16.mxu0 %v1735_v4 }
  0xff   : > { %1807 = vxpose.xlu1.c.b16.start [1/8] %v12788_v57, 128 }
 0x101   : > { %1872 = vxpose.xlu0.c.b16.cont [2/8] %v11616_v58, 128  ;;  %v1757_v4 = vpop.trf.xlu0 }
 0x103   : > { %1808 = vxpose.xlu1.c.b16.cont [2/8] %v11617_v59, 128  ;;  %v12236_v59 = vld [vmem:[%s12577_s4 + $0x1e8] ss:$16 sps:$4 sm:$0xff]  }
 0x105   : > { %2400 = vmatmul.mubr.bf16.gmra.mrb[64].mxu0 %v1671_v9  ;;  %1873 = vxpose.xlu0.c.b16.cont [3/8] %v11618_v60, 128  ;;  %v1693_v9 = vpop.trf.xlu1 }
 0x106   : > { %2409 = vmatprep.mubr.bf16.mxu0 %v1736_v10  ;;  %v1758_v10 = vpop.trf.xlu0 }
 0x107   : > { %1809 = vxpose.xlu1.c.b16.cont [3/8] %v11619_v63, 128 }
 0x109   : > { %1874 = vxpose.xlu0.c.b16.cont [4/8] %v11620_v0, 128 }
 0x10a   : > { %v1831_v15 = vpop.trf.xlu0 }
 0x10b   : > { %1810 = vxpose.xlu1.c.b16.cont [4/8] %v11621_v1, 128 }
 0x10d   : > { %2410 = vmatmul.mubr.bf16.gmra.mrb[68].mxu0 %v1672_v11  ;;  %1875 = vxpose.xlu0.c.b16.cont [5/8] %v11622_v2, 128  ;;  %v11627_v11 = vld [vmem:[%s12577_s4 + $0x2cc] ss:$16 sps:$4 sm:$0xff]  }
 0x10e   : > { %2419 = vmatprep.mubr.bf16.mxu0 %v1737_v12  ;;  %v11628_v12 = vld [vmem:[%s12577_s4 + $0x3ec] ss:$16 sps:$4 sm:$0xff]  }
 0x10f   : > { %1811 = vxpose.xlu1.c.b16.cont [5/8] %v11623_v5, 128 }
 0x111   : > { %1876 = vxpose.xlu0.c.b16.cont [6/8] %v11624_v6, 128 }
 0x113   : > { %1812 = vxpose.xlu1.c.b16.cont [6/8] %v11625_v7, 128 }
 0x115   : > { %2420 = vmatmul.mubr.bf16.gmra.mrb[72].mxu0 %v1673_v13  ;;  %1877 = vxpose.xlu0.c.b16.cont [7/8] %v11626_v8, 128  ;;  %v11629_v13 = vld [vmem:[%s12577_s4 + $0x2ec] ss:$16 sps:$4 sm:$0xff]  }
 0x116   : > { %2429 = vmatprep.mubr.bf16.mxu0 %v1738_v14  ;;  %v1694_v14 = vpop.trf.xlu1 }
 0x117   : > { %1813 = vxpose.xlu1.c.b16.cont [7/8] %v11627_v11, 128 }
 0x119   : > { %1878 = vxpose.xlu0.c.b16.end [8/8] %v11628_v12, 128 }
 0x11b   : > { %1814 = vxpose.xlu1.c.b16.end [8/8] %v11629_v13, 128 }
 0x11d   : > { %2430 = vmatmul.mubr.bf16.gmra.mrb[76].mxu0 %v1674_v16  ;;  %v1767_v16 = vpop.trf.xlu1 }
 0x11e   : > { %2439 = vmatprep.mubr.bf16.mxu0 %v1739_v17  ;;  %v1832_v17 = vpop.trf.xlu0 }
 0x121   : > { %v1768_v20 = vpop.trf.xlu1 }
 0x125   : > { %2440 = vmatmul.mubr.bf16.gmra.mrb[80].mxu0 %v1675_v22  ;;  %v1833_v22 = vpop.trf.xlu0  ;;  %v1769_v25 = vpop.trf.xlu1 }
 0x126   : > { %2449 = vmatprep.mubr.bf16.mxu0 %v1740_v23  ;;  %v12216_v23 = vld [vmem:[%s12577_s4 + $0x4c] ss:$16 sps:$4 sm:$0xff]  }
 0x129   : > { %v1834_v27 = vpop.trf.xlu0 }
 0x12d   : > { %2450 = vmatmul.mubr.bf16.gmra.mrb[84].mxu0 %v1676_v28  ;;  %v12219_v28 = vld [vmem:[%s12577_s4 + $0x88] ss:$16 sps:$4 sm:$0xff]  }
 0x12e   : > { %2459 = vmatprep.mubr.bf16.mxu0 %v1741_v29  ;;  %v1770_v29 = vpop.trf.xlu1 }
 0x135   : > { %2460 = vmatmul.mubr.bf16.gmra.mrb[88].mxu0 %v1677_v36  ;;  %v12225_v36 = vld [vmem:[%s12577_s4 + $0x12c] ss:$16 sps:$4 sm:$0xff]  }
 0x136   : > { %2469 = vmatprep.mubr.bf16.mxu0 %v1742_v37 }
 0x13d   : > { %2470 = vmatmul.mubr.bf16.gmra.mrb[92].mxu0 %v1678_v43  ;;  %v12229_v43 = vld [vmem:[%s12577_s4 + $0x16c] ss:$16 sps:$4 sm:$0xff]  }
 0x13e   : > { %2479 = vmatprep.mubr.bf16.mxu0 %v1751_v45 }
 0x145   : > { %2480 = vmatmul.mubr.bf16.gmra.mrb[96].mxu0 %v1687_v46  ;;  %v12230_v46 = vld [vmem:[%s12577_s4 + $0x168] ss:$16 sps:$4 sm:$0xff]  }
 0x146   : > { %2489 = vmatprep.mubr.bf16.mxu0 %v1752_v49 }
 0x14d   : > { %2490 = vmatmul.mubr.bf16.gmra.mrb[100].mxu0 %v1688_v50  ;;  %v12231_v50 = vld [vmem:[%s12577_s4 + $0x18c] ss:$16 sps:$4 sm:$0xff]  }
 0x14e   : > { %2499 = vmatprep.mubr.bf16.mxu0 %v1753_v51  ;;  %v12232_v51 = vld [vmem:[%s12577_s4 + $0x188] ss:$16 sps:$4 sm:$0xff]  }
 0x155   : > { %2500 = vmatmul.mubr.bf16.gmra.mrb[104].mxu0 %v1689_v52  ;;  %v12233_v52 = vld [vmem:[%s12577_s4 + $0x1ac] ss:$16 sps:$4 sm:$0xff]  }
 0x156   : > { %2509 = vmatprep.mubr.bf16.mxu0 %v1754_v53 }
 0x15d   : > { %2510 = vmatmul.mubr.bf16.gmra.mrb[108].mxu0 %v1690_v55 }
 0x15e   : > { %2519 = vmatprep.mubr.bf16.mxu0 %v1755_v56  ;;  %v12235_v56 = vld [vmem:[%s12577_s4 + $0x1c8] ss:$16 sps:$4 sm:$0xff]  }
 0x165   : > { %2520 = vmatmul.mubr.bf16.gmra.mrb[112].mxu0 %v1691_v61 }
 0x166   : > { %2529 = vmatprep.mubr.bf16.mxu0 %v1756_v62 }
 0x16d   : > { %2530 = vmatmul.mubr.bf16.gmra.mrb[116].mxu0 %v1692_v3 }
 0x16e   : > { %2539 = vmatprep.mubr.bf16.mxu0 %v1757_v4 }
 0x175   : > { %2540 = vmatmul.mubr.bf16.gmra.mrb[120].mxu0 %v1693_v9 }
 0x176   : > { %2549 = vmatprep.mubr.bf16.mxu0 %v1758_v10 }
 0x17d   : > { %2550 = vmatmul.mubr.bf16.gmra.mrb[124].mxu0 %v1694_v14 }
 0x17e   : > { %2592 = vmatprep.mubr.bf16.mxu0 %v1831_v15 }
 0x185   : > { %2593 = vmatmul.mubr.bf16.vlgmr.msra.gmra.mrb[0].mxu0 %v1767_v16 }
 0x186   : > { %2602 = vmatprep.mubr.bf16.mxu0 %v1832_v17  ;;  %5474 = vmatpush1.bf16.msra.mxu0 %v12213_v18 }
 0x187   : > { %5475 = vmatprep.subr.bf16.mxu0 %v12214_v19 }
 0x18a   : > { %5476 = vmatpush1.bf16.msra.mxu0 %v12215_v21 }
 0x18b   : > { %5477 = vmatprep.subr.bf16.mxu0 %v12216_v23 }
 0x18d   : > { %2603 = vmatmul.mubr.bf16.gmra.mrb[4].mxu0 %v1768_v20 }
 0x18e   : > { %2612 = vmatprep.mubr.bf16.mxu0 %v1833_v22  ;;  %5478 = vmatpush1.bf16.msra.mxu0 %v12217_v24 }
 0x18f   : > { %5479 = vmatprep.subr.bf16.mxu0 %v12681_v30  ;;  %v1835_v30 = vpop.trf.xlu0 }
 0x192   : > { %5480 = vmatpush1.bf16.msra.mxu0 %v12218_v26 }
 0x193   : > { %5481 = vmatprep.subr.bf16.mxu0 %v12686_v34  ;;  %v1771_v34 = vpop.trf.xlu1 }
 0x195   : > { %2613 = vmatmul.mubr.bf16.gmra.mrb[8].mxu0 %v1769_v25 }
 0x196   : > { %2622 = vmatprep.mubr.bf16.mxu0 %v1834_v27  ;;  %5482 = vmatpush1.bf16.msra.mxu0 %v12219_v28 }
 0x197   : > { %5483 = vmatprep.subr.bf16.mxu0 %v12693_v40  ;;  %v1836_v40 = vpop.trf.xlu0  ;;  %v1772_v37 = vpop.trf.xlu1 }
 0x19a   : > { %5484 = vmatpush1.bf16.msra.mxu0 %v12220_v31 }
 0x19b   : > { %5485 = vmatprep.subr.bf16.mxu0 %v12702_v44  ;;  %v12224_v44 = vld [vmem:[%s12577_s4 + $0x108] ss:$16 sps:$4 sm:$0xff]   ;;  %v1773_v45 = vpop.trf.xlu1 }
 0x19d   : > { %2623 = vmatmul.mubr.bf16.gmra.mrb[12].mxu0 %v1770_v29 }
 0x19e   : > { %2632 = vmatprep.mubr.bf16.mxu0 %v1835_v30  ;;  %5486 = vmatpush1.bf16.msra.mxu0 %v12221_v32 }
 0x19f   : > { %5487 = vmatprep.subr.bf16.mxu0 %v12710_v48  ;;  %v1837_v48 = vpop.trf.xlu0  ;;  %v1774_v53 = vpop.trf.xlu1 }
 0x1a2   : > { %5488 = vmatpush1.bf16.msra.mxu0 %v12222_v33 }
 0x1a3   : > { %5489 = vmatprep.subr.bf16.mxu0 %v12223_v35  ;;  %v1838_v49 = vpop.trf.xlu0  ;;  %v1783_v58 = vpop.trf.xlu1 }
 0x1a5   : > { %2633 = vmatmul.mubr.bf16.gmra.mrb[16].mxu0 %v1771_v34 }
 0x1a6   : > { %2642 = vmatprep.mubr.bf16.mxu0 %v1836_v40  ;;  %5490 = vmatpush1.bf16.msra.mxu0 %v12224_v44 }
 0x1a7   : > { %5491 = vmatprep.subr.bf16.mxu0 %v12225_v36  ;;  %v1847_v55 = vpop.trf.xlu0  ;;  %v1784_v61 = vpop.trf.xlu1 }
 0x1aa   : > { %5492 = vmatpush1.bf16.msra.mxu0 %v12226_v38 }
 0x1ab   : > { %5493 = vmatprep.subr.bf16.mxu0 %v12227_v39  ;;  %v1848_v60 = vpop.trf.xlu0  ;;  %v1785_v63 = vpop.trf.xlu1 }
 0x1ad   : > { %2643 = vmatmul.mubr.bf16.gmra.mrb[20].mxu0 %v1772_v37 }
 0x1ae   : > { %2652 = vmatprep.mubr.bf16.mxu0 %v1837_v48  ;;  %5494 = vmatpush1.bf16.msra.mxu0 %v12228_v41 }
 0x1af   : > { %5495 = vmatprep.subr.bf16.mxu0 %v12229_v43  ;;  %v1849_v62 = vpop.trf.xlu0  ;;  %v1786_v0 = vpop.trf.xlu1 }
 0x1b2   : > { %5496 = vmatpush1.bf16.msra.mxu0 %v12230_v46 }
 0x1b3   : > { %5497 = vmatprep.subr.bf16.mxu0 %v12231_v50 }
 0x1b5   : > { %2653 = vmatmul.mubr.bf16.gmra.mrb[24].mxu0 %v1773_v45 }
 0x1b6   : > { %2662 = vmatprep.mubr.bf16.mxu0 %v1838_v49  ;;  %5498 = vmatpush1.bf16.msra.mxu0 %v12232_v51 }
 0x1b7   : > { %5499 = vmatprep.subr.bf16.mxu0 %v12233_v52 }
 0x1ba   : > { %5500 = vmatpush1.bf16.msra.mxu0 %v12234_v54 }
 0x1bb   : > { %5501 = vmatprep.subr.bf16.mxu0 %v12698_v42  ;;  %v1850_v42 = vpop.trf.xlu0 }
 0x1bd   : > { %2663 = vmatmul.mubr.bf16.gmra.mrb[28].mxu0 %v1774_v53 }
 0x1be   : > { %2672 = vmatprep.mubr.bf16.mxu0 %v1847_v55  ;;  %5502 = vmatpush1.bf16.msra.mxu0 %v12235_v56 }
 0x1bf   : > { %5503 = vmatprep.subr.bf16.mxu0 %v12706_v47  ;;  %v1851_v1 = vpop.trf.xlu0  ;;  %v1787_v47 = vpop.trf.xlu1 }
 0x1c2   : > { %5504 = vmatpush1.bf16.msra.mxu0 %v12236_v59 }
 0x1c3   : > { %5706 = vmatprep.subr.bf16.mxu0 %v12788_v57  ;;  %v1852_v2 = vpop.trf.xlu0  ;;  %v1788_v3 = vpop.trf.xlu1 }
 0x1c5   : > { %2673 = vmatmul.mubr.bf16.gmra.mrb[32].mxu0 %v1783_v58 }
 0x1c6   : > { %2682 = vmatprep.mubr.bf16.mxu0 %v1848_v60 }
 0x1c7   : > { %v1853_v57 = vpop.trf.xlu0  ;;  %v1789_v4 = vpop.trf.xlu1 }
 0x1cb   : > { %v1854_v5 = vpop.trf.xlu0  ;;  %v1790_v6 = vpop.trf.xlu1 }
 0x1cd   : > { %2683 = vmatmul.mubr.bf16.gmra.mrb[36].mxu0 %v1784_v61 }
 0x1ce   : > { %2692 = vmatprep.mubr.bf16.mxu0 %v1849_v62 }
 0x1cf   : > { %v1863_v7 = vpop.trf.xlu0  ;;  %v1799_v8 = vpop.trf.xlu1 }
 0x1d3   : > { %v1864_v9 = vpop.trf.xlu0  ;;  %v1800_v10 = vpop.trf.xlu1 }
 0x1d5   : > { %2693 = vmatmul.mubr.bf16.gmra.mrb[40].mxu0 %v1785_v63 }
 0x1d6   : > { %2702 = vmatprep.mubr.bf16.mxu0 %v1850_v42 }
 0x1d7   : > { %v1865_v11 = vpop.trf.xlu0  ;;  %v1801_v12 = vpop.trf.xlu1 }
 0x1db   : > { %v1866_v13 = vpop.trf.xlu0  ;;  %v1802_v14 = vpop.trf.xlu1 }
 0x1dd   : > { %2703 = vmatmul.mubr.bf16.gmra.mrb[44].mxu0 %v1786_v0 }
 0x1de   : > { %2712 = vmatprep.mubr.bf16.mxu0 %v1851_v1 }
 0x1df   : > { %v1867_v15 = vpop.trf.xlu0  ;;  %v1803_v16 = vpop.trf.xlu1 }
 0x1e3   : > { %v1868_v17 = vpop.trf.xlu0  ;;  %v1804_v18 = vpop.trf.xlu1 }
 0x1e5   : > { %2713 = vmatmul.mubr.bf16.gmra.mrb[48].mxu0 %v1787_v47 }
 0x1e6   : > { %2722 = vmatprep.mubr.bf16.mxu0 %v1852_v2 }
 0x1e7   : > { %v1869_v19 = vpop.trf.xlu0  ;;  %v1805_v20 = vpop.trf.xlu1 }
 0x1eb   : > { %v1870_v21 = vpop.trf.xlu0  ;;  %v1806_v22 = vpop.trf.xlu1 }
 0x1ed   : > { %2723 = vmatmul.mubr.bf16.gmra.mrb[52].mxu0 %v1788_v3 }
 0x1ee   : > { %2732 = vmatprep.mubr.bf16.mxu0 %v1853_v57 }
 0x1ef   : > { %v1879_v23 = vpop.trf.xlu0  ;;  %v1815_v24 = vpop.trf.xlu1 }
 0x1f3   : > { %v1880_v25 = vpop.trf.xlu0  ;;  %v1816_v26 = vpop.trf.xlu1 }
 0x1f5   : > { %2733 = vmatmul.mubr.bf16.gmra.mrb[56].mxu0 %v1789_v4 }
 0x1f6   : > { %2742 = vmatprep.mubr.bf16.mxu0 %v1854_v5 }
 0x1f7   : > { %v1881_v27 = vpop.trf.xlu0  ;;  %v1817_v28 = vpop.trf.xlu1 }
 0x1fb   : > { %v1882_v29 = vpop.trf.xlu0  ;;  %v1818_v40 = vpop.trf.xlu1 }
 0x1fd   : > { %2743 = vmatmul.mubr.bf16.gmra.mrb[60].mxu0 %v1790_v6 }
 0x1fe   : > { %2752 = vmatprep.mubr.bf16.mxu0 %v1863_v7 }
 0x1ff   : > { %v1883_v36 = vpop.trf.xlu0  ;;  %v1819_v49 = vpop.trf.xlu1 }
 0x203   : > { %v1884_v52 = vpop.trf.xlu0  ;;  %v1820_v62 = vpop.trf.xlu1 }
 0x205   : > { %2753 = vmatmul.mubr.bf16.gmra.mrb[64].mxu0 %v1799_v8 }
 0x206   : > { %2762 = vmatprep.mubr.bf16.mxu0 %v1864_v9 }
 0x207   : > { %v1885_v0 = vpop.trf.xlu0  ;;  %v1821_v7 = vpop.trf.xlu1 }
 0x20d   : > { %2763 = vmatmul.mubr.bf16.gmra.mrb[68].mxu0 %v1800_v10  ;;  %v1886_v10 = vpop.trf.xlu0 }
 0x20e   : > { %2772 = vmatprep.mubr.bf16.mxu0 %v1865_v11 }
 0x215   : > { %2773 = vmatmul.mubr.bf16.gmra.mrb[72].mxu0 %v1801_v12 }
 0x216   : > { %2782 = vmatprep.mubr.bf16.mxu0 %v1866_v13 }
 0x21d   : > { %2783 = vmatmul.mubr.bf16.gmra.mrb[76].mxu0 %v1802_v14 }
 0x21e   : > { %2792 = vmatprep.mubr.bf16.mxu0 %v1867_v15 }
 0x225   : > { %2793 = vmatmul.mubr.bf16.gmra.mrb[80].mxu0 %v1803_v16 }
 0x226   : > { %2802 = vmatprep.mubr.bf16.mxu0 %v1868_v17 }
 0x22d   : > { %2803 = vmatmul.mubr.bf16.gmra.mrb[84].mxu0 %v1804_v18 }
 0x22e   : > { %2812 = vmatprep.mubr.bf16.mxu0 %v1869_v19  ;;  %v1822_v19 = vpop.trf.xlu1 }
 0x235   : > { %2813 = vmatmul.mubr.bf16.gmra.mrb[88].mxu0 %v1805_v20 }
 0x236   : > { %2822 = vmatprep.mubr.bf16.mxu0 %v1870_v21 }
 0x23d   : > { %2823 = vmatmul.mubr.bf16.gmra.mrb[92].mxu0 %v1806_v22 }
 0x23e   : > { %2832 = vmatprep.mubr.bf16.mxu0 %v1879_v23 }
 0x245   : > { %2833 = vmatmul.mubr.bf16.gmra.mrb[96].mxu0 %v1815_v24 }
 0x246   : > { %2842 = vmatprep.mubr.bf16.mxu0 %v1880_v25 }
 0x24d   : > { %2843 = vmatmul.mubr.bf16.gmra.mrb[100].mxu0 %v1816_v26 }
 0x24e   : > { %2852 = vmatprep.mubr.bf16.mxu0 %v1881_v27 }
 0x255   : > { %2853 = vmatmul.mubr.bf16.gmra.mrb[104].mxu0 %v1817_v28 }
 0x256   : > { %2862 = vmatprep.mubr.bf16.mxu0 %v1882_v29 }
 0x258   : > { %v2594_v31 = vpop.f32.mrb[0].mxu0 }
 0x259   : > { %v12837_v30 = vmul.f32 0.044194173, %v2594_v31  ;;  %v2596_v32 = vpop.f32.mrb[1].mxu0 }
 0x25a   : > { %v12839_v34 = vmul.f32 0.044194173, %v2596_v32  ;;  %v2598_v33 = vpop.f32.mrb[2].mxu0 }
 0x25b   : > { %v12841_v35 = vmul.f32 0.044194173, %v2598_v33  ;;  %v2600_v44 = vpop.f32.mrb[3].mxu0 }
 0x25c   : > { %v12843_v37 = vmul.f32 0.044194173, %v2600_v44  ;;  %v3041_v38 = vmax.f32 %v12837_v30, %v12839_v34 }
 0x25d   : > { %2863 = vmatmul.mubr.bf16.gmra.mrb[108].mxu0 %v1818_v40 }
 0x25e   : > { %3042 = vmax.xlane.f32.xlu0 %v3041_v38  ;;  %v3044_v48 = vmax.f32 %v12841_v35, %v12843_v37  ;;  %2872 = vmatprep.mubr.bf16.mxu0 %v1883_v36 }
 0x260   : > { %3045 = vmax.xlane.f32.xlu1 %v3044_v48  ;;  %v2604_v39 = vpop.f32.mrb[4].mxu0 }
 0x261   : > { %v12849_v41 = vmul.f32 0.044194173, %v2604_v39  ;;  %v2606_v43 = vpop.f32.mrb[5].mxu0 }
 0x262   : > { %v12851_v45 = vmul.f32 0.044194173, %v2606_v43  ;;  %v2608_v46 = vpop.f32.mrb[6].mxu0 }
 0x263   : > { %v12853_v50 = vmul.f32 0.044194173, %v2608_v46  ;;  %v2610_v51 = vpop.f32.mrb[7].mxu0 }
 0x264   : > { %v12855_v53 = vmul.f32 0.044194173, %v2610_v51  ;;  %v3047_v54 = vmax.f32 %v12849_v41, %v12851_v45 }
 0x265   : > { %2873 = vmatmul.mubr.bf16.gmra.mrb[112].mxu0 %v1819_v49 }
 0x266   : > { %3048 = vmax.xlane.f32.xlu0 %v3047_v54  ;;  %v3050_v55 = vmax.f32 %v12853_v50, %v12855_v53  ;;  %2882 = vmatprep.mubr.bf16.mxu0 %v1884_v52 }
 0x268   : > { %3051 = vmax.xlane.f32.xlu1 %v3050_v55  ;;  %v2614_v56 = vpop.f32.mrb[8].mxu0 }
 0x269   : > { %v12861_v58 = vmul.f32 0.044194173, %v2614_v56  ;;  %v2616_v59 = vpop.f32.mrb[9].mxu0 }
 0x26a   : > { %v12863_v60 = vmul.f32 0.044194173, %v2616_v59  ;;  %v2618_v61 = vpop.f32.mrb[10].mxu0 }
 0x26b   : > { %v12865_v63 = vmul.f32 0.044194173, %v2618_v61  ;;  %v2620_v42 = vpop.f32.mrb[11].mxu0 }
 0x26c   : > { %v12867_v1 = vmul.f32 0.044194173, %v2620_v42  ;;  %v3053_v47 = vmax.f32 %v12861_v58, %v12863_v60 }
 0x26d   : > { %2883 = vmatmul.mubr.bf16.gmra.mrb[116].mxu0 %v1820_v62 }
 0x26e   : > { %3054 = vmax.xlane.f32.xlu0 %v3053_v47  ;;  %v3056_v2 = vmax.f32 %v12865_v63, %v12867_v1  ;;  %2892 = vmatprep.mubr.bf16.mxu0 %v1885_v0 }
 0x270   : > { %3057 = vmax.xlane.f32.xlu1 %v3056_v2  ;;  %v2624_v3 = vpop.f32.mrb[12].mxu0 }
 0x271   : > { %v12873_v57 = vmul.f32 0.044194173, %v2624_v3  ;;  %v2626_v4 = vpop.f32.mrb[13].mxu0 }
 0x272   : > { %v12875_v5 = vmul.f32 0.044194173, %v2626_v4  ;;  %v2628_v6 = vpop.f32.mrb[14].mxu0 }
 0x273   : > { %v12877_v8 = vmul.f32 0.044194173, %v2628_v6  ;;  %v2630_v9 = vpop.f32.mrb[15].mxu0 }
 0x274   : > { %v12879_v11 = vmul.f32 0.044194173, %v2630_v9  ;;  %v3059_v12 = vmax.f32 %v12873_v57, %v12875_v5 }
 0x275   : > { %2893 = vmatmul.mubr.bf16.gmra.mrb[120].mxu0 %v1821_v7 }
 0x276   : > { %3060 = vmax.xlane.f32.xlu0 %v3059_v12  ;;  %v3062_v13 = vmax.f32 %v12877_v8, %v12879_v11  ;;  %2902 = vmatprep.mubr.bf16.mxu0 %v1886_v10 }
 0x278   : > { %3063 = vmax.xlane.f32.xlu1 %v3062_v13  ;;  %v2634_v14 = vpop.f32.mrb[16].mxu0 }
 0x279   : > { %v12885_v15 = vmul.f32 0.044194173, %v2634_v14  ;;  %v2636_v16 = vpop.f32.mrb[17].mxu0 }
 0x27a   : > { %v12887_v17 = vmul.f32 0.044194173, %v2636_v16  ;;  %v2638_v18 = vpop.f32.mrb[18].mxu0 }
 0x27b   : > { %v12889_v20 = vmul.f32 0.044194173, %v2638_v18  ;;  %v2640_v21 = vpop.f32.mrb[19].mxu0 }
 0x27c   : > { %v12891_v22 = vmul.f32 0.044194173, %v2640_v21  ;;  %v3065_v23 = vmax.f32 %v12885_v15, %v12887_v17 }
 0x27d   : > { %2903 = vmatmul.mubr.bf16.gmra.mrb[124].mxu0 %v1822_v19 }
 0x27e   : > { %3066 = vmax.xlane.f32.xlu0 %v3065_v23  ;;  %v3068_v24 = vmax.f32 %v12889_v20, %v12891_v22 }
 0x280   : > { %3069 = vmax.xlane.f32.xlu1 %v3068_v24  ;;  %v2644_v25 = vpop.f32.mrb[20].mxu0 }
 0x281   : > { %v12897_v26 = vmul.f32 0.044194173, %v2644_v25  ;;  %v2646_v27 = vpop.f32.mrb[21].mxu0 }
 0x282   : > { %v12899_v28 = vmul.f32 0.044194173, %v2646_v27  ;;  %v2648_v29 = vpop.f32.mrb[22].mxu0 }
 0x283   : > { %v12901_v31 = vmul.f32 0.044194173, %v2648_v29  ;;  %v2650_v32 = vpop.f32.mrb[23].mxu0 }
 0x284   : > { %v12903_v33 = vmul.f32 0.044194173, %v2650_v32  ;;  %v3071_v40 = vmax.f32 %v12897_v26, %v12899_v28 }
 0x286   : > { %3072 = vmax.xlane.f32.xlu0 %v3071_v40  ;;  %v3074_v44 = vmax.f32 %v12901_v31, %v12903_v33 }
 0x288   : > { %3075 = vmax.xlane.f32.xlu1 %v3074_v44  ;;  %v2654_v36 = vpop.f32.mrb[24].mxu0 }
 0x289   : > { %v12909_v38 = vmul.f32 0.044194173, %v2654_v36  ;;  %v2656_v48 = vpop.f32.mrb[25].mxu0 }
 0x28a   : > { %v12911_v39 = vmul.f32 0.044194173, %v2656_v48  ;;  %v2658_v43 = vpop.f32.mrb[26].mxu0 }
 0x28b   : > { %v12913_v46 = vmul.f32 0.044194173, %v2658_v43  ;;  %v2660_v49 = vpop.f32.mrb[27].mxu0 }
 0x28c   : > { %v12915_v51 = vmul.f32 0.044194173, %v2660_v49  ;;  %v3077_v52 = vmax.f32 %v12909_v38, %v12911_v39 }
 0x28e   : > { %3078 = vmax.xlane.f32.xlu0 %v3077_v52  ;;  %v3080_v54 = vmax.f32 %v12913_v46, %v12915_v51 }
 0x290   : > { %3081 = vmax.xlane.f32.xlu1 %v3080_v54  ;;  %v2664_v55 = vpop.f32.mrb[28].mxu0 }
 0x291   : > { %v12921_v56 = vmul.f32 0.044194173, %v2664_v55  ;;  %v2666_v59 = vpop.f32.mrb[29].mxu0 }
 0x292   : > { %v12923_v61 = vmul.f32 0.044194173, %v2666_v59  ;;  %v2668_v62 = vpop.f32.mrb[30].mxu0 }
 0x293   : > { %v12925_v42 = vmul.f32 0.044194173, %v2668_v62  ;;  %v2670_v0 = vpop.f32.mrb[31].mxu0 }
 0x294   : > { %17079 = vst [vmem:[#allocation5_spill] sm:$0xff] %v12923_v61  ;;  %v12927_v47 = vmul.f32 0.044194173, %v2670_v0  ;;  %v3083_v2 = vmax.f32 %v12921_v56, %v12923_v61 }
 0x295   : > { %17080 = vst [vmem:[#allocation6_spill] sm:$0xff] %v12925_v42 }
 0x296   : > { %17081 = vst [vmem:[#allocation7_spill] sm:$0xff] %v12927_v47  ;;  %3084 = vmax.xlane.f32.xlu0 %v3083_v2  ;;  %v3086_v3 = vmax.f32 %v12925_v42, %v12927_v47 }
 0x298   : > { %3087 = vmax.xlane.f32.xlu1 %v3086_v3  ;;  %v2674_v4 = vpop.f32.mrb[32].mxu0 }
 0x299   : > { %v12933_v6 = vmul.f32 0.044194173, %v2674_v4  ;;  %v2676_v7 = vpop.f32.mrb[33].mxu0 }
 0x29a   : > { %v12935_v9 = vmul.f32 0.044194173, %v2676_v7  ;;  %v2678_v10 = vpop.f32.mrb[34].mxu0 }
 0x29b   : > { %17082 = vst [vmem:[#allocation8_spill] sm:$0xff] %v12933_v6  ;;  %v12937_v12 = vmul.f32 0.044194173, %v2678_v10  ;;  %v2680_v13 = vpop.f32.mrb[35].mxu0 }
 0x29c   : > { %17083 = vst [vmem:[#allocation9_spill] sm:$0xff] %v12935_v9  ;;  %v12939_v14 = vmul.f32 0.044194173, %v2680_v13  ;;  %v3089_v16 = vmax.f32 %v12933_v6, %v12935_v9 }
 0x29d   : > { %17084 = vst [vmem:[#allocation10_spill] sm:$0xff] %v12937_v12 }
 0x29e   : > { %17085 = vst [vmem:[#allocation11_spill] sm:$0xff] %v12939_v14  ;;  %3090 = vmax.xlane.f32.xlu0 %v3089_v16  ;;  %v3092_v18 = vmax.f32 %v12937_v12, %v12939_v14 }
 0x2a0   : > { %3093 = vmax.xlane.f32.xlu1 %v3092_v18  ;;  %v2684_v19 = vpop.f32.mrb[36].mxu0 }
 0x2a1   : > { %v12945_v21 = vmul.f32 0.044194173, %v2684_v19  ;;  %v2686_v23 = vpop.f32.mrb[37].mxu0 }
 0x2a2   : > { %v12947_v24 = vmul.f32 0.044194173, %v2686_v23  ;;  %v2688_v25 = vpop.f32.mrb[38].mxu0 }
 0x2a3   : > { %17086 = vst [vmem:[#allocation12_spill] sm:$0xff] %v12945_v21  ;;  %v12949_v27 = vmul.f32 0.044194173, %v2688_v25  ;;  %v2690_v29 = vpop.f32.mrb[39].mxu0 }
 0x2a4   : > { %17087 = vst [vmem:[#allocation13_spill] sm:$0xff] %v12947_v24  ;;  %v12951_v32 = vmul.f32 0.044194173, %v2690_v29  ;;  %v3095_v40 = vmax.f32 %v12945_v21, %v12947_v24 }
 0x2a5   : > { %17088 = vst [vmem:[#allocation14_spill] sm:$0xff] %v12949_v27 }
 0x2a6   : > { %17089 = vst [vmem:[#allocation15_spill] sm:$0xff] %v12951_v32  ;;  %3096 = vmax.xlane.f32.xlu0 %v3095_v40  ;;  %v3098_v44 = vmax.f32 %v12949_v27, %v12951_v32 }
 0x2a8   : > { %3099 = vmax.xlane.f32.xlu1 %v3098_v44  ;;  %v2694_v36 = vpop.f32.mrb[40].mxu0 }
 0x2a9   : > { %v12957_v48 = vmul.f32 0.044194173, %v2694_v36  ;;  %v2696_v43 = vpop.f32.mrb[41].mxu0 }
 0x2aa   : > { %v12959_v49 = vmul.f32 0.044194173, %v2696_v43  ;;  %v2698_v52 = vpop.f32.mrb[42].mxu0 }
 0x2ab   : > { %17090 = vst [vmem:[#allocation16_spill] sm:$0xff] %v12957_v48  ;;  %v12961_v54 = vmul.f32 0.044194173, %v2698_v52  ;;  %v2700_v55 = vpop.f32.mrb[43].mxu0 }
 0x2ac   : > { %17091 = vst [vmem:[#allocation17_spill] sm:$0xff] %v12959_v49  ;;  %v12963_v59 = vmul.f32 0.044194173, %v2700_v55  ;;  %v3101_v62 = vmax.f32 %v12957_v48, %v12959_v49 }
 0x2ad   : > { %17092 = vst [vmem:[#allocation18_spill] sm:$0xff] %v12961_v54 }
 0x2ae   : > { %17093 = vst [vmem:[#allocation19_spill] sm:$0xff] %v12963_v59  ;;  %3102 = vmax.xlane.f32.xlu0 %v3101_v62  ;;  %v3104_v0 = vmax.f32 %v12961_v54, %v12963_v59 }
 0x2b0   : > { %3105 = vmax.xlane.f32.xlu1 %v3104_v0  ;;  %v2704_v2 = vpop.f32.mrb[44].mxu0 }
 0x2b1   : > { %v12969_v3 = vmul.f32 0.044194173, %v2704_v2  ;;  %v2706_v4 = vpop.f32.mrb[45].mxu0 }
 0x2b2   : > { %v12971_v7 = vmul.f32 0.044194173, %v2706_v4  ;;  %v2708_v10 = vpop.f32.mrb[46].mxu0 }
 0x2b3   : > { %17094 = vst [vmem:[#allocation20_spill] sm:$0xff] %v12969_v3  ;;  %v12973_v13 = vmul.f32 0.044194173, %v2708_v10  ;;  %v2710_v16 = vpop.f32.mrb[47].mxu0 }
 0x2b4   : > { %17095 = vst [vmem:[#allocation21_spill] sm:$0xff] %v12971_v7  ;;  %v12975_v18 = vmul.f32 0.044194173, %v2710_v16  ;;  %v3107_v19 = vmax.f32 %v12969_v3, %v12971_v7 }
 0x2b5   : > { %17096 = vst [vmem:[#allocation22_spill] sm:$0xff] %v12973_v13 }
 0x2b6   : > { %17097 = vst [vmem:[#allocation23_spill] sm:$0xff] %v12975_v18  ;;  %3108 = vmax.xlane.f32.xlu0 %v3107_v19  ;;  %v3110_v23 = vmax.f32 %v12973_v13, %v12975_v18 }
 0x2b8   : > { %3111 = vmax.xlane.f32.xlu1 %v3110_v23  ;;  %v12981_v25 = vpop.f32.mrb[48].mxu0 }
 0x2b9   : > { %v12983_v29 = vpop.f32.mrb[49].mxu0 }
 0x2ba   : > { %v12985_v40 = vpop.f32.mrb[50].mxu0 }
 0x2bb   : > { %v12987_v44 = vpop.f32.mrb[51].mxu0 }
 0x2c0   : > { %v12989_v36 = vpop.f32.mrb[52].mxu0 }
 0x2c1   : > { %v12991_v43 = vpop.f32.mrb[53].mxu0 }
 0x2c2   : > { %v12993_v52 = vpop.f32.mrb[54].mxu0 }
 0x2c3   : > { %v12995_v55 = vpop.f32.mrb[55].mxu0 }
 0x2c8   : > { %v12997_v62 = vpop.f32.mrb[56].mxu0 }
 0x2c9   : > { %v12999_v0 = vpop.f32.mrb[57].mxu0 }
 0x2ca   : > { %v13001_v2 = vpop.f32.mrb[58].mxu0 }
 0x2cb   : > { %v13003_v4 = vpop.f32.mrb[59].mxu0 }
 0x2d0   : > { %v13005_v10 = vpop.f32.mrb[60].mxu0 }
 0x2d1   : > { %v13007_v16 = vpop.f32.mrb[61].mxu0 }
 0x2d2   : > { %v13009_v19 = vpop.f32.mrb[62].mxu0 }
 0x2d3   : > { %v13011_v23 = vpop.f32.mrb[63].mxu0 }
 0x2d8   : > { %v13013_v18 = vpop.f32.mrb[64].mxu0 }
 0x2d9   : > { %v13015_v13 = vpop.f32.mrb[65].mxu0 }
 0x2da   : > { %v13017_v7 = vpop.f32.mrb[66].mxu0 }
 0x2db   : > { %v13019_v3 = vpop.f32.mrb[67].mxu0 }
 0x2e0   : > { %v13021_v59 = vpop.f32.mrb[68].mxu0 }
 0x2e1   : > { %v13023_v54 = vpop.f32.mrb[69].mxu0 }
 0x2e2   : > { %v13025_v49 = vpop.f32.mrb[70].mxu0 }
 0x2e3   : > { %17098 = vst [vmem:[#allocation24_spill] sm:$0xff] %v13025_v49  ;;  %v13027_v48 = vpop.f32.mrb[71].mxu0 }
 0x2e4   : > { %17099 = vst [vmem:[#allocation25_spill] sm:$0xff] %v13027_v48 }
 0x2e8   : > { %v13029_v32 = vpop.f32.mrb[72].mxu0 }
 0x2e9   : > { %17100 = vst [vmem:[#allocation26_spill] sm:$0xff] %v13029_v32  ;;  %v13031_v27 = vpop.f32.mrb[73].mxu0 }
 0x2ea   : > { %17101 = vst [vmem:[#allocation27_spill] sm:$0xff] %v13031_v27  ;;  %v13033_v24 = vpop.f32.mrb[74].mxu0 }
 0x2eb   : > { %17102 = vst [vmem:[#allocation28_spill] sm:$0xff] %v13033_v24  ;;  %v3043_v21 = vpop.xlane.xlu0 %3042  ;;  %v13035_v14 = vpop.f32.mrb[75].mxu0 }
 0x2ec   : > { %17103 = vst [vmem:[#allocation29_spill] sm:$0xff] %v13035_v14  ;;  %v3233_v12 = vsub.f32 %v12837_v30, %v3043_v21  ;;  %v3234_v9 = vsub.f32 %v12839_v34, %v3043_v21 }
 0x2ed   : > { %v3046_v6 = vpop.xlane.xlu1 %3045 }
 0x2ee   : > { %v3361_v47 = vmul.f32 1.442695, %v3233_v12  ;;  %v3363_v42 = vmul.f32 1.442695, %v3234_v9  ;;  %v3235_v49 = vsub.f32 %v12841_v35, %v3046_v6  ;;  %v3236_v48 = vsub.f32 %v12843_v37, %v3046_v6 }
 0x2f0   : > { %11829 = vpow2.f32 %v3361_v47  ;;  %v3365_v32 = vmul.f32 1.442695, %v3235_v49  ;;  %v3367_v61 = vmul.f32 1.442695, %v3236_v48  ;;  %v13041_v27 = vpop.f32.mrb[76].mxu0 }
 0x2f1   : > { %11831 = vpow2.f32 %v3363_v42  ;;  %v13043_v24 = vpop.f32.mrb[77].mxu0 }
 0x2f2   : > { %11833 = vpow2.f32 %v3365_v32  ;;  %v13045_v14 = vpop.f32.mrb[78].mxu0 }
 0x2f3   : > { %11835 = vpow2.f32 %v3367_v61  ;;  %v3049_v30 = vpop.xlane.xlu0 %3048  ;;  %v13047_v34 = vpop.f32.mrb[79].mxu0 }
 0x2f4   : > { %v3237_v9 = vsub.f32 %v12849_v41, %v3049_v30  ;;  %v3238_v35 = vsub.f32 %v12851_v45, %v3049_v30  ;;  %v13064_v30 = vmul.f32 0.044194173, %v12981_v25 }
 0x2f5   : > { %v3052_v37 = vpop.xlane.xlu1 %3051 }
 0x2f6   : > { %v3369_v47 = vmul.f32 1.442695, %v3237_v9  ;;  %v3371_v6 = vmul.f32 1.442695, %v3238_v35  ;;  %v3239_v12 = vsub.f32 %v12853_v50, %v3052_v37  ;;  %v3240_v42 = vsub.f32 %v12855_v53, %v3052_v37 }
 0x2f7   : > { %v13071_v35 = vmul.f32 0.044194173, %v12983_v29  ;;  %v13082_v29 = vmul.f32 0.044194173, %v12985_v40 }
 0x2f8   : > { %11837 = vpow2.f32 %v3369_v47  ;;  %v3373_v21 = vmul.f32 1.442695, %v3239_v12  ;;  %v3375_v32 = vmul.f32 1.442695, %v3240_v42  ;;  %v13053_v48 = vpop.f32.mrb[80].mxu0 }
 0x2f9   : > { %11839 = vpow2.f32 %v3371_v6  ;;  %v13055_v61 = vpop.f32.mrb[81].mxu0 }
 0x2fa   : > { %v13057_v49 = vpop.eup %11829  ;;  %11841 = vpow2.f32 %v3373_v21  ;;  %v13059_v41 = vpop.f32.mrb[82].mxu0 }
 0x2fb   : > { %17104 = vst [vmem:[#allocation30_spill] sm:$0xff] %v13057_v49  ;;  %v13061_v45 = vpop.eup %11831  ;;  %11843 = vpow2.f32 %v3375_v32  ;;  %v3055_v50 = vpop.xlane.xlu0 %3054 }
 0x2fc   : > { %17105 = vst [vmem:[#allocation31_spill] sm:$0xff] %v13061_v45  ;;  %v13066_v53 = vpop.f32.mrb[83].mxu0  ;;  %v13068_v9 = vpop.eup %11833  ;;  %v3241_v37 = vsub.f32 %v12861_v58, %v3055_v50  ;;  %v3242_v47 = vsub.f32 %v12863_v60, %v3055_v50  ;;  %v3617_v6 = vadd.f32 %v13061_v45, %v13057_v49  ;;  %v13085_v58 = vmul.f32 0.044194173, %v12987_v44 }
 0x2fd   : > { %17106 = vst [vmem:[#allocation32_spill] sm:$0xff] %v13066_v53  ;;  %17107 = vst [vmem:[#allocation33_spill] sm:$0xff] %v13068_v9  ;;  %v13077_v12 = vpop.eup %11835  ;;  %v3058_v25 = vpop.xlane.xlu1 %3057 }
 0x2fe   : > { %17108 = vst [vmem:[#allocation34_spill] sm:$0xff] %v13077_v12  ;;  %v3377_v42 = vmul.f32 1.442695, %v3241_v37  ;;  %v3379_v21 = vmul.f32 1.442695, %v3242_v47  ;;  %3618 = vadd.xlane.f32.xlu0 %v3617_v6  ;;  %v3243_v32 = vsub.f32 %v12865_v63, %v3058_v25  ;;  %v3244_v53 = vsub.f32 %v12867_v1, %v3058_v25  ;;  %17109 = vst [vmem:[#allocation35_spill] sm:$0xff] %v13085_v58 }
 0x2ff   : > { %v3620_v60 = vadd.f32 %v13077_v12, %v13068_v9  ;;  %v3113_v37 = vmax.f32 %v13064_v30, %v13071_v35  ;;  %v13102_v47 = vmul.f32 0.044194173, %v12989_v36  ;;  %v3116_v25 = vmax.f32 %v13082_v29, %v13085_v58 }
 0x300   : > { %11845 = vpow2.f32 %v3377_v42  ;;  %v3381_v50 = vmul.f32 1.442695, %v3243_v32  ;;  %v3383_v49 = vmul.f32 1.442695, %v3244_v53  ;;  %v13089_v45 = vpop.f32.mrb[84].mxu0 }
 0x301   : > { %11847 = vpow2.f32 %v3379_v21  ;;  %3621 = vadd.xlane.f32.xlu1 %v3620_v60  ;;  %v13093_v63 = vpop.f32.mrb[85].mxu0  ;;  %v13111_v21 = vmul.f32 0.044194173, %v12991_v43  ;;  %v13122_v43 = vmul.f32 0.044194173, %v12993_v52 }
 0x302   : > { %v13095_v1 = vpop.eup %11837  ;;  %11849 = vpow2.f32 %v3381_v50  ;;  %3114 = vmax.xlane.f32.xlu0 %v3113_v37  ;;  %v13097_v40 = vpop.f32.mrb[86].mxu0 }
 0x303   : > { %17110 = vst [vmem:[#allocation36_spill] sm:$0xff] %v13095_v1  ;;  %v13099_v44 = vpop.eup %11839  ;;  %11851 = vpow2.f32 %v3383_v49  ;;  %v3061_v53 = vpop.xlane.xlu0 %3060 }
 0x304   : > { %17111 = vst [vmem:[#allocation37_spill] sm:$0xff] %v13099_v44  ;;  %v13104_v6 = vpop.f32.mrb[87].mxu0  ;;  %v13108_v42 = vpop.eup %11841  ;;  %v3245_v32 = vsub.f32 %v12873_v57, %v3061_v53  ;;  %v3246_v60 = vsub.f32 %v12875_v5, %v3061_v53  ;;  %v3623_v36 = vadd.f32 %v13099_v44, %v13095_v1  ;;  %v13125_v57 = vmul.f32 0.044194173, %v12995_v55 }
 0x305   : > { %17112 = vst [vmem:[#allocation38_spill] sm:$0xff] %v13108_v42  ;;  %v13117_v50 = vpop.eup %11843  ;;  %3117 = vmax.xlane.f32.xlu1 %v3116_v25  ;;  %v3064_v49 = vpop.xlane.xlu1 %3063 }
 0x306   : > { %17113 = vst [vmem:[#allocation39_spill] sm:$0xff] %v13117_v50  ;;  %v3385_v37 = vmul.f32 1.442695, %v3245_v32  ;;  %v3387_v9 = vmul.f32 1.442695, %v3246_v60  ;;  %3624 = vadd.xlane.f32.xlu0 %v3623_v36  ;;  %v3247_v12 = vsub.f32 %v12877_v8, %v3064_v49  ;;  %v3248_v58 = vsub.f32 %v12879_v11, %v3064_v49 }
 0x307   : > { %v3626_v5 = vadd.f32 %v13117_v50, %v13108_v42  ;;  %v3119_v32 = vmax.f32 %v13102_v47, %v13111_v21  ;;  %v13151_v49 = vmul.f32 0.044194173, %v12999_v0  ;;  %v13162_v0 = vmul.f32 0.044194173, %v13001_v2 }
 0x308   : > { %11853 = vpow2.f32 %v3385_v37  ;;  %v3389_v53 = vmul.f32 1.442695, %v3247_v12  ;;  %v3391_v25 = vmul.f32 1.442695, %v3248_v58  ;;  %v13129_v1 = vpop.f32.mrb[88].mxu0 }
 0x309   : > { %11855 = vpow2.f32 %v3387_v9  ;;  %3627 = vadd.xlane.f32.xlu1 %v3626_v5  ;;  %v13133_v8 = vpop.f32.mrb[89].mxu0  ;;  %v13142_v12 = vmul.f32 0.044194173, %v12997_v62  ;;  %v3122_v9 = vmax.f32 %v13122_v43, %v13125_v57 }
 0x30a   : > { %v13135_v11 = vpop.eup %11845  ;;  %11857 = vpow2.f32 %v3389_v53  ;;  %3120 = vmax.xlane.f32.xlu0 %v3119_v32  ;;  %v13137_v52 = vpop.f32.mrb[90].mxu0 }
 0x30b   : > { %17114 = vst [vmem:[#allocation40_spill] sm:$0xff] %v13135_v11  ;;  %v13139_v55 = vpop.eup %11847  ;;  %11859 = vpow2.f32 %v3391_v25  ;;  %v3067_v58 = vpop.xlane.xlu0 %3066 }
 0x30c   : > { %17115 = vst [vmem:[#allocation41_spill] sm:$0xff] %v13139_v55  ;;  %v13144_v60 = vpop.f32.mrb[91].mxu0  ;;  %v13148_v36 = vpop.eup %11849  ;;  %v3249_v37 = vsub.f32 %v12885_v15, %v3067_v58  ;;  %v3250_v5 = vsub.f32 %v12887_v17, %v3067_v58  ;;  %v3629_v62 = vadd.f32 %v13139_v55, %v13135_v11  ;;  %v13165_v15 = vmul.f32 0.044194173, %v13003_v4 }
 0x30d   : > { %17116 = vst [vmem:[#allocation42_spill] sm:$0xff] %v13148_v36  ;;  %v13157_v53 = vpop.eup %11851  ;;  %3123 = vmax.xlane.f32.xlu1 %v3122_v9  ;;  %v3070_v25 = vpop.xlane.xlu1 %3069 }
 0x30e   : > { %17117 = vst [vmem:[#allocation43_spill] sm:$0xff] %v13157_v53  ;;  %v3393_v32 = vmul.f32 1.442695, %v3249_v37  ;;  %v3395_v42 = vmul.f32 1.442695, %v3250_v5  ;;  %3630 = vadd.xlane.f32.xlu0 %v3629_v62  ;;  %v3251_v50 = vsub.f32 %v12889_v20, %v3070_v25  ;;  %v3252_v44 = vsub.f32 %v12891_v22, %v3070_v25 }
 0x30f   : > { %v3632_v17 = vadd.f32 %v13157_v53, %v13148_v36  ;;  %v3125_v37 = vmax.f32 %v13142_v12, %v13151_v49  ;;  %v13191_v25 = vmul.f32 0.044194173, %v13007_v16  ;;  %v13202_v16 = vmul.f32 0.044194173, %v13009_v19 }
 0x310   : > { %11861 = vpow2.f32 %v3393_v32  ;;  %v3397_v58 = vmul.f32 1.442695, %v3251_v50  ;;  %v3399_v9 = vmul.f32 1.442695, %v3252_v44  ;;  %v13169_v11 = vpop.f32.mrb[92].mxu0 }
 0x311   : > { %11863 = vpow2.f32 %v3395_v42  ;;  %3633 = vadd.xlane.f32.xlu1 %v3632_v17  ;;  %v13173_v20 = vpop.f32.mrb[93].mxu0  ;;  %v13182_v50 = vmul.f32 0.044194173, %v13005_v10  ;;  %v3128_v42 = vmax.f32 %v13162_v0, %v13165_v15 }
 0x312   : > { %v13175_v22 = vpop.eup %11853  ;;  %11865 = vpow2.f32 %v3397_v58  ;;  %3126 = vmax.xlane.f32.xlu0 %v3125_v37  ;;  %v13177_v2 = vpop.f32.mrb[94].mxu0 }
 0x313   : > { %17118 = vst [vmem:[#allocation44_spill] sm:$0xff] %v13175_v22  ;;  %v13179_v4 = vpop.eup %11855  ;;  %11867 = vpow2.f32 %v3399_v9  ;;  %v3073_v44 = vpop.xlane.xlu0 %3072 }
 0x314   : > { %17119 = vst [vmem:[#allocation45_spill] sm:$0xff] %v13179_v4  ;;  %v13184_v5 = vpop.f32.mrb[95].mxu0  ;;  %v13188_v62 = vpop.eup %11857  ;;  %v3253_v32 = vsub.f32 %v12897_v26, %v3073_v44  ;;  %v3254_v17 = vsub.f32 %v12899_v28, %v3073_v44  ;;  %v3635_v10 = vadd.f32 %v13179_v4, %v13175_v22  ;;  %v13205_v26 = vmul.f32 0.044194173, %v13011_v23 }
 0x315   : > { %17120 = vst [vmem:[#allocation46_spill] sm:$0xff] %v13188_v62  ;;  %v13197_v58 = vpop.eup %11859  ;;  %3129 = vmax.xlane.f32.xlu1 %v3128_v42  ;;  %v3076_v9 = vpop.xlane.xlu1 %3075 }
 0x316   : > { %17121 = vst [vmem:[#allocation47_spill] sm:$0xff] %v13197_v58  ;;  %v3401_v37 = vmul.f32 1.442695, %v3253_v32  ;;  %v3403_v36 = vmul.f32 1.442695, %v3254_v17  ;;  %3636 = vadd.xlane.f32.xlu0 %v3635_v10  ;;  %v3255_v53 = vsub.f32 %v12901_v31, %v3076_v9  ;;  %v3256_v55 = vsub.f32 %v12903_v33, %v3076_v9  ;;  %17122 = vst [vmem:[#allocation48_spill] sm:$0xff] %v13205_v26 }
 0x317   : > { %v3638_v28 = vadd.f32 %v13197_v58, %v13188_v62  ;;  %v3131_v32 = vmax.f32 %v13182_v50, %v13191_v25  ;;  %v13231_v9 = vmul.f32 0.044194173, %v13015_v13  ;;  %v13242_v13 = vmul.f32 0.044194173, %v13017_v7 }
 0x318   : > { %11869 = vpow2.f32 %v3401_v37  ;;  %v3405_v44 = vmul.f32 1.442695, %v3255_v53  ;;  %v3407_v42 = vmul.f32 1.442695, %v3256_v55  ;;  %v13209_v22 = vpop.f32.mrb[96].mxu0 }
 0x319   : > { %11871 = vpow2.f32 %v3403_v36  ;;  %3639 = vadd.xlane.f32.xlu1 %v3638_v28  ;;  %v13213_v31 = vpop.f32.mrb[97].mxu0  ;;  %v13222_v53 = vmul.f32 0.044194173, %v13013_v18  ;;  %v3134_v36 = vmax.f32 %v13202_v16, %v13205_v26  ;;  %17127 = vst [vmem:[#allocation53_spill] sm:$0xff] %v13231_v9  ;;  %17129 = vst [vmem:[#allocation55_spill] sm:$0xff] %v13242_v13 }
 0x31a   : > { %v13215_v33 = vpop.eup %11861  ;;  %11873 = vpow2.f32 %v3405_v44  ;;  %3132 = vmax.xlane.f32.xlu0 %v3131_v32  ;;  %v13217_v19 = vpop.f32.mrb[98].mxu0 }
 0x31b   : > { %17123 = vst [vmem:[#allocation49_spill] sm:$0xff] %v13215_v33  ;;  %v13219_v23 = vpop.eup %11863  ;;  %17125 = vst [vmem:[#allocation51_spill] sm:$0xff] %v13222_v53  ;;  %11875 = vpow2.f32 %v3407_v42  ;;  %v3079_v55 = vpop.xlane.xlu0 %3078 }
 0x31c   : > { %17124 = vst [vmem:[#allocation50_spill] sm:$0xff] %v13219_v23  ;;  %v13224_v17 = vpop.f32.mrb[99].mxu0  ;;  %v13228_v10 = vpop.eup %11865  ;;  %v3257_v37 = vsub.f32 %v12909_v38, %v3079_v55  ;;  %v3258_v28 = vsub.f32 %v12911_v39, %v3079_v55  ;;  %v3641_v18 = vadd.f32 %v13219_v23, %v13215_v33  ;;  %v13245_v38 = vmul.f32 0.044194173, %v13019_v3  ;;  %v17138_v23 = vld [vmem:[#allocation6_spill] sm:$0xff] }
 0x31d   : > { %17126 = vst [vmem:[#allocation52_spill] sm:$0xff] %v13228_v10  ;;  %v13237_v44 = vpop.eup %11867  ;;  %3135 = vmax.xlane.f32.xlu1 %v3134_v36  ;;  %v3082_v42 = vpop.xlane.xlu1 %3081 }
 0x31e   : > { %17128 = vst [vmem:[#allocation54_spill] sm:$0xff] %v13237_v44  ;;  %v3409_v32 = vmul.f32 1.442695, %v3257_v37  ;;  %v3411_v62 = vmul.f32 1.442695, %v3258_v28  ;;  %3642 = vadd.xlane.f32.xlu0 %v3641_v18  ;;  %v3259_v58 = vsub.f32 %v12913_v46, %v3082_v42  ;;  %v3260_v4 = vsub.f32 %v12915_v51, %v3082_v42  ;;  %17130 = vst [vmem:[#allocation56_spill] sm:$0xff] %v13245_v38 }
 0x31f   : > { %v3644_v39 = vadd.f32 %v13237_v44, %v13228_v10  ;;  %v3137_v37 = vmax.f32 %v13222_v53, %v13231_v9  ;;  %v13271_v42 = vmul.f32 0.044194173, %v13023_v54  ;;  %v17140_v54 = vld [vmem:[#allocation24_spill] sm:$0xff] }
 0x320   : > { %11877 = vpow2.f32 %v3409_v32  ;;  %v3413_v55 = vmul.f32 1.442695, %v3259_v58  ;;  %v3415_v36 = vmul.f32 1.442695, %v3260_v4  ;;  %v13249_v33 = vpop.f32.mrb[100].mxu0 }
 0x321   : > { %11879 = vpow2.f32 %v3411_v62  ;;  %3645 = vadd.xlane.f32.xlu1 %v3644_v39  ;;  %v13253_v46 = vpop.f32.mrb[101].mxu0  ;;  %v13262_v58 = vmul.f32 0.044194173, %v13021_v59  ;;  %v3140_v62 = vmax.f32 %v13242_v13, %v13245_v38  ;;  %17135 = vst [vmem:[#allocation61_spill] sm:$0xff] %v13271_v42  ;;  %v17136_v39 = vld [vmem:[#allocation5_spill] sm:$0xff]  ;;  %v17139_v13 = vld [vmem:[#allocation7_spill] sm:$0xff] }
 0x322   : > { %v13255_v51 = vpop.eup %11869  ;;  %11881 = vpow2.f32 %v3413_v55  ;;  %3138 = vmax.xlane.f32.xlu0 %v3137_v37  ;;  %v13257_v3 = vpop.f32.mrb[102].mxu0  ;;  %v13282_v53 = vmul.f32 0.044194173, %v17140_v54 }
 0x323   : > { %17131 = vst [vmem:[#allocation57_spill] sm:$0xff] %v13255_v51  ;;  %v13259_v7 = vpop.eup %11871  ;;  %17133 = vst [vmem:[#allocation59_spill] sm:$0xff] %v13262_v58  ;;  %11883 = vpow2.f32 %v3415_v36  ;;  %v3085_v4 = vpop.xlane.xlu0 %3084 }
 0x324   : > { %17132 = vst [vmem:[#allocation58_spill] sm:$0xff] %v13259_v7  ;;  %v13264_v28 = vpop.f32.mrb[103].mxu0  ;;  %v13268_v18 = vpop.eup %11873  ;;  %v3261_v32 = vsub.f32 %v12921_v56, %v3085_v4  ;;  %v3262_v55 = vsub.f32 %v17136_v39, %v3085_v4  ;;  %v3647_v59 = vadd.f32 %v13259_v7, %v13255_v51  ;;  %17141 = vst [vmem:[#allocation6_spill] sm:$0xff] %v13282_v53  ;;  %v17142_v56 = vld [vmem:[#allocation25_spill] sm:$0xff] }
 0x325   : > { %17134 = vst [vmem:[#allocation60_spill] sm:$0xff] %v13268_v18  ;;  %v13277_v37 = vpop.eup %11875  ;;  %3141 = vmax.xlane.f32.xlu1 %v3140_v62  ;;  %v3088_v36 = vpop.xlane.xlu1 %3087  ;;  %v13285_v26 = vmul.f32 0.044194173, %v17142_v56  ;;  %v17153_v56 = vld [vmem:[#allocation27_spill] sm:$0xff] }
 0x326   : > { %17137 = vst [vmem:[#allocation5_spill] sm:$0xff] %v13277_v37  ;;  %v3417_v10 = vmul.f32 1.442695, %v3261_v32  ;;  %v3419_v44 = vmul.f32 1.442695, %v3262_v55  ;;  %3648 = vadd.xlane.f32.xlu0 %v3647_v59  ;;  %v3263_v38 = vsub.f32 %v17138_v23, %v3088_v36  ;;  %v3264_v9 = vsub.f32 %v17139_v13, %v3088_v36 }
 0x327   : > { %17143 = vst [vmem:[#allocation7_spill] sm:$0xff] %v13285_v26  ;;  %v3650_v4 = vadd.f32 %v13277_v37, %v13268_v18  ;;  %v3143_v32 = vmax.f32 %v13262_v58, %v13271_v42  ;;  %v17156_v18 = vld [vmem:[#allocation9_spill] sm:$0xff] }
 0x328   : > { %11885 = vpow2.f32 %v3417_v10  ;;  %v3421_v39 = vmul.f32 1.442695, %v3263_v38  ;;  %v3423_v62 = vmul.f32 1.442695, %v3264_v9  ;;  %v13289_v51 = vpop.f32.mrb[104].mxu0  ;;  %v17149_v10 = vld [vmem:[#allocation26_spill] sm:$0xff] }
 0x329   : > { %17144 = vst [vmem:[#allocation24_spill] sm:$0xff] %v13289_v51  ;;  %11887 = vpow2.f32 %v3419_v44  ;;  %3651 = vadd.xlane.f32.xlu1 %v3650_v4  ;;  %v13293_v23 = vpop.f32.mrb[105].mxu0  ;;  %v13302_v38 = vmul.f32 0.044194173, %v17149_v10  ;;  %v3146_v44 = vmax.f32 %v13282_v53, %v13285_v26  ;;  %v13311_v4 = vmul.f32 0.044194173, %v17153_v56 }
 0x32a   : > { %17145 = vst [vmem:[#allocation25_spill] sm:$0xff] %v13293_v23  ;;  %v13295_v13 = vpop.eup %11877  ;;  %11889 = vpow2.f32 %v3421_v39  ;;  %3144 = vmax.xlane.f32.xlu0 %v3143_v32  ;;  %v13297_v55 = vpop.f32.mrb[106].mxu0  ;;  %v17155_v39 = vld [vmem:[#allocation8_spill] sm:$0xff]  ;;  %v17158_v26 = vld [vmem:[#allocation10_spill] sm:$0xff] }
 0x32b   : > { %17146 = vst [vmem:[#allocation62_spill] sm:$0xff] %v13295_v13  ;;  %17147 = vst [vmem:[#allocation63_spill] sm:$0xff] %v13297_v55  ;;  %v13299_v59 = vpop.eup %11879  ;;  %11891 = vpow2.f32 %v3423_v62  ;;  %v3091_v9 = vpop.xlane.xlu0 %3090  ;;  %v17160_v56 = vld [vmem:[#allocation28_spill] sm:$0xff] }
 0x32c   : > { %17148 = vst [vmem:[#allocation64_spill] sm:$0xff] %v13299_v59  ;;  %17150 = vst [vmem:[#allocation26_spill] sm:$0xff] %v13302_v38  ;;  %v13304_v36 = vpop.f32.mrb[107].mxu0  ;;  %v13308_v54 = vpop.eup %11881  ;;  %v3265_v32 = vsub.f32 %v17155_v39, %v3091_v9  ;;  %v3266_v37 = vsub.f32 %v17156_v18, %v3091_v9  ;;  %v3653_v10 = vadd.f32 %v13299_v59, %v13295_v13  ;;  %v13322_v23 = vmul.f32 0.044194173, %v17160_v56  ;;  %v17162_v39 = vld [vmem:[#allocation29_spill] sm:$0xff] }
 0x32d   : > { %17151 = vst [vmem:[#allocation65_spill] sm:$0xff] %v13304_v36  ;;  %17152 = vst [vmem:[#allocation66_spill] sm:$0xff] %v13308_v54  ;;  %v13317_v7 = vpop.eup %11883  ;;  %3147 = vmax.xlane.f32.xlu1 %v3146_v44  ;;  %v3094_v62 = vpop.xlane.xlu1 %3093  ;;  %v17159_v36 = vld [vmem:[#allocation11_spill] sm:$0xff]  ;;  %v13325_v51 = vmul.f32 0.044194173, %v17162_v39  ;;  %v17169_v39 = vld [vmem:[#allocation12_spill] sm:$0xff] }
 0x32e   : > { %17154 = vst [vmem:[#allocation27_spill] sm:$0xff] %v13311_v4  ;;  %17157 = vst [vmem:[#allocation8_spill] sm:$0xff] %v13317_v7  ;;  %v3425_v42 = vmul.f32 1.442695, %v3265_v32  ;;  %v3427_v58 = vmul.f32 1.442695, %v3266_v37  ;;  %3654 = vadd.xlane.f32.xlu0 %v3653_v10  ;;  %v3267_v53 = vsub.f32 %v17158_v26, %v3094_v62  ;;  %v3268_v55 = vsub.f32 %v17159_v36, %v3094_v62 }
 0x32f   : > { %17161 = vst [vmem:[#allocation9_spill] sm:$0xff] %v13322_v23  ;;  %17163 = vst [vmem:[#allocation10_spill] sm:$0xff] %v13325_v51  ;;  %v3656_v18 = vadd.f32 %v13317_v7, %v13308_v54  ;;  %v3149_v37 = vmax.f32 %v13302_v38, %v13311_v4  ;;  %v13351_v56 = vmul.f32 0.044194173, %v13043_v24  ;;  %v17173_v4 = vld [vmem:[#allocation15_spill] sm:$0xff] }
 0x330   : > { %11893 = vpow2.f32 %v3425_v42  ;;  %v3429_v9 = vmul.f32 1.442695, %v3267_v53  ;;  %v3431_v44 = vmul.f32 1.442695, %v3268_v55  ;;  %v13329_v13 = vpop.f32.mrb[108].mxu0 }
 0x331   : > { %11895 = vpow2.f32 %v3427_v58  ;;  %3657 = vadd.xlane.f32.xlu1 %v3656_v18  ;;  %v13333_v26 = vpop.f32.mrb[109].mxu0  ;;  %v13342_v53 = vmul.f32 0.044194173, %v13041_v27  ;;  %v3152_v58 = vmax.f32 %v13322_v23, %v13325_v51  ;;  %17168 = vst [vmem:[#allocation68_spill] sm:$0xff] %v13351_v56  ;;  %v17172_v51 = vld [vmem:[#allocation14_spill] sm:$0xff] }
 0x332   : > { %v13335_v36 = vpop.eup %11885  ;;  %11897 = vpow2.f32 %v3429_v9  ;;  %3150 = vmax.xlane.f32.xlu0 %v3149_v37  ;;  %v13337_v32 = vpop.f32.mrb[110].mxu0  ;;  %v17170_v9 = vld [vmem:[#allocation13_spill] sm:$0xff]  ;;  %v13362_v24 = vmul.f32 0.044194173, %v13045_v14 }
 0x333   : > { %17164 = vst [vmem:[#allocation11_spill] sm:$0xff] %v13335_v36  ;;  %v13339_v10 = vpop.eup %11887  ;;  %17166 = vst [vmem:[#allocation29_spill] sm:$0xff] %v13342_v53  ;;  %11899 = vpow2.f32 %v3431_v44  ;;  %v3097_v42 = vpop.xlane.xlu0 %3096 }
 0x334   : > { %17165 = vst [vmem:[#allocation28_spill] sm:$0xff] %v13339_v10  ;;  %v13344_v55 = vpop.f32.mrb[111].mxu0  ;;  %v13348_v62 = vpop.eup %11889  ;;  %v3269_v18 = vsub.f32 %v17169_v39, %v3097_v42  ;;  %v3270_v37 = vsub.f32 %v17170_v9, %v3097_v42  ;;  %v3659_v27 = vadd.f32 %v13339_v10, %v13335_v36  ;;  %17174 = vst [vmem:[#allocation13_spill] sm:$0xff] %v13362_v24  ;;  %v13365_v39 = vmul.f32 0.044194173, %v13047_v34 }
 0x335   : > { %17167 = vst [vmem:[#allocation67_spill] sm:$0xff] %v13348_v62  ;;  %v13357_v54 = vpop.eup %11891  ;;  %3153 = vmax.xlane.f32.xlu1 %v3152_v58  ;;  %v3100_v44 = vpop.xlane.xlu1 %3099 }
 0x336   : > { %17171 = vst [vmem:[#allocation12_spill] sm:$0xff] %v13357_v54  ;;  %v3433_v7 = vmul.f32 1.442695, %v3269_v18  ;;  %v3435_v59 = vmul.f32 1.442695, %v3270_v37  ;;  %3660 = vadd.xlane.f32.xlu0 %v3659_v27  ;;  %v3271_v23 = vsub.f32 %v17172_v51, %v3100_v44  ;;  %v3272_v38 = vsub.f32 %v17173_v4, %v3100_v44  ;;  %17175 = vst [vmem:[#allocation14_spill] sm:$0xff] %v13365_v39 }
 0x337   : > { %v3662_v42 = vadd.f32 %v13357_v54, %v13348_v62  ;;  %v3155_v18 = vmax.f32 %v13342_v53, %v13351_v56  ;;  %v13391_v27 = vmul.f32 0.044194173, %v13055_v61  ;;  %v17182_v44 = vld [vmem:[#allocation16_spill] sm:$0xff]  ;;  %v17186_v56 = vld [vmem:[#allocation19_spill] sm:$0xff]  ;;  %v13402_v61 = vmul.f32 0.044194173, %v13059_v41 }
 0x338   : > { %11901 = vpow2.f32 %v3433_v7  ;;  %v3437_v9 = vmul.f32 1.442695, %v3271_v23  ;;  %v3439_v58 = vmul.f32 1.442695, %v3272_v38  ;;  %v13369_v36 = vpop.f32.mrb[112].mxu0 }
 0x339   : > { %11903 = vpow2.f32 %v3435_v59  ;;  %3663 = vadd.xlane.f32.xlu1 %v3662_v42  ;;  %v13373_v51 = vpop.f32.mrb[113].mxu0  ;;  %v13382_v7 = vmul.f32 0.044194173, %v13053_v48  ;;  %v3158_v59 = vmax.f32 %v13362_v24, %v13365_v39  ;;  %17181 = vst [vmem:[#allocation73_spill] sm:$0xff] %v13391_v27  ;;  %v17185_v39 = vld [vmem:[#allocation18_spill] sm:$0xff] }
 0x33a   : > { %v13375_v14 = vpop.eup %11893  ;;  %11905 = vpow2.f32 %v3437_v9  ;;  %3156 = vmax.xlane.f32.xlu0 %v3155_v18  ;;  %v13377_v34 = vpop.f32.mrb[114].mxu0  ;;  %v17183_v9 = vld [vmem:[#allocation17_spill] sm:$0xff] }
 0x33b   : > { %17176 = vst [vmem:[#allocation15_spill] sm:$0xff] %v13375_v14  ;;  %v13379_v4 = vpop.eup %11895  ;;  %17178 = vst [vmem:[#allocation70_spill] sm:$0xff] %v13382_v7  ;;  %11907 = vpow2.f32 %v3439_v58  ;;  %v3103_v23 = vpop.xlane.xlu0 %3102 }
 0x33c   : > { %17177 = vst [vmem:[#allocation69_spill] sm:$0xff] %v13379_v4  ;;  %v13384_v38 = vpop.f32.mrb[115].mxu0  ;;  %v13388_v37 = vpop.eup %11897  ;;  %v3273_v42 = vsub.f32 %v17182_v44, %v3103_v23  ;;  %v3274_v18 = vsub.f32 %v17183_v9, %v3103_v23  ;;  %v3665_v48 = vadd.f32 %v13379_v4, %v13375_v14  ;;  %17187 = vst [vmem:[#allocation17_spill] sm:$0xff] %v13402_v61  ;;  %v17188_v44 = vld [vmem:[#allocation32_spill] sm:$0xff] }
 0x33d   : > { %17179 = vst [vmem:[#allocation71_spill] sm:$0xff] %v13384_v38  ;;  %17180 = vst [vmem:[#allocation72_spill] sm:$0xff] %v13388_v37  ;;  %v13397_v62 = vpop.eup %11899  ;;  %3159 = vmax.xlane.f32.xlu1 %v3158_v59  ;;  %v3106_v58 = vpop.xlane.xlu1 %3105  ;;  %v13405_v38 = vmul.f32 0.044194173, %v17188_v44  ;;  %v17192_v44 = vld [vmem:[#allocation20_spill] sm:$0xff] }
 0x33e   : > { %17184 = vst [vmem:[#allocation16_spill] sm:$0xff] %v13397_v62  ;;  %v3441_v54 = vmul.f32 1.442695, %v3273_v42  ;;  %v3443_v10 = vmul.f32 1.442695, %v3274_v18  ;;  %3666 = vadd.xlane.f32.xlu0 %v3665_v48  ;;  %v3275_v24 = vsub.f32 %v17185_v39, %v3106_v58  ;;  %v3276_v53 = vsub.f32 %v17186_v56, %v3106_v58 }
 0x33f   : > { %17189 = vst [vmem:[#allocation18_spill] sm:$0xff] %v13405_v38  ;;  %v3668_v23 = vadd.f32 %v13397_v62, %v13388_v37  ;;  %v3161_v42 = vmax.f32 %v13382_v7, %v13391_v27  ;;  %v13431_v58 = vmul.f32 0.044194173, %v13093_v63  ;;  %v17196_v27 = vld [vmem:[#allocation23_spill] sm:$0xff]  ;;  %v13442_v63 = vmul.f32 0.044194173, %v13097_v40 }
 0x340   : > { %11909 = vpow2.f32 %v3441_v54  ;;  %v3445_v9 = vmul.f32 1.442695, %v3275_v24  ;;  %v3447_v59 = vmul.f32 1.442695, %v3276_v53  ;;  %v13409_v14 = vpop.f32.mrb[116].mxu0 }
 0x341   : > { %11911 = vpow2.f32 %v3443_v10  ;;  %3669 = vadd.xlane.f32.xlu1 %v3668_v23  ;;  %v13413_v56 = vpop.f32.mrb[117].mxu0  ;;  %v13422_v54 = vmul.f32 0.044194173, %v13089_v45  ;;  %v3164_v10 = vmax.f32 %v13402_v61, %v13405_v38  ;;  %v17195_v38 = vld [vmem:[#allocation22_spill] sm:$0xff] }
 0x342   : > { %v13415_v41 = vpop.eup %11901  ;;  %11913 = vpow2.f32 %v3445_v9  ;;  %3162 = vmax.xlane.f32.xlu0 %v3161_v42  ;;  %v13417_v39 = vpop.f32.mrb[118].mxu0  ;;  %v17193_v9 = vld [vmem:[#allocation21_spill] sm:$0xff] }
 0x343   : > { %17190 = vst [vmem:[#allocation19_spill] sm:$0xff] %v13415_v41  ;;  %v13419_v18 = vpop.eup %11903  ;;  %11915 = vpow2.f32 %v3447_v59  ;;  %v3109_v53 = vpop.xlane.xlu0 %3108 }
 0x344   : > { %v13424_v24 = vpop.f32.mrb[119].mxu0  ;;  %v13428_v48 = vpop.eup %11905  ;;  %v3277_v23 = vsub.f32 %v17192_v44, %v3109_v53  ;;  %v3278_v42 = vsub.f32 %v17193_v9, %v3109_v53  ;;  %v3671_v45 = vadd.f32 %v13419_v18, %v13415_v41  ;;  %v13445_v44 = vmul.f32 0.044194173, %v13104_v6 }
 0x345   : > { %17191 = vst [vmem:[#allocation32_spill] sm:$0xff] %v13428_v48  ;;  %v13437_v37 = vpop.eup %11907  ;;  %3165 = vmax.xlane.f32.xlu1 %v3164_v10  ;;  %v3112_v59 = vpop.xlane.xlu1 %3111 }
 0x346   : > { %17194 = vst [vmem:[#allocation20_spill] sm:$0xff] %v13437_v37  ;;  %v3449_v62 = vmul.f32 1.442695, %v3277_v23  ;;  %v3451_v4 = vmul.f32 1.442695, %v3278_v42  ;;  %3672 = vadd.xlane.f32.xlu0 %v3671_v45  ;;  %v3279_v61 = vsub.f32 %v17195_v38, %v3112_v59  ;;  %v3280_v7 = vsub.f32 %v17196_v27, %v3112_v59 }
 0x347   : > { %v3674_v53 = vadd.f32 %v13437_v37, %v13428_v48  ;;  %v3167_v23 = vmax.f32 %v13422_v54, %v13431_v58  ;;  %v13471_v42 = vmul.f32 0.044194173, %v13133_v8  ;;  %v13516_v37 = vmul.f32 0.044194173, %v13177_v2  ;;  %v11632_v2 = vld [vmem:[%s17209_s29 + $0x4] ss:$16 sps:$4 sm:$0xff]  }
 0x348   : > { %11917 = vpow2.f32 %v3449_v62  ;;  %v3453_v9 = vmul.f32 1.442695, %v3279_v61  ;;  %v3455_v10 = vmul.f32 1.442695, %v3280_v7  ;;  %v13449_v41 = vpop.f32.mrb[120].mxu0  ;;  %v3170_v7 = vmax.f32 %v13442_v63, %v13445_v44  ;;  %5505 = vmatprep.mubr.bf16.mxu0 %v11632_v2 }
 0x349   : > { %11919 = vpow2.f32 %v3451_v4  ;;  %3675 = vadd.xlane.f32.xlu1 %v3674_v53  ;;  %v13453_v38 = vpop.f32.mrb[121].mxu0  ;;  %v13468_v4 = vmul.f32 0.044194173, %v13129_v1  ;;  %17207 = vst [vmem:[#allocation81_spill] sm:$0xff] %v13516_v37  ;;  %v12240_v2 = vld [vmem:[%s12577_s4 + $0x24c] ss:$16 sps:$4 sm:$0xff]  }
 0x34a   : > { %v13455_v40 = vpop.eup %11909  ;;  %11921 = vpow2.f32 %v3453_v9  ;;  %3168 = vmax.xlane.f32.xlu0 %v3167_v23  ;;  %v13457_v6 = vpop.f32.mrb[122].mxu0  ;;  %v13480_v9 = vmul.f32 0.044194173, %v13137_v52 }
 0x34b   : > { %17197 = vst [vmem:[#allocation21_spill] sm:$0xff] %v13455_v40  ;;  %v13459_v27 = vpop.eup %11911  ;;  %11923 = vpow2.f32 %v3455_v10  ;;  %v13461_v62 = vpop.f32.mrb[123].mxu0  ;;  %v13483_v10 = vmul.f32 0.044194173, %v13144_v60  ;;  %v3173_v8 = vmax.f32 %v13468_v4, %v13471_v42 }
 0x34c   : > { %17198 = vst [vmem:[#allocation22_spill] sm:$0xff] %v13459_v27  ;;  %v13465_v61 = vpop.eup %11913  ;;  %v3677_v45 = vadd.f32 %v13459_v27, %v13455_v40 }
 0x34d   : > { %17199 = vst [vmem:[#allocation23_spill] sm:$0xff] %v13465_v61  ;;  %v13475_v59 = vpop.eup %11915  ;;  %3171 = vmax.xlane.f32.xlu1 %v3170_v7  ;;  %v3176_v60 = vmax.f32 %v13480_v9, %v13483_v10 }
 0x34e   : > { %17200 = vst [vmem:[#allocation74_spill] sm:$0xff] %v13475_v59  ;;  %3678 = vadd.xlane.f32.xlu0 %v3677_v45  ;;  %v3680_v53 = vadd.f32 %v13475_v59, %v13465_v61  ;;  %v13504_v59 = vmul.f32 0.044194173, %v13169_v11  ;;  %v13519_v11 = vmul.f32 0.044194173, %v13184_v5 }
 0x34f   : > { %v11633_v5 = vld [vmem:[%s17209_s29 + $0x24] ss:$16 sps:$4 sm:$0xff]  }
 0x350   : > { %v13485_v1 = vpop.f32.mrb[124].mxu0  ;;  %17204 = vst [vmem:[#allocation78_spill] sm:$0xff] %v13504_v59  ;;  %17208 = vst [vmem:[#allocation82_spill] sm:$0xff] %v13519_v11 }
 0x351   : > { %3681 = vadd.xlane.f32.xlu1 %v3680_v53  ;;  %v13489_v23 = vpop.f32.mrb[125].mxu0  ;;  %v13507_v53 = vmul.f32 0.044194173, %v13173_v20 }
 0x352   : > { %v13491_v40 = vpop.eup %11917  ;;  %3174 = vmax.xlane.f32.xlu0 %v3173_v8  ;;  %v13493_v7 = vpop.f32.mrb[126].mxu0 }
 0x353   : > { %17201 = vst [vmem:[#allocation75_spill] sm:$0xff] %v13491_v40  ;;  %v13495_v45 = vpop.eup %11919  ;;  %v13497_v52 = vpop.f32.mrb[127].mxu0  ;;  %17205 = vst [vmem:[#allocation79_spill] sm:$0xff] %v13507_v53  ;;  %v3179_v20 = vmax.f32 %v13504_v59, %v13507_v53  ;;  %v12246_v53 = vld [vmem:[%s12577_s4 + $0x2ac] ss:$16 sps:$4 sm:$0xff]  }
 0x354   : > { %17202 = vst [vmem:[#allocation76_spill] sm:$0xff] %v13495_v45  ;;  %v13501_v61 = vpop.eup %11921  ;;  %v3683_v8 = vadd.f32 %v13495_v45, %v13491_v40  ;;  %v12243_v40 = vld [vmem:[%s12577_s4 + $0x268] ss:$16 sps:$4 sm:$0xff]  }
 0x355   : > { %17203 = vst [vmem:[#allocation77_spill] sm:$0xff] %v13501_v61  ;;  %v13511_v27 = vpop.eup %11923  ;;  %3177 = vmax.xlane.f32.xlu1 %v3176_v60  ;;  %v3182_v60 = vmax.f32 %v13516_v37, %v13519_v11 }
 0x356   : > { %17206 = vst [vmem:[#allocation80_spill] sm:$0xff] %v13511_v27  ;;  %3684 = vadd.xlane.f32.xlu0 %v3683_v8  ;;  %v3686_v48 = vadd.f32 %v13511_v27, %v13501_v61  ;;  %v11630_v8 = vld [vmem:[%s17209_s29] ss:$16 sps:$4 sm:$0xff]   ;;  %v11636_v61 = vld [vmem:[%s17209_s29 + $0x44] ss:$16 sps:$4 sm:$0xff]  }
 0x357   : > { %5506 = vmatmul.mubr.bf16.vlgmr.msra.gmra.mrb[128].mxu0 %v11630_v8  ;;  %v12239_v27 = vld [vmem:[%s12577_s4 + $0x228] ss:$16 sps:$4 sm:$0xff]  }
 0x358   : > { %5515 = vmatprep.mubr.bf16.mxu0 %v11633_v5  ;;  %v12241_v8 = vld [vmem:[%s12577_s4 + $0x248] ss:$16 sps:$4 sm:$0xff]   ;;  %v12242_v5 = vld [vmem:[%s12577_s4 + $0x26c] ss:$16 sps:$4 sm:$0xff]  }
 0x359   : > { %3687 = vadd.xlane.f32.xlu1 %v3686_v48  ;;  %v12237_v48 = vld [vmem:[%s12577_s4 + $0x208] ss:$16 sps:$4 sm:$0xff]  }
 0x35a   : > { %3180 = vmax.xlane.f32.xlu0 %v3179_v20  ;;  %5707 = vmatpush1.bf16.msra.mxu0 %v12237_v48  ;;  %v12238_v20 = vld [vmem:[%s12577_s4 + $0x22c] ss:$16 sps:$4 sm:$0xff]  }
 0x35b   : > { %5708 = vmatprep.subr.bf16.mxu0 %v12238_v20  ;;  %v11638_v20 = vld [vmem:[%s17209_s29 + $0x40] ss:$16 sps:$4 sm:$0xff]  }
 0x35d   : > { %3183 = vmax.xlane.f32.xlu1 %v3182_v60  ;;  %v11635_v60 = vld [vmem:[%s17209_s29 + $0x20] ss:$16 sps:$4 sm:$0xff]  }
 0x35e   : > { %5709 = vmatpush1.bf16.msra.mxu0 %v12239_v27  ;;  %v11639_v27 = vld [vmem:[%s17209_s29 + $0x64] ss:$16 sps:$4 sm:$0xff]  }
 0x35f   : > { %5710 = vmatprep.subr.bf16.mxu0 %v12240_v2  ;;  %5516 = vmatmul.mubr.bf16.gmra.mrb[132].mxu0 %v11635_v60 }
 0x360   : > { %5525 = vmatprep.mubr.bf16.mxu0 %v11636_v61  ;;  %v12244_v61 = vld [vmem:[%s12577_s4 + $0x28c] ss:$16 sps:$4 sm:$0xff]  }
 0x362   : > { %5711 = vmatpush1.bf16.msra.mxu0 %v12241_v8 }
 0x363   : > { %5712 = vmatprep.subr.bf16.mxu0 %v12242_v5 }
 0x366   : > { %5713 = vmatpush1.bf16.msra.mxu0 %v12243_v40 }
 0x367   : > { %5714 = vmatprep.subr.bf16.mxu0 %v12244_v61  ;;  %5526 = vmatmul.mubr.bf16.gmra.mrb[136].mxu0 %v11638_v20 }
 0x368   : > { %5535 = vmatprep.mubr.bf16.mxu0 %v11639_v27  ;;  %v11642_v27 = vld [vmem:[%s17209_s29 + $0x84] ss:$16 sps:$4 sm:$0xff]  }
 0x38b   : > { %v3619_v48 = vpop.xlane.xlu0 %3618 }
 0x38c   : > { %11925 = vrcp.f32 %v3619_v48  ;;  %v12245_v48 = vld [vmem:[%s12577_s4 + $0x288] ss:$16 sps:$4 sm:$0xff]  }
 0x38d   : > { %5715 = vmatpush1.bf16.msra.mxu0 %v12245_v48 }
 0x38e   : > { %v3622_v60 = vpop.xlane.xlu1 %3621  ;;  %5716 = vmatprep.subr.bf16.mxu0 %v12246_v53 }
 0x38f   : > { %11927 = vrcp.f32 %v3622_v60  ;;  %v3115_v2 = vpop.xlane.xlu0 %3114  ;;  %v17210_v60 = vld [vmem:[#allocation35_spill] sm:$0xff] }
 0x390   : > { %v3281_v8 = vsub.f32 %v13064_v30, %v3115_v2  ;;  %v3282_v5 = vsub.f32 %v13071_v35, %v3115_v2  ;;  %v11641_v30 = vld [vmem:[%s17209_s29 + $0x60] ss:$16 sps:$4 sm:$0xff]   ;;  %v12247_v2 = vld [vmem:[%s12577_s4 + $0x2a8] ss:$16 sps:$4 sm:$0xff]  }
 0x391   : > { %5717 = vmatpush1.bf16.msra.mxu0 %v12247_v2 }
 0x392   : > { %v3457_v45 = vmul.f32 1.442695, %v3281_v8  ;;  %v3459_v11 = vmul.f32 1.442695, %v3282_v5  ;;  %v3118_v37 = vpop.xlane.xlu1 %3117  ;;  %v17213_v5 = vld [vmem:[#allocation30_spill] sm:$0xff]  ;;  %5536 = vmatmul.mubr.bf16.gmra.mrb[140].mxu0 %v11641_v30 }
 0x393   : > { %v3283_v40 = vsub.f32 %v13082_v29, %v3118_v37  ;;  %v3284_v61 = vsub.f32 %v17210_v60, %v3118_v37  ;;  %v3625_v59 = vpop.xlane.xlu0 %3624  ;;  %v12248_v37 = vld [vmem:[%s12577_s4 + $0x2cc] ss:$16 sps:$4 sm:$0xff]   ;;  %5545 = vmatprep.mubr.bf16.mxu0 %v11642_v27 }
 0x394   : > { %11929 = vpow2.f32 %v3457_v45  ;;  %5718 = vmatprep.subr.bf16.mxu0 %v12248_v37 }
 0x395   : > { %11931 = vpow2.f32 %v3459_v11  ;;  %v3461_v35 = vmul.f32 1.442695, %v3283_v40  ;;  %v3463_v20 = vmul.f32 1.442695, %v3284_v61  ;;  %v17212_v11 = vld [vmem:[#allocation31_spill] sm:$0xff] }
 0x396   : > { %v11926_v53 = vpop.eup %11925  ;;  %11933 = vrcp.f32 %v3625_v59  ;;  %v3628_v29 = vpop.xlane.xlu1 %3627  ;;  %v12249_v61 = vld [vmem:[%s12577_s4 + $0x2c8] ss:$16 sps:$4 sm:$0xff]  }
 0x397   : > { %11935 = vpow2.f32 %v3461_v35  ;;  %v3121_v45 = vpop.xlane.xlu0 %3120  ;;  %v3874_v8 = vmul.f32 %v11926_v53, %v17212_v11  ;;  %v3873_v48 = vmul.f32 %v11926_v53, %v17213_v5  ;;  %5719 = vmatpush1.bf16.msra.mxu0 %v12249_v61  ;;  %v17214_v53 = vld [vmem:[#allocation34_spill] sm:$0xff]  ;;  %v17215_v11 = vld [vmem:[#allocation33_spill] sm:$0xff] }
 0x398   : > { %11937 = vpow2.f32 %v3463_v20  ;;  %v3285_v59 = vsub.f32 %v13102_v47, %v3121_v45  ;;  %v3286_v40 = vsub.f32 %v13111_v21, %v3121_v45  ;;  %v12250_v47 = vld [vmem:[%s12577_s4 + $0x2ec] ss:$16 sps:$4 sm:$0xff]   ;;  %v12251_v61 = vld [vmem:[%s12577_s4 + $0x2e8] ss:$16 sps:$4 sm:$0xff]  }
 0x399   : > { %v11928_v60 = vpop.eup %11927  ;;  %11939 = vrcp.f32 %v3628_v29  ;;  %4002 = vst [vmem:[%s13572_s5 + $0x8] sm:$0xff] %v3874_v8  ;;  %4001 = vst [vmem:[%s13572_s5] sm:$0xff] %v3873_v48  ;;  %5720 = vmatprep.subr.bf16.mxu0 %v12250_v47 }
 0x39a   : > { %v3465_v35 = vmul.f32 1.442695, %v3285_v59  ;;  %v3467_v2 = vmul.f32 1.442695, %v3286_v40  ;;  %v3124_v37 = vpop.xlane.xlu1 %3123  ;;  %v3876_v20 = vmul.f32 %v11928_v60, %v17214_v53  ;;  %v3875_v5 = vmul.f32 %v11928_v60, %v17215_v11  ;;  %v11644_v59 = vld [vmem:[%s17209_s29 + $0x80] ss:$16 sps:$4 sm:$0xff]  }
 0x39b   : > { %v3287_v21 = vsub.f32 %v13122_v43, %v3124_v37  ;;  %v3288_v30 = vsub.f32 %v13125_v57, %v3124_v37  ;;  %v3631_v29 = vpop.xlane.xlu0 %3630  ;;  %v11645_v43 = vld [vmem:[%s17209_s29 + $0xa4] ss:$16 sps:$4 sm:$0xff]   ;;  %5721 = vmatpush1.bf16.msra.mxu0 %v12251_v61  ;;  %v13602_v37 = vmul.f32 0.044194173, %v13209_v22 }
 0x39c   : > { %11941 = vpow2.f32 %v3465_v35  ;;  %4004 = vst [vmem:[%s13572_s5 + $0x18] sm:$0xff] %v3876_v20  ;;  %v10722_v27 = vpack.c.bf16 %v3876_v20, %v3874_v8  ;;  %4003 = vst [vmem:[%s13572_s5 + $0x10] sm:$0xff] %v3875_v5  ;;  %v10724_v45 = vpack.c.bf16 %v3875_v5, %v3873_v48  ;;  %v12252_v35 = vld [vmem:[%s12577_s4 + $0x30c] ss:$16 sps:$4 sm:$0xff]   ;;  %5546 = vmatmul.mubr.bf16.gmra.mrb[144].mxu0 %v11644_v59 }
 0x39d   : > { %11943 = vpow2.f32 %v3467_v2  ;;  %v3469_v40 = vmul.f32 1.442695, %v3287_v21  ;;  %v3471_v60 = vmul.f32 1.442695, %v3288_v30  ;;  %5722 = vmatprep.subr.bf16.mxu0 %v12252_v35  ;;  %v13605_v2 = vmul.f32 0.044194173, %v13213_v31  ;;  %5555 = vmatprep.mubr.bf16.mxu0 %v11645_v43 }
 0x39e   : > { %v13596_v57 = vpop.eup %11929  ;;  %11945 = vrcp.f32 %v3631_v29  ;;  %10723 = vmatprep.subr.bf16.mxu1 %v10722_v27  ;;  %v3634_v8 = vpop.xlane.xlu1 %3633  ;;  %v17216_v21 = vld [vmem:[#allocation37_spill] sm:$0xff]  ;;  %v17217_v30 = vld [vmem:[#allocation36_spill] sm:$0xff] }
 0x39f   : > { %v13599_v48 = vpop.eup %11931  ;;  %11947 = vpow2.f32 %v3469_v40  ;;  %10725 = vmatpush1.bf16.xpose.msra.mxu1 %v10724_v45  ;;  %v3127_v53 = vpop.xlane.xlu0 %3126  ;;  %v12253_v27 = vld [vmem:[%s12577_s4 + $0x308] ss:$16 sps:$4 sm:$0xff]  }
 0x3a0   : > { %v11934_v20 = vpop.eup %11933  ;;  %11949 = vpow2.f32 %v3471_v60  ;;  %v3289_v11 = vsub.f32 %v13142_v12, %v3127_v53  ;;  %v3290_v5 = vsub.f32 %v13151_v49, %v3127_v53  ;;  %v3689_v47 = vadd.f32 %v13599_v48, %v13596_v57  ;;  %5723 = vmatpush1.bf16.msra.mxu0 %v12253_v27  ;;  %v12254_v60 = vld [vmem:[%s12577_s4 + $0x32c] ss:$16 sps:$4 sm:$0xff]  }
 0x3a1   : > { %v13611_v22 = vpop.eup %11935  ;;  %11951 = vrcp.f32 %v3634_v8  ;;  %v3878_v31 = vmul.f32 %v11934_v20, %v17216_v21  ;;  %v3877_v29 = vmul.f32 %v11934_v20, %v17217_v30  ;;  %v13619_v49 = vmul.f32 0.044194173, %v13217_v19  ;;  %5724 = vmatprep.subr.bf16.mxu0 %v12254_v60  ;;  %v12255_v30 = vld [vmem:[%s12577_s4 + $0x328] ss:$16 sps:$4 sm:$0xff]  }
 0x3a2   : > { %v13616_v12 = vpop.eup %11937  ;;  %v3473_v45 = vmul.f32 1.442695, %v3289_v11  ;;  %v3475_v40 = vmul.f32 1.442695, %v3290_v5  ;;  %3690 = vadd.xlane.f32.xlu0 %v3689_v47  ;;  %v3130_v59 = vpop.xlane.xlu1 %3129  ;;  %v13623_v8 = vmul.f32 0.044194173, %v13224_v17  ;;  %v3185_v20 = vmax.f32 %v13602_v37, %v13605_v2 }
 0x3a3   : > { %v11940_v61 = vpop.eup %11939  ;;  %v3291_v43 = vsub.f32 %v13162_v0, %v3130_v59  ;;  %v3292_v35 = vsub.f32 %v13165_v15, %v3130_v59  ;;  %v3637_v53 = vpop.xlane.xlu0 %3636  ;;  %v3692_v19 = vadd.f32 %v13616_v12, %v13611_v22  ;;  %4006 = vst [vmem:[%s13572_s5 + $0x28] sm:$0xff] %v3878_v31  ;;  %4005 = vst [vmem:[%s13572_s5 + $0x20] sm:$0xff] %v3877_v29  ;;  %v17218_v11 = vld [vmem:[#allocation39_spill] sm:$0xff]  ;;  %v17219_v5 = vld [vmem:[#allocation38_spill] sm:$0xff] }
 0x3a4   : > { %11953 = vpow2.f32 %v3473_v45  ;;  %v3880_v17 = vmul.f32 %v11940_v61, %v17218_v11  ;;  %v3879_v47 = vmul.f32 %v11940_v61, %v17219_v5  ;;  %v11647_v0 = vld [vmem:[%s17209_s29 + $0xa0] ss:$16 sps:$4 sm:$0xff]   ;;  %5725 = vmatpush1.bf16.msra.mxu0 %v12255_v30  ;;  %v12256_v61 = vld [vmem:[%s12577_s4 + $0x34c] ss:$16 sps:$4 sm:$0xff]   ;;  %v12257_v30 = vld [vmem:[%s12577_s4 + $0x348] ss:$16 sps:$4 sm:$0xff]  }
 0x3a5   : > { %11955 = vpow2.f32 %v3475_v40  ;;  %v3477_v15 = vmul.f32 1.442695, %v3291_v43  ;;  %v3479_v21 = vmul.f32 1.442695, %v3292_v35  ;;  %3693 = vadd.xlane.f32.xlu1 %v3692_v19  ;;  %5726 = vmatprep.subr.bf16.mxu0 %v12256_v61  ;;  %v13647_v40 = vmul.f32 0.044194173, %v13249_v33 }
 0x3a6   : > { %v13639_v27 = vpop.eup %11941  ;;  %11957 = vrcp.f32 %v3637_v53  ;;  %3186 = vmax.xlane.f32.xlu0 %v3185_v20  ;;  %4008 = vst [vmem:[%s13572_s5 + $0x38] sm:$0xff] %v3880_v17  ;;  %v10726_v45 = vpack.c.bf16 %v3880_v17, %v3878_v31  ;;  %v3640_v59 = vpop.xlane.xlu1 %3639  ;;  %4007 = vst [vmem:[%s13572_s5 + $0x30] sm:$0xff] %v3879_v47  ;;  %v10728_v60 = vpack.c.bf16 %v3879_v47, %v3877_v29  ;;  %v13650_v43 = vmul.f32 0.044194173, %v13253_v46  ;;  %v17223_v46 = vld [vmem:[#allocation41_spill] sm:$0xff]  ;;  %v17224_v5 = vld [vmem:[#allocation40_spill] sm:$0xff] }
 0x3a7   : > { %17220 = vst [vmem:[#allocation35_spill] sm:$0xff] %v13639_v27  ;;  %v13644_v11 = vpop.eup %11943  ;;  %11959 = vpow2.f32 %v3477_v15  ;;  %v3133_v35 = vpop.xlane.xlu0 %3132  ;;  %v3188_v53 = vmax.f32 %v13619_v49, %v13623_v8  ;;  %5556 = vmatmul.mubr.bf16.gmra.mrb[148].mxu0 %v11647_v0  ;;  %v17227_v61 = vld [vmem:[#allocation48_spill] sm:$0xff] }
 0x3a8   : > { %17221 = vst [vmem:[#allocation31_spill] sm:$0xff] %v13644_v11  ;;  %v11946_v19 = vpop.eup %11945  ;;  %11961 = vpow2.f32 %v3479_v21  ;;  %10727 = vmatprep.subr.bf16.mxu1 %v10726_v45  ;;  %v3293_v31 = vsub.f32 %v13182_v50, %v3133_v35  ;;  %v3294_v29 = vsub.f32 %v13191_v25, %v3133_v35  ;;  %v3695_v33 = vadd.f32 %v13644_v11, %v13639_v27  ;;  %v17242_v27 = vld [vmem:[#allocation55_spill] sm:$0xff]  ;;  %v17243_v11 = vld [vmem:[#allocation56_spill] sm:$0xff] }
 0x3a9   : > { %v13658_v20 = vpop.eup %11947  ;;  %11963 = vrcp.f32 %v3640_v59  ;;  %10729 = vmatpush1.bf16.xpose.msra.mxu1 %v10728_v60  ;;  %3189 = vmax.xlane.f32.xlu1 %v3188_v53  ;;  %v3882_v17 = vmul.f32 %v11946_v19, %v17223_v46  ;;  %v3881_v47 = vmul.f32 %v11946_v19, %v17224_v5  ;;  %v13665_v50 = vmul.f32 0.044194173, %v13257_v3  ;;  %v12258_v3 = vld [vmem:[%s12577_s4 + $0x36c] ss:$16 sps:$4 sm:$0xff]  }
 0x3aa   : > { %17222 = vst [vmem:[#allocation30_spill] sm:$0xff] %v13658_v20  ;;  %v13662_v15 = vpop.eup %11949  ;;  %v3481_v25 = vmul.f32 1.442695, %v3293_v31  ;;  %v3483_v21 = vmul.f32 1.442695, %v3294_v29  ;;  %3696 = vadd.xlane.f32.xlu0 %v3695_v33  ;;  %v3136_v0 = vpop.xlane.xlu1 %3135  ;;  %5727 = vmatpush1.bf16.msra.mxu0 %v12257_v30  ;;  %v17228_v31 = vld [vmem:[#allocation43_spill] sm:$0xff] }
 0x3ab   : > { %17225 = vst [vmem:[#allocation34_spill] sm:$0xff] %v13662_v15  ;;  %v11952_v45 = vpop.eup %11951  ;;  %v13669_v59 = vmul.f32 0.044194173, %v13264_v28  ;;  %v3295_v60 = vsub.f32 %v13202_v16, %v3136_v0  ;;  %v3296_v35 = vsub.f32 %v17227_v61, %v3136_v0  ;;  %v3643_v53 = vpop.xlane.xlu0 %3642  ;;  %v3698_v19 = vadd.f32 %v13662_v15, %v13658_v20  ;;  %4010 = vst [vmem:[%s13572_s5 + $0x48] sm:$0xff] %v3882_v17  ;;  %v17229_v16 = vld [vmem:[#allocation42_spill] sm:$0xff] }
 0x3ac   : > { %4009 = vst [vmem:[%s13572_s5 + $0x40] sm:$0xff] %v3881_v47  ;;  %5728 = vmatprep.subr.bf16.mxu0 %v12258_v3  ;;  %11965 = vpow2.f32 %v3481_v25  ;;  %v3191_v28 = vmax.f32 %v13647_v40, %v13650_v43  ;;  %v3884_v29 = vmul.f32 %v11952_v45, %v17228_v31  ;;  %v3883_v33 = vmul.f32 %v11952_v45, %v17229_v16  ;;  %v12259_v3 = vld [vmem:[%s12577_s4 + $0x368] ss:$16 sps:$4 sm:$0xff]  }
 0x3ad   : > { %17226 = vst [vmem:[#allocation33_spill] sm:$0xff] %v13669_v59  ;;  %11967 = vpow2.f32 %v3483_v21  ;;  %v3485_v46 = vmul.f32 1.442695, %v3295_v60  ;;  %v3487_v5 = vmul.f32 1.442695, %v3296_v35  ;;  %3699 = vadd.xlane.f32.xlu1 %v3698_v19  ;;  %v17232_v31 = vld [vmem:[#allocation24_spill] sm:$0xff] }
 0x3ae   : > { %v13682_v0 = vpop.eup %11953  ;;  %11969 = vrcp.f32 %v3643_v53  ;;  %3192 = vmax.xlane.f32.xlu0 %v3191_v28  ;;  %4012 = vst [vmem:[%s13572_s5 + $0x58] sm:$0xff] %v3884_v29  ;;  %v10730_v30 = vpack.c.bf16 %v3884_v29, %v3882_v17  ;;  %v3646_v25 = vpop.xlane.xlu1 %3645  ;;  %4011 = vst [vmem:[%s13572_s5 + $0x50] sm:$0xff] %v3883_v33  ;;  %v10732_v61 = vpack.c.bf16 %v3883_v33, %v3881_v47  ;;  %5729 = vmatpush1.bf16.msra.mxu0 %v12259_v3  ;;  %v17233_v21 = vld [vmem:[#allocation25_spill] sm:$0xff]  ;;  %v12260_v19 = vld [vmem:[%s12577_s4 + $0x38c] ss:$16 sps:$4 sm:$0xff]  }
 0x3af   : > { %17230 = vst [vmem:[#allocation37_spill] sm:$0xff] %v13682_v0  ;;  %v13687_v20 = vpop.eup %11955  ;;  %v13690_v45 = vmul.f32 0.044194173, %v17232_v31  ;;  %v13693_v60 = vmul.f32 0.044194173, %v17233_v21  ;;  %11971 = vpow2.f32 %v3485_v46  ;;  %v3139_v35 = vpop.xlane.xlu0 %3138  ;;  %v3194_v53 = vmax.f32 %v13665_v50, %v13669_v59  ;;  %5730 = vmatprep.subr.bf16.mxu0 %v12260_v19  ;;  %v17234_v47 = vld [vmem:[#allocation51_spill] sm:$0xff] }
 0x3b0   : > { %17231 = vst [vmem:[#allocation36_spill] sm:$0xff] %v13687_v20  ;;  %v11958_v17 = vpop.eup %11957  ;;  %11973 = vpow2.f32 %v3487_v5  ;;  %10731 = vmatprep.subr.bf16.mxu1 %v10730_v30  ;;  %v3297_v28 = vsub.f32 %v17234_v47, %v3139_v35  ;;  %v17235_v29 = vld [vmem:[#allocation53_spill] sm:$0xff]  ;;  %v3701_v33 = vadd.f32 %v13687_v20, %v13682_v0  ;;  %v17238_v21 = vld [vmem:[#allocation44_spill] sm:$0xff]  ;;  %v17240_v47 = vld [vmem:[#allocation63_spill] sm:$0xff] }
 0x3b1   : > { %v3298_v16 = vsub.f32 %v17235_v29, %v3139_v35  ;;  %v11648_v46 = vld [vmem:[%s17209_s29 + $0xc4] ss:$16 sps:$4 sm:$0xff]   ;;  %v11650_v3 = vld [vmem:[%s17209_s29 + $0xc0] ss:$16 sps:$4 sm:$0xff]   ;;  %v13708_v31 = vpop.eup %11959  ;;  %11975 = vrcp.f32 %v3646_v25  ;;  %10733 = vmatpush1.bf16.xpose.msra.mxu1 %v10732_v61  ;;  %3195 = vmax.xlane.f32.xlu1 %v3194_v53  ;;  %v3885_v35 = vmul.f32 %v11958_v17, %v17238_v21  ;;  %v13715_v29 = vmul.f32 0.044194173, %v17240_v47 }
 0x3b2   : > { %17236 = vst [vmem:[#allocation39_spill] sm:$0xff] %v13708_v31  ;;  %v17237_v5 = vld [vmem:[#allocation45_spill] sm:$0xff]  ;;  %v13712_v19 = vpop.eup %11961  ;;  %v3489_v0 = vmul.f32 1.442695, %v3297_v28  ;;  %3702 = vadd.xlane.f32.xlu0 %v3701_v33  ;;  %v3142_v15 = vpop.xlane.xlu1 %3141  ;;  %5565 = vmatprep.mubr.bf16.mxu0 %v11648_v46  ;;  %v3197_v28 = vmax.f32 %v13690_v45, %v13693_v60  ;;  %v17245_v46 = vld [vmem:[#allocation46_spill] sm:$0xff] }
 0x3b3   : > { %v3886_v30 = vmul.f32 %v11958_v17, %v17237_v5  ;;  %17239 = vst [vmem:[#allocation38_spill] sm:$0xff] %v13712_v19  ;;  %v3491_v20 = vmul.f32 1.442695, %v3298_v16  ;;  %v11964_v25 = vpop.eup %11963  ;;  %v17241_v61 = vld [vmem:[#allocation65_spill] sm:$0xff]  ;;  %v3299_v5 = vsub.f32 %v17242_v27, %v3142_v15  ;;  %v3300_v59 = vsub.f32 %v17243_v11, %v3142_v15  ;;  %v3649_v17 = vpop.xlane.xlu0 %3648  ;;  %4013 = vst [vmem:[%s13572_s5 + $0x60] sm:$0xff] %v3885_v35  ;;  %v17244_v16 = vld [vmem:[#allocation47_spill] sm:$0xff] }
 0x3b4   : > { %v13718_v53 = vmul.f32 0.044194173, %v17241_v61  ;;  %v3704_v21 = vadd.f32 %v13712_v19, %v13708_v31  ;;  %5566 = vmatmul.mubr.bf16.gmra.mrb[152].mxu0 %v11650_v3  ;;  %11977 = vpow2.f32 %v3489_v0  ;;  %v3888_v33 = vmul.f32 %v11964_v25, %v17244_v16  ;;  %v12261_v47 = vld [vmem:[%s12577_s4 + $0x388] ss:$16 sps:$4 sm:$0xff]   ;;  %v12262_v61 = vld [vmem:[%s12577_s4 + $0x3ac] ss:$16 sps:$4 sm:$0xff]  }
 0x3b5   : > { %4014 = vst [vmem:[%s13572_s5 + $0x68] sm:$0xff] %v3886_v30  ;;  %v3887_v27 = vmul.f32 %v11964_v25, %v17245_v46  ;;  %5731 = vmatpush1.bf16.msra.mxu0 %v12261_v47  ;;  %11979 = vpow2.f32 %v3491_v20  ;;  %v3493_v11 = vmul.f32 1.442695, %v3299_v5  ;;  %v3495_v15 = vmul.f32 1.442695, %v3300_v59  ;;  %v17251_v46 = vld [vmem:[#allocation50_spill] sm:$0xff] }
 0x3b6   : > { %3705 = vadd.xlane.f32.xlu1 %v3704_v21  ;;  %5732 = vmatprep.subr.bf16.mxu0 %v12262_v61  ;;  %v13732_v31 = vpop.eup %11965  ;;  %11981 = vrcp.f32 %v3649_v17  ;;  %4016 = vst [vmem:[%s13572_s5 + $0x78] sm:$0xff] %v3888_v33  ;;  %v10734_v0 = vpack.c.bf16 %v3888_v33, %v3886_v30  ;;  %v3652_v3 = vpop.xlane.xlu1 %3651  ;;  %v13739_v25 = vmul.f32 0.044194173, %v13329_v13  ;;  %v13742_v20 = vmul.f32 0.044194173, %v13333_v26  ;;  %v17248_v30 = vld [vmem:[#allocation59_spill] sm:$0xff] }
 0x3b7   : > { %17246 = vst [vmem:[#allocation41_spill] sm:$0xff] %v13732_v31  ;;  %3198 = vmax.xlane.f32.xlu0 %v3197_v28  ;;  %4015 = vst [vmem:[%s13572_s5 + $0x70] sm:$0xff] %v3887_v27  ;;  %v10736_v16 = vpack.c.bf16 %v3887_v27, %v3885_v35  ;;  %v13736_v19 = vpop.eup %11967  ;;  %11983 = vpow2.f32 %v3493_v11  ;;  %v3145_v59 = vpop.xlane.xlu0 %3144  ;;  %v3200_v5 = vmax.f32 %v13715_v29, %v13718_v53  ;;  %v17249_v28 = vld [vmem:[#allocation61_spill] sm:$0xff]  ;;  %v12263_v33 = vld [vmem:[%s12577_s4 + $0x3a8] ss:$16 sps:$4 sm:$0xff]  }
 0x3b8   : > { %17247 = vst [vmem:[#allocation40_spill] sm:$0xff] %v13736_v19  ;;  %v11970_v17 = vpop.eup %11969  ;;  %11985 = vpow2.f32 %v3495_v15  ;;  %10735 = vmatprep.subr.bf16.mxu1 %v10734_v0  ;;  %v3301_v21 = vsub.f32 %v17248_v30, %v3145_v59  ;;  %v3302_v35 = vsub.f32 %v17249_v28, %v3145_v59  ;;  %v3707_v13 = vadd.f32 %v13736_v19, %v13732_v31  ;;  %v17252_v47 = vld [vmem:[#allocation49_spill] sm:$0xff]  ;;  %v12264_v28 = vld [vmem:[%s12577_s4 + $0x3cc] ss:$16 sps:$4 sm:$0xff]  }
 0x3b9   : > { %5733 = vmatpush1.bf16.msra.mxu0 %v12263_v33  ;;  %v13751_v26 = vpop.eup %11971  ;;  %11987 = vrcp.f32 %v3652_v3  ;;  %10737 = vmatpush1.bf16.xpose.msra.mxu1 %v10736_v16  ;;  %v3890_v27 = vmul.f32 %v11970_v17, %v17251_v46  ;;  %v3889_v11 = vmul.f32 %v11970_v17, %v17252_v47  ;;  %v13758_v61 = vmul.f32 0.044194173, %v13337_v32  ;;  %v17255_v17 = vld [vmem:[#allocation7_spill] sm:$0xff] }
 0x3ba   : > { %17250 = vst [vmem:[#allocation48_spill] sm:$0xff] %v13751_v26  ;;  %3201 = vmax.xlane.f32.xlu1 %v3200_v5  ;;  %v13755_v15 = vpop.eup %11973  ;;  %v3497_v0 = vmul.f32 1.442695, %v3301_v21  ;;  %v3499_v59 = vmul.f32 1.442695, %v3302_v35  ;;  %v3148_v30 = vpop.xlane.xlu1 %3147  ;;  %5734 = vmatprep.subr.bf16.mxu0 %v12264_v28  ;;  %v17254_v5 = vld [vmem:[#allocation6_spill] sm:$0xff]  ;;  %v3203_v21 = vmax.f32 %v13739_v25, %v13742_v20 }
 0x3bb   : > { %17253 = vst [vmem:[#allocation43_spill] sm:$0xff] %v13755_v15  ;;  %3708 = vadd.xlane.f32.xlu0 %v3707_v13  ;;  %v11976_v3 = vpop.eup %11975  ;;  %v13762_v16 = vmul.f32 0.044194173, %v13344_v55  ;;  %v3303_v33 = vsub.f32 %v17254_v5, %v3148_v30  ;;  %v3304_v46 = vsub.f32 %v17255_v17, %v3148_v30  ;;  %v3655_v47 = vpop.xlane.xlu0 %3654  ;;  %v3710_v32 = vadd.f32 %v13755_v15, %v13751_v26  ;;  %v17256_v35 = vld [vmem:[#allocation54_spill] sm:$0xff]  ;;  %v17257_v55 = vld [vmem:[#allocation52_spill] sm:$0xff] }
 0x3bc   : > { %4018 = vst [vmem:[%s13572_s5 + $0x88] sm:$0xff] %v3890_v27  ;;  %4017 = vst [vmem:[%s13572_s5 + $0x80] sm:$0xff] %v3889_v11  ;;  %11989 = vpow2.f32 %v3497_v0  ;;  %v3892_v13 = vmul.f32 %v11976_v3, %v17256_v35  ;;  %v3891_v28 = vmul.f32 %v11976_v3, %v17257_v55  ;;  %v11651_v30 = vld [vmem:[%s17209_s29 + $0xe4] ss:$16 sps:$4 sm:$0xff]   ;;  %v11653_v5 = vld [vmem:[%s17209_s29 + $0xe0] ss:$16 sps:$4 sm:$0xff]  }
 0x3bd   : > { %v12265_v17 = vld [vmem:[%s12577_s4 + $0x3c8] ss:$16 sps:$4 sm:$0xff]   ;;  %11991 = vpow2.f32 %v3499_v59  ;;  %v3501_v0 = vmul.f32 1.442695, %v3303_v33  ;;  %v3503_v26 = vmul.f32 1.442695, %v3304_v46  ;;  %5575 = vmatprep.mubr.bf16.mxu0 %v11651_v30  ;;  %v3206_v46 = vmax.f32 %v13758_v61, %v13762_v16 }
 0x3be   : > { %5735 = vmatpush1.bf16.msra.mxu0 %v12265_v17  ;;  %3711 = vadd.xlane.f32.xlu1 %v3710_v32  ;;  %v12266_v15 = vld [vmem:[%s12577_s4 + $0x3ec] ss:$16 sps:$4 sm:$0xff]   ;;  %v13782_v35 = vpop.eup %11977  ;;  %11993 = vrcp.f32 %v3655_v47  ;;  %4020 = vst [vmem:[%s13572_s5 + $0x98] sm:$0xff] %v3892_v13  ;;  %v10738_v3 = vpack.c.bf16 %v3892_v13, %v3890_v27  ;;  %v3658_v55 = vpop.xlane.xlu1 %3657  ;;  %4019 = vst [vmem:[%s13572_s5 + $0x90] sm:$0xff] %v3891_v28  ;;  %v10740_v31 = vpack.c.bf16 %v3891_v28, %v3889_v11  ;;  %v17261_v32 = vld [vmem:[#allocation27_spill] sm:$0xff] }
 0x3bf   : > { %5736 = vmatprep.subr.bf16.mxu0 %v12266_v15  ;;  %17258 = vst [vmem:[#allocation42_spill] sm:$0xff] %v13782_v35  ;;  %3204 = vmax.xlane.f32.xlu0 %v3203_v21  ;;  %v13786_v19 = vpop.eup %11979  ;;  %v13789_v59 = vmul.f32 0.044194173, %v13369_v36  ;;  %v13792_v33 = vmul.f32 0.044194173, %v13373_v51  ;;  %11995 = vpow2.f32 %v3501_v0  ;;  %v3151_v15 = vpop.xlane.xlu0 %3150  ;;  %v17260_v47 = vld [vmem:[#allocation26_spill] sm:$0xff] }
 0x3c0   : > { %17259 = vst [vmem:[#allocation24_spill] sm:$0xff] %v13786_v19  ;;  %5576 = vmatmul.mubr.bf16.gmra.mrb[156].mxu0 %v11653_v5  ;;  %v11982_v27 = vpop.eup %11981  ;;  %11997 = vpow2.f32 %v3503_v26  ;;  %10739 = vmatprep.subr.bf16.mxu1 %v10738_v3  ;;  %v3305_v11 = vsub.f32 %v17260_v47, %v3151_v15  ;;  %v3306_v21 = vsub.f32 %v17261_v32, %v3151_v15  ;;  %v12267_v13 = vld [vmem:[%s12577_s4 + $0x3e8] ss:$16 sps:$4 sm:$0xff]   ;;  %v17264_v26 = vld [vmem:[#allocation57_spill] sm:$0xff]  ;;  %v13808_v0 = vmul.f32 0.044194173, %v13377_v34 }
 0x3c1   : > { %v3713_v36 = vadd.f32 %v13786_v19, %v13782_v35  ;;  %v13801_v51 = vpop.eup %11983  ;;  %11999 = vrcp.f32 %v3658_v55  ;;  %10741 = vmatpush1.bf16.xpose.msra.mxu1 %v10740_v31  ;;  %v17263_v28 = vld [vmem:[#allocation58_spill] sm:$0xff]  ;;  %v3893_v5 = vmul.f32 %v11982_v27, %v17264_v26  ;;  %v17267_v31 = vld [vmem:[#allocation9_spill] sm:$0xff]  ;;  %v3209_v34 = vmax.f32 %v13789_v59, %v13792_v33 }
 0x3c2   : > { %5737 = vmatpush1.bf16.msra.mxu0 %v12267_v13  ;;  %17262 = vst [vmem:[#allocation25_spill] sm:$0xff] %v13801_v51  ;;  %3207 = vmax.xlane.f32.xlu1 %v3206_v46  ;;  %v3894_v30 = vmul.f32 %v11982_v27, %v17263_v28  ;;  %v13805_v17 = vpop.eup %11985  ;;  %v3505_v3 = vmul.f32 1.442695, %v3305_v11  ;;  %v3507_v15 = vmul.f32 1.442695, %v3306_v21  ;;  %v3154_v47 = vpop.xlane.xlu1 %3153  ;;  %v17266_v13 = vld [vmem:[#allocation71_spill] sm:$0xff] }
 0x3c3   : > { %17265 = vst [vmem:[#allocation51_spill] sm:$0xff] %v13805_v17  ;;  %3714 = vadd.xlane.f32.xlu0 %v3713_v36  ;;  %v11988_v32 = vpop.eup %11987  ;;  %v13811_v55 = vmul.f32 0.044194173, %v17266_v13  ;;  %v3307_v46 = vsub.f32 %v17267_v31, %v3154_v47  ;;  %v17268_v35 = vld [vmem:[#allocation10_spill] sm:$0xff]  ;;  %v3661_v28 = vpop.xlane.xlu0 %3660  ;;  %v3716_v27 = vadd.f32 %v13805_v17, %v13801_v51  ;;  %4021 = vst [vmem:[%s13572_s5 + $0xa0] sm:$0xff] %v3893_v5  ;;  %v17269_v11 = vld [vmem:[#allocation5_spill] sm:$0xff] }
 0x3c4   : > { %v3308_v19 = vsub.f32 %v17268_v35, %v3154_v47  ;;  %4022 = vst [vmem:[%s13572_s5 + $0xa8] sm:$0xff] %v3894_v30  ;;  %12001 = vpow2.f32 %v3505_v3  ;;  %v3896_v21 = vmul.f32 %v11988_v32, %v17269_v11  ;;  %v17270_v36 = vld [vmem:[#allocation60_spill] sm:$0xff]  ;;  %v11654_v35 = vld [vmem:[%s17209_s29 + $0x104] ss:$16 sps:$4 sm:$0xff]   ;;  %v11656_v47 = vld [vmem:[%s17209_s29 + $0x100] ss:$16 sps:$4 sm:$0xff]  }
 0x3c5   : > { %v3895_v26 = vmul.f32 %v11988_v32, %v17270_v36  ;;  %12003 = vpow2.f32 %v3507_v15  ;;  %v3509_v13 = vmul.f32 1.442695, %v3307_v46  ;;  %5585 = vmatprep.mubr.bf16.mxu0 %v11654_v35  ;;  %v13836_v17 = vmul.f32 0.044194173, %v13409_v14  ;;  %v17277_v35 = vld [vmem:[#allocation62_spill] sm:$0xff] }
 0x3c6   : > { %v3511_v31 = vmul.f32 1.442695, %v3308_v19  ;;  %3717 = vadd.xlane.f32.xlu1 %v3716_v27  ;;  %v13829_v3 = vpop.eup %11989  ;;  %12005 = vrcp.f32 %v3661_v28  ;;  %4024 = vst [vmem:[%s13572_s5 + $0xb8] sm:$0xff] %v3896_v21  ;;  %v10742_v11 = vpack.c.bf16 %v3896_v21, %v3894_v30  ;;  %v3664_v51 = vpop.xlane.xlu1 %3663  ;;  %v13839_v15 = vmul.f32 0.044194173, %v13413_v56  ;;  %v17273_v30 = vld [vmem:[#allocation29_spill] sm:$0xff] }
 0x3c7   : > { %17271 = vst [vmem:[#allocation53_spill] sm:$0xff] %v13829_v3  ;;  %3210 = vmax.xlane.f32.xlu0 %v3209_v34  ;;  %4023 = vst [vmem:[%s13572_s5 + $0xb0] sm:$0xff] %v3895_v26  ;;  %v10744_v32 = vpack.c.bf16 %v3895_v26, %v3893_v5  ;;  %v13833_v36 = vpop.eup %11991  ;;  %12007 = vpow2.f32 %v3509_v13  ;;  %v3157_v19 = vpop.xlane.xlu0 %3156  ;;  %v3212_v46 = vmax.f32 %v13808_v0, %v13811_v55  ;;  %v17274_v27 = vld [vmem:[#allocation68_spill] sm:$0xff] }
 0x3c8   : > { %17272 = vst [vmem:[#allocation45_spill] sm:$0xff] %v13833_v36  ;;  %5586 = vmatmul.mubr.bf16.gmra.mrb[160].mxu0 %v11656_v47  ;;  %v11994_v28 = vpop.eup %11993  ;;  %12009 = vpow2.f32 %v3511_v31  ;;  %10743 = vmatprep.subr.bf16.mxu1 %v10742_v11  ;;  %v3309_v5 = vsub.f32 %v17273_v30, %v3157_v19  ;;  %v3310_v34 = vsub.f32 %v17274_v27, %v3157_v19  ;;  %v17276_v56 = vld [vmem:[#allocation64_spill] sm:$0xff]  ;;  %v13854_v31 = vmul.f32 0.044194173, %v13417_v39 }
 0x3c9   : > { %v3719_v14 = vadd.f32 %v13833_v36, %v13829_v3  ;;  %v13847_v21 = vpop.eup %11995  ;;  %12011 = vrcp.f32 %v3664_v51  ;;  %10745 = vmatpush1.bf16.xpose.msra.mxu1 %v10744_v32  ;;  %v3898_v26 = vmul.f32 %v11994_v28, %v17276_v56  ;;  %v3897_v47 = vmul.f32 %v11994_v28, %v17277_v35  ;;  %v17279_v32 = vld [vmem:[#allocation13_spill] sm:$0xff]  ;;  %v17280_v3 = vld [vmem:[#allocation14_spill] sm:$0xff] }
 0x3ca   : > { %17275 = vst [vmem:[#allocation44_spill] sm:$0xff] %v13847_v21  ;;  %3213 = vmax.xlane.f32.xlu1 %v3212_v46  ;;  %v13851_v13 = vpop.eup %11997  ;;  %v3513_v11 = vmul.f32 1.442695, %v3309_v5  ;;  %v3515_v19 = vmul.f32 1.442695, %v3310_v34  ;;  %v3160_v30 = vpop.xlane.xlu1 %3159  ;;  %v3215_v39 = vmax.f32 %v13836_v17, %v13839_v15  ;;  %v17281_v5 = vld [vmem:[#allocation8_spill] sm:$0xff] }
 0x3cb   : > { %17278 = vst [vmem:[#allocation63_spill] sm:$0xff] %v13851_v13  ;;  %3720 = vadd.xlane.f32.xlu0 %v3719_v14  ;;  %v12000_v27 = vpop.eup %11999  ;;  %v13857_v51 = vmul.f32 0.044194173, %v13424_v24  ;;  %v3311_v46 = vsub.f32 %v17279_v32, %v3160_v30  ;;  %v3312_v36 = vsub.f32 %v17280_v3, %v3160_v30  ;;  %v3667_v56 = vpop.xlane.xlu0 %3666  ;;  %v3722_v28 = vadd.f32 %v13851_v13, %v13847_v21  ;;  %v17282_v24 = vld [vmem:[#allocation66_spill] sm:$0xff]  ;;  %v11657_v3 = vld [vmem:[%s17209_s29 + $0x124] ss:$16 sps:$4 sm:$0xff]  }
 0x3cc   : > { %4026 = vst [vmem:[%s13572_s5 + $0xc8] sm:$0xff] %v3898_v26  ;;  %4025 = vst [vmem:[%s13572_s5 + $0xc0] sm:$0xff] %v3897_v47  ;;  %12013 = vpow2.f32 %v3513_v11  ;;  %v3900_v34 = vmul.f32 %v12000_v27, %v17281_v5  ;;  %v3899_v14 = vmul.f32 %v12000_v27, %v17282_v24  ;;  %v11659_v35 = vld [vmem:[%s17209_s29 + $0x120] ss:$16 sps:$4 sm:$0xff]   ;;  %5595 = vmatprep.mubr.bf16.mxu0 %v11657_v3  ;;  %v13882_v13 = vmul.f32 0.044194173, %v13449_v41 }
 0x3cd   : > { %12015 = vpow2.f32 %v3515_v19  ;;  %v3517_v30 = vmul.f32 1.442695, %v3311_v46  ;;  %v3519_v32 = vmul.f32 1.442695, %v3312_v36  ;;  %v13885_v19 = vmul.f32 0.044194173, %v13453_v38 }
 0x3ce   : > { %3723 = vadd.xlane.f32.xlu1 %v3722_v28  ;;  %v13875_v11 = vpop.eup %12001  ;;  %12017 = vrcp.f32 %v3667_v56  ;;  %4028 = vst [vmem:[%s13572_s5 + $0xd8] sm:$0xff] %v3900_v34  ;;  %v10746_v5 = vpack.c.bf16 %v3900_v34, %v3898_v26  ;;  %v3670_v21 = vpop.xlane.xlu1 %3669  ;;  %4027 = vst [vmem:[%s13572_s5 + $0xd0] sm:$0xff] %v3899_v14  ;;  %v10748_v27 = vpack.c.bf16 %v3899_v14, %v3897_v47  ;;  %v17285_v26 = vld [vmem:[#allocation70_spill] sm:$0xff]  ;;  %v17286_v28 = vld [vmem:[#allocation73_spill] sm:$0xff] }
 0x3cf   : > { %17283 = vst [vmem:[#allocation65_spill] sm:$0xff] %v13875_v11  ;;  %3216 = vmax.xlane.f32.xlu0 %v3215_v39  ;;  %v13879_v24 = vpop.eup %12003  ;;  %12019 = vpow2.f32 %v3517_v30  ;;  %v3163_v36 = vpop.xlane.xlu0 %3162  ;;  %v3218_v46 = vmax.f32 %v13854_v31, %v13857_v51  ;;  %v17288_v38 = vld [vmem:[#allocation28_spill] sm:$0xff]  ;;  %v17289_v3 = vld [vmem:[#allocation11_spill] sm:$0xff] }
 0x3d0   : > { %17284 = vst [vmem:[#allocation55_spill] sm:$0xff] %v13879_v24  ;;  %5596 = vmatmul.mubr.bf16.gmra.mrb[164].mxu0 %v11659_v35  ;;  %v12006_v56 = vpop.eup %12005  ;;  %12021 = vpow2.f32 %v3519_v32  ;;  %10747 = vmatprep.subr.bf16.mxu1 %v10746_v5  ;;  %v3313_v47 = vsub.f32 %v17285_v26, %v3163_v36  ;;  %v3314_v39 = vsub.f32 %v17286_v28, %v3163_v36  ;;  %v13900_v32 = vmul.f32 0.044194173, %v13457_v6 }
 0x3d1   : > { %v3725_v41 = vadd.f32 %v13879_v24, %v13875_v11  ;;  %v13893_v34 = vpop.eup %12007  ;;  %12023 = vrcp.f32 %v3670_v21  ;;  %10749 = vmatpush1.bf16.xpose.msra.mxu1 %v10748_v27  ;;  %v3902_v14 = vmul.f32 %v12006_v56, %v17288_v38  ;;  %v3901_v35 = vmul.f32 %v12006_v56, %v17289_v3  ;;  %v17291_v27 = vld [vmem:[#allocation17_spill] sm:$0xff]  ;;  %v17292_v11 = vld [vmem:[#allocation18_spill] sm:$0xff] }
 0x3d2   : > { %17287 = vst [vmem:[#allocation56_spill] sm:$0xff] %v13893_v34  ;;  %3219 = vmax.xlane.f32.xlu1 %v3218_v46  ;;  %v13897_v30 = vpop.eup %12009  ;;  %v3521_v5 = vmul.f32 1.442695, %v3313_v47  ;;  %v3523_v36 = vmul.f32 1.442695, %v3314_v39  ;;  %v3166_v26 = vpop.xlane.xlu1 %3165  ;;  %v3221_v6 = vmax.f32 %v13882_v13, %v13885_v19  ;;  %v17293_v47 = vld [vmem:[#allocation12_spill] sm:$0xff] }
 0x3d3   : > { %17290 = vst [vmem:[#allocation47_spill] sm:$0xff] %v13897_v30  ;;  %3726 = vadd.xlane.f32.xlu0 %v3725_v41  ;;  %v12012_v28 = vpop.eup %12011  ;;  %v13903_v21 = vmul.f32 0.044194173, %v13461_v62  ;;  %v3315_v46 = vsub.f32 %v17291_v27, %v3166_v26  ;;  %v3316_v24 = vsub.f32 %v17292_v11, %v3166_v26  ;;  %v3673_v38 = vpop.xlane.xlu0 %3672  ;;  %v3728_v56 = vadd.f32 %v13897_v30, %v13893_v34  ;;  %v17294_v62 = vld [vmem:[#allocation67_spill] sm:$0xff] }
 0x3d4   : > { %4030 = vst [vmem:[%s13572_s5 + $0xe8] sm:$0xff] %v3902_v14  ;;  %4029 = vst [vmem:[%s13572_s5 + $0xe0] sm:$0xff] %v3901_v35  ;;  %12025 = vpow2.f32 %v3521_v5  ;;  %v3904_v39 = vmul.f32 %v12012_v28, %v17293_v47  ;;  %v3903_v41 = vmul.f32 %v12012_v28, %v17294_v62  ;;  %v11660_v11 = vld [vmem:[%s17209_s29 + $0x144] ss:$16 sps:$4 sm:$0xff]   ;;  %v11662_v3 = vld [vmem:[%s17209_s29 + $0x140] ss:$16 sps:$4 sm:$0xff]  }
 0x3d5   : > { %12027 = vpow2.f32 %v3523_v36  ;;  %v3525_v26 = vmul.f32 1.442695, %v3315_v46  ;;  %v3527_v27 = vmul.f32 1.442695, %v3316_v24  ;;  %5605 = vmatprep.mubr.bf16.mxu0 %v11660_v11  ;;  %v13928_v30 = vmul.f32 0.044194173, %v13485_v1 }
 0x3d6   : > { %3729 = vadd.xlane.f32.xlu1 %v3728_v56  ;;  %v13921_v5 = vpop.eup %12013  ;;  %12029 = vrcp.f32 %v3673_v38  ;;  %4032 = vst [vmem:[%s13572_s5 + $0xf8] sm:$0xff] %v3904_v39  ;;  %v10750_v47 = vpack.c.bf16 %v3904_v39, %v3902_v14  ;;  %v3676_v34 = vpop.xlane.xlu1 %3675  ;;  %4031 = vst [vmem:[%s13572_s5 + $0xf0] sm:$0xff] %v3903_v41  ;;  %v10752_v28 = vpack.c.bf16 %v3903_v41, %v3901_v35  ;;  %v13931_v36 = vmul.f32 0.044194173, %v13489_v23  ;;  %v17295_v23 = vld [vmem:[#allocation69_spill] sm:$0xff]  ;;  %v17296_v39 = vld [vmem:[#allocation15_spill] sm:$0xff] }
 0x3d7   : > { %3222 = vmax.xlane.f32.xlu0 %v3221_v6  ;;  %v13925_v62 = vpop.eup %12015  ;;  %12031 = vpow2.f32 %v3525_v26  ;;  %v3169_v24 = vpop.xlane.xlu0 %3168  ;;  %v3224_v46 = vmax.f32 %v13900_v32, %v13903_v21 }
 0x3d8   : > { %5606 = vmatmul.mubr.bf16.gmra.mrb[168].mxu0 %v11662_v3  ;;  %v12018_v38 = vpop.eup %12017  ;;  %12033 = vpow2.f32 %v3527_v27  ;;  %10751 = vmatprep.subr.bf16.mxu1 %v10750_v47  ;;  %v3317_v14 = vsub.f32 %v13422_v54, %v3169_v24  ;;  %v3318_v35 = vsub.f32 %v13431_v58, %v3169_v24  ;;  %v3731_v1 = vadd.f32 %v13925_v62, %v13921_v5 }
 0x3d9   : > { %v13939_v56 = vpop.eup %12019  ;;  %12035 = vrcp.f32 %v3676_v34  ;;  %10753 = vmatpush1.bf16.xpose.msra.mxu1 %v10752_v28  ;;  %v3906_v6 = vmul.f32 %v12018_v38, %v17295_v23  ;;  %v3905_v41 = vmul.f32 %v12018_v38, %v17296_v39  ;;  %v13946_v54 = vmul.f32 0.044194173, %v13493_v7  ;;  %v17297_v38 = vld [vmem:[#allocation16_spill] sm:$0xff] }
 0x3da   : > { %3225 = vmax.xlane.f32.xlu1 %v3224_v46  ;;  %v13943_v11 = vpop.eup %12021  ;;  %v3529_v58 = vmul.f32 1.442695, %v3317_v14  ;;  %v3531_v3 = vmul.f32 1.442695, %v3318_v35  ;;  %v3172_v26 = vpop.xlane.xlu1 %3171  ;;  %v13949_v34 = vmul.f32 0.044194173, %v13497_v52  ;;  %v3227_v7 = vmax.f32 %v13928_v30, %v13931_v36 }
 0x3db   : > { %3732 = vadd.xlane.f32.xlu0 %v3731_v1  ;;  %v12024_v27 = vpop.eup %12023  ;;  %v3319_v47 = vsub.f32 %v13442_v63, %v3172_v26  ;;  %v3320_v28 = vsub.f32 %v13445_v44, %v3172_v26  ;;  %v3679_v24 = vpop.xlane.xlu0 %3678  ;;  %v3734_v46 = vadd.f32 %v13943_v11, %v13939_v56  ;;  %4034 = vst [vmem:[%s13572_s5 + $0x108] sm:$0xff] %v3906_v6  ;;  %4033 = vst [vmem:[%s13572_s5 + $0x100] sm:$0xff] %v3905_v41  ;;  %v17298_v52 = vld [vmem:[#allocation72_spill] sm:$0xff]  ;;  %v11663_v63 = vld [vmem:[%s17209_s29 + $0x164] ss:$16 sps:$4 sm:$0xff]  }
 0x3dc   : > { %12037 = vpow2.f32 %v3529_v58  ;;  %v3908_v14 = vmul.f32 %v12024_v27, %v17297_v38  ;;  %v3907_v35 = vmul.f32 %v12024_v27, %v17298_v52  ;;  %v11665_v44 = vld [vmem:[%s17209_s29 + $0x160] ss:$16 sps:$4 sm:$0xff]   ;;  %5615 = vmatprep.mubr.bf16.mxu0 %v11663_v63 }
 0x3dd   : > { %12039 = vpow2.f32 %v3531_v3  ;;  %v3533_v1 = vmul.f32 1.442695, %v3319_v47  ;;  %v3535_v23 = vmul.f32 1.442695, %v3320_v28  ;;  %v3230_v3 = vmax.f32 %v13946_v54, %v13949_v34 }
 0x3de   : > { %3735 = vadd.xlane.f32.xlu1 %v3734_v46  ;;  %v13967_v39 = vpop.eup %12025  ;;  %12041 = vrcp.f32 %v3679_v24  ;;  %4036 = vst [vmem:[%s13572_s5 + $0x118] sm:$0xff] %v3908_v14  ;;  %v10754_v58 = vpack.c.bf16 %v3908_v14, %v3906_v6  ;;  %v3682_v26 = vpop.xlane.xlu1 %3681  ;;  %4035 = vst [vmem:[%s13572_s5 + $0x110] sm:$0xff] %v3907_v35  ;;  %v10756_v27 = vpack.c.bf16 %v3907_v35, %v3905_v41  ;;  %v17301_v46 = vld [vmem:[#allocation19_spill] sm:$0xff] }
 0x3df   : > { %3228 = vmax.xlane.f32.xlu0 %v3227_v7  ;;  %v13971_v38 = vpop.eup %12027  ;;  %12043 = vpow2.f32 %v3533_v1  ;;  %v3175_v52 = vpop.xlane.xlu0 %3174  ;;  %v13990_v7 = vld [vmem:[%s13983_s23] sm:$0x77] }
 0x3e0   : > { %5616 = vmatmul.mubr.bf16.gmra.mrb[172].mxu0 %v11665_v44  ;;  %v12030_v47 = vpop.eup %12029  ;;  %12045 = vpow2.f32 %v3535_v23  ;;  %10755 = vmatprep.subr.bf16.mxu1 %v10754_v58  ;;  %v3321_v28 = vsub.f32 %v13468_v4, %v3175_v52  ;;  %v3322_v6 = vsub.f32 %v13471_v42, %v3175_v52  ;;  %v3737_v41 = vadd.f32 %v13971_v38, %v13967_v39  ;;  %v17302_v52 = vld [vmem:[#allocation20_spill] sm:$0xff] }
 0x3e1   : > { %v13985_v24 = vpop.eup %12031  ;;  %12047 = vrcp.f32 %v3682_v26  ;;  %10757 = vmatpush1.bf16.xpose.msra.mxu1 %v10756_v27  ;;  %v3910_v4 = vmul.f32 %v12030_v47, %v13419_v18  ;;  %v3909_v42 = vmul.f32 %v12030_v47, %v17301_v46  ;;  %v13996_v1 = vcombine.high %v13990_v7, %v13990_v7  ;;  %v17303_v47 = vld [vmem:[#allocation32_spill] sm:$0xff] }
 0x3e2   : > { %17300 = vst [vmem:[#allocation46_spill] sm:$0xff] %v13985_v24  ;;  %3231 = vmax.xlane.f32.xlu1 %v3230_v3  ;;  %v13992_v14 = vpop.eup %12033  ;;  %v3537_v35 = vmul.f32 1.442695, %v3321_v28  ;;  %v3539_v63 = vmul.f32 1.442695, %v3322_v6  ;;  %v3178_v44 = vpop.xlane.xlu1 %3177 }
 0x3e3   : > { %3738 = vadd.xlane.f32.xlu0 %v3737_v41  ;;  %v12036_v23 = vpop.eup %12035  ;;  %v3323_v58 = vsub.f32 %v13480_v9, %v3178_v44  ;;  %v3324_v26 = vsub.f32 %v13483_v10, %v3178_v44  ;;  %v3685_v18 = vpop.xlane.xlu0 %3684  ;;  %v3740_v27 = vadd.f32 %v13992_v14, %v13985_v24  ;;  %4038 = vst [vmem:[%s13572_s5 + $0x128] sm:$0xff] %v3910_v4  ;;  %4037 = vst [vmem:[%s13572_s5 + $0x120] sm:$0xff] %v3909_v42  ;;  %v11666_v6 = vld [vmem:[%s17209_s29 + $0x184] ss:$16 sps:$4 sm:$0xff]   ;;  %v11669_v9 = vld [vmem:[%s17209_s29 + $0x180] ss:$16 sps:$4 sm:$0xff]  }
 0x3e4   : > { %12049 = vpow2.f32 %v3537_v35  ;;  %v3912_v3 = vmul.f32 %v12036_v23, %v17302_v52  ;;  %v3911_v28 = vmul.f32 %v12036_v23, %v17303_v47  ;;  %4197 = vmatprep.mubr.f32.mxu1 %v13996_v1  ;;  %5625 = vmatprep.mubr.bf16.mxu0 %v11666_v6 }
 0x3e5   : > { %12051 = vpow2.f32 %v3539_v63  ;;  %v3541_v10 = vmul.f32 1.442695, %v3323_v58  ;;  %v3543_v41 = vmul.f32 1.442695, %v3324_v26  ;;  %v17306_v63 = vld [vmem:[#allocation78_spill] sm:$0xff]  ;;  %v17307_v26 = vld [vmem:[#allocation79_spill] sm:$0xff] }
 0x3e6   : > { %3741 = vadd.xlane.f32.xlu1 %v3740_v27  ;;  %v14013_v46 = vpop.eup %12037  ;;  %12053 = vrcp.f32 %v3685_v18  ;;  %4040 = vst [vmem:[%s13572_s5 + $0x138] sm:$0xff] %v3912_v3  ;;  %v10758_v35 = vpack.c.bf16 %v3912_v3, %v3910_v4  ;;  %v3688_v44 = vpop.xlane.xlu1 %3687  ;;  %4039 = vst [vmem:[%s13572_s5 + $0x130] sm:$0xff] %v3911_v28  ;;  %v10760_v23 = vpack.c.bf16 %v3911_v28, %v3909_v42  ;;  %v17308_v42 = vld [vmem:[#allocation22_spill] sm:$0xff]  ;;  %v17309_v28 = vld [vmem:[#allocation21_spill] sm:$0xff] }
 0x3e7   : > { %17304 = vst [vmem:[#allocation59_spill] sm:$0xff] %v14013_v46  ;;  %v14017_v52 = vpop.eup %12039  ;;  %12055 = vpow2.f32 %v3541_v10  ;;  %v3181_v47 = vpop.xlane.xlu0 %3180 }
 0x3e8   : > { %17305 = vst [vmem:[#allocation61_spill] sm:$0xff] %v14017_v52  ;;  %5626 = vmatmul.mubr.bf16.gmra.mrb[176].mxu0 %v11669_v9  ;;  %v12042_v24 = vpop.eup %12041  ;;  %12057 = vpow2.f32 %v3543_v41  ;;  %10759 = vmatprep.subr.bf16.mxu1 %v10758_v35  ;;  %v3325_v58 = vsub.f32 %v17306_v63, %v3181_v47  ;;  %v3326_v27 = vsub.f32 %v17307_v26, %v3181_v47  ;;  %v17310_v63 = vld [vmem:[#allocation81_spill] sm:$0xff] }
 0x3e9   : > { %v3743_v4 = vadd.f32 %v14017_v52, %v14013_v46  ;;  %v14023_v18 = vpop.eup %12043  ;;  %12059 = vrcp.f32 %v3688_v44  ;;  %10761 = vmatpush1.bf16.xpose.msra.mxu1 %v10760_v23  ;;  %v3914_v3 = vmul.f32 %v12042_v24, %v17308_v42  ;;  %v3913_v6 = vmul.f32 %v12042_v24, %v17309_v28  ;;  %v17311_v46 = vld [vmem:[#allocation82_spill] sm:$0xff]  ;;  %v17313_v42 = vld [vmem:[#allocation23_spill] sm:$0xff] }
 0x3ea   : > { %v14027_v9 = vpop.eup %12045  ;;  %v3545_v10 = vmul.f32 1.442695, %v3325_v58  ;;  %v3547_v41 = vmul.f32 1.442695, %v3326_v27  ;;  %v3184_v35 = vpop.xlane.xlu1 %3183  ;;  %v17312_v24 = vld [vmem:[#allocation74_spill] sm:$0xff] }
 0x3eb   : > { %3744 = vadd.xlane.f32.xlu0 %v3743_v4  ;;  %v12048_v47 = vpop.eup %12047  ;;  %v3327_v26 = vsub.f32 %v17310_v63, %v3184_v35  ;;  %v3328_v52 = vsub.f32 %v17311_v46, %v3184_v35  ;;  %v3746_v44 = vadd.f32 %v14027_v9, %v14023_v18  ;;  %4042 = vst [vmem:[%s13572_s5 + $0x148] sm:$0xff] %v3914_v3  ;;  %4041 = vst [vmem:[%s13572_s5 + $0x140] sm:$0xff] %v3913_v6  ;;  %v11670_v27 = vld [vmem:[%s17209_s29 + $0x1a4] ss:$16 sps:$4 sm:$0xff]   ;;  %v11672_v4 = vld [vmem:[%s17209_s29 + $0x1a0] ss:$16 sps:$4 sm:$0xff]  }
 0x3ec   : > { %12061 = vpow2.f32 %v3545_v10  ;;  %v3916_v23 = vmul.f32 %v12048_v47, %v17312_v24  ;;  %v3915_v58 = vmul.f32 %v12048_v47, %v17313_v42  ;;  %5635 = vmatprep.mubr.bf16.mxu0 %v11670_v27  ;;  %v17316_v27 = vld [vmem:[#allocation80_spill] sm:$0xff] }
 0x3ed   : > { %12063 = vpow2.f32 %v3547_v41  ;;  %v3549_v46 = vmul.f32 1.442695, %v3327_v26  ;;  %v3551_v28 = vmul.f32 1.442695, %v3328_v52  ;;  %3747 = vadd.xlane.f32.xlu1 %v3746_v44 }
 0x3ee   : > { %v14043_v35 = vpop.eup %12049  ;;  %4044 = vst [vmem:[%s13572_s5 + $0x158] sm:$0xff] %v3916_v23  ;;  %v10762_v10 = vpack.c.bf16 %v3916_v23, %v3914_v3  ;;  %4043 = vst [vmem:[%s13572_s5 + $0x150] sm:$0xff] %v3915_v58  ;;  %v10764_v63 = vpack.c.bf16 %v3915_v58, %v3913_v6  ;;  %v17314_v3 = vld [vmem:[#allocation76_spill] sm:$0xff]  ;;  %v17315_v6 = vld [vmem:[#allocation75_spill] sm:$0xff] }
 0x3ef   : > { %v14047_v47 = vpop.eup %12051  ;;  %12065 = vpow2.f32 %v3549_v46  ;;  %v17317_v46 = vld [vmem:[#allocation77_spill] sm:$0xff] }
 0x3f0   : > { %5636 = vmatmul.mubr.bf16.gmra.mrb[180].mxu0 %v11672_v4  ;;  %v12054_v24 = vpop.eup %12053  ;;  %12067 = vpow2.f32 %v3551_v28  ;;  %10763 = vmatprep.subr.bf16.mxu1 %v10762_v10  ;;  %v3749_v52 = vadd.f32 %v14047_v47, %v14043_v35  ;;  %v11673_v10 = vld [vmem:[%s17209_s29 + $0x1c4] ss:$16 sps:$4 sm:$0xff]  }
 0x3f1   : > { %v14051_v41 = vpop.eup %12055  ;;  %10765 = vmatpush1.bf16.xpose.msra.mxu1 %v10764_v63  ;;  %v3918_v26 = vmul.f32 %v12054_v24, %v17314_v3  ;;  %v3917_v44 = vmul.f32 %v12054_v24, %v17315_v6  ;;  %v11675_v63 = vld [vmem:[%s17209_s29 + $0x1c0] ss:$16 sps:$4 sm:$0xff]   ;;  %5645 = vmatprep.mubr.bf16.mxu0 %v11673_v10  ;;  %v11682_v10 = vld [vmem:[%s17209_s29 + $0x224] ss:$16 sps:$4 sm:$0xff]  }
 0x3f2   : > { %v14055_v23 = vpop.eup %12057  ;;  %3750 = vadd.xlane.f32.xlu0 %v3749_v52 }
 0x3f3   : > { %v12060_v42 = vpop.eup %12059  ;;  %v3752_v58 = vadd.f32 %v14055_v23, %v14051_v41  ;;  %4046 = vst [vmem:[%s13572_s5 + $0x168] sm:$0xff] %v3918_v26  ;;  %4045 = vst [vmem:[%s13572_s5 + $0x160] sm:$0xff] %v3917_v44 }
 0x3f4   : > { %v3920_v4 = vmul.f32 %v12060_v42, %v17316_v27  ;;  %v3919_v28 = vmul.f32 %v12060_v42, %v17317_v46 }
 0x3f5   : > { %3753 = vadd.xlane.f32.xlu1 %v3752_v58  ;;  %v11676_v58 = vld [vmem:[%s17209_s29 + $0x1e4] ss:$16 sps:$4 sm:$0xff]  }
 0x3f6   : > { %v14069_v24 = vpop.eup %12061  ;;  %4048 = vst [vmem:[%s13572_s5 + $0x178] sm:$0xff] %v3920_v4  ;;  %v10766_v52 = vpack.c.bf16 %v3920_v4, %v3918_v26  ;;  %4047 = vst [vmem:[%s13572_s5 + $0x170] sm:$0xff] %v3919_v28  ;;  %v10768_v3 = vpack.c.bf16 %v3919_v28, %v3917_v44  ;;  %v11678_v44 = vld [vmem:[%s17209_s29 + $0x1e0] ss:$16 sps:$4 sm:$0xff]   ;;  %v11679_v4 = vld [vmem:[%s17209_s29 + $0x204] ss:$16 sps:$4 sm:$0xff]  }
 0x3f7   : > { %v14073_v6 = vpop.eup %12063  ;;  %v11681_v28 = vld [vmem:[%s17209_s29 + $0x200] ss:$16 sps:$4 sm:$0xff]  }
 0x3f8   : > { %5646 = vmatmul.mubr.bf16.gmra.mrb[184].mxu0 %v11675_v63  ;;  %10767 = vmatprep.subr.bf16.mxu1 %v10766_v52  ;;  %v3755_v42 = vadd.f32 %v14073_v6, %v14069_v24  ;;  %v11684_v63 = vld [vmem:[%s17209_s29 + $0x220] ss:$16 sps:$4 sm:$0xff]   ;;  %v11685_v52 = vld [vmem:[%s17209_s29 + $0x244] ss:$16 sps:$4 sm:$0xff]  }
 0x3f9   : > { %v14077_v27 = vpop.eup %12065  ;;  %10769 = vmatpush1.bf16.xpose.msra.mxu1 %v10768_v3  ;;  %5655 = vmatprep.mubr.bf16.mxu0 %v11676_v58  ;;  %v11687_v3 = vld [vmem:[%s17209_s29 + $0x240] ss:$16 sps:$4 sm:$0xff]  }
 0x3fa   : > { %17318 = vst [vmem:[#allocation50_spill] sm:$0xff] %v14077_v27  ;;  %v14082_v46 = vpop.eup %12067  ;;  %3756 = vadd.xlane.f32.xlu0 %v3755_v42  ;;  %v11688_v42 = vld [vmem:[%s17209_s29 + $0x264] ss:$16 sps:$4 sm:$0xff]   ;;  %v11690_v58 = vld [vmem:[%s17209_s29 + $0x260] ss:$16 sps:$4 sm:$0xff]  }
 0x3fb   : > { %17319 = vst [vmem:[#allocation49_spill] sm:$0xff] %v14082_v46  ;;  %v3758_v26 = vadd.f32 %v14082_v46, %v14077_v27 }
 0x3fd   : > { %3759 = vadd.xlane.f32.xlu1 %v3758_v26  ;;  %v11693_v26 = vld [vmem:[%s17209_s29 + $0xc] ss:$16 sps:$4 sm:$0xff]  }
 0x400   : > { %5656 = vmatmul.mubr.bf16.gmra.mrb[188].mxu0 %v11678_v44  ;;  %v11691_v44 = vld [vmem:[%s17209_s29 + $0x8] ss:$16 sps:$4 sm:$0xff]  }
 0x401   : > { %5665 = vmatprep.mubr.bf16.mxu0 %v11679_v4  ;;  %v11694_v4 = vld [vmem:[%s17209_s29 + $0x2c] ss:$16 sps:$4 sm:$0xff]  }
 0x408   : > { %5666 = vmatmul.mubr.bf16.gmra.mrb[192].mxu0 %v11681_v28  ;;  %v11696_v28 = vld [vmem:[%s17209_s29 + $0x28] ss:$16 sps:$4 sm:$0xff]  }
 0x409   : > { %5675 = vmatprep.mubr.bf16.mxu0 %v11682_v10  ;;  %v11697_v10 = vld [vmem:[%s17209_s29 + $0x4c] ss:$16 sps:$4 sm:$0xff]  }
 0x410   : > { %5676 = vmatmul.mubr.bf16.gmra.mrb[196].mxu0 %v11684_v63 }
 0x411   : > { %5685 = vmatprep.mubr.bf16.mxu0 %v11685_v52 }
 0x418   : > { %5686 = vmatmul.mubr.bf16.gmra.mrb[200].mxu0 %v11687_v3 }
 0x419   : > { %5695 = vmatprep.mubr.bf16.mxu0 %v11688_v42  ;;  %v11699_v42 = vld [vmem:[%s17209_s29 + $0x48] ss:$16 sps:$4 sm:$0xff]  }
 0x420   : > { %5696 = vmatmul.mubr.bf16.gmra.mrb[204].mxu0 %v11690_v58 }
 0x421   : > { %5738 = vmatprep.mubr.bf16.mxu0 %v11693_v26 }
 0x428   : > { %5739 = vmatmul.mubr.bf16.vlgmr.msra.gmra.mrb[128].mxu0 %v11691_v44  ;;  %v11700_v44 = vld [vmem:[%s17209_s29 + $0x6c] ss:$16 sps:$4 sm:$0xff]  }
 0x429   : > { %5748 = vmatprep.mubr.bf16.mxu0 %v11694_v4 }
 0x42f   : > { %v3691_v63 = vpop.xlane.xlu0 %3690 }
 0x430   : > { %5749 = vmatmul.mubr.bf16.gmra.mrb[132].mxu0 %v11696_v28  ;;  %12069 = vrcp.f32 %v3691_v63 }
 0x431   : > { %5758 = vmatprep.mubr.bf16.mxu0 %v11697_v10 }
 0x432   : > { %v3694_v52 = vpop.xlane.xlu1 %3693 }
 0x433   : > { %12071 = vrcp.f32 %v3694_v52  ;;  %v3187_v3 = vpop.xlane.xlu0 %3186 }
 0x434   : > { %v3329_v58 = vsub.f32 %v13602_v37, %v3187_v3  ;;  %v3330_v26 = vsub.f32 %v13605_v2, %v3187_v3 }
 0x436   : > { %v3553_v4 = vmul.f32 1.442695, %v3329_v58  ;;  %v3555_v27 = vmul.f32 1.442695, %v3330_v26  ;;  %v3190_v28 = vpop.xlane.xlu1 %3189 }
 0x437   : > { %v3331_v10 = vsub.f32 %v13619_v49, %v3190_v28  ;;  %v3332_v63 = vsub.f32 %v13623_v8, %v3190_v28  ;;  %v3697_v52 = vpop.xlane.xlu0 %3696  ;;  %v11702_v8 = vld [vmem:[%s17209_s29 + $0x68] ss:$16 sps:$4 sm:$0xff]  }
 0x438   : > { %5759 = vmatmul.mubr.bf16.gmra.mrb[136].mxu0 %v11699_v42  ;;  %12073 = vpow2.f32 %v3553_v4 }
 0x439   : > { %5768 = vmatprep.mubr.bf16.mxu0 %v11700_v44  ;;  %12075 = vpow2.f32 %v3555_v27  ;;  %v3557_v46 = vmul.f32 1.442695, %v3331_v10  ;;  %v3559_v37 = vmul.f32 1.442695, %v3332_v63  ;;  %v11703_v44 = vld [vmem:[%s17209_s29 + $0x8c] ss:$16 sps:$4 sm:$0xff]  }
 0x43a   : > { %v12070_v2 = vpop.eup %12069  ;;  %12077 = vrcp.f32 %v3697_v52  ;;  %v3700_v3 = vpop.xlane.xlu1 %3699 }
 0x43b   : > { %12079 = vpow2.f32 %v3557_v46  ;;  %v3193_v58 = vpop.xlane.xlu0 %3192  ;;  %v3922_v26 = vmul.f32 %v12070_v2, %v13599_v48  ;;  %v3921_v49 = vmul.f32 %v12070_v2, %v13596_v57 }
 0x43c   : > { %12081 = vpow2.f32 %v3559_v37  ;;  %v3333_v27 = vsub.f32 %v13647_v40, %v3193_v58  ;;  %v3334_v42 = vsub.f32 %v13650_v43, %v3193_v58  ;;  %v17320_v43 = vld [vmem:[#allocation33_spill] sm:$0xff] }
 0x43d   : > { %v12072_v46 = vpop.eup %12071  ;;  %12083 = vrcp.f32 %v3700_v3  ;;  %4050 = vst [vmem:[%s13572_s5 + $0x188] sm:$0xff] %v3922_v26  ;;  %4049 = vst [vmem:[%s13572_s5 + $0x180] sm:$0xff] %v3921_v49 }
 0x43e   : > { %v3561_v57 = vmul.f32 1.442695, %v3333_v27  ;;  %v3563_v48 = vmul.f32 1.442695, %v3334_v42  ;;  %v3196_v4 = vpop.xlane.xlu1 %3195  ;;  %v3924_v28 = vmul.f32 %v12072_v46, %v13616_v12  ;;  %v3923_v10 = vmul.f32 %v12072_v46, %v13611_v22  ;;  %v11706_v46 = vld [vmem:[%s17209_s29 + $0xac] ss:$16 sps:$4 sm:$0xff]  }
 0x43f   : > { %v3335_v40 = vsub.f32 %v13665_v50, %v3196_v4  ;;  %v3336_v63 = vsub.f32 %v17320_v43, %v3196_v4  ;;  %v3703_v52 = vpop.xlane.xlu0 %3702 }
 0x440   : > { %5769 = vmatmul.mubr.bf16.gmra.mrb[140].mxu0 %v11702_v8  ;;  %12085 = vpow2.f32 %v3561_v57  ;;  %4052 = vst [vmem:[%s13572_s5 + $0x198] sm:$0xff] %v3924_v28  ;;  %v10770_v37 = vpack.c.bf16 %v3924_v28, %v3922_v26  ;;  %4051 = vst [vmem:[%s13572_s5 + $0x190] sm:$0xff] %v3923_v10  ;;  %v10772_v2 = vpack.c.bf16 %v3923_v10, %v3921_v49  ;;  %v11705_v26 = vld [vmem:[%s17209_s29 + $0x88] ss:$16 sps:$4 sm:$0xff]   ;;  %v17322_v28 = vld [vmem:[#allocation35_spill] sm:$0xff] }
 0x441   : > { %5778 = vmatprep.mubr.bf16.mxu0 %v11703_v44  ;;  %12087 = vpow2.f32 %v3563_v48  ;;  %v3565_v3 = vmul.f32 1.442695, %v3335_v40  ;;  %v3567_v58 = vmul.f32 1.442695, %v3336_v63  ;;  %v17321_v48 = vld [vmem:[#allocation31_spill] sm:$0xff] }
 0x442   : > { %v14156_v27 = vpop.eup %12073  ;;  %12089 = vrcp.f32 %v3703_v52  ;;  %10771 = vmatprep.subr.bf16.mxu1 %v10770_v37 }
 0x443   : > { %v3706_v22 = vpop.xlane.xlu1 %3705  ;;  %v14158_v12 = vpop.eup %12075  ;;  %12091 = vpow2.f32 %v3565_v3  ;;  %10773 = vmatpush1.bf16.xpose.msra.mxu1 %v10772_v2 }
 0x444   : > { %v3199_v50 = vpop.xlane.xlu0 %3198  ;;  %v12078_v8 = vpop.eup %12077  ;;  %12093 = vpow2.f32 %v3567_v58  ;;  %v3761_v44 = vadd.f32 %v14158_v12, %v14156_v27  ;;  %v17323_v58 = vld [vmem:[#allocation34_spill] sm:$0xff] }
 0x445   : > { %v3337_v49 = vsub.f32 %v13690_v45, %v3199_v50  ;;  %v3338_v42 = vsub.f32 %v13693_v60, %v3199_v50  ;;  %v14170_v57 = vpop.eup %12079  ;;  %12095 = vrcp.f32 %v3706_v22  ;;  %v3926_v4 = vmul.f32 %v12078_v8, %v17321_v48  ;;  %v17324_v50 = vld [vmem:[#allocation30_spill] sm:$0xff] }
 0x446   : > { %v3925_v10 = vmul.f32 %v12078_v8, %v17322_v28  ;;  %v14174_v40 = vpop.eup %12081  ;;  %3762 = vadd.xlane.f32.xlu0 %v3761_v44 }
 0x447   : > { %v3569_v45 = vmul.f32 1.442695, %v3337_v49  ;;  %v3571_v60 = vmul.f32 1.442695, %v3338_v42  ;;  %v3202_v43 = vpop.xlane.xlu1 %3201  ;;  %v12084_v63 = vpop.eup %12083  ;;  %v3764_v3 = vadd.f32 %v14174_v40, %v14170_v57  ;;  %4054 = vst [vmem:[%s13572_s5 + $0x1a8] sm:$0xff] %v3926_v4 }
 0x448   : > { %v3339_v52 = vsub.f32 %v13715_v29, %v3202_v43  ;;  %v3340_v37 = vsub.f32 %v13718_v53, %v3202_v43  ;;  %v3709_v2 = vpop.xlane.xlu0 %3708  ;;  %4053 = vst [vmem:[%s13572_s5 + $0x1a0] sm:$0xff] %v3925_v10  ;;  %5779 = vmatmul.mubr.bf16.gmra.mrb[144].mxu0 %v11705_v26  ;;  %v3928_v22 = vmul.f32 %v12084_v63, %v17323_v58 }
 0x449   : > { %12097 = vpow2.f32 %v3569_v45  ;;  %v3927_v8 = vmul.f32 %v12084_v63, %v17324_v50  ;;  %5788 = vmatprep.mubr.bf16.mxu0 %v11706_v46  ;;  %3765 = vadd.xlane.f32.xlu1 %v3764_v3  ;;  %v11708_v46 = vld [vmem:[%s17209_s29 + $0xa8] ss:$16 sps:$4 sm:$0xff]  }
 0x44a   : > { %12099 = vpow2.f32 %v3571_v60  ;;  %v3573_v49 = vmul.f32 1.442695, %v3339_v52  ;;  %v3575_v29 = vmul.f32 1.442695, %v3340_v37  ;;  %v14184_v53 = vpop.eup %12085  ;;  %4056 = vst [vmem:[%s13572_s5 + $0x1b8] sm:$0xff] %v3928_v22  ;;  %v10774_v42 = vpack.c.bf16 %v3928_v22, %v3926_v4  ;;  %v17325_v52 = vld [vmem:[#allocation36_spill] sm:$0xff] }
 0x44b   : > { %12101 = vrcp.f32 %v3709_v2  ;;  %v3712_v44 = vpop.xlane.xlu1 %3711  ;;  %4055 = vst [vmem:[%s13572_s5 + $0x1b0] sm:$0xff] %v3927_v8  ;;  %v10776_v48 = vpack.c.bf16 %v3927_v8, %v3925_v10  ;;  %v14188_v28 = vpop.eup %12087  ;;  %v11709_v10 = vld [vmem:[%s17209_s29 + $0xcc] ss:$16 sps:$4 sm:$0xff]   ;;  %v17326_v2 = vld [vmem:[#allocation37_spill] sm:$0xff] }
 0x44c   : > { %12103 = vpow2.f32 %v3573_v49  ;;  %v3205_v26 = vpop.xlane.xlu0 %3204  ;;  %v12090_v45 = vpop.eup %12089  ;;  %10775 = vmatprep.subr.bf16.mxu1 %v10774_v42  ;;  %v3767_v4 = vadd.f32 %v14188_v28, %v14184_v53 }
 0x44d   : > { %12105 = vpow2.f32 %v3575_v29  ;;  %v3341_v60 = vsub.f32 %v13739_v25, %v3205_v26  ;;  %v3342_v43 = vsub.f32 %v13742_v20, %v3205_v26  ;;  %v14200_v63 = vpop.eup %12091  ;;  %10777 = vmatpush1.bf16.xpose.msra.mxu1 %v10776_v48  ;;  %v3930_v37 = vmul.f32 %v12090_v45, %v17325_v52  ;;  %v17328_v26 = vld [vmem:[#allocation39_spill] sm:$0xff] }
 0x44e   : > { %12107 = vrcp.f32 %v3712_v44  ;;  %v3929_v3 = vmul.f32 %v12090_v45, %v17326_v2  ;;  %v14204_v25 = vpop.eup %12093  ;;  %3768 = vadd.xlane.f32.xlu0 %v3767_v4  ;;  %v17327_v44 = vld [vmem:[#allocation38_spill] sm:$0xff] }
 0x44f   : > { %v3577_v20 = vmul.f32 1.442695, %v3341_v60  ;;  %v3579_v58 = vmul.f32 1.442695, %v3342_v43  ;;  %v3208_v22 = vpop.xlane.xlu1 %3207  ;;  %v12096_v50 = vpop.eup %12095  ;;  %v3770_v42 = vadd.f32 %v14204_v25, %v14200_v63  ;;  %4058 = vst [vmem:[%s13572_s5 + $0x1c8] sm:$0xff] %v3930_v37 }
 0x450   : > { %v3343_v8 = vsub.f32 %v13758_v61, %v3208_v22  ;;  %v3344_v49 = vsub.f32 %v13762_v16, %v3208_v22  ;;  %v3715_v29 = vpop.xlane.xlu0 %3714  ;;  %4057 = vst [vmem:[%s13572_s5 + $0x1c0] sm:$0xff] %v3929_v3  ;;  %5789 = vmatmul.mubr.bf16.gmra.mrb[148].mxu0 %v11708_v46  ;;  %v3932_v48 = vmul.f32 %v12096_v50, %v17327_v44 }
 0x451   : > { %12109 = vpow2.f32 %v3577_v20  ;;  %v3931_v45 = vmul.f32 %v12096_v50, %v17328_v26  ;;  %5798 = vmatprep.mubr.bf16.mxu0 %v11709_v10  ;;  %3771 = vadd.xlane.f32.xlu1 %v3770_v42  ;;  %v11711_v10 = vld [vmem:[%s17209_s29 + $0xc8] ss:$16 sps:$4 sm:$0xff]  }
 0x452   : > { %12111 = vpow2.f32 %v3579_v58  ;;  %v3581_v60 = vmul.f32 1.442695, %v3343_v8  ;;  %v3583_v61 = vmul.f32 1.442695, %v3344_v49  ;;  %4060 = vst [vmem:[%s13572_s5 + $0x1d8] sm:$0xff] %v3932_v48  ;;  %v10778_v43 = vpack.c.bf16 %v3932_v48, %v3930_v37  ;;  %v17329_v50 = vld [vmem:[#allocation40_spill] sm:$0xff] }
 0x453   : > { %v14214_v16 = vpop.eup %12097  ;;  %12113 = vrcp.f32 %v3715_v29  ;;  %v3718_v4 = vpop.xlane.xlu1 %3717  ;;  %4059 = vst [vmem:[%s13572_s5 + $0x1d0] sm:$0xff] %v3931_v45  ;;  %v10780_v52 = vpack.c.bf16 %v3931_v45, %v3929_v3  ;;  %v17330_v49 = vld [vmem:[#allocation41_spill] sm:$0xff] }
 0x454   : > { %v14218_v2 = vpop.eup %12099  ;;  %12115 = vpow2.f32 %v3581_v60  ;;  %v3211_v46 = vpop.xlane.xlu0 %3210  ;;  %10779 = vmatprep.subr.bf16.mxu1 %v10778_v43  ;;  %v11712_v43 = vld [vmem:[%s17209_s29 + $0xec] ss:$16 sps:$4 sm:$0xff]  }
 0x455   : > { %v12102_v20 = vpop.eup %12101  ;;  %12117 = vpow2.f32 %v3583_v61  ;;  %v3345_v58 = vsub.f32 %v13789_v59, %v3211_v46  ;;  %v3346_v22 = vsub.f32 %v13792_v33, %v3211_v46  ;;  %v3773_v37 = vadd.f32 %v14218_v2, %v14214_v16  ;;  %10781 = vmatpush1.bf16.xpose.msra.mxu1 %v10780_v52  ;;  %v17332_v46 = vld [vmem:[#allocation48_spill] sm:$0xff] }
 0x456   : > { %v14227_v3 = vpop.eup %12103  ;;  %12119 = vrcp.f32 %v3718_v4  ;;  %v3934_v8 = vmul.f32 %v12102_v20, %v17329_v50  ;;  %v3933_v29 = vmul.f32 %v12102_v20, %v17330_v49  ;;  %v17331_v4 = vld [vmem:[#allocation43_spill] sm:$0xff] }
 0x457   : > { %v14231_v42 = vpop.eup %12105  ;;  %v3585_v44 = vmul.f32 1.442695, %v3345_v58  ;;  %v3587_v48 = vmul.f32 1.442695, %v3346_v22  ;;  %3774 = vadd.xlane.f32.xlu0 %v3773_v37  ;;  %v3214_v59 = vpop.xlane.xlu1 %3213 }
 0x458   : > { %v12108_v33 = vpop.eup %12107  ;;  %v3347_v26 = vsub.f32 %v13808_v0, %v3214_v59  ;;  %v3348_v45 = vsub.f32 %v13811_v55, %v3214_v59  ;;  %v3721_v60 = vpop.xlane.xlu0 %3720  ;;  %v3776_v61 = vadd.f32 %v14231_v42, %v14227_v3  ;;  %4062 = vst [vmem:[%s13572_s5 + $0x1e8] sm:$0xff] %v3934_v8  ;;  %4061 = vst [vmem:[%s13572_s5 + $0x1e0] sm:$0xff] %v3933_v29  ;;  %5799 = vmatmul.mubr.bf16.gmra.mrb[152].mxu0 %v11711_v10 }
 0x459   : > { %12121 = vpow2.f32 %v3585_v44  ;;  %v3936_v52 = vmul.f32 %v12108_v33, %v17331_v4  ;;  %v3935_v0 = vmul.f32 %v12108_v33, %v17332_v46  ;;  %5808 = vmatprep.mubr.bf16.mxu0 %v11712_v43  ;;  %v11714_v44 = vld [vmem:[%s17209_s29 + $0xe8] ss:$16 sps:$4 sm:$0xff]  }
 0x45a   : > { %12123 = vpow2.f32 %v3587_v48  ;;  %v3589_v55 = vmul.f32 1.442695, %v3347_v26  ;;  %v3591_v20 = vmul.f32 1.442695, %v3348_v45  ;;  %3777 = vadd.xlane.f32.xlu1 %v3776_v61  ;;  %v17333_v26 = vld [vmem:[#allocation24_spill] sm:$0xff] }
 0x45b   : > { %v14244_v58 = vpop.eup %12109  ;;  %12125 = vrcp.f32 %v3721_v60  ;;  %4064 = vst [vmem:[%s13572_s5 + $0x1f8] sm:$0xff] %v3936_v52  ;;  %v10782_v22 = vpack.c.bf16 %v3936_v52, %v3934_v8  ;;  %v3724_v10 = vpop.xlane.xlu1 %3723  ;;  %4063 = vst [vmem:[%s13572_s5 + $0x1f0] sm:$0xff] %v3935_v0  ;;  %v10784_v37 = vpack.c.bf16 %v3935_v0, %v3933_v29  ;;  %v17334_v60 = vld [vmem:[#allocation42_spill] sm:$0xff] }
 0x45c   : > { %v14248_v50 = vpop.eup %12111  ;;  %12127 = vpow2.f32 %v3589_v55  ;;  %v3217_v49 = vpop.xlane.xlu0 %3216 }
 0x45d   : > { %v12114_v48 = vpop.eup %12113  ;;  %12129 = vpow2.f32 %v3591_v20  ;;  %10783 = vmatprep.subr.bf16.mxu1 %v10782_v22  ;;  %v3349_v59 = vsub.f32 %v13836_v17, %v3217_v49  ;;  %v3350_v33 = vsub.f32 %v13839_v15, %v3217_v49  ;;  %v3779_v8 = vadd.f32 %v14248_v50, %v14244_v58  ;;  %v11715_v22 = vld [vmem:[%s17209_s29 + $0x10c] ss:$16 sps:$4 sm:$0xff]   ;;  %v17336_v49 = vld [vmem:[#allocation25_spill] sm:$0xff] }
 0x45e   : > { %v14257_v29 = vpop.eup %12115  ;;  %12131 = vrcp.f32 %v3724_v10  ;;  %10785 = vmatpush1.bf16.xpose.msra.mxu1 %v10784_v37  ;;  %v3938_v45 = vmul.f32 %v12114_v48, %v17333_v26  ;;  %v3937_v61 = vmul.f32 %v12114_v48, %v17334_v60  ;;  %v17335_v10 = vld [vmem:[#allocation51_spill] sm:$0xff] }
 0x45f   : > { %v14261_v43 = vpop.eup %12117  ;;  %v3593_v4 = vmul.f32 1.442695, %v3349_v59  ;;  %v3595_v52 = vmul.f32 1.442695, %v3350_v33  ;;  %3780 = vadd.xlane.f32.xlu0 %v3779_v8  ;;  %v3220_v17 = vpop.xlane.xlu1 %3219 }
 0x460   : > { %v12120_v15 = vpop.eup %12119  ;;  %v3351_v46 = vsub.f32 %v13854_v31, %v3220_v17  ;;  %v3352_v0 = vsub.f32 %v13857_v51, %v3220_v17  ;;  %v3727_v55 = vpop.xlane.xlu0 %3726  ;;  %v3782_v20 = vadd.f32 %v14261_v43, %v14257_v29  ;;  %4066 = vst [vmem:[%s13572_s5 + $0x208] sm:$0xff] %v3938_v45  ;;  %4065 = vst [vmem:[%s13572_s5 + $0x200] sm:$0xff] %v3937_v61  ;;  %5809 = vmatmul.mubr.bf16.gmra.mrb[156].mxu0 %v11714_v44 }
 0x461   : > { %12133 = vpow2.f32 %v3593_v4  ;;  %v3940_v37 = vmul.f32 %v12120_v15, %v17335_v10  ;;  %v3939_v31 = vmul.f32 %v12120_v15, %v17336_v49  ;;  %5818 = vmatprep.mubr.bf16.mxu0 %v11715_v22  ;;  %v11717_v4 = vld [vmem:[%s17209_s29 + $0x108] ss:$16 sps:$4 sm:$0xff]  }
 0x462   : > { %12135 = vpow2.f32 %v3595_v52  ;;  %v3597_v51 = vmul.f32 1.442695, %v3351_v46  ;;  %v3599_v48 = vmul.f32 1.442695, %v3352_v0  ;;  %3783 = vadd.xlane.f32.xlu1 %v3782_v20  ;;  %v17337_v46 = vld [vmem:[#allocation45_spill] sm:$0xff] }
 0x463   : > { %v14274_v59 = vpop.eup %12121  ;;  %12137 = vrcp.f32 %v3727_v55  ;;  %4068 = vst [vmem:[%s13572_s5 + $0x218] sm:$0xff] %v3940_v37  ;;  %v10786_v33 = vpack.c.bf16 %v3940_v37, %v3938_v45  ;;  %v3730_v44 = vpop.xlane.xlu1 %3729  ;;  %4067 = vst [vmem:[%s13572_s5 + $0x210] sm:$0xff] %v3939_v31  ;;  %v10788_v8 = vpack.c.bf16 %v3939_v31, %v3937_v61  ;;  %v17338_v55 = vld [vmem:[#allocation53_spill] sm:$0xff] }
 0x464   : > { %v14278_v26 = vpop.eup %12123  ;;  %12139 = vpow2.f32 %v3597_v51  ;;  %v3223_v60 = vpop.xlane.xlu0 %3222 }
 0x465   : > { %v12126_v52 = vpop.eup %12125  ;;  %12141 = vpow2.f32 %v3599_v48  ;;  %10787 = vmatprep.subr.bf16.mxu1 %v10786_v33  ;;  %4198 = vmatmul.mubr.f32.vlgmr.msra.gmra.mrb[0].mxu1 %v13990_v7  ;;  %v3353_v17 = vsub.f32 %v13882_v13, %v3223_v60  ;;  %v3354_v45 = vsub.f32 %v13885_v19, %v3223_v60  ;;  %v3785_v61 = vadd.f32 %v14278_v26, %v14274_v59  ;;  %v17339_v48 = vld [vmem:[#allocation63_spill] sm:$0xff] }
 0x466   : > { %v14288_v15 = vpop.eup %12127  ;;  %12143 = vrcp.f32 %v3730_v44  ;;  %10789 = vmatpush1.bf16.xpose.msra.mxu1 %v10788_v8  ;;  %v3942_v0 = vmul.f32 %v12126_v52, %v17337_v46  ;;  %v3941_v20 = vmul.f32 %v12126_v52, %v17338_v55  ;;  %4268 = vmatprep.mubr.f32.mxu1 %v13996_v1  ;;  %v11718_v1 = vld [vmem:[%s17209_s29 + $0x12c] ss:$16 sps:$4 sm:$0xff]   ;;  %v11720_v46 = vld [vmem:[%s17209_s29 + $0x128] ss:$16 sps:$4 sm:$0xff]  }
 0x467   : > { %v14293_v7 = vpop.eup %12129  ;;  %v3601_v13 = vmul.f32 1.442695, %v3353_v17  ;;  %v3603_v22 = vmul.f32 1.442695, %v3354_v45  ;;  %3786 = vadd.xlane.f32.xlu0 %v3785_v61  ;;  %v3226_v19 = vpop.xlane.xlu1 %3225  ;;  %v17340_v44 = vld [vmem:[#allocation44_spill] sm:$0xff] }
 0x468   : > { %v12132_v10 = vpop.eup %12131  ;;  %v3355_v37 = vsub.f32 %v13900_v32, %v3226_v19  ;;  %v3356_v49 = vsub.f32 %v13903_v21, %v3226_v19  ;;  %v3733_v31 = vpop.xlane.xlu0 %3732  ;;  %v3788_v51 = vadd.f32 %v14293_v7, %v14288_v15  ;;  %4070 = vst [vmem:[%s13572_s5 + $0x228] sm:$0xff] %v3942_v0  ;;  %4069 = vst [vmem:[%s13572_s5 + $0x220] sm:$0xff] %v3941_v20  ;;  %5819 = vmatmul.mubr.bf16.gmra.mrb[160].mxu0 %v11717_v4  ;;  %v17341_v19 = vld [vmem:[#allocation55_spill] sm:$0xff] }
 0x469   : > { %12145 = vpow2.f32 %v3601_v13  ;;  %v3944_v33 = vmul.f32 %v12132_v10, %v17339_v48  ;;  %v3943_v32 = vmul.f32 %v12132_v10, %v17340_v44  ;;  %5828 = vmatprep.mubr.bf16.mxu0 %v11718_v1 }
 0x46a   : > { %12147 = vpow2.f32 %v3603_v22  ;;  %v3605_v21 = vmul.f32 1.442695, %v3355_v37  ;;  %v3607_v8 = vmul.f32 1.442695, %v3356_v49  ;;  %3789 = vadd.xlane.f32.xlu1 %v3788_v51  ;;  %v17342_v37 = vld [vmem:[#allocation65_spill] sm:$0xff] }
 0x46b   : > { %v14306_v60 = vpop.eup %12133  ;;  %12149 = vrcp.f32 %v3733_v31  ;;  %4072 = vst [vmem:[%s13572_s5 + $0x238] sm:$0xff] %v3944_v33  ;;  %v10790_v52 = vpack.c.bf16 %v3944_v33, %v3942_v0  ;;  %v3736_v4 = vpop.xlane.xlu1 %3735  ;;  %4071 = vst [vmem:[%s13572_s5 + $0x230] sm:$0xff] %v3943_v32  ;;  %v10792_v17 = vpack.c.bf16 %v3943_v32, %v3941_v20 }
 0x46c   : > { %v14310_v45 = vpop.eup %12135  ;;  %12151 = vpow2.f32 %v3605_v21  ;;  %v3229_v61 = vpop.xlane.xlu0 %3228  ;;  %v11721_v21 = vld [vmem:[%s17209_s29 + $0x14c] ss:$16 sps:$4 sm:$0xff]  }
 0x46d   : > { %v12138_v55 = vpop.eup %12137  ;;  %12153 = vpow2.f32 %v3607_v8  ;;  %10791 = vmatprep.subr.bf16.mxu1 %v10790_v52  ;;  %v3357_v13 = vsub.f32 %v13928_v30, %v3229_v61  ;;  %v3358_v22 = vsub.f32 %v13931_v36, %v3229_v61  ;;  %v3791_v0 = vadd.f32 %v14310_v45, %v14306_v60  ;;  %v17343_v8 = vld [vmem:[#allocation47_spill] sm:$0xff] }
 0x46e   : > { %v14319_v20 = vpop.eup %12139  ;;  %12155 = vrcp.f32 %v3736_v4  ;;  %10793 = vmatpush1.bf16.xpose.msra.mxu1 %v10792_v17  ;;  %v3946_v10 = vmul.f32 %v12138_v55, %v17341_v19  ;;  %v3945_v49 = vmul.f32 %v12138_v55, %v17342_v37  ;;  %v17344_v4 = vld [vmem:[#allocation56_spill] sm:$0xff] }
 0x46f   : > { %v14323_v31 = vpop.eup %12141  ;;  %v3609_v51 = vmul.f32 1.442695, %v3357_v13  ;;  %v3611_v1 = vmul.f32 1.442695, %v3358_v22  ;;  %3792 = vadd.xlane.f32.xlu0 %v3791_v0  ;;  %v3232_v30 = vpop.xlane.xlu1 %3231  ;;  %v11723_v0 = vld [vmem:[%s17209_s29 + $0x148] ss:$16 sps:$4 sm:$0xff]  }
 0x470   : > { %v12144_v36 = vpop.eup %12143  ;;  %v3359_v48 = vsub.f32 %v13946_v54, %v3232_v30  ;;  %v3360_v33 = vsub.f32 %v13949_v34, %v3232_v30  ;;  %v3739_v44 = vpop.xlane.xlu0 %3738  ;;  %v3794_v32 = vadd.f32 %v14323_v31, %v14319_v20  ;;  %4074 = vst [vmem:[%s13572_s5 + $0x248] sm:$0xff] %v3946_v10  ;;  %4073 = vst [vmem:[%s13572_s5 + $0x240] sm:$0xff] %v3945_v49  ;;  %5829 = vmatmul.mubr.bf16.gmra.mrb[164].mxu0 %v11720_v46 }
 0x471   : > { %12157 = vpow2.f32 %v3609_v51  ;;  %v3948_v52 = vmul.f32 %v12144_v36, %v17343_v8  ;;  %v3947_v54 = vmul.f32 %v12144_v36, %v17344_v4  ;;  %5838 = vmatprep.mubr.bf16.mxu0 %v11721_v21 }
 0x472   : > { %12159 = vpow2.f32 %v3611_v1  ;;  %v3613_v34 = vmul.f32 1.442695, %v3359_v48  ;;  %v3615_v17 = vmul.f32 1.442695, %v3360_v33  ;;  %3795 = vadd.xlane.f32.xlu1 %v3794_v32  ;;  %v11724_v33 = vld [vmem:[%s17209_s29 + $0x16c] ss:$16 sps:$4 sm:$0xff]  }
 0x473   : > { %v14336_v61 = vpop.eup %12145  ;;  %12161 = vrcp.f32 %v3739_v44  ;;  %4076 = vst [vmem:[%s13572_s5 + $0x258] sm:$0xff] %v3948_v52  ;;  %v10794_v55 = vpack.c.bf16 %v3948_v52, %v3946_v10  ;;  %v3742_v46 = vpop.xlane.xlu1 %3741  ;;  %4075 = vst [vmem:[%s13572_s5 + $0x250] sm:$0xff] %v3947_v54  ;;  %v10796_v13 = vpack.c.bf16 %v3947_v54, %v3945_v49 }
 0x474   : > { %v14340_v22 = vpop.eup %12147  ;;  %12163 = vpow2.f32 %v3613_v34 }
 0x475   : > { %v12150_v19 = vpop.eup %12149  ;;  %12165 = vpow2.f32 %v3615_v17  ;;  %10795 = vmatprep.subr.bf16.mxu1 %v10794_v55  ;;  %v3797_v37 = vadd.f32 %v14340_v22, %v14336_v61 }
 0x476   : > { %v14347_v51 = vpop.eup %12151  ;;  %12167 = vrcp.f32 %v3742_v46  ;;  %10797 = vmatpush1.bf16.xpose.msra.mxu1 %v10796_v13  ;;  %v3950_v10 = vmul.f32 %v12150_v19, %v13925_v62  ;;  %v3949_v49 = vmul.f32 %v12150_v19, %v13921_v5  ;;  %v11727_v19 = vld [vmem:[%s17209_s29 + $0x18c] ss:$16 sps:$4 sm:$0xff]  }
 0x477   : > { %v14351_v1 = vpop.eup %12153  ;;  %3798 = vadd.xlane.f32.xlu0 %v3797_v37 }
 0x478   : > { %v12156_v30 = vpop.eup %12155  ;;  %v3745_v36 = vpop.xlane.xlu0 %3744  ;;  %v3800_v48 = vadd.f32 %v14351_v1, %v14347_v51  ;;  %4078 = vst [vmem:[%s13572_s5 + $0x268] sm:$0xff] %v3950_v10  ;;  %4077 = vst [vmem:[%s13572_s5 + $0x260] sm:$0xff] %v3949_v49  ;;  %5839 = vmatmul.mubr.bf16.gmra.mrb[168].mxu0 %v11723_v0 }
 0x479   : > { %12169 = vrcp.f32 %v3745_v36  ;;  %v3952_v5 = vmul.f32 %v12156_v30, %v13943_v11  ;;  %v3951_v62 = vmul.f32 %v12156_v30, %v13939_v56  ;;  %5848 = vmatprep.mubr.bf16.mxu0 %v11724_v33  ;;  %v11726_v11 = vld [vmem:[%s17209_s29 + $0x168] ss:$16 sps:$4 sm:$0xff]  }
 0x47a   : > { %3801 = vadd.xlane.f32.xlu1 %v3800_v48  ;;  %v3748_v21 = vpop.xlane.xlu1 %3747  ;;  %v17346_v48 = vld [vmem:[#allocation61_spill] sm:$0xff] }
 0x47b   : > { %v14362_v44 = vpop.eup %12157  ;;  %4080 = vst [vmem:[%s13572_s5 + $0x278] sm:$0xff] %v3952_v5  ;;  %v10798_v32 = vpack.c.bf16 %v3952_v5, %v3950_v10  ;;  %4079 = vst [vmem:[%s13572_s5 + $0x270] sm:$0xff] %v3951_v62  ;;  %v10800_v8 = vpack.c.bf16 %v3951_v62, %v3949_v49  ;;  %12171 = vrcp.f32 %v3748_v21  ;;  %v17347_v5 = vld [vmem:[#allocation59_spill] sm:$0xff] }
 0x47c   : > { %v14366_v52 = vpop.eup %12159 }
 0x47d   : > { %v12162_v4 = vpop.eup %12161  ;;  %10799 = vmatprep.subr.bf16.mxu1 %v10798_v32  ;;  %v3803_v56 = vadd.f32 %v14366_v52, %v14362_v44 }
 0x47e   : > { %v14373_v54 = vpop.eup %12163  ;;  %10801 = vmatpush1.bf16.xpose.msra.mxu1 %v10800_v8  ;;  %v3954_v34 = vmul.f32 %v12162_v4, %v13971_v38  ;;  %v3953_v17 = vmul.f32 %v12162_v4, %v13967_v39  ;;  %v17345_v38 = vld [vmem:[#allocation46_spill] sm:$0xff] }
 0x47f   : > { %v14377_v55 = vpop.eup %12165  ;;  %3804 = vadd.xlane.f32.xlu0 %v3803_v56  ;;  %v3751_v13 = vpop.xlane.xlu0 %3750  ;;  %v11730_v4 = vld [vmem:[%s17209_s29 + $0x1ac] ss:$16 sps:$4 sm:$0xff]  }
 0x480   : > { %v12168_v46 = vpop.eup %12167  ;;  %v3806_v0 = vadd.f32 %v14377_v55, %v14373_v54  ;;  %4082 = vst [vmem:[%s13572_s5 + $0x288] sm:$0xff] %v3954_v34  ;;  %4081 = vst [vmem:[%s13572_s5 + $0x280] sm:$0xff] %v3953_v17  ;;  %5849 = vmatmul.mubr.bf16.gmra.mrb[172].mxu0 %v11726_v11  ;;  %12173 = vrcp.f32 %v3751_v13 }
 0x481   : > { %v3956_v39 = vmul.f32 %v12168_v46, %v13992_v14  ;;  %v3955_v37 = vmul.f32 %v12168_v46, %v17345_v38  ;;  %5858 = vmatprep.mubr.bf16.mxu0 %v11727_v19  ;;  %v11729_v14 = vld [vmem:[%s17209_s29 + $0x188] ss:$16 sps:$4 sm:$0xff]  }
 0x482   : > { %3807 = vadd.xlane.f32.xlu1 %v3806_v0  ;;  %v3754_v30 = vpop.xlane.xlu1 %3753  ;;  %v11732_v0 = vld [vmem:[%s17209_s29 + $0x1a8] ss:$16 sps:$4 sm:$0xff]  }
 0x483   : > { %v12170_v10 = vpop.eup %12169  ;;  %4084 = vst [vmem:[%s13572_s5 + $0x298] sm:$0xff] %v3956_v39  ;;  %v10802_v49 = vpack.c.bf16 %v3956_v39, %v3954_v34  ;;  %4083 = vst [vmem:[%s13572_s5 + $0x290] sm:$0xff] %v3955_v37  ;;  %v10804_v36 = vpack.c.bf16 %v3955_v37, %v3953_v17  ;;  %12175 = vrcp.f32 %v3754_v30  ;;  %v17017_v34 = vmov 0   ;;  %v4368_v37 = vld [vmem:[%s17348_s20 + $0x8] sm:$0xff]  ;;  %v4369_v30 = vld [vmem:[%s17348_s20 + $0x10] sm:$0xff] }
 0x484   : > { %v3958_v33 = vmul.f32 %v12170_v10, %v17346_v48  ;;  %v3957_v62 = vmul.f32 %v12170_v10, %v17347_v5  ;;  %11341 = vset.pattern.permute.xlu1 %v17017_v34  ;;  %11340 = vset.pattern.permute.xlu0 %v17017_v34 }
 0x485   : > { %10803 = vmatprep.subr.bf16.mxu1 %v10802_v49  ;;  %v12172_v32 = vpop.eup %12171 }
 0x486   : > { %10805 = vmatpush1.bf16.xpose.msra.mxu1 %v10804_v36  ;;  %4086 = vst [vmem:[%s13572_s5 + $0x2a8] sm:$0xff] %v3958_v33  ;;  %4085 = vst [vmem:[%s13572_s5 + $0x2a0] sm:$0xff] %v3957_v62  ;;  %v3960_v21 = vmul.f32 %v12172_v32, %v14027_v9  ;;  %v3959_v8 = vmul.f32 %v12172_v32, %v14023_v18  ;;  %v11735_v36 = vld [vmem:[%s17209_s29 + $0x1c8] ss:$16 sps:$4 sm:$0xff]  }
 0x487   : > { %v3757_v11 = vpop.xlane.xlu0 %3756 }
 0x488   : > { %5859 = vmatmul.mubr.bf16.gmra.mrb[176].mxu0 %v11729_v14  ;;  %12177 = vrcp.f32 %v3757_v11  ;;  %4088 = vst [vmem:[%s13572_s5 + $0x2b8] sm:$0xff] %v3960_v21  ;;  %v10806_v56 = vpack.c.bf16 %v3960_v21, %v3958_v33  ;;  %4087 = vst [vmem:[%s13572_s5 + $0x2b0] sm:$0xff] %v3959_v8  ;;  %v10808_v9 = vpack.c.bf16 %v3959_v8, %v3957_v62  ;;  %v17349_v33 = vld [vmem:[#allocation49_spill] sm:$0xff]  ;;  %v17350_v62 = vld [vmem:[#allocation50_spill] sm:$0xff] }
 0x489   : > { %5868 = vmatprep.mubr.bf16.mxu0 %v11730_v4  ;;  %v4371_v8 = vld [vmem:[%s17348_s20 + $0x20] sm:$0xff]  ;;  %v11738_v11 = vld [vmem:[%s17209_s29 + $0x1e8] ss:$16 sps:$4 sm:$0xff]  }
 0x48a   : > { %v12174_v18 = vpop.eup %12173  ;;  %10807 = vmatprep.subr.bf16.mxu1 %v10806_v56  ;;  %v3760_v17 = vpop.xlane.xlu1 %3759  ;;  %v4372_v4 = vld [vmem:[%s17348_s20 + $0x28] sm:$0xff] }
 0x48b   : > { %12179 = vrcp.f32 %v3760_v17  ;;  %v3962_v46 = vmul.f32 %v12174_v18, %v14047_v47  ;;  %v3961_v13 = vmul.f32 %v12174_v18, %v14043_v35  ;;  %v11733_v35 = vld [vmem:[%s17209_s29 + $0x1cc] ss:$16 sps:$4 sm:$0xff]   ;;  %v4373_v17 = vld [vmem:[%s17348_s20 + $0x30] sm:$0xff] }
 0x48c   : > { %v11739_v56 = vld [vmem:[%s17209_s29 + $0x20c] ss:$16 sps:$4 sm:$0xff]  }
 0x48d   : > { %v12176_v19 = vpop.eup %12175  ;;  %4090 = vst [vmem:[%s13572_s5 + $0x2c8] sm:$0xff] %v3962_v46  ;;  %4089 = vst [vmem:[%s13572_s5 + $0x2c0] sm:$0xff] %v3961_v13  ;;  %v4376_v18 = vld [vmem:[%s17348_s20 + $0x48] sm:$0xff] }
 0x48e   : > { %10809 = vmatpush1.bf16.xpose.msra.mxu1 %v10808_v9  ;;  %v3964_v39 = vmul.f32 %v12176_v19, %v14055_v23  ;;  %v3963_v38 = vmul.f32 %v12176_v19, %v14051_v41  ;;  %v4367_v9 = vld [vmem:[%s17348_s20] sm:$0xff]  ;;  %v4378_v19 = vld [vmem:[%s17348_s20 + $0x58] sm:$0xff] }
 0x490   : > { %5869 = vmatmul.mubr.bf16.gmra.mrb[180].mxu0 %v11732_v0  ;;  %4092 = vst [vmem:[%s13572_s5 + $0x2d8] sm:$0xff] %v3964_v39  ;;  %v10810_v47 = vpack.c.bf16 %v3964_v39, %v3962_v46  ;;  %4091 = vst [vmem:[%s13572_s5 + $0x2d0] sm:$0xff] %v3963_v38  ;;  %v10812_v10 = vpack.c.bf16 %v3963_v38, %v3961_v13  ;;  %v11741_v46 = vld [vmem:[%s17209_s29 + $0x208] ss:$16 sps:$4 sm:$0xff]   ;;  %v11742_v0 = vld [vmem:[%s17209_s29 + $0x22c] ss:$16 sps:$4 sm:$0xff]  }
 0x491   : > { %5878 = vmatprep.mubr.bf16.mxu0 %v11733_v35  ;;  %v4374_v13 = vld [vmem:[%s17348_s20 + $0x38] sm:$0xff]  ;;  %v4375_v39 = vld [vmem:[%s17348_s20 + $0x40] sm:$0xff]  ;;  %v4377_v35 = vld [vmem:[%s17348_s20 + $0x50] sm:$0xff] }
 0x492   : > { %v12178_v49 = vpop.eup %12177  ;;  %10811 = vmatprep.subr.bf16.mxu1 %v10810_v47  ;;  %v11744_v38 = vld [vmem:[%s17209_s29 + $0x228] ss:$16 sps:$4 sm:$0xff]   ;;  %v11745_v47 = vld [vmem:[%s17209_s29 + $0x24c] ss:$16 sps:$4 sm:$0xff]  }
 0x493   : > { %4414 = vperm.xlu1 %11341, %v4368_v37   ;;  %v3966_v41 = vmul.f32 %v12178_v49, %v14073_v6  ;;  %v3965_v23 = vmul.f32 %v12178_v49, %v14069_v24  ;;  %v4370_v24 = vld [vmem:[%s17348_s20 + $0x18] sm:$0xff]  ;;  %v4380_v37 = vld [vmem:[%s17348_s20 + $0x68] sm:$0xff]  ;;  %v4379_v49 = vld [vmem:[%s17348_s20 + $0x60] sm:$0xff] }
 0x494   : > { %v11736_v6 = vld [vmem:[%s17209_s29 + $0x1ec] ss:$16 sps:$4 sm:$0xff]  }
 0x495   : > { %v12180_v48 = vpop.eup %12179  ;;  %4094 = vst [vmem:[%s13572_s5 + $0x2e8] sm:$0xff] %v3966_v41  ;;  %4093 = vst [vmem:[%s13572_s5 + $0x2e0] sm:$0xff] %v3965_v23  ;;  %4409 = vperm.xlu0 %11340, %v4367_v9   ;;  %v4398_v9 = vld [vmem:[%s17348_s20 + $0xf8] sm:$0xff] }
 0x496   : > { %10813 = vmatpush1.bf16.xpose.msra.mxu1 %v10812_v10  ;;  %v3968_v5 = vmul.f32 %v12180_v48, %v17349_v33  ;;  %v3967_v14 = vmul.f32 %v12180_v48, %v17350_v62  ;;  %v4382_v10 = vld [vmem:[%s17348_s20 + $0x78] sm:$0xff]  ;;  %v4383_v33 = vld [vmem:[%s17348_s20 + $0x80] sm:$0xff]  ;;  %v4388_v62 = vld [vmem:[%s17348_s20 + $0xa8] sm:$0xff] }
 0x497   : > { %4419 = vperm.xlu1 %11341, %v4369_v30   ;;  %v4381_v30 = vld [vmem:[%s17348_s20 + $0x70] sm:$0xff]  ;;  %v4386_v48 = vld [vmem:[%s17348_s20 + $0x98] sm:$0xff] }
 0x498   : > { %5879 = vmatmul.mubr.bf16.gmra.mrb[184].mxu0 %v11735_v36  ;;  %4096 = vst [vmem:[%s13572_s5 + $0x2f8] sm:$0xff] %v3968_v5  ;;  %v10814_v32 = vpack.c.bf16 %v3968_v5, %v3966_v41  ;;  %4095 = vst [vmem:[%s13572_s5 + $0x2f0] sm:$0xff] %v3967_v14  ;;  %v10816_v21 = vpack.c.bf16 %v3967_v14, %v3965_v23  ;;  %v11747_v41 = vld [vmem:[%s17209_s29 + $0x248] ss:$16 sps:$4 sm:$0xff]   ;;  %v11748_v36 = vld [vmem:[%s17209_s29 + $0x26c] ss:$16 sps:$4 sm:$0xff]  }
 0x499   : > { %5888 = vmatprep.mubr.bf16.mxu0 %v11736_v6  ;;  %4454 = vperm.xlu0 %11340, %v4376_v18   ;;  %v4384_v23 = vld [vmem:[%s17348_s20 + $0x88] sm:$0xff]  ;;  %v4385_v14 = vld [vmem:[%s17348_s20 + $0x90] sm:$0xff]  ;;  %v4387_v6 = vld [vmem:[%s17348_s20 + $0xa0] sm:$0xff] }
 0x49a   : > { %10815 = vmatprep.subr.bf16.mxu1 %v10814_v32  ;;  %v11750_v5 = vld [vmem:[%s17209_s29 + $0x268] ss:$16 sps:$4 sm:$0xff]  }
 0x49b   : > { %4424 = vperm.xlu1 %11341, %v4370_v24   ;;  %v4390_v24 = vld [vmem:[%s17348_s20 + $0xb8] sm:$0xff]  ;;  %v4392_v32 = vld [vmem:[%s17348_s20 + $0xc8] sm:$0xff] }
 0x49d   : > { %4464 = vperm.xlu0 %11340, %v4378_v19   ;;  %v6198_v19 = vld [vmem:[%s16876_s7 + $0x18] sm:$0xff] }
 0x49e   : > { %10817 = vmatpush1.bf16.xpose.msra.mxu1 %v10816_v21  ;;  %v4389_v21 = vld [vmem:[%s17348_s20 + $0xb0] sm:$0xff] }
 0x49f   : > { %4429 = vperm.xlu1 %11341, %v4371_v8   ;;  %v4394_v8 = vld [vmem:[%s17348_s20 + $0xd8] sm:$0xff] }
 0x4a0   : > { %5889 = vmatmul.mubr.bf16.gmra.mrb[188].mxu0 %v11738_v11  ;;  %v4391_v11 = vld [vmem:[%s17348_s20 + $0xc0] sm:$0xff] }
 0x4a1   : > { %5898 = vmatprep.mubr.bf16.mxu0 %v11739_v56  ;;  %4474 = vperm.xlu0 %11340, %v4380_v37   ;;  %v4393_v56 = vld [vmem:[%s17348_s20 + $0xd0] sm:$0xff]  ;;  %v6200_v37 = vld [vmem:[%s16876_s7 + $0x28] sm:$0xff] }
 0x4a3   : > { %4434 = vperm.xlu1 %11341, %v4372_v4   ;;  %v4396_v4 = vld [vmem:[%s17348_s20 + $0xe8] sm:$0xff] }
 0x4a5   : > { %4484 = vperm.xlu0 %11340, %v4382_v10  }
 0x4a7   : > { %4439 = vperm.xlu1 %11341, %v4373_v17   ;;  %v4395_v17 = vld [vmem:[%s17348_s20 + $0xe0] sm:$0xff] }
 0x4a8   : > { %5899 = vmatmul.mubr.bf16.gmra.mrb[192].mxu0 %v11741_v46  ;;  %v6196_v46 = vld [vmem:[%s16876_s7 + $0x8] sm:$0xff] }
 0x4a9   : > { %5908 = vmatprep.mubr.bf16.mxu0 %v11742_v0  ;;  %4494 = vperm.xlu0 %11340, %v4384_v23   ;;  %v4397_v0 = vld [vmem:[%s17348_s20 + $0xf0] sm:$0xff]  ;;  %v6202_v23 = vld [vmem:[%s16876_s7 + $0x38] sm:$0xff] }
 0x4ab   : > { %4444 = vperm.xlu1 %11341, %v4374_v13  }
 0x4ad   : > { %4504 = vperm.xlu0 %11340, %v4386_v48  }
 0x4af   : > { %4449 = vperm.xlu1 %11341, %v4375_v39  }
 0x4b0   : > { %5909 = vmatmul.mubr.bf16.gmra.mrb[196].mxu0 %v11744_v38  ;;  %v6195_v38 = vld [vmem:[%s16876_s7] sm:$0xff] }
 0x4b1   : > { %5918 = vmatprep.mubr.bf16.mxu0 %v11745_v47  ;;  %4514 = vperm.xlu0 %11340, %v4388_v62  }
 0x4b3   : > { %4459 = vperm.xlu1 %11341, %v4377_v35  }
 0x4b5   : > { %4524 = vperm.xlu0 %11340, %v4390_v24  }
 0x4b7   : > { %4469 = vperm.xlu1 %11341, %v4379_v49  }
 0x4b8   : > { %5919 = vmatmul.mubr.bf16.gmra.mrb[200].mxu0 %v11747_v41  ;;  %v6197_v41 = vld [vmem:[%s16876_s7 + $0x10] sm:$0xff] }
 0x4b9   : > { %5928 = vmatprep.mubr.bf16.mxu0 %v11748_v36  ;;  %4534 = vperm.xlu0 %11340, %v4392_v32   ;;  %v6201_v32 = vld [vmem:[%s16876_s7 + $0x30] sm:$0xff] }
 0x4bb   : > { %4479 = vperm.xlu1 %11341, %v4381_v30  }
 0x4bd   : > { %4544 = vperm.xlu0 %11340, %v4394_v8   ;;  %v6208_v8 = vld [vmem:[%s16876_s7 + $0x68] sm:$0xff] }
 0x4bf   : > { %4489 = vperm.xlu1 %11341, %v4383_v33   ;;  %v6204_v33 = vld [vmem:[%s16876_s7 + $0x48] sm:$0xff] }
 0x4c0   : > { %5929 = vmatmul.mubr.bf16.gmra.mrb[204].mxu0 %v11750_v5 }
 0x4c1   : > { %7247 = vmatprep.mubr.bf16.mxu0 %v17017_v34  ;;  %4554 = vperm.xlu0 %11340, %v4396_v4  }
 0x4c3   : > { %4499 = vperm.xlu1 %11341, %v4385_v14   ;;  %v6206_v14 = vld [vmem:[%s16876_s7 + $0x58] sm:$0xff] }
 0x4c5   : > { %4564 = vperm.xlu0 %11340, %v4398_v9  }
 0x4c7   : > { %4509 = vperm.xlu1 %11341, %v4387_v6  }
 0x4c9   : > { %6218 = vperm.xlu0 %11340, %v6196_v46  }
 0x4cb   : > { %4519 = vperm.xlu1 %11341, %v4389_v21  }
 0x4cd   : > { %6228 = vperm.xlu0 %11340, %v6198_v19   ;;  %v6702_v19 = vld [vmem:[%s16878_s9 + $0x8] sm:$0xff] }
 0x4cf   : > { %4529 = vperm.xlu1 %11341, %v4391_v11  }
 0x4d1   : > { %6238 = vperm.xlu0 %11340, %v6200_v37  }
 0x4d3   : > { %4539 = vperm.xlu1 %11341, %v4393_v56   ;;  %v3763_v18 = vpop.xlane.xlu0 %3762 }
 0x4d4   : > { %12181 = vrcp.f32 %v3763_v18 }
 0x4d5   : > { %6248 = vperm.xlu0 %11340, %v6202_v23  }
 0x4d6   : > { %v3766_v13 = vpop.xlane.xlu1 %3765 }
 0x4d7   : > { %4549 = vperm.xlu1 %11341, %v4395_v17   ;;  %12183 = vrcp.f32 %v3766_v13  ;;  %v6205_v13 = vld [vmem:[%s16876_s7 + $0x50] sm:$0xff] }
 0x4d9   : > { %6258 = vperm.xlu0 %11340, %v6204_v33  }
 0x4db   : > { %4559 = vperm.xlu1 %11341, %v4397_v0   ;;  %v3769_v39 = vpop.xlane.xlu0 %3768 }
 0x4dc   : > { %12185 = vrcp.f32 %v3769_v39 }
 0x4dd   : > { %6268 = vperm.xlu0 %11340, %v6206_v14   ;;  %v4400_v14 = vld [vmem:[%s17348_s20 + $0x108] sm:$0xff] }
 0x4de   : > { %v12182_v35 = vpop.eup %12181  ;;  %v3772_v47 = vpop.xlane.xlu1 %3771 }
 0x4df   : > { %6213 = vperm.xlu1 %11341, %v6195_v38   ;;  %12187 = vrcp.f32 %v3772_v47  ;;  %v3970_v10 = vmul.f32 %v12182_v35, %v14158_v12  ;;  %v3969_v49 = vmul.f32 %v12182_v35, %v14156_v27  ;;  %v6199_v27 = vld [vmem:[%s16876_s7 + $0x20] sm:$0xff] }
 0x4e1   : > { %v12184_v30 = vpop.eup %12183  ;;  %4098 = vst [vmem:[%s13572_s5 + $0x308] sm:$0xff] %v3970_v10  ;;  %4097 = vst [vmem:[%s13572_s5 + $0x300] sm:$0xff] %v3969_v49  ;;  %6278 = vperm.xlu0 %11340, %v6208_v8  }
 0x4e2   : > { %v3972_v36 = vmul.f32 %v12184_v30, %v14174_v40  ;;  %v3971_v48 = vmul.f32 %v12184_v30, %v14170_v57  ;;  %v6706_v30 = vld [vmem:[%s16878_s9 + $0x28] sm:$0xff] }
 0x4e3   : > { %6223 = vperm.xlu1 %11341, %v6197_v41   ;;  %v6209_v41 = vld [vmem:[%s16876_s7 + $0x70] sm:$0xff] }
 0x4e4   : > { %v3775_v12 = vpop.xlane.xlu0 %3774  ;;  %4100 = vst [vmem:[%s13572_s5 + $0x318] sm:$0xff] %v3972_v36  ;;  %v10818_v5 = vpack.c.bf16 %v3972_v36, %v3970_v10  ;;  %4099 = vst [vmem:[%s13572_s5 + $0x310] sm:$0xff] %v3971_v48  ;;  %v10820_v62 = vpack.c.bf16 %v3971_v48, %v3969_v49 }
 0x4e5   : > { %12189 = vrcp.f32 %v3775_v12 }
 0x4e6   : > { %v12186_v40 = vpop.eup %12185  ;;  %10819 = vmatprep.subr.bf16.mxu1 %v10818_v5 }
 0x4e7   : > { %v3778_v57 = vpop.xlane.xlu1 %3777  ;;  %6233 = vperm.xlu1 %11341, %v6199_v27   ;;  %10821 = vmatpush1.bf16.xpose.msra.mxu1 %v10820_v62  ;;  %v3974_v24 = vmul.f32 %v12186_v40, %v14188_v28  ;;  %v3973_v6 = vmul.f32 %v12186_v40, %v14184_v53  ;;  %v6203_v53 = vld [vmem:[%s16876_s7 + $0x40] sm:$0xff]  ;;  %v6703_v40 = vld [vmem:[%s16878_s9 + $0x10] sm:$0xff] }
 0x4e8   : > { %12191 = vrcp.f32 %v3778_v57 }
 0x4e9   : > { %v12188_v21 = vpop.eup %12187  ;;  %4102 = vst [vmem:[%s13572_s5 + $0x328] sm:$0xff] %v3974_v24  ;;  %4101 = vst [vmem:[%s13572_s5 + $0x320] sm:$0xff] %v3973_v6 }
 0x4ea   : > { %v3976_v11 = vmul.f32 %v12188_v21, %v14204_v25  ;;  %v3975_v4 = vmul.f32 %v12188_v21, %v14200_v63  ;;  %v6210_v63 = vld [vmem:[%s16876_s7 + $0x78] sm:$0xff] }
 0x4eb   : > { %6243 = vperm.xlu1 %11341, %v6201_v32   ;;  %6288 = vperm.xlu0 %11340, %v6210_v63  }
 0x4ec   : > { %v3781_v28 = vpop.xlane.xlu0 %3780  ;;  %4104 = vst [vmem:[%s13572_s5 + $0x338] sm:$0xff] %v3976_v11  ;;  %v10822_v56 = vpack.c.bf16 %v3976_v11, %v3974_v24  ;;  %4103 = vst [vmem:[%s13572_s5 + $0x330] sm:$0xff] %v3975_v4  ;;  %v10824_v9 = vpack.c.bf16 %v3975_v4, %v3973_v6 }
 0x4ed   : > { %12193 = vrcp.f32 %v3781_v28  ;;  %v6707_v28 = vld [vmem:[%s16878_s9 + $0x30] sm:$0xff] }
 0x4ee   : > { %10823 = vmatprep.subr.bf16.mxu1 %v10822_v56  ;;  %v4404_v56 = vld [vmem:[%s17348_s20 + $0x128] sm:$0xff] }
 0x4ef   : > { %v12190_v18 = vpop.eup %12189  ;;  %v3784_v17 = vpop.xlane.xlu1 %3783  ;;  %6253 = vperm.xlu1 %11341, %v6203_v53   ;;  %10825 = vmatpush1.bf16.xpose.msra.mxu1 %v10824_v9 }
 0x4f0   : > { %12195 = vrcp.f32 %v3784_v17  ;;  %v3978_v25 = vmul.f32 %v12190_v18, %v14218_v2  ;;  %v3977_v46 = vmul.f32 %v12190_v18, %v14214_v16  ;;  %v6207_v16 = vld [vmem:[%s16876_s7 + $0x60] sm:$0xff]  ;;  %6716 = vperm.xlu0 %11340, %v6702_v19  }
 0x4f2   : > { %v12192_v0 = vpop.eup %12191  ;;  %4106 = vst [vmem:[%s13572_s5 + $0x348] sm:$0xff] %v3978_v25  ;;  %4105 = vst [vmem:[%s13572_s5 + $0x340] sm:$0xff] %v3977_v46 }
 0x4f3   : > { %v3980_v39 = vmul.f32 %v12192_v0, %v14231_v42  ;;  %v3979_v38 = vmul.f32 %v12192_v0, %v14227_v3  ;;  %6263 = vperm.xlu1 %11341, %v6205_v13   ;;  %v6704_v3 = vld [vmem:[%s16878_s9 + $0x18] sm:$0xff]  ;;  %v4401_v0 = vld [vmem:[%s17348_s20 + $0x110] sm:$0xff] }
 0x4f4   : > { %v3787_v2 = vpop.xlane.xlu0 %3786  ;;  %6726 = vperm.xlu0 %11340, %v6704_v3  }
 0x4f5   : > { %12197 = vrcp.f32 %v3787_v2  ;;  %4108 = vst [vmem:[%s13572_s5 + $0x358] sm:$0xff] %v3980_v39  ;;  %v10826_v37 = vpack.c.bf16 %v3980_v39, %v3978_v25  ;;  %4107 = vst [vmem:[%s13572_s5 + $0x350] sm:$0xff] %v3979_v38  ;;  %v10828_v35 = vpack.c.bf16 %v3979_v38, %v3977_v46 }
 0x4f7   : > { %v12194_v47 = vpop.eup %12193  ;;  %10827 = vmatprep.subr.bf16.mxu1 %v10826_v37  ;;  %v3790_v10 = vpop.xlane.xlu1 %3789  ;;  %6273 = vperm.xlu1 %11341, %v6207_v16  }
 0x4f8   : > { %12199 = vrcp.f32 %v3790_v10  ;;  %10829 = vmatpush1.bf16.xpose.msra.mxu1 %v10828_v35  ;;  %v3982_v42 = vmul.f32 %v12194_v47, %v14248_v50  ;;  %v3981_v49 = vmul.f32 %v12194_v47, %v14244_v58  ;;  %v6701_v58 = vld [vmem:[%s16878_s9] sm:$0xff]  ;;  %6736 = vperm.xlu0 %11340, %v6706_v30   ;;  %v4405_v47 = vld [vmem:[%s17348_s20 + $0x130] sm:$0xff] }
 0x4fa   : > { %v12196_v23 = vpop.eup %12195  ;;  %4110 = vst [vmem:[%s13572_s5 + $0x368] sm:$0xff] %v3982_v42  ;;  %4109 = vst [vmem:[%s13572_s5 + $0x360] sm:$0xff] %v3981_v49 }
 0x4fb   : > { %v3984_v36 = vmul.f32 %v12196_v23, %v14261_v43  ;;  %v3983_v48 = vmul.f32 %v12196_v23, %v14257_v29  ;;  %6283 = vperm.xlu1 %11341, %v6209_v41   ;;  %v6708_v29 = vld [vmem:[%s16878_s9 + $0x38] sm:$0xff] }
 0x4fc   : > { %v3793_v50 = vpop.xlane.xlu0 %3792  ;;  %6746 = vperm.xlu0 %11340, %v6708_v29  }
 0x4fd   : > { %12201 = vrcp.f32 %v3793_v50  ;;  %4112 = vst [vmem:[%s13572_s5 + $0x378] sm:$0xff] %v3984_v36  ;;  %v10830_v12 = vpack.c.bf16 %v3984_v36, %v3982_v42  ;;  %4111 = vst [vmem:[%s13572_s5 + $0x370] sm:$0xff] %v3983_v48  ;;  %v10832_v27 = vpack.c.bf16 %v3983_v48, %v3981_v49  ;;  %v12269_v36 = vld [vmem:[%s13983_s23] sm:$0x77]  ;;  %s10718_s23 = sshll.u32 %s17491_s2, 4 }
 0x4fe   : > { %v12270_v50 = vld [vmem:[%s12577_s4] ss:$16 sps:$4 sm:$0xff]   ;;  %s14758_s28 = scalar_lea.vmem %s17351_s24, %s10718_s23 }
 0x4ff   : > { %v12198_v33 = vpop.eup %12197  ;;  %10831 = vmatprep.subr.bf16.mxu1 %v10830_v12  ;;  %v3796_v5 = vpop.xlane.xlu1 %3795  ;;  %6711 = vperm.xlu1 %11341, %v6701_v58   ;;  %v12271_v58 = vld [vmem:[%s17209_s29 + $0x4] ss:$16 sps:$4 sm:$0xff]  }
 0x500   : > { %12203 = vrcp.f32 %v3796_v5  ;;  %10833 = vmatpush1.bf16.xpose.msra.mxu1 %v10832_v27  ;;  %v3986_v43 = vmul.f32 %v12198_v33, %v14278_v26  ;;  %v3985_v62 = vmul.f32 %v12198_v33, %v14274_v59  ;;  %v6705_v59 = vld [vmem:[%s16878_s9 + $0x20] sm:$0xff]  ;;  %4574 = vperm.xlu0 %11340, %v4400_v14  }
 0x501   : > { %v12272_v27 = vld [vmem:[%s12577_s4 + $0x24] ss:$16 sps:$4 sm:$0xff]   ;;  %v12273_v5 = vld [vmem:[%s12577_s4 + $0x20] ss:$16 sps:$4 sm:$0xff]  }
 0x502   : > { %v12200_v57 = vpop.eup %12199  ;;  %4114 = vst [vmem:[%s13572_s5 + $0x388] sm:$0xff] %v3986_v43  ;;  %4113 = vst [vmem:[%s13572_s5 + $0x380] sm:$0xff] %v3985_v62  ;;  %v12276_v14 = vld [vmem:[%s12577_s4 + $0x64] ss:$16 sps:$4 sm:$0xff]  }
 0x503   : > { %v3988_v24 = vmul.f32 %v12200_v57, %v14293_v7  ;;  %v3987_v6 = vmul.f32 %v12200_v57, %v14288_v15  ;;  %6721 = vperm.xlu1 %11341, %v6703_v40   ;;  %v4402_v15 = vld [vmem:[%s17348_s20 + $0x118] sm:$0xff]  ;;  %v12275_v40 = vld [vmem:[%s12577_s4 + $0x40] ss:$16 sps:$4 sm:$0xff]  }
 0x504   : > { %v3799_v26 = vpop.xlane.xlu0 %3798  ;;  %4584 = vperm.xlu0 %11340, %v4402_v15  }
 0x505   : > { %12205 = vrcp.f32 %v3799_v26  ;;  %4116 = vst [vmem:[%s13572_s5 + $0x398] sm:$0xff] %v3988_v24  ;;  %v10834_v32 = vpack.c.bf16 %v3988_v24, %v3986_v43  ;;  %4115 = vst [vmem:[%s13572_s5 + $0x390] sm:$0xff] %v3987_v6  ;;  %v10836_v21 = vpack.c.bf16 %v3987_v6, %v3985_v62  ;;  %v12274_v43 = vld [vmem:[%s12577_s4 + $0x44] ss:$16 sps:$4 sm:$0xff]   ;;  %v12277_v26 = vld [vmem:[%s12577_s4 + $0x60] ss:$16 sps:$4 sm:$0xff]  }
 0x506   : > { %v4275_v6 = vld [vmem:[%s14758_s28] sm:$0x77] }
 0x507   : > { %v12202_v8 = vpop.eup %12201  ;;  %10835 = vmatprep.subr.bf16.mxu1 %v10834_v32  ;;  %v3802_v11 = vpop.xlane.xlu1 %3801  ;;  %6731 = vperm.xlu1 %11341, %v6705_v59   ;;  %v12278_v32 = vld [vmem:[%s12577_s4 + $0x84] ss:$16 sps:$4 sm:$0xff]  }
 0x508   : > { %12207 = vrcp.f32 %v3802_v11  ;;  %10837 = vmatpush1.bf16.xpose.msra.mxu1 %v10836_v21  ;;  %v3990_v7 = vmul.f32 %v12202_v8, %v14310_v45  ;;  %v3989_v4 = vmul.f32 %v12202_v8, %v14306_v60  ;;  %v4399_v60 = vld [vmem:[%s17348_s20 + $0x100] sm:$0xff]  ;;  %4594 = vperm.xlu0 %11340, %v4404_v56   ;;  %v4279_v21 = vcombine.high %v4275_v6, %v4275_v6 }
 0x509   : > { %v12279_v11 = vld [vmem:[%s12577_s4 + $0x80] ss:$16 sps:$4 sm:$0xff]  }
 0x50a   : > { %v12204_v53 = vpop.eup %12203  ;;  %4118 = vst [vmem:[%s13572_s5 + $0x3a8] sm:$0xff] %v3990_v7  ;;  %4117 = vst [vmem:[%s13572_s5 + $0x3a0] sm:$0xff] %v3989_v4 }
 0x50b   : > { %v3992_v9 = vmul.f32 %v12204_v53, %v14323_v31  ;;  %v3991_v18 = vmul.f32 %v12204_v53, %v14319_v20  ;;  %6741 = vperm.xlu1 %11341, %v6707_v28   ;;  %v4406_v20 = vld [vmem:[%s17348_s20 + $0x138] sm:$0xff] }
 0x50c   : > { %v3805_v45 = vpop.xlane.xlu0 %3804  ;;  %4604 = vperm.xlu0 %11340, %v4406_v20  }
 0x50d   : > { %12209 = vrcp.f32 %v3805_v45  ;;  %4120 = vst [vmem:[%s13572_s5 + $0x3b8] sm:$0xff] %v3992_v9  ;;  %v10838_v17 = vpack.c.bf16 %v3992_v9, %v3990_v7  ;;  %4119 = vst [vmem:[%s13572_s5 + $0x3b0] sm:$0xff] %v3991_v18  ;;  %v10840_v63 = vpack.c.bf16 %v3991_v18, %v3989_v4  ;;  %v12280_v4 = vld [vmem:[%s12577_s4 + $0xa4] ss:$16 sps:$4 sm:$0xff]  }
 0x50f   : > { %v12206_v25 = vpop.eup %12205  ;;  %10839 = vmatprep.subr.bf16.mxu1 %v10838_v17  ;;  %v3808_v46 = vpop.xlane.xlu1 %3807  ;;  %4569 = vperm.xlu1 %11341, %v4399_v60   ;;  %v12281_v17 = vld [vmem:[%s12577_s4 + $0xa0] ss:$16 sps:$4 sm:$0xff]  }
 0x510   : > { %12211 = vrcp.f32 %v3808_v46  ;;  %10841 = vmatpush1.bf16.xpose.msra.mxu1 %v10840_v63  ;;  %v3994_v31 = vmul.f32 %v12206_v25, %v14340_v22  ;;  %v3993_v13 = vmul.f32 %v12206_v25, %v14336_v61  ;;  %v4403_v61 = vld [vmem:[%s17348_s20 + $0x120] sm:$0xff] }
 0x511   : > { %v12282_v46 = vld [vmem:[%s12577_s4 + $0xc4] ss:$16 sps:$4 sm:$0xff]  }
 0x512   : > { %v12208_v19 = vpop.eup %12207  ;;  %4122 = vst [vmem:[%s13572_s5 + $0x3c8] sm:$0xff] %v3994_v31  ;;  %4121 = vst [vmem:[%s13572_s5 + $0x3c0] sm:$0xff] %v3993_v13 }
 0x513   : > { %v3996_v39 = vmul.f32 %v12208_v19, %v14351_v1  ;;  %v3995_v38 = vmul.f32 %v12208_v19, %v14347_v51  ;;  %v14702_v2 = vpop.permute.xlu1 %4414  ;;  %4579 = vperm.xlu1 %11341, %v4401_v0   ;;  %v5740_v0 = vpop.f32.mrb[128].mxu0  ;;  %v12283_v19 = vld [vmem:[%s12577_s4 + $0xc0] ss:$16 sps:$4 sm:$0xff]  }
 0x514   : > { %v14726_v23 = vpop.permute.xlu0 %4409 }
 0x515   : > { %4124 = vst [vmem:[%s13572_s5 + $0x3d8] sm:$0xff] %v3996_v39  ;;  %v10842_v22 = vpack.c.bf16 %v3996_v39, %v3994_v31  ;;  %4123 = vst [vmem:[%s13572_s5 + $0x3d0] sm:$0xff] %v3995_v38  ;;  %v10844_v16 = vpack.c.bf16 %v3995_v38, %v3993_v13  ;;  %v7063_v31 = vld [vmem:[%s16881_s12 + $0x8] sm:$0xff]  ;;  %v7062_v13 = vld [vmem:[%s16881_s12] sm:$0xff]  ;;  %v10938_v38 = vadd.f32 %v5740_v0, %v14726_v23 }
 0x516   : > { %7077 = vperm.xlu0 %11340, %v7063_v31   ;;  %v12290_v31 = vld [vmem:[%s12577_s4 + $0x144] ss:$16 sps:$4 sm:$0xff]  }
 0x517   : > { %v12210_v37 = vpop.eup %12209  ;;  %10843 = vmatprep.subr.bf16.mxu1 %v10842_v22  ;;  %v14709_v1 = vpop.permute.xlu1 %4419  ;;  %4589 = vperm.xlu1 %11341, %v4403_v61   ;;  %v12284_v22 = vld [vmem:[%s12577_s4 + $0xe4] ss:$16 sps:$4 sm:$0xff]  }
 0x518   : > { %10845 = vmatpush1.bf16.xpose.msra.mxu1 %v10844_v16  ;;  %v3998_v51 = vmul.f32 %v12210_v37, %v14366_v52  ;;  %v3997_v35 = vmul.f32 %v12210_v37, %v14362_v44  ;;  %v14808_v61 = vpop.f32.mrb[129].mxu0  ;;  %v7065_v16 = vld [vmem:[%s16881_s12 + $0x18] sm:$0xff] }
 0x519   : > { %v5744_v37 = vpop.f32.mrb[130].mxu0 }
 0x51a   : > { %v12212_v10 = vpop.eup %12211  ;;  %4126 = vst [vmem:[%s13572_s5 + $0x3e8] sm:$0xff] %v3998_v51  ;;  %4125 = vst [vmem:[%s13572_s5 + $0x3e0] sm:$0xff] %v3997_v35  ;;  %7087 = vperm.xlu0 %11340, %v7065_v16   ;;  %v7345_v16 = vld [vmem:[%s16883_s14 + $0x8] sm:$0xff] }
 0x51b   : > { %v4000_v3 = vmul.f32 %v12212_v10, %v14377_v55  ;;  %v3999_v42 = vmul.f32 %v12212_v10, %v14373_v54  ;;  %v14720_v49 = vpop.permute.xlu1 %4424  ;;  %4599 = vperm.xlu1 %11341, %v4405_v47   ;;  %v12268_v55 = vld [vmem:[%s12577_s4 + $0x4] ss:$16 sps:$4 sm:$0xff]   ;;  %v14731_v54 = vpop.permute.xlu0 %4454 }
 0x51c   : > { %v7064_v47 = vld [vmem:[%s16881_s12 + $0x10] sm:$0xff]  ;;  %v14818_v10 = vpop.f32.mrb[131].mxu0 }
 0x51d   : > { %4128 = vst [vmem:[%s13572_s5 + $0x3f8] sm:$0xff] %v4000_v3  ;;  %v10846_v52 = vpack.c.bf16 %v4000_v3, %v3998_v51  ;;  %4127 = vst [vmem:[%s13572_s5 + $0x3f0] sm:$0xff] %v3999_v42  ;;  %v10848_v44 = vpack.c.bf16 %v3999_v42, %v3997_v35  ;;  %v5941_v51 = vmax.f32 %v10938_v38, 0.0  ;;  %v10940_v35 = vadd.f32 %v5744_v37, %v14702_v2  ;;  %v12285_v42 = vld [vmem:[%s12577_s4 + $0xe0] ss:$16 sps:$4 sm:$0xff]  }
 0x51e   : > { %v7344_v37 = vld [vmem:[%s16883_s14] sm:$0xff] }
 0x51f   : > { %10847 = vmatprep.subr.bf16.mxu1 %v10846_v52  ;;  %v14724_v41 = vpop.permute.xlu1 %4429  ;;  %v14740_v12 = vpop.permute.xlu0 %4464  ;;  %7072 = vperm.xlu1 %11341, %v7062_v13   ;;  %v5945_v52 = vmax.f32 %v10940_v35, 0.0 }
 0x520   : > { %10849 = vmatpush1.bf16.xpose.msra.mxu1 %v10848_v44 }
 0x521   : > { %5007 = vmatprep.subr.bf16.mxu1 %v12268_v55  ;;  %v12286_v55 = vld [vmem:[%s12577_s4 + $0x104] ss:$16 sps:$4 sm:$0xff]  }
 0x523   : > { %v14729_v30 = vpop.permute.xlu1 %4434  ;;  %v14746_v29 = vpop.permute.xlu0 %4474  ;;  %7082 = vperm.xlu1 %11341, %v7064_v47  }
 0x527   : > { %4269 = vmatmul.mubr.f32.vlgmr.msra.gmra.mrb[2].mxu1 %v12269_v36  ;;  %v14734_v48 = vpop.permute.xlu1 %4439  ;;  %v14753_v57 = vpop.permute.xlu0 %4484  ;;  %v14826_v36 = vpack.c.bf16 %v5945_v52, %v5941_v51  ;;  %v12291_v51 = vld [vmem:[%s12577_s4 + $0x140] ss:$16 sps:$4 sm:$0xff]   ;;  %v12292_v52 = vld [vmem:[%s12577_s4 + $0x164] ss:$16 sps:$4 sm:$0xff]  }
 0x528   : > { %5008 = vmatpush1.bf16.msra.mxu1 %v12270_v50  ;;  %5039 = vmatprep.mubr.bf16.mxu1 %v12271_v58  ;;  %v5750_v58 = vpop.f32.mrb[132].mxu0 }
 0x529   : > { %5009 = vmatprep.subr.bf16.mxu1 %v12272_v27  ;;  %17354 = vst [vmem:[#allocation54_spill] sm:$0xff] %v14826_v36  ;;  %v7067_v27 = vld [vmem:[%s16881_s12 + $0x28] sm:$0xff] }
 0x52a   : > { %7097 = vperm.xlu0 %11340, %v7067_v27   ;;  %v7347_v27 = vld [vmem:[%s16883_s14 + $0x18] sm:$0xff] }
 0x52b   : > { %v14743_v33 = vpop.permute.xlu1 %4444  ;;  %v14765_v59 = vpop.permute.xlu0 %4494 }
 0x52c   : > { %5010 = vmatpush1.bf16.msra.mxu1 %v12273_v5  ;;  %v7066_v5 = vld [vmem:[%s16881_s12 + $0x20] sm:$0xff] }
 0x52d   : > { %5011 = vmatprep.subr.bf16.mxu1 %v12274_v43  ;;  %v12287_v43 = vld [vmem:[%s12577_s4 + $0x100] ss:$16 sps:$4 sm:$0xff]   ;;  %7092 = vperm.xlu1 %11341, %v7066_v5  }
 0x52f   : > { %v14750_v62 = vpop.permute.xlu1 %4449  ;;  %v14777_v7 = vpop.permute.xlu0 %4504 }
 0x530   : > { %5012 = vmatpush1.bf16.msra.mxu1 %v12275_v40  ;;  %v10942_v40 = vadd.f32 %v5750_v58, %v14709_v1 }
 0x531   : > { %5013 = vmatprep.subr.bf16.mxu1 %v12276_v14  ;;  %v14838_v14 = vpop.f32.mrb[133].mxu0 }
 0x533   : > { %v14761_v24 = vpop.permute.xlu1 %4459  ;;  %v14790_v63 = vpop.permute.xlu0 %4514 }
 0x534   : > { %5014 = vmatpush1.bf16.msra.mxu1 %v12277_v26  ;;  %v12288_v26 = vld [vmem:[%s12577_s4 + $0x124] ss:$16 sps:$4 sm:$0xff]  }
 0x535   : > { %5015 = vmatprep.subr.bf16.mxu1 %v12278_v32  ;;  %v5754_v32 = vpop.f32.mrb[134].mxu0 }
 0x537   : > { %v14769_v8 = vpop.permute.xlu1 %4469  ;;  %v14805_v39 = vpop.permute.xlu0 %4524 }
 0x538   : > { %5016 = vmatpush1.bf16.msra.mxu1 %v12279_v11  ;;  %v4199_v15 = vpop.f32.mrb[0].mxu1  ;;  %v5949_v11 = vmax.f32 %v10942_v40, 0.0 }
 0x539   : > { %5017 = vmatprep.subr.bf16.mxu1 %v12280_v4  ;;  %v10124_v28 = vrot.slane %v4199_v15, 6  ;;  %v4201_v53 = vpop.f32.mrb[1].mxu1  ;;  %v14780_v56 = vsub.f32 %v4199_v15, %v4275_v6  ;;  %v10944_v15 = vadd.f32 %v5754_v32, %v14720_v49  ;;  %v14847_v4 = vpop.f32.mrb[135].mxu0 }
 0x53a   : > { %v10125_v9 = vrot.slane %v4201_v53, 6  ;;  %v14782_v18 = vsub.f32 %v4201_v53, %v4279_v21  ;;  %v7069_v21 = vld [vmem:[%s16881_s12 + $0x38] sm:$0xff] }
 0x53b   : > { %17352 = vst [vmem:[#allocation6_spill] sm:$0xff] %v14780_v56  ;;  %10132 = vst [vmem:[%s14775_s3 + $0x20] sm:$0x1c] %v10124_v28  ;;  %v14785_v45 = vpop.permute.xlu1 %4479  ;;  %v10104_v60 = vrot.slane %v14780_v56, 1  ;;  %v14823_v44 = vpop.permute.xlu0 %4534  ;;  %v7068_v28 = vld [vmem:[%s16881_s12 + $0x30] sm:$0xff]  ;;  %7107 = vperm.xlu0 %11340, %v7069_v21  }
 0x53c   : > { %17353 = vst [vmem:[#allocation7_spill] sm:$0xff] %v14782_v18  ;;  %5018 = vmatpush1.bf16.msra.mxu1 %v12281_v17  ;;  %10133 = vst [vmem:[%s14775_s3 + $0x28] sm:$0x1c] %v10125_v9  ;;  %v10105_v25 = vrot.slane %v14782_v18, 1  ;;  %v14854_v9 = vpop.f32.mrb[136].mxu0  ;;  %v5953_v17 = vmax.f32 %v10944_v15, 0.0  ;;  %7102 = vperm.xlu1 %11341, %v7068_v28  }
 0x53d   : > { %5019 = vmatprep.subr.bf16.mxu1 %v12282_v46  ;;  %10112 = vst [vmem:[%s14775_s3 + $0x20] ss:$-28 sps:$4 sm:$0x83] %v10104_v60   ;;  %v12289_v60 = vld [vmem:[%s12577_s4 + $0x120] ss:$16 sps:$4 sm:$0xff]  }
 0x53e   : > { %10113 = vst [vmem:[%s14775_s3 + $0x28] ss:$-28 sps:$4 sm:$0x83] %v10105_v25   ;;  %v14857_v25 = vpop.f32.mrb[137].mxu0  ;;  %v14864_v0 = vpack.c.bf16 %v5953_v17, %v5949_v11  ;;  %v12293_v28 = vld [vmem:[%s12577_s4 + $0x160] ss:$16 sps:$4 sm:$0xff]  }
 0x53f   : > { %v14796_v20 = vpop.permute.xlu1 %4489  ;;  %v14840_v6 = vpop.permute.xlu0 %4544  ;;  %7359 = vperm.xlu0 %11340, %v7345_v16   ;;  %v12294_v16 = vld [vmem:[%s12577_s4 + $0x184] ss:$16 sps:$4 sm:$0xff]   ;;  %v12297_v56 = vld [vmem:[%s12577_s4 + $0x1a0] ss:$16 sps:$4 sm:$0xff]  }
 0x540   : > { %5020 = vmatpush1.bf16.msra.mxu1 %v12283_v19  ;;  %v14862_v13 = vpop.f32.mrb[138].mxu0  ;;  %17356 = vst [vmem:[#allocation26_spill] sm:$0xff] %v14864_v0  ;;  %7354 = vperm.xlu1 %11341, %v7344_v37  }
 0x541   : > { %5021 = vmatprep.subr.bf16.mxu1 %v12284_v22  ;;  %v14866_v19 = vpop.f32.mrb[139].mxu0 }
 0x542   : > { %v5770_v22 = vpop.f32.mrb[140].mxu0 }
 0x543   : > { %v14820_v3 = vpop.permute.xlu1 %4499  ;;  %v14859_v46 = vpop.permute.xlu0 %4554  ;;  %v10950_v35 = vadd.f32 %v5770_v22, %v14734_v48  ;;  %7369 = vperm.xlu0 %11340, %v7347_v27  }
 0x544   : > { %5022 = vmatpush1.bf16.msra.mxu1 %v12285_v42  ;;  %17355 = vst [vmem:[#allocation52_spill] sm:$0xff] %v14859_v46  ;;  %v5772_v47 = vpop.f32.mrb[141].mxu0 }
 0x545   : > { %5023 = vmatprep.subr.bf16.mxu1 %v12286_v55  ;;  %v10951_v55 = vadd.f32 %v5772_v47, %v14734_v48  ;;  %v5774_v58 = vpop.f32.mrb[142].mxu0  ;;  %v5965_v5 = vmax.f32 %v10950_v35, 0.0 }
 0x546   : > { %v5776_v40 = vpop.f32.mrb[143].mxu0 }
 0x547   : > { %v14828_v50 = vpop.permute.xlu1 %4509  ;;  %v14878_v42 = vpop.permute.xlu0 %4564  ;;  %v5966_v21 = vmax.f32 %v10951_v55, 0.0  ;;  %v10953_v11 = vadd.f32 %v5776_v40, %v14743_v33 }
 0x548   : > { %5024 = vmatpush1.bf16.msra.mxu1 %v12287_v43  ;;  %17357 = vst [vmem:[#allocation27_spill] sm:$0xff] %v14878_v42  ;;  %v10952_v43 = vadd.f32 %v5774_v58, %v14743_v33  ;;  %v5780_v15 = vpop.f32.mrb[144].mxu0 }
 0x549   : > { %5025 = vmatprep.subr.bf16.mxu1 %v12288_v26  ;;  %v7346_v26 = vld [vmem:[%s16883_s14 + $0x10] sm:$0xff]  ;;  %v10954_v17 = vadd.f32 %v5780_v15, %v14750_v62  ;;  %v5970_v37 = vmax.f32 %v10953_v11, 0.0  ;;  %v7349_v11 = vld [vmem:[%s16883_s14 + $0x28] sm:$0xff] }
 0x54a   : > { %7364 = vperm.xlu1 %11341, %v7346_v26   ;;  %v12295_v26 = vld [vmem:[%s12577_s4 + $0x180] ss:$16 sps:$4 sm:$0xff]   ;;  %7379 = vperm.xlu0 %11340, %v7349_v11  }
 0x54b   : > { %v14852_v53 = vpop.permute.xlu1 %4519  ;;  %v14894_v22 = vpop.permute.xlu0 %6218  ;;  %v14903_v27 = vpack.c.bf16 %v5970_v37, %v5966_v21 }
 0x54c   : > { %5026 = vmatpush1.bf16.msra.mxu1 %v12289_v60  ;;  %v5969_v60 = vmax.f32 %v10952_v43, 0.0  ;;  %17358 = vst [vmem:[#allocation58_spill] sm:$0xff] %v14894_v22 }
 0x54d   : > { %5027 = vmatprep.subr.bf16.mxu1 %v12290_v31  ;;  %v5782_v31 = vpop.f32.mrb[145].mxu0  ;;  %17361 = vst [vmem:[#allocation9_spill] sm:$0xff] %v14903_v27 }
 0x54e   : > { %v5784_v35 = vpop.f32.mrb[146].mxu0  ;;  %v14898_v47 = vpack.c.bf16 %v5969_v60, %v5965_v5  ;;  %v7348_v5 = vld [vmem:[%s16883_s14 + $0x20] sm:$0xff] }
 0x54f   : > { %v14868_v38 = vpop.permute.xlu1 %4529  ;;  %v10956_v55 = vadd.f32 %v5784_v35, %v14731_v54  ;;  %v5786_v58 = vpop.f32.mrb[147].mxu0  ;;  %7374 = vperm.xlu1 %11341, %v7348_v5  }
 0x550   : > { %5028 = vmatpush1.bf16.msra.mxu1 %v12291_v51  ;;  %v10955_v51 = vadd.f32 %v5782_v31, %v14750_v62  ;;  %17359 = vst [vmem:[#allocation57_spill] sm:$0xff] %v14898_v47  ;;  %v10957_v15 = vadd.f32 %v5786_v58, %v14731_v54  ;;  %v14914_v21 = vpop.permute.xlu0 %6228  ;;  %v7351_v58 = vld [vmem:[%s16883_s14 + $0x38] sm:$0xff] }
 0x551   : > { %5029 = vmatprep.subr.bf16.mxu1 %v12292_v52  ;;  %v5973_v52 = vmax.f32 %v10954_v17, 0.0  ;;  %v5977_v60 = vmax.f32 %v10956_v55, 0.0  ;;  %17362 = vst [vmem:[#allocation10_spill] sm:$0xff] %v14914_v21  ;;  %7389 = vperm.xlu0 %11340, %v7351_v58   ;;  %v12298_v21 = vld [vmem:[%s12577_s4 + $0x1c4] ss:$16 sps:$4 sm:$0xff]  }
 0x552   : > { %v5974_v40 = vmax.f32 %v10955_v51, 0.0  ;;  %v5978_v37 = vmax.f32 %v10957_v15, 0.0 }
 0x553   : > { %v14889_v32 = vpop.permute.xlu1 %4539 }
 0x554   : > { %5030 = vmatpush1.bf16.msra.mxu1 %v12293_v28  ;;  %v5790_v28 = vpop.f32.mrb[148].mxu0 }
 0x555   : > { %5031 = vmatprep.subr.bf16.mxu1 %v12294_v16  ;;  %v10958_v17 = vadd.f32 %v5790_v28, %v14761_v24  ;;  %v5792_v31 = vpop.f32.mrb[149].mxu0  ;;  %v12296_v16 = vld [vmem:[%s12577_s4 + $0x1a4] ss:$16 sps:$4 sm:$0xff]  }
 0x556   : > { %v10959_v51 = vadd.f32 %v5792_v31, %v14761_v24  ;;  %v5794_v35 = vpop.f32.mrb[150].mxu0  ;;  %v14929_v31 = vpack.c.bf16 %v5978_v37, %v5974_v40 }
 0x557   : > { %v14901_v43 = vpop.permute.xlu1 %4549  ;;  %v5981_v55 = vmax.f32 %v10958_v17, 0.0  ;;  %v10960_v28 = vadd.f32 %v5794_v35, %v14740_v12  ;;  %v5796_v11 = vpop.f32.mrb[151].mxu0 }
 0x558   : > { %17360 = vst [vmem:[#allocation71_spill] sm:$0xff] %v14901_v43  ;;  %5032 = vmatpush1.bf16.msra.mxu1 %v12295_v26  ;;  %v14921_v26 = vpack.c.bf16 %v5977_v60, %v5973_v52  ;;  %17365 = vst [vmem:[#allocation29_spill] sm:$0xff] %v14929_v31  ;;  %v5982_v5 = vmax.f32 %v10959_v51, 0.0  ;;  %v10961_v34 = vadd.f32 %v5796_v11, %v14740_v12  ;;  %v5800_v18 = vpop.f32.mrb[152].mxu0  ;;  %v14934_v35 = vpop.permute.xlu0 %6238 }
 0x559   : > { %5033 = vmatprep.subr.bf16.mxu1 %v12296_v16  ;;  %v7350_v16 = vld [vmem:[%s16883_s14 + $0x30] sm:$0xff]  ;;  %v5985_v52 = vmax.f32 %v10960_v28, 0.0  ;;  %v10962_v60 = vadd.f32 %v5800_v18, %v14769_v8  ;;  %v5802_v17 = vpop.f32.mrb[153].mxu0  ;;  %17366 = vst [vmem:[#allocation68_spill] sm:$0xff] %v14934_v35 }
 0x55a   : > { %17363 = vst [vmem:[#allocation5_spill] sm:$0xff] %v14921_v26  ;;  %v5986_v22 = vmax.f32 %v10961_v34, 0.0  ;;  %v10963_v40 = vadd.f32 %v5802_v17, %v14769_v8  ;;  %v5804_v37 = vpop.f32.mrb[154].mxu0  ;;  %7384 = vperm.xlu1 %11341, %v7350_v16   ;;  %v7635_v34 = vld [vmem:[%s16885_s16 + $0x8] sm:$0xff]  ;;  %v12299_v16 = vld [vmem:[%s12577_s4 + $0x1c0] ss:$16 sps:$4 sm:$0xff]  }
 0x55b   : > { %v14927_v15 = vpop.permute.xlu1 %4559  ;;  %v14938_v51 = vpack.c.bf16 %v5985_v52, %v5981_v55  ;;  %v5989_v11 = vmax.f32 %v10962_v60, 0.0  ;;  %v5806_v28 = vpop.f32.mrb[155].mxu0  ;;  %v7634_v55 = vld [vmem:[%s16885_s16] sm:$0xff]  ;;  %7657 = vperm.xlu0 %11340, %v7635_v34  }
 0x55c   : > { %17364 = vst [vmem:[#allocation60_spill] sm:$0xff] %v14927_v15  ;;  %5034 = vmatpush1.bf16.msra.mxu1 %v12297_v56  ;;  %v10964_v56 = vadd.f32 %v5804_v37, %v14746_v29  ;;  %v14943_v58 = vpack.c.bf16 %v5986_v22, %v5982_v5  ;;  %v5990_v35 = vmax.f32 %v10963_v40, 0.0  ;;  %v5810_v26 = vpop.f32.mrb[156].mxu0  ;;  %v14954_v22 = vpop.permute.xlu0 %6248  ;;  %v12300_v5 = vld [vmem:[%s12577_s4 + $0x1e4] ss:$16 sps:$4 sm:$0xff]  }
 0x55d   : > { %5035 = vmatprep.subr.bf16.mxu1 %v12298_v21  ;;  %17367 = vst [vmem:[#allocation64_spill] sm:$0xff] %v14938_v51  ;;  %v10965_v21 = vadd.f32 %v5806_v28, %v14746_v29  ;;  %v10966_v60 = vadd.f32 %v5810_v26, %v14785_v45  ;;  %v5812_v17 = vpop.f32.mrb[157].mxu0  ;;  %17370 = vst [vmem:[#allocation14_spill] sm:$0xff] %v14954_v22 }
 0x55e   : > { %17369 = vst [vmem:[#allocation13_spill] sm:$0xff] %v14943_v58  ;;  %v5993_v52 = vmax.f32 %v10964_v56, 0.0  ;;  %v10967_v37 = vadd.f32 %v5812_v17, %v14785_v45  ;;  %v5814_v28 = vpop.f32.mrb[158].mxu0  ;;  %7652 = vperm.xlu1 %11341, %v7634_v55   ;;  %v12301_v58 = vld [vmem:[%s12577_s4 + $0x1e0] ss:$16 sps:$4 sm:$0xff]  }
 0x55f   : > { %v14941_v18 = vpop.permute.xlu1 %6213  ;;  %v5994_v40 = vmax.f32 %v10965_v21, 0.0  ;;  %v5997_v56 = vmax.f32 %v10966_v60, 0.0  ;;  %v10968_v26 = vadd.f32 %v5814_v28, %v14753_v57  ;;  %v5816_v34 = vpop.f32.mrb[159].mxu0 }
 0x560   : > { %17368 = vst [vmem:[#allocation62_spill] sm:$0xff] %v14941_v18  ;;  %5036 = vmatpush1.bf16.msra.mxu1 %v12299_v16  ;;  %v7637_v18 = vld [vmem:[%s16885_s16 + $0x18] sm:$0xff]  ;;  %v14961_v16 = vpack.c.bf16 %v5993_v52, %v5989_v11  ;;  %v5998_v55 = vmax.f32 %v10967_v37, 0.0  ;;  %v10969_v22 = vadd.f32 %v5816_v34, %v14753_v57  ;;  %v5820_v51 = vpop.f32.mrb[160].mxu0  ;;  %v14974_v28 = vpop.permute.xlu0 %6258 }
 0x561   : > { %5037 = vmatprep.subr.bf16.mxu1 %v12300_v5  ;;  %v7636_v5 = vld [vmem:[%s16885_s16 + $0x10] sm:$0xff]  ;;  %v14969_v17 = vpack.c.bf16 %v5994_v40, %v5990_v35  ;;  %v6001_v11 = vmax.f32 %v10968_v26, 0.0  ;;  %v10970_v52 = vadd.f32 %v5820_v51, %v14796_v20  ;;  %v5822_v60 = vpop.f32.mrb[161].mxu0  ;;  %7667 = vperm.xlu0 %11340, %v7637_v18   ;;  %17374 = vst [vmem:[#allocation73_spill] sm:$0xff] %v14974_v28 }
 0x562   : > { %17371 = vst [vmem:[#allocation8_spill] sm:$0xff] %v14961_v16  ;;  %v12302_v16 = vld [vmem:[%s12577_s4 + $0x204] ss:$16 sps:$4 sm:$0xff]   ;;  %v6002_v31 = vmax.f32 %v10969_v22, 0.0  ;;  %v5824_v35 = vpop.f32.mrb[162].mxu0  ;;  %7662 = vperm.xlu1 %11341, %v7636_v5  }
 0x563   : > { %v14967_v21 = vpop.permute.xlu1 %6223  ;;  %17373 = vst [vmem:[#allocation70_spill] sm:$0xff] %v14969_v17  ;;  %v14978_v40 = vpack.c.bf16 %v6001_v11, %v5997_v56  ;;  %v6005_v37 = vmax.f32 %v10970_v52, 0.0  ;;  %v5826_v26 = vpop.f32.mrb[163].mxu0  ;;  %v12303_v51 = vld [vmem:[%s17209_s29] ss:$16 sps:$4 sm:$0xff]   ;;  %v7639_v56 = vld [vmem:[%s16885_s16 + $0x28] sm:$0xff] }
 0x564   : > { %17372 = vst [vmem:[#allocation66_spill] sm:$0xff] %v14967_v21  ;;  %5038 = vmatpush1.bf16.msra.mxu1 %v12301_v58  ;;  %v10971_v21 = vadd.f32 %v5822_v60, %v14796_v20  ;;  %v10972_v58 = vadd.f32 %v5824_v35, %v14765_v59  ;;  %v14986_v22 = vpack.c.bf16 %v6002_v31, %v5998_v55  ;;  %v5830_v5 = vpop.f32.mrb[164].mxu0  ;;  %v7638_v11 = vld [vmem:[%s16885_s16 + $0x20] sm:$0xff]  ;;  %v15000_v35 = vpop.permute.xlu0 %6268 }
 0x565   : > { %5240 = vmatprep.subr.bf16.mxu1 %v12302_v16  ;;  %17375 = vst [vmem:[#allocation28_spill] sm:$0xff] %v14978_v40  ;;  %v10973_v34 = vadd.f32 %v5826_v26, %v14765_v59  ;;  %v12304_v52 = vld [vmem:[%s17209_s29 + $0x24] ss:$16 sps:$4 sm:$0xff]   ;;  %v12305_v60 = vld [vmem:[%s12577_s4 + $0x200] ss:$16 sps:$4 sm:$0xff]   ;;  %v5832_v55 = vpop.f32.mrb[165].mxu0  ;;  %7677 = vperm.xlu0 %11340, %v7639_v56  }
 0x566   : > { %17377 = vst [vmem:[#allocation17_spill] sm:$0xff] %v14986_v22  ;;  %v6006_v16 = vmax.f32 %v10971_v21, 0.0  ;;  %v6009_v31 = vmax.f32 %v10972_v58, 0.0  ;;  %v10974_v21 = vadd.f32 %v5830_v5, %v14820_v3  ;;  %17378 = vst [vmem:[#allocation18_spill] sm:$0xff] %v15000_v35  ;;  %v12306_v26 = vld [vmem:[%s12577_s4 + $0x224] ss:$16 sps:$4 sm:$0xff]   ;;  %v10975_v28 = vadd.f32 %v5832_v55, %v14820_v3  ;;  %7672 = vperm.xlu1 %11341, %v7638_v11  }
 0x567   : > { %5040 = vmatmul.mubr.bf16.vlgmr.msra.gmra.mrb[4].mxu1 %v12303_v51  ;;  %v14984_v18 = vpop.permute.xlu1 %6233  ;;  %v6010_v51 = vmax.f32 %v10973_v34, 0.0  ;;  %v7641_v5 = vld [vmem:[%s16885_s16 + $0x38] sm:$0xff]  ;;  %v12320_v17 = vld [vmem:[%s12577_s4 + $0x2c4] ss:$16 sps:$4 sm:$0xff]  }
 0x568   : > { %17376 = vst [vmem:[#allocation11_spill] sm:$0xff] %v14984_v18  ;;  %5049 = vmatprep.mubr.bf16.mxu1 %v12304_v52  ;;  %5241 = vmatpush1.bf16.msra.mxu1 %v12305_v60  ;;  %v5834_v18 = vpop.f32.mrb[166].mxu0  ;;  %v15004_v40 = vpack.c.bf16 %v6009_v31, %v6005_v37  ;;  %v6013_v22 = vmax.f32 %v10974_v21, 0.0  ;;  %v7640_v37 = vld [vmem:[%s16885_s16 + $0x30] sm:$0xff]  ;;  %v15020_v35 = vpop.permute.xlu0 %6278 }
 0x569   : > { %5242 = vmatprep.subr.bf16.mxu1 %v12306_v26  ;;  %v10976_v52 = vadd.f32 %v5834_v18, %v14777_v7  ;;  %v5836_v58 = vpop.f32.mrb[167].mxu0  ;;  %v15012_v34 = vpack.c.bf16 %v6010_v51, %v6006_v16  ;;  %v6014_v26 = vmax.f32 %v10975_v28, 0.0  ;;  %v12307_v18 = vld [vmem:[%s12577_s4 + $0x220] ss:$16 sps:$4 sm:$0xff]   ;;  %17382 = vst [vmem:[#allocation15_spill] sm:$0xff] %v15020_v35  ;;  %7687 = vperm.xlu0 %11340, %v7641_v5  }
 0x56a   : > { %17379 = vst [vmem:[#allocation12_spill] sm:$0xff] %v15004_v40  ;;  %v10977_v56 = vadd.f32 %v5836_v58, %v14777_v7  ;;  %v5840_v55 = vpop.f32.mrb[168].mxu0  ;;  %v12308_v40 = vld [vmem:[%s12577_s4 + $0x244] ss:$16 sps:$4 sm:$0xff]   ;;  %7682 = vperm.xlu1 %11341, %v7640_v37  }
 0x56b   : > { %v15010_v60 = vpop.permute.xlu1 %6243  ;;  %17381 = vst [vmem:[#allocation69_spill] sm:$0xff] %v15012_v34  ;;  %v6017_v11 = vmax.f32 %v10976_v52, 0.0  ;;  %v10978_v31 = vadd.f32 %v5840_v55, %v14828_v50  ;;  %v5842_v21 = vpop.f32.mrb[169].mxu0  ;;  %v12309_v55 = vld [vmem:[%s17209_s29 + $0x20] ss:$16 sps:$4 sm:$0xff]  }
 0x56c   : > { %17380 = vst [vmem:[#allocation67_spill] sm:$0xff] %v15010_v60  ;;  %5243 = vmatpush1.bf16.msra.mxu1 %v12307_v18  ;;  %v6018_v16 = vmax.f32 %v10977_v56, 0.0  ;;  %v10979_v28 = vadd.f32 %v5842_v21, %v14828_v50  ;;  %v5844_v51 = vpop.f32.mrb[170].mxu0  ;;  %v7642_v37 = vld [vmem:[%s16885_s16 + $0x40] sm:$0xff] }
 0x56d   : > { %5244 = vmatprep.subr.bf16.mxu1 %v12308_v40  ;;  %v15024_v58 = vpack.c.bf16 %v6017_v11, %v6013_v22  ;;  %v6021_v60 = vmax.f32 %v10978_v31, 0.0  ;;  %v10980_v34 = vadd.f32 %v5844_v51, %v14790_v63  ;;  %v5846_v52 = vpop.f32.mrb[171].mxu0  ;;  %v7643_v11 = vld [vmem:[%s16885_s16 + $0x48] sm:$0xff]  ;;  %v12310_v31 = vld [vmem:[%s17209_s29 + $0x44] ss:$16 sps:$4 sm:$0xff]   ;;  %v15046_v51 = vpop.permute.xlu0 %6288 }
 0x56e   : > { %v15032_v56 = vpack.c.bf16 %v6018_v16, %v6014_v26  ;;  %v6022_v5 = vmax.f32 %v10979_v28, 0.0  ;;  %v10981_v22 = vadd.f32 %v5846_v52, %v14790_v63  ;;  %v5850_v18 = vpop.f32.mrb[172].mxu0  ;;  %v12311_v21 = vld [vmem:[%s12577_s4 + $0x240] ss:$16 sps:$4 sm:$0xff]   ;;  %17386 = vst [vmem:[#allocation20_spill] sm:$0xff] %v15046_v51  ;;  %7697 = vperm.xlu0 %11340, %v7643_v11   ;;  %7692 = vperm.xlu1 %11341, %v7642_v37  }
 0x56f   : > { %17383 = vst [vmem:[#allocation16_spill] sm:$0xff] %v15024_v58  ;;  %5050 = vmatmul.mubr.bf16.gmra.mrb[8].mxu1 %v12309_v55  ;;  %v15030_v40 = vpop.permute.xlu1 %6253  ;;  %v6025_v26 = vmax.f32 %v10980_v34, 0.0  ;;  %v10982_v16 = vadd.f32 %v5850_v18, %v14852_v53  ;;  %v5852_v28 = vpop.f32.mrb[173].mxu0  ;;  %v12312_v52 = vld [vmem:[%s12577_s4 + $0x264] ss:$16 sps:$4 sm:$0xff]   ;;  %v7645_v18 = vld [vmem:[%s16885_s16 + $0x58] sm:$0xff] }
 0x570   : > { %17384 = vst [vmem:[#allocation72_spill] sm:$0xff] %v15030_v40  ;;  %17385 = vst [vmem:[#allocation19_spill] sm:$0xff] %v15032_v56  ;;  %5059 = vmatprep.mubr.bf16.mxu1 %v12310_v31  ;;  %5245 = vmatpush1.bf16.msra.mxu1 %v12311_v21  ;;  %v6026_v55 = vmax.f32 %v10981_v22, 0.0  ;;  %v10983_v35 = vadd.f32 %v5852_v28, %v14852_v53  ;;  %v5854_v40 = vpop.f32.mrb[174].mxu0 }
 0x571   : > { %5246 = vmatprep.subr.bf16.mxu1 %v12312_v52  ;;  %v15050_v58 = vpack.c.bf16 %v6025_v26, %v6021_v60  ;;  %v6029_v56 = vmax.f32 %v10982_v16, 0.0  ;;  %v10984_v31 = vadd.f32 %v5854_v40, %v14805_v39  ;;  %v5856_v34 = vpop.f32.mrb[175].mxu0  ;;  %v7644_v60 = vld [vmem:[%s16885_s16 + $0x50] sm:$0xff]  ;;  %v15066_v51 = vpop.permute.xlu0 %6716 }
 0x572   : > { %v15058_v22 = vpack.c.bf16 %v6026_v55, %v6022_v5  ;;  %v6030_v52 = vmax.f32 %v10983_v35, 0.0  ;;  %v10985_v11 = vadd.f32 %v5856_v34, %v14805_v39  ;;  %v5860_v28 = vpop.f32.mrb[176].mxu0  ;;  %v12313_v40 = vld [vmem:[%s12577_s4 + $0x260] ss:$16 sps:$4 sm:$0xff]   ;;  %17390 = vst [vmem:[#allocation22_spill] sm:$0xff] %v15066_v51  ;;  %7707 = vperm.xlu0 %11340, %v7645_v18   ;;  %7702 = vperm.xlu1 %11341, %v7644_v60  }
 0x573   : > { %17387 = vst [vmem:[#allocation32_spill] sm:$0xff] %v15050_v58  ;;  %v15056_v21 = vpop.permute.xlu1 %6263  ;;  %v6033_v37 = vmax.f32 %v10984_v31, 0.0  ;;  %v10986_v26 = vadd.f32 %v5860_v28, %v14868_v38  ;;  %v5862_v16 = vpop.f32.mrb[177].mxu0  ;;  %v12314_v58 = vld [vmem:[%s12577_s4 + $0x284] ss:$16 sps:$4 sm:$0xff]  }
 0x574   : > { %17388 = vst [vmem:[#allocation78_spill] sm:$0xff] %v15056_v21  ;;  %17389 = vst [vmem:[#allocation79_spill] sm:$0xff] %v15058_v22  ;;  %5247 = vmatpush1.bf16.msra.mxu1 %v12313_v40  ;;  %v6034_v5 = vmax.f32 %v10985_v11, 0.0  ;;  %v10987_v35 = vadd.f32 %v5862_v16, %v14868_v38  ;;  %v5864_v55 = vpop.f32.mrb[178].mxu0  ;;  %v12315_v28 = vld [vmem:[%s17209_s29 + $0x40] ss:$16 sps:$4 sm:$0xff]  }
 0x575   : > { %5248 = vmatprep.subr.bf16.mxu1 %v12314_v58  ;;  %v15070_v34 = vpack.c.bf16 %v6033_v37, %v6029_v56  ;;  %v6037_v21 = vmax.f32 %v10986_v26, 0.0  ;;  %v10988_v22 = vadd.f32 %v5864_v55, %v14823_v44  ;;  %v5866_v31 = vpop.f32.mrb[179].mxu0  ;;  %v7647_v37 = vld [vmem:[%s16885_s16 + $0x68] sm:$0xff]  ;;  %v7646_v60 = vld [vmem:[%s16885_s16 + $0x60] sm:$0xff]  ;;  %v15092_v55 = vpop.permute.xlu0 %6726 }
 0x576   : > { %v15078_v11 = vpack.c.bf16 %v6034_v5, %v6030_v52  ;;  %v6038_v18 = vmax.f32 %v10987_v35, 0.0  ;;  %v10989_v56 = vadd.f32 %v5866_v31, %v14823_v44  ;;  %v5870_v40 = vpop.f32.mrb[180].mxu0  ;;  %v12316_v26 = vld [vmem:[%s17209_s29 + $0x64] ss:$16 sps:$4 sm:$0xff]   ;;  %v12317_v16 = vld [vmem:[%s12577_s4 + $0x280] ss:$16 sps:$4 sm:$0xff]   ;;  %7717 = vperm.xlu0 %11340, %v7647_v37   ;;  %7712 = vperm.xlu1 %11341, %v7646_v60  }
 0x577   : > { %17391 = vst [vmem:[#allocation21_spill] sm:$0xff] %v15070_v34  ;;  %5060 = vmatmul.mubr.bf16.gmra.mrb[12].mxu1 %v12315_v28  ;;  %v15076_v58 = vpop.permute.xlu1 %6273  ;;  %v6041_v52 = vmax.f32 %v10988_v22, 0.0  ;;  %v10990_v5 = vadd.f32 %v5870_v40, %v14889_v32  ;;  %v5872_v35 = vpop.f32.mrb[181].mxu0  ;;  %17394 = vst [vmem:[#allocation74_spill] sm:$0xff] %v15092_v55  ;;  %v12318_v31 = vld [vmem:[%s12577_s4 + $0x2a4] ss:$16 sps:$4 sm:$0xff]  }
 0x578   : > { %17392 = vst [vmem:[#allocation81_spill] sm:$0xff] %v15076_v58  ;;  %17393 = vst [vmem:[#allocation82_spill] sm:$0xff] %v15078_v11  ;;  %5069 = vmatprep.mubr.bf16.mxu1 %v12316_v26  ;;  %5249 = vmatpush1.bf16.msra.mxu1 %v12317_v16  ;;  %v6042_v28 = vmax.f32 %v10989_v56, 0.0  ;;  %v5874_v51 = vpop.f32.mrb[182].mxu0  ;;  %v10991_v26 = vadd.f32 %v5872_v35, %v14889_v32  ;;  %v12319_v11 = vld [vmem:[%s12577_s4 + $0x2a0] ss:$16 sps:$4 sm:$0xff]  }
 0x579   : > { %5250 = vmatprep.subr.bf16.mxu1 %v12318_v31  ;;  %v15095_v58 = vpack.c.bf16 %v6041_v52, %v6037_v21  ;;  %v6045_v34 = vmax.f32 %v10990_v5, 0.0  ;;  %v10992_v16 = vadd.f32 %v5874_v51, %v14840_v6  ;;  %v5876_v56 = vpop.f32.mrb[183].mxu0  ;;  %v7649_v51 = vld [vmem:[%s16885_s16 + $0x78] sm:$0xff]  ;;  %v12323_v31 = vld [vmem:[%s12577_s4 + $0x2c0] ss:$16 sps:$4 sm:$0xff]  }
 0x57a   : > { %v15101_v40 = vpack.c.bf16 %v6042_v28, %v6038_v18  ;;  %v6046_v37 = vmax.f32 %v10991_v26, 0.0  ;;  %v10993_v52 = vadd.f32 %v5876_v56, %v14840_v6  ;;  %v5880_v5 = vpop.f32.mrb[184].mxu0  ;;  %v7648_v18 = vld [vmem:[%s16885_s16 + $0x70] sm:$0xff]  ;;  %7727 = vperm.xlu0 %11340, %v7649_v51   ;;  %v8181_v56 = vld [vmem:[%s16887_s18 + $0x8] sm:$0xff] }
 0x57b   : > { %17395 = vst [vmem:[#allocation23_spill] sm:$0xff] %v15095_v58  ;;  %v15099_v22 = vpop.permute.xlu1 %6283  ;;  %v6049_v55 = vmax.f32 %v10992_v16, 0.0  ;;  %v10994_v60 = vadd.f32 %v5880_v5, %v14901_v43  ;;  %v5882_v35 = vpop.f32.mrb[185].mxu0  ;;  %7722 = vperm.xlu1 %11341, %v7648_v18   ;;  %v8182_v58 = vld [vmem:[%s16887_s18 + $0x10] sm:$0xff] }
 0x57c   : > { %17396 = vst [vmem:[#allocation76_spill] sm:$0xff] %v15099_v22  ;;  %17397 = vst [vmem:[#allocation75_spill] sm:$0xff] %v15101_v40  ;;  %5251 = vmatpush1.bf16.msra.mxu1 %v12319_v11  ;;  %v15114_v11 = vpop.permute.xlu0 %6736  ;;  %v6050_v28 = vmax.f32 %v10993_v52, 0.0  ;;  %v10995_v26 = vadd.f32 %v5882_v35, %v14901_v43  ;;  %v5884_v16 = vpop.f32.mrb[186].mxu0  ;;  %v12331_v40 = vld [vmem:[%s12577_s4 + $0x320] ss:$16 sps:$4 sm:$0xff]  }
 0x57d   : > { %5252 = vmatprep.subr.bf16.mxu1 %v12320_v17  ;;  %v15105_v21 = vpack.c.bf16 %v6049_v55, %v6045_v34  ;;  %17399 = vst [vmem:[#allocation77_spill] sm:$0xff] %v15114_v11  ;;  %v12321_v17 = vld [vmem:[%s17209_s29 + $0x60] ss:$16 sps:$4 sm:$0xff]   ;;  %v12322_v55 = vld [vmem:[%s17209_s29 + $0x84] ss:$16 sps:$4 sm:$0xff]   ;;  %v6053_v5 = vmax.f32 %v10994_v60, 0.0  ;;  %v10996_v51 = vadd.f32 %v5884_v16, %v14859_v46 }
 0x57e   : > { %v5886_v11 = vpop.f32.mrb[187].mxu0  ;;  %8251 = vperm.xlu0 %11340, %v8181_v56  }
 0x57f   : > { %17398 = vst [vmem:[#allocation80_spill] sm:$0xff] %v15105_v21  ;;  %5070 = vmatmul.mubr.bf16.gmra.mrb[16].mxu1 %v12321_v17  ;;  %v15119_v34 = vpop.permute.xlu1 %6711  ;;  %v12324_v17 = vld [vmem:[%s12577_s4 + $0x2e4] ss:$16 sps:$4 sm:$0xff]   ;;  %v10997_v52 = vadd.f32 %v5886_v11, %v14859_v46  ;;  %v5890_v35 = vpop.f32.mrb[188].mxu0  ;;  %v6057_v60 = vmax.f32 %v10996_v51, 0.0  ;;  %v8183_v21 = vld [vmem:[%s16887_s18 + $0x18] sm:$0xff] }
 0x580   : > { %17400 = vst [vmem:[#allocation33_spill] sm:$0xff] %v15119_v34  ;;  %5079 = vmatprep.mubr.bf16.mxu1 %v12322_v55  ;;  %5253 = vmatpush1.bf16.msra.mxu1 %v12323_v31  ;;  %v15132_v34 = vpack.c.bf16 %v6050_v28, %v6046_v37  ;;  %v6054_v55 = vmax.f32 %v10995_v26, 0.0  ;;  %v8180_v31 = vld [vmem:[%s16887_s18] sm:$0xff]  ;;  %v15138_v22 = vpop.permute.xlu0 %6746  ;;  %v10998_v16 = vadd.f32 %v5890_v35, %v14927_v15  ;;  %v5892_v18 = vpop.f32.mrb[189].mxu0 }
 0x581   : > { %5254 = vmatprep.subr.bf16.mxu1 %v12324_v17  ;;  %17402 = vst [vmem:[#allocation35_spill] sm:$0xff] %v15138_v22  ;;  %v12325_v37 = vld [vmem:[%s12577_s4 + $0x2e0] ss:$16 sps:$4 sm:$0xff]   ;;  %v6058_v28 = vmax.f32 %v10997_v52, 0.0  ;;  %v10999_v26 = vadd.f32 %v5892_v18, %v14927_v15  ;;  %v5894_v11 = vpop.f32.mrb[190].mxu0  ;;  %v15149_v22 = vpack.c.bf16 %v6057_v60, %v6053_v5  ;;  %8246 = vperm.xlu1 %11341, %v8180_v31  }
 0x582   : > { %17401 = vst [vmem:[#allocation31_spill] sm:$0xff] %v15132_v34  ;;  %v12326_v34 = vld [vmem:[%s12577_s4 + $0x304] ss:$16 sps:$4 sm:$0xff]   ;;  %v11000_v51 = vadd.f32 %v5894_v11, %v14878_v42  ;;  %v5896_v56 = vpop.f32.mrb[191].mxu0  ;;  %v12327_v5 = vld [vmem:[%s17209_s29 + $0x80] ss:$16 sps:$4 sm:$0xff]   ;;  %8261 = vperm.xlu0 %11340, %v8183_v21  }
 0x583   : > { %v15140_v17 = vpop.permute.xlu1 %6721  ;;  %17404 = vst [vmem:[#allocation30_spill] sm:$0xff] %v15149_v22  ;;  %v15152_v35 = vpack.c.bf16 %v6058_v28, %v6054_v55  ;;  %v6062_v52 = vmax.f32 %v10999_v26, 0.0  ;;  %v11001_v18 = vadd.f32 %v5896_v56, %v14878_v42  ;;  %v12329_v28 = vld [vmem:[%s12577_s4 + $0x300] ss:$16 sps:$4 sm:$0xff]   ;;  %v8185_v56 = vld [vmem:[%s16887_s18 + $0x28] sm:$0xff] }
 0x584   : > { %17403 = vst [vmem:[#allocation34_spill] sm:$0xff] %v15140_v17  ;;  %5255 = vmatpush1.bf16.msra.mxu1 %v12325_v37  ;;  %v6061_v17 = vmax.f32 %v10998_v16, 0.0  ;;  %v5900_v37 = vpop.f32.mrb[192].mxu0  ;;  %v6065_v55 = vmax.f32 %v11000_v51, 0.0  ;;  %v12328_v16 = vld [vmem:[%s17209_s29 + $0xa4] ss:$16 sps:$4 sm:$0xff]  }
 0x585   : > { %5256 = vmatprep.subr.bf16.mxu1 %v12326_v34  ;;  %17405 = vst [vmem:[#allocation36_spill] sm:$0xff] %v15152_v35  ;;  %v15158_v34 = vpop.permute.xlu0 %4574  ;;  %v5902_v60 = vpop.f32.mrb[193].mxu0  ;;  %v6066_v26 = vmax.f32 %v11001_v18, 0.0  ;;  %8256 = vperm.xlu1 %11341, %v8182_v58  }
 0x586   : > { %17406 = vst [vmem:[#allocation37_spill] sm:$0xff] %v15158_v34  ;;  %v5904_v11 = vpop.f32.mrb[194].mxu0  ;;  %8271 = vperm.xlu0 %11340, %v8185_v56  }
 0x587   : > { %5080 = vmatmul.mubr.bf16.gmra.mrb[20].mxu1 %v12327_v5  ;;  %v15163_v31 = vpop.permute.xlu1 %6731  ;;  %v12330_v5 = vld [vmem:[%s12577_s4 + $0x324] ss:$16 sps:$4 sm:$0xff]   ;;  %v5906_v21 = vpop.f32.mrb[195].mxu0  ;;  %v15175_v51 = vpack.c.bf16 %v6066_v26, %v6062_v52  ;;  %v8187_v52 = vld [vmem:[%s16887_s18 + $0x38] sm:$0xff] }
 0x588   : > { %17407 = vst [vmem:[#allocation38_spill] sm:$0xff] %v15163_v31  ;;  %5089 = vmatprep.mubr.bf16.mxu1 %v12328_v16  ;;  %5257 = vmatpush1.bf16.msra.mxu1 %v12329_v28  ;;  %v15173_v31 = vpack.c.bf16 %v6065_v55, %v6061_v17  ;;  %v5910_v22 = vpop.f32.mrb[196].mxu0  ;;  %v8184_v16 = vld [vmem:[%s16887_s18 + $0x20] sm:$0xff]  ;;  %v11004_v17 = vadd.f32 %v5904_v11, %v15158_v34 }
 0x589   : > { %5258 = vmatprep.subr.bf16.mxu1 %v12330_v5  ;;  %17409 = vst [vmem:[#allocation40_spill] sm:$0xff] %v15175_v51  ;;  %v15180_v18 = vpop.permute.xlu0 %4584  ;;  %v5912_v35 = vpop.f32.mrb[197].mxu0  ;;  %v11005_v58 = vadd.f32 %v5906_v21, %v15158_v34  ;;  %v12332_v26 = vld [vmem:[%s12577_s4 + $0x344] ss:$16 sps:$4 sm:$0xff]   ;;  %8266 = vperm.xlu1 %11341, %v8184_v16   ;;  %v12333_v11 = vld [vmem:[%s17209_s29 + $0xa0] ss:$16 sps:$4 sm:$0xff]  }
 0x58a   : > { %17408 = vst [vmem:[#allocation39_spill] sm:$0xff] %v15173_v31  ;;  %17410 = vst [vmem:[#allocation41_spill] sm:$0xff] %v15180_v18  ;;  %v5914_v55 = vpop.f32.mrb[198].mxu0  ;;  %8281 = vperm.xlu0 %11340, %v8187_v52   ;;  %v12335_v51 = vld [vmem:[%s12577_s4 + $0x340] ss:$16 sps:$4 sm:$0xff]   ;;  %v6073_v47 = vmax.f32 %v11004_v17, 0.0 }
 0x58b   : > { %v15182_v28 = vpop.permute.xlu1 %6741  ;;  %v5916_v5 = vpop.f32.mrb[199].mxu0  ;;  %v6074_v27 = vmax.f32 %v11005_v58, 0.0  ;;  %v12336_v52 = vld [vmem:[%s12577_s4 + $0x364] ss:$16 sps:$4 sm:$0xff]  }
 0x58c   : > { %17411 = vst [vmem:[#allocation43_spill] sm:$0xff] %v15182_v28  ;;  %5259 = vmatpush1.bf16.msra.mxu1 %v12331_v40  ;;  %v15191_v31 = vpop.f32.mrb[200].mxu0  ;;  %v8186_v40 = vld [vmem:[%s16887_s18 + $0x30] sm:$0xff]  ;;  %v11009_v34 = vadd.f32 %v5916_v5, %v15180_v18 }
 0x58d   : > { %5260 = vmatprep.subr.bf16.mxu1 %v12332_v26  ;;  %v15196_v56 = vpop.permute.xlu0 %4594  ;;  %v11008_v26 = vadd.f32 %v5914_v55, %v15180_v18  ;;  %v5922_v16 = vpop.f32.mrb[201].mxu0  ;;  %v12334_v28 = vld [vmem:[%s17209_s29 + $0xc4] ss:$16 sps:$4 sm:$0xff]   ;;  %v8189_v55 = vld [vmem:[%s16887_s18 + $0x48] sm:$0xff]  ;;  %8276 = vperm.xlu1 %11341, %v8186_v40  }
 0x58e   : > { %v5924_v36 = vpop.f32.mrb[202].mxu0  ;;  %8291 = vperm.xlu0 %11340, %v8189_v55   ;;  %v12338_v18 = vld [vmem:[%s12577_s4 + $0x384] ss:$16 sps:$4 sm:$0xff]  }
 0x58f   : > { %5090 = vmatmul.mubr.bf16.gmra.mrb[24].mxu1 %v12333_v11  ;;  %v15201_v21 = vpop.permute.xlu1 %4569  ;;  %v6081_v58 = vmax.f32 %v11008_v26, 0.0  ;;  %v6082_v26 = vmax.f32 %v11009_v34, 0.0  ;;  %v11012_v46 = vadd.f32 %v5924_v36, %v15196_v56 }
 0x590   : > { %17412 = vst [vmem:[#allocation48_spill] sm:$0xff] %v15201_v21  ;;  %5099 = vmatprep.mubr.bf16.mxu1 %v12334_v28  ;;  %5261 = vmatpush1.bf16.msra.mxu1 %v12335_v51  ;;  %v11002_v0 = vadd.f32 %v5900_v37, %v15201_v21  ;;  %v11003_v11 = vadd.f32 %v5902_v60, %v15201_v21  ;;  %v5926_v28 = vpop.f32.mrb[203].mxu0  ;;  %v8188_v37 = vld [vmem:[%s16887_s18 + $0x40] sm:$0xff] }
 0x591   : > { %5262 = vmatprep.subr.bf16.mxu1 %v12336_v52  ;;  %v12337_v21 = vld [vmem:[%s12577_s4 + $0x360] ss:$16 sps:$4 sm:$0xff]   ;;  %v11013_v5 = vadd.f32 %v5926_v28, %v15196_v56  ;;  %8286 = vperm.xlu1 %11341, %v8188_v37  }
 0x592   : > { %v6069_v51 = vmax.f32 %v11002_v0, 0.0  ;;  %v6070_v17 = vmax.f32 %v11003_v11, 0.0  ;;  %v15227_v11 = vpop.permute.xlu0 %4604  ;;  %v8190_v28 = vld [vmem:[%s16887_s18 + $0x50] sm:$0xff] }
 0x593   : > { %v15218_v42 = vpop.permute.xlu1 %4579  ;;  %v5930_v60 = vpop.f32.mrb[204].mxu0  ;;  %v6090_v37 = vmax.f32 %v11013_v5, 0.0  ;;  %v8193_v5 = vld [vmem:[%s16887_s18 + $0x68] sm:$0xff] }
 0x594   : > { %5263 = vmatpush1.bf16.msra.mxu1 %v12337_v21  ;;  %v11006_v52 = vadd.f32 %v5910_v22, %v15218_v42  ;;  %v15222_v15 = vpack.c.bf16 %v6074_v27, %v6070_v17  ;;  %v15225_v40 = vpack.c.bf16 %v6073_v47, %v6069_v51  ;;  %v5932_v0 = vpop.f32.mrb[205].mxu0  ;;  %v11007_v21 = vadd.f32 %v5912_v35, %v15218_v42  ;;  %v8191_v47 = vld [vmem:[%s16887_s18 + $0x58] sm:$0xff]  ;;  %v12340_v51 = vld [vmem:[%s17209_s29 + $0xe4] ss:$16 sps:$4 sm:$0xff]   ;;  %v12341_v17 = vld [vmem:[%s12577_s4 + $0x380] ss:$16 sps:$4 sm:$0xff]  }
 0x595   : > { %5264 = vmatprep.subr.bf16.mxu1 %v12338_v18  ;;  %v5934_v43 = vpop.f32.mrb[206].mxu0  ;;  %v12339_v18 = vld [vmem:[%s17209_s29 + $0xc0] ss:$16 sps:$4 sm:$0xff]   ;;  %8301 = vperm.xlu0 %11340, %v8191_v47  }
 0x596   : > { %17413 = vst [vmem:[#allocation24_spill] sm:$0xff] %v15222_v15  ;;  %17414 = vst [vmem:[#allocation42_spill] sm:$0xff] %v15225_v40  ;;  %v6077_v22 = vmax.f32 %v11006_v52, 0.0  ;;  %7215 = vmatprep.subr.bf16.mxu0 %v15222_v15  ;;  %v5936_v27 = vpop.f32.mrb[207].mxu0  ;;  %v6078_v34 = vmax.f32 %v11007_v21, 0.0  ;;  %v11016_v35 = vadd.f32 %v5934_v43, %v15227_v11  ;;  %8296 = vperm.xlu1 %11341, %v8190_v28  }
 0x597   : > { %5100 = vmatmul.mubr.bf16.gmra.mrb[28].mxu1 %v12339_v18  ;;  %7216 = vmatpush1.bf16.msra.mxu0 %v15225_v40  ;;  %v15240_v36 = vpop.permute.xlu1 %4589  ;;  %v11017_v55 = vadd.f32 %v5936_v27, %v15227_v11  ;;  %v12342_v27 = vld [vmem:[%s12577_s4 + $0x3a4] ss:$16 sps:$4 sm:$0xff]   ;;  %v6089_v18 = vmax.f32 %v11012_v46, 0.0 }
 0x598   : > { %5109 = vmatprep.mubr.bf16.mxu1 %v12340_v51  ;;  %5265 = vmatpush1.bf16.msra.mxu1 %v12341_v17  ;;  %v11010_v52 = vadd.f32 %v15191_v31, %v15240_v36  ;;  %v15253_v21 = vpack.c.bf16 %v6081_v58, %v6077_v22  ;;  %v11011_v43 = vadd.f32 %v5922_v16, %v15240_v36  ;;  %v6097_v31 = vmax.f32 %v11016_v35, 0.0  ;;  %v8192_v46 = vld [vmem:[%s16887_s18 + $0x60] sm:$0xff] }
 0x599   : > { %5266 = vmatprep.subr.bf16.mxu1 %v12342_v27  ;;  %v15257_v40 = vpack.c.bf16 %v6082_v26, %v6078_v34  ;;  %v12343_v16 = vld [vmem:[%s12577_s4 + $0x3a0] ss:$16 sps:$4 sm:$0xff]   ;;  %v6098_v26 = vmax.f32 %v11017_v55, 0.0  ;;  %v12344_v28 = vld [vmem:[%s12577_s4 + $0x3c4] ss:$16 sps:$4 sm:$0xff]   ;;  %8311 = vperm.xlu0 %11340, %v8193_v5  }
 0x59a   : > { %v6085_v15 = vmax.f32 %v11010_v52, 0.0  ;;  %v6086_v51 = vmax.f32 %v11011_v43, 0.0  ;;  %8306 = vperm.xlu1 %11341, %v8192_v46   ;;  %v8194_v27 = vld [vmem:[%s16887_s18 + $0x70] sm:$0xff]  ;;  %v8196_v46 = vld [vmem:[%s16887_s18 + $0x80] sm:$0xff] }
 0x59b   : > { %7217 = vmatprep.subr.bf16.mxu0 %v15257_v40  ;;  %v15263_v58 = vpop.permute.xlu1 %4599  ;;  %v12349_v5 = vld [vmem:[%s12577_s4 + $0x3e0] ss:$16 sps:$4 sm:$0xff]  }
 0x59c   : > { %5267 = vmatpush1.bf16.msra.mxu1 %v12343_v16  ;;  %7218 = vmatpush1.bf16.msra.mxu0 %v15253_v21  ;;  %v11014_v22 = vadd.f32 %v5930_v60, %v15263_v58  ;;  %v11015_v47 = vadd.f32 %v5932_v0, %v15263_v58  ;;  %v15272_v34 = vpack.c.bf16 %v6090_v37, %v6086_v51  ;;  %v12345_v60 = vld [vmem:[%s17209_s29 + $0xe0] ss:$16 sps:$4 sm:$0xff]   ;;  %v8195_v0 = vld [vmem:[%s16887_s18 + $0x78] sm:$0xff]  ;;  %v8197_v51 = vld [vmem:[%s16887_s18 + $0x88] sm:$0xff] }
 0x59d   : > { %5268 = vmatprep.subr.bf16.mxu1 %v12344_v28  ;;  %v15275_v35 = vpack.c.bf16 %v6089_v18, %v6085_v15  ;;  %v12346_v15 = vld [vmem:[%s17209_s29 + $0x104] ss:$16 sps:$4 sm:$0xff]   ;;  %v12347_v37 = vld [vmem:[%s12577_s4 + $0x3c0] ss:$16 sps:$4 sm:$0xff]   ;;  %8321 = vperm.xlu0 %11340, %v8195_v0   ;;  %v17415_v28 = vmov 0  }
 0x59e   : > { %v6093_v17 = vmax.f32 %v11014_v22, 0.0  ;;  %7219 = vmatprep.subr.bf16.mxu0 %v15272_v34  ;;  %v6094_v55 = vmax.f32 %v11015_v47, 0.0  ;;  %v12348_v18 = vld [vmem:[%s12577_s4 + $0x3e4] ss:$16 sps:$4 sm:$0xff]   ;;  %8316 = vperm.xlu1 %11341, %v8194_v27   ;;  %v12350_v16 = vld [vmem:[%s17209_s29 + $0x100] ss:$16 sps:$4 sm:$0xff]  }
 0x59f   : > { %5110 = vmatmul.mubr.bf16.gmra.mrb[32].mxu1 %v12345_v60  ;;  %v12351_v22 = vld [vmem:[%s17209_s29 + $0x124] ss:$16 sps:$4 sm:$0xff]   ;;  %v12352_v0 = vld [vmem:[%s17209_s29 + $0x120] ss:$16 sps:$4 sm:$0xff]  }
 0x5a0   : > { %5119 = vmatprep.mubr.bf16.mxu1 %v12346_v15  ;;  %5269 = vmatpush1.bf16.msra.mxu1 %v12347_v37  ;;  %v15288_v52 = vpack.c.bf16 %v6098_v26, %v6094_v55  ;;  %v15290_v43 = vpack.c.bf16 %v6097_v31, %v6093_v17  ;;  %v11751_v31 = vld [vmem:[%s16880_s11] sm:$0xff]   ;;  %v8199_v26 = vld [vmem:[%s16887_s18 + $0x98] sm:$0xff]  ;;  %v8198_v47 = vld [vmem:[%s16887_s18 + $0x90] sm:$0xff] }
 0x5a1   : > { %5270 = vmatprep.subr.bf16.mxu1 %v12348_v18  ;;  %7220 = vmatpush1.bf16.msra.mxu0 %v15275_v35  ;;  %v8201_v17 = vld [vmem:[%s16887_s18 + $0xa8] sm:$0xff]  ;;  %v8200_v60 = vld [vmem:[%s16887_s18 + $0xa0] sm:$0xff]  ;;  %v8203_v15 = vld [vmem:[%s16887_s18 + $0xb8] sm:$0xff] }
 0x5a2   : > { %7221 = vmatprep.subr.bf16.mxu0 %v15288_v52  ;;  %8331 = vperm.xlu0 %11340, %v8197_v51   ;;  %v11752_v55 = vld [vmem:[%s16880_s11 + $0x8] sm:$0xff]   ;;  %v12353_v37 = vld [vmem:[%s17209_s29 + $0x144] ss:$16 sps:$4 sm:$0xff]  }
 0x5a3   : > { %8326 = vperm.xlu1 %11341, %v8196_v46   ;;  %v8202_v27 = vld [vmem:[%s16887_s18 + $0xb0] sm:$0xff]  ;;  %v8205_v18 = vld [vmem:[%s16887_s18 + $0xc8] sm:$0xff]  ;;  %v8204_v51 = vld [vmem:[%s16887_s18 + $0xc0] sm:$0xff] }
 0x5a4   : > { %5271 = vmatpush1.bf16.msra.mxu1 %v12349_v5  ;;  %v12354_v5 = vld [vmem:[%s17209_s29 + $0x140] ss:$16 sps:$4 sm:$0xff]   ;;  %v12355_v46 = vld [vmem:[%s17209_s29 + $0x164] ss:$16 sps:$4 sm:$0xff]  }
 0x5a5   : > { %7222 = vmatpush1.bf16.msra.mxu0 %v15290_v43 }
 0x5a6   : > { %8341 = vperm.xlu0 %11340, %v8199_v26   ;;  %v8209_v26 = vld [vmem:[%s16887_s18 + $0xe8] sm:$0xff] }
 0x5a7   : > { %5120 = vmatmul.mubr.bf16.gmra.mrb[36].mxu1 %v12350_v16  ;;  %8336 = vperm.xlu1 %11341, %v8198_v47   ;;  %v8206_v16 = vld [vmem:[%s16887_s18 + $0xd0] sm:$0xff] }
 0x5a8   : > { %5129 = vmatprep.mubr.bf16.mxu1 %v12351_v22  ;;  %10640 = vmatmul.mubr.msk.bf16.vlgmr.msra.gmra.mrb[208].mxu0 %vm6968_vm0, %v11751_v31  ;;  %v8207_v31 = vld [vmem:[%s16887_s18 + $0xd8] sm:$0xff]  ;;  %v8208_v22 = vld [vmem:[%s16887_s18 + $0xe0] sm:$0xff] }
 0x5a9   : > { %7257 = vmatprep.mubr.bf16.mxu0 %v17415_v28  ;;  %v12356_v47 = vld [vmem:[%s17209_s29 + $0x160] ss:$16 sps:$4 sm:$0xff]  }
 0x5aa   : > { %8351 = vperm.xlu0 %11340, %v8201_v17   ;;  %v8211_v17 = vld [vmem:[%s16887_s18 + $0xf8] sm:$0xff] }
 0x5ab   : > { %8346 = vperm.xlu1 %11341, %v8200_v60   ;;  %v8210_v60 = vld [vmem:[%s16887_s18 + $0xf0] sm:$0xff] }
 0x5ae   : > { %8361 = vperm.xlu0 %11340, %v8203_v15   ;;  %v8212_v15 = vld [vmem:[%s16887_s18 + $0x100] sm:$0xff] }
 0x5af   : > { %5130 = vmatmul.mubr.bf16.gmra.mrb[40].mxu1 %v12352_v0  ;;  %8356 = vperm.xlu1 %11341, %v8202_v27   ;;  %v8213_v0 = vld [vmem:[%s16887_s18 + $0x108] sm:$0xff]  ;;  %v8215_v27 = vld [vmem:[%s16887_s18 + $0x118] sm:$0xff] }
 0x5b0   : > { %5139 = vmatprep.mubr.bf16.mxu1 %v12353_v37  ;;  %10641 = vmatmul.mubr.msk.bf16.gmra.mrb[212].mxu0 %vm6968_vm0, %v11752_v55  ;;  %v12357_v55 = vld [vmem:[%s17209_s29 + $0x184] ss:$16 sps:$4 sm:$0xff]   ;;  %v12358_v37 = vld [vmem:[%s17209_s29 + $0x180] ss:$16 sps:$4 sm:$0xff]  }
 0x5b1   : > { %7529 = vmatprep.mubr.bf16.mxu0 %v17415_v28 }
 0x5b2   : > { %8371 = vperm.xlu0 %11340, %v8205_v18   ;;  %v12359_v18 = vld [vmem:[%s17209_s29 + $0x1a4] ss:$16 sps:$4 sm:$0xff]  }
 0x5b3   : > { %8366 = vperm.xlu1 %11341, %v8204_v51   ;;  %v8214_v51 = vld [vmem:[%s16887_s18 + $0x110] sm:$0xff] }
 0x5b6   : > { %8381 = vperm.xlu0 %11340, %v8207_v31   ;;  %v8216_v31 = vld [vmem:[%s16887_s18 + $0x120] sm:$0xff] }
 0x5b7   : > { %5140 = vmatmul.mubr.bf16.gmra.mrb[44].mxu1 %v12354_v5  ;;  %8376 = vperm.xlu1 %11341, %v8206_v16   ;;  %v8217_v5 = vld [vmem:[%s16887_s18 + $0x128] sm:$0xff]  ;;  %v8219_v16 = vld [vmem:[%s16887_s18 + $0x138] sm:$0xff] }
 0x5b8   : > { %5149 = vmatprep.mubr.bf16.mxu1 %v12355_v46  ;;  %v12360_v46 = vld [vmem:[%s17209_s29 + $0x1a0] ss:$16 sps:$4 sm:$0xff]  }
 0x5ba   : > { %8391 = vperm.xlu0 %11340, %v8209_v26   ;;  %v12361_v26 = vld [vmem:[%s17209_s29 + $0x1c4] ss:$16 sps:$4 sm:$0xff]  }
 0x5bb   : > { %8386 = vperm.xlu1 %11341, %v8208_v22   ;;  %v8218_v22 = vld [vmem:[%s16887_s18 + $0x130] sm:$0xff] }
 0x5be   : > { %8401 = vperm.xlu0 %11340, %v8211_v17   ;;  %v8220_v17 = vld [vmem:[%s16887_s18 + $0x140] sm:$0xff] }
 0x5bf   : > { %5150 = vmatmul.mubr.bf16.gmra.mrb[48].mxu1 %v12356_v47  ;;  %8396 = vperm.xlu1 %11341, %v8210_v60   ;;  %v8221_v47 = vld [vmem:[%s16887_s18 + $0x148] sm:$0xff]  ;;  %v8223_v60 = vld [vmem:[%s16887_s18 + $0x158] sm:$0xff] }
 0x5c0   : > { %5159 = vmatprep.mubr.bf16.mxu1 %v12357_v55  ;;  %v12362_v55 = vld [vmem:[%s17209_s29 + $0x1c0] ss:$16 sps:$4 sm:$0xff]  }
 0x5c2   : > { %8411 = vperm.xlu0 %11340, %v8213_v0   ;;  %v12363_v0 = vld [vmem:[%s17209_s29 + $0x1e4] ss:$16 sps:$4 sm:$0xff]  }
 0x5c3   : > { %8406 = vperm.xlu1 %11341, %v8212_v15   ;;  %v8222_v15 = vld [vmem:[%s16887_s18 + $0x150] sm:$0xff] }
 0x5c6   : > { %8421 = vperm.xlu0 %11340, %v8215_v27   ;;  %v8224_v27 = vld [vmem:[%s16887_s18 + $0x160] sm:$0xff] }
 0x5c7   : > { %5160 = vmatmul.mubr.bf16.gmra.mrb[52].mxu1 %v12358_v37  ;;  %8416 = vperm.xlu1 %11341, %v8214_v51   ;;  %v8225_v37 = vld [vmem:[%s16887_s18 + $0x168] sm:$0xff]  ;;  %v8227_v51 = vld [vmem:[%s16887_s18 + $0x178] sm:$0xff] }
 0x5c8   : > { %5169 = vmatprep.mubr.bf16.mxu1 %v12359_v18  ;;  %v12364_v18 = vld [vmem:[%s17209_s29 + $0x1e0] ss:$16 sps:$4 sm:$0xff]  }
 0x5ca   : > { %8431 = vperm.xlu0 %11340, %v8217_v5   ;;  %v12365_v5 = vld [vmem:[%s17209_s29 + $0x204] ss:$16 sps:$4 sm:$0xff]  }
 0x5cb   : > { %8426 = vperm.xlu1 %11341, %v8216_v31   ;;  %v8226_v31 = vld [vmem:[%s16887_s18 + $0x170] sm:$0xff] }
 0x5ce   : > { %8441 = vperm.xlu0 %11340, %v8219_v16   ;;  %v8228_v16 = vld [vmem:[%s16887_s18 + $0x180] sm:$0xff] }
 0x5cf   : > { %5170 = vmatmul.mubr.bf16.gmra.mrb[56].mxu1 %v12360_v46  ;;  %8436 = vperm.xlu1 %11341, %v8218_v22   ;;  %v8229_v46 = vld [vmem:[%s16887_s18 + $0x188] sm:$0xff]  ;;  %v8231_v22 = vld [vmem:[%s16887_s18 + $0x198] sm:$0xff] }
 0x5d0   : > { %5179 = vmatprep.mubr.bf16.mxu1 %v12361_v26  ;;  %v12366_v26 = vld [vmem:[%s17209_s29 + $0x200] ss:$16 sps:$4 sm:$0xff]  }
 0x5d2   : > { %8451 = vperm.xlu0 %11340, %v8221_v47   ;;  %v12367_v47 = vld [vmem:[%s17209_s29 + $0x224] ss:$16 sps:$4 sm:$0xff]  }
 0x5d3   : > { %8446 = vperm.xlu1 %11341, %v8220_v17   ;;  %v8230_v17 = vld [vmem:[%s16887_s18 + $0x190] sm:$0xff] }
 0x5d6   : > { %8461 = vperm.xlu0 %11340, %v8223_v60   ;;  %v8232_v60 = vld [vmem:[%s16887_s18 + $0x1a0] sm:$0xff] }
 0x5d7   : > { %5180 = vmatmul.mubr.bf16.gmra.mrb[60].mxu1 %v12362_v55  ;;  %8456 = vperm.xlu1 %11341, %v8222_v15   ;;  %v8233_v55 = vld [vmem:[%s16887_s18 + $0x1a8] sm:$0xff]  ;;  %v8235_v15 = vld [vmem:[%s16887_s18 + $0x1b8] sm:$0xff] }
 0x5d8   : > { %5189 = vmatprep.mubr.bf16.mxu1 %v12363_v0  ;;  %v12368_v0 = vld [vmem:[%s17209_s29 + $0x220] ss:$16 sps:$4 sm:$0xff]  }
 0x5da   : > { %8471 = vperm.xlu0 %11340, %v8225_v37   ;;  %v12369_v37 = vld [vmem:[%s17209_s29 + $0x244] ss:$16 sps:$4 sm:$0xff]  }
 0x5db   : > { %8466 = vperm.xlu1 %11341, %v8224_v27   ;;  %v8234_v27 = vld [vmem:[%s16887_s18 + $0x1b0] sm:$0xff] }
 0x5de   : > { %8481 = vperm.xlu0 %11340, %v8227_v51   ;;  %v8236_v51 = vld [vmem:[%s16887_s18 + $0x1c0] sm:$0xff] }
 0x5df   : > { %5190 = vmatmul.mubr.bf16.gmra.mrb[64].mxu1 %v12364_v18  ;;  %8476 = vperm.xlu1 %11341, %v8226_v31   ;;  %v8237_v18 = vld [vmem:[%s16887_s18 + $0x1c8] sm:$0xff]  ;;  %v12370_v31 = vld [vmem:[%s17209_s29 + $0x240] ss:$16 sps:$4 sm:$0xff]  }
 0x5e0   : > { %5199 = vmatprep.mubr.bf16.mxu1 %v12365_v5  ;;  %v4276_v5 = vld [vmem:[%s14758_s28 + $0x8] sm:$0x77] }
 0x5e2   : > { %8491 = vperm.xlu0 %11340, %v8229_v46   ;;  %v8239_v46 = vld [vmem:[%s16887_s18 + $0x1d8] sm:$0xff] }
 0x5e3   : > { %8486 = vperm.xlu1 %11341, %v8228_v16   ;;  %v10939_v16 = vadd.f32 %v14808_v61, %v14726_v23  ;;  %v8241_v61 = vld [vmem:[%s16887_s18 + $0x1e8] sm:$0xff] }
 0x5e6   : > { %8501 = vperm.xlu0 %11340, %v8231_v22   ;;  %v12371_v22 = vld [vmem:[%s17209_s29 + $0x264] ss:$16 sps:$4 sm:$0xff]  }
 0x5e7   : > { %5200 = vmatmul.mubr.bf16.gmra.mrb[68].mxu1 %v12366_v26  ;;  %8496 = vperm.xlu1 %11341, %v8230_v17   ;;  %v10941_v26 = vadd.f32 %v14818_v10, %v14702_v2  ;;  %v4280_v17 = vcombine.high %v4276_v5, %v4276_v5 }
 0x5e8   : > { %5209 = vmatprep.mubr.bf16.mxu1 %v12367_v47  ;;  %v8238_v47 = vld [vmem:[%s16887_s18 + $0x1d0] sm:$0xff] }
 0x5ea   : > { %8511 = vperm.xlu0 %11340, %v8233_v55  }
 0x5eb   : > { %8506 = vperm.xlu1 %11341, %v8232_v60  }
 0x5ee   : > { %8521 = vperm.xlu0 %11340, %v8235_v15   ;;  %v5942_v15 = vmax.f32 %v10939_v16, 0.0  ;;  %v8243_v16 = vld [vmem:[%s16887_s18 + $0x1f8] sm:$0xff] }
 0x5ef   : > { %5210 = vmatmul.mubr.bf16.gmra.mrb[72].mxu1 %v12368_v0  ;;  %8516 = vperm.xlu1 %11341, %v8234_v27  }
 0x5f0   : > { %5219 = vmatprep.mubr.bf16.mxu1 %v12369_v37  ;;  %v5946_v37 = vmax.f32 %v10941_v26, 0.0  ;;  %v10943_v26 = vadd.f32 %v14838_v14, %v14709_v1  ;;  %v12374_v14 = vld [vmem:[%s17209_s29 + $0x8] ss:$16 sps:$4 sm:$0xff]  }
 0x5f2   : > { %8531 = vperm.xlu0 %11340, %v8237_v18   ;;  %v8240_v18 = vld [vmem:[%s16887_s18 + $0x1e0] sm:$0xff] }
 0x5f3   : > { %8526 = vperm.xlu1 %11341, %v8236_v51  }
 0x5f6   : > { %8541 = vperm.xlu0 %11340, %v8239_v46  }
 0x5f7   : > { %5220 = vmatmul.mubr.bf16.gmra.mrb[76].mxu1 %v12370_v31  ;;  %8536 = vperm.xlu1 %11341, %v8238_v47   ;;  %v12373_v47 = vld [vmem:[%s17209_s29 + $0xc] ss:$16 sps:$4 sm:$0xff]  }
 0x5f8   : > { %5229 = vmatprep.mubr.bf16.mxu1 %v12371_v22  ;;  %v10945_v22 = vadd.f32 %v14847_v4, %v14720_v49  ;;  %v10946_v4 = vadd.f32 %v14854_v9, %v14724_v41 }
 0x5fa   : > { %v4270_v55 = vpop.f32.mrb[2].mxu1  ;;  %8551 = vperm.xlu0 %11340, %v8241_v61   ;;  %v10948_v61 = vadd.f32 %v14862_v13, %v14729_v30  ;;  %v12376_v13 = vld [vmem:[%s17209_s29 + $0x28] ss:$16 sps:$4 sm:$0xff]  }
 0x5fb   : > { %v10126_v60 = vrot.slane %v4270_v55, 6  ;;  %v4272_v0 = vpop.f32.mrb[3].mxu1  ;;  %v15516_v10 = vsub.f32 %v4270_v55, %v4276_v5  ;;  %v12372_v5 = vld [vmem:[%s17209_s29 + $0x260] ss:$16 sps:$4 sm:$0xff]   ;;  %8546 = vperm.xlu1 %11341, %v8240_v18   ;;  %v15544_v55 = vpack.c.bf16 %v5946_v37, %v5942_v15  ;;  %v12375_v15 = vld [vmem:[%s17209_s29 + $0x2c] ss:$16 sps:$4 sm:$0xff]   ;;  %v10949_v18 = vadd.f32 %v14866_v19, %v14729_v30 }
 0x5fc   : > { %v10127_v27 = vrot.slane %v4272_v0, 6  ;;  %v15521_v51 = vsub.f32 %v4272_v0, %v4280_v17  ;;  %v8242_v17 = vld [vmem:[%s16887_s18 + $0x1f0] sm:$0xff]  ;;  %v5954_v0 = vmax.f32 %v10945_v22, 0.0  ;;  %v12378_v19 = vld [vmem:[%s17209_s29 + $0x48] ss:$16 sps:$4 sm:$0xff]  }
 0x5fd   : > { %10134 = vst [vmem:[%s14775_s3 + $0x30] sm:$0x1c] %v10126_v60  ;;  %v10106_v31 = vrot.slane %v15516_v10, 1  ;;  %v5950_v60 = vmax.f32 %v10943_v26, 0.0  ;;  %v5962_v9 = vmax.f32 %v10949_v18, 0.0 }
 0x5fe   : > { %10135 = vst [vmem:[%s14775_s3 + $0x38] sm:$0x1c] %v10127_v27  ;;  %v10107_v46 = vrot.slane %v15521_v51, 1  ;;  %8561 = vperm.xlu0 %11340, %v8243_v16   ;;  %v10947_v27 = vadd.f32 %v14857_v25, %v14724_v41  ;;  %v12377_v16 = vld [vmem:[%s17209_s29 + $0x4c] ss:$16 sps:$4 sm:$0xff]  }
 0x5ff   : > { %5230 = vmatmul.mubr.bf16.gmra.mrb[80].mxu1 %v12372_v5  ;;  %10114 = vst [vmem:[%s14775_s3 + $0x30] ss:$-28 sps:$4 sm:$0x83] %v10106_v31   ;;  %8556 = vperm.xlu1 %11341, %v8242_v17   ;;  %v15557_v37 = vpack.c.bf16 %v5954_v0, %v5950_v60  ;;  %v5957_v31 = vmax.f32 %v10946_v4, 0.0  ;;  %v12379_v22 = vld [vmem:[%s17209_s29 + $0x6c] ss:$16 sps:$4 sm:$0xff]  }
 0x600   : > { %5272 = vmatprep.mubr.bf16.mxu1 %v12373_v47  ;;  %10115 = vst [vmem:[%s14775_s3 + $0x38] ss:$-28 sps:$4 sm:$0x83] %v10107_v46   ;;  %v5961_v46 = vmax.f32 %v10948_v61, 0.0  ;;  %v5958_v5 = vmax.f32 %v10947_v27, 0.0 }
 0x601   : > { %v12380_v47 = vld [vmem:[%s17209_s29 + $0x68] ss:$16 sps:$4 sm:$0xff]   ;;  %v12381_v17 = vld [vmem:[%s17209_s29 + $0x8c] ss:$16 sps:$4 sm:$0xff]  }
 0x602   : > { %v15569_v26 = vpack.c.bf16 %v5962_v9, %v5958_v5  ;;  %v15571_v25 = vpack.c.bf16 %v5961_v46, %v5957_v31  ;;  %v12382_v60 = vld [vmem:[%s17209_s29 + $0x88] ss:$16 sps:$4 sm:$0xff]   ;;  %v12383_v0 = vld [vmem:[%s17209_s29 + $0xac] ss:$16 sps:$4 sm:$0xff]  }
 0x603   : > { %v12385_v4 = vld [vmem:[%s17209_s29 + $0xcc] ss:$16 sps:$4 sm:$0xff]   ;;  %v12386_v61 = vld [vmem:[%s17209_s29 + $0xc8] ss:$16 sps:$4 sm:$0xff]  }
 0x604   : > { %v12388_v27 = vld [vmem:[%s17209_s29 + $0xe8] ss:$16 sps:$4 sm:$0xff]   ;;  %v12389_v18 = vld [vmem:[%s17209_s29 + $0x10c] ss:$16 sps:$4 sm:$0xff]  }
 0x605   : > { %v12390_v31 = vld [vmem:[%s17209_s29 + $0x108] ss:$16 sps:$4 sm:$0xff]   ;;  %v12391_v46 = vld [vmem:[%s17209_s29 + $0x12c] ss:$16 sps:$4 sm:$0xff]  }
 0x606   : > { %v12392_v5 = vld [vmem:[%s17209_s29 + $0x128] ss:$16 sps:$4 sm:$0xff]   ;;  %v12393_v9 = vld [vmem:[%s17209_s29 + $0x14c] ss:$16 sps:$4 sm:$0xff]  }
 0x607   : > { %5273 = vmatmul.mubr.bf16.vlgmr.msra.gmra.mrb[4].mxu1 %v12374_v14  ;;  %v12384_v14 = vld [vmem:[%s17209_s29 + $0xa8] ss:$16 sps:$4 sm:$0xff]  }
 0x608   : > { %5282 = vmatprep.mubr.bf16.mxu1 %v12375_v15  ;;  %v12387_v15 = vld [vmem:[%s17209_s29 + $0xec] ss:$16 sps:$4 sm:$0xff]  }
 0x60f   : > { %5283 = vmatmul.mubr.bf16.gmra.mrb[8].mxu1 %v12376_v13  ;;  %v12394_v13 = vld [vmem:[%s17209_s29 + $0x148] ss:$16 sps:$4 sm:$0xff]  }
 0x610   : > { %5292 = vmatprep.mubr.bf16.mxu1 %v12377_v16  ;;  %v12395_v16 = vld [vmem:[%s17209_s29 + $0x16c] ss:$16 sps:$4 sm:$0xff]  }
 0x617   : > { %5293 = vmatmul.mubr.bf16.gmra.mrb[12].mxu1 %v12378_v19  ;;  %v12396_v19 = vld [vmem:[%s17209_s29 + $0x168] ss:$16 sps:$4 sm:$0xff]  }
 0x618   : > { %5302 = vmatprep.mubr.bf16.mxu1 %v12379_v22  ;;  %v12397_v22 = vld [vmem:[%s17209_s29 + $0x18c] ss:$16 sps:$4 sm:$0xff]  }
 0x61f   : > { %5303 = vmatmul.mubr.bf16.gmra.mrb[16].mxu1 %v12380_v47  ;;  %v12398_v47 = vld [vmem:[%s17209_s29 + $0x188] ss:$16 sps:$4 sm:$0xff]  }
 0x620   : > { %5312 = vmatprep.mubr.bf16.mxu1 %v12381_v17  ;;  %v12399_v17 = vld [vmem:[%s17209_s29 + $0x1ac] ss:$16 sps:$4 sm:$0xff]  }
 0x627   : > { %5313 = vmatmul.mubr.bf16.gmra.mrb[20].mxu1 %v12382_v60  ;;  %v12400_v60 = vld [vmem:[%s17209_s29 + $0x1a8] ss:$16 sps:$4 sm:$0xff]  }
 0x628   : > { %5322 = vmatprep.mubr.bf16.mxu1 %v12383_v0  ;;  %v12401_v0 = vld [vmem:[%s17209_s29 + $0x1cc] ss:$16 sps:$4 sm:$0xff]  }
 0x62f   : > { %5323 = vmatmul.mubr.bf16.gmra.mrb[24].mxu1 %v12384_v14  ;;  %v12402_v14 = vld [vmem:[%s17209_s29 + $0x1c8] ss:$16 sps:$4 sm:$0xff]  }
 0x630   : > { %5332 = vmatprep.mubr.bf16.mxu1 %v12385_v4  ;;  %v12403_v4 = vld [vmem:[%s17209_s29 + $0x1ec] ss:$16 sps:$4 sm:$0xff]  }
 0x637   : > { %5333 = vmatmul.mubr.bf16.gmra.mrb[28].mxu1 %v12386_v61  ;;  %v15651_v61 = vpop.permute.xlu1 %7072 }
 0x638   : > { %5342 = vmatprep.mubr.bf16.mxu1 %v12387_v15  ;;  %17416 = vst [vmem:[#allocation51_spill] sm:$0xff] %v15651_v61 }
 0x63f   : > { %5343 = vmatmul.mubr.bf16.gmra.mrb[32].mxu1 %v12388_v27 }
 0x640   : > { %5352 = vmatprep.mubr.bf16.mxu1 %v12389_v18 }
 0x647   : > { %5353 = vmatmul.mubr.bf16.gmra.mrb[36].mxu1 %v12390_v31  ;;  %v15654_v31 = vpop.permute.xlu0 %7077 }
 0x648   : > { %5362 = vmatprep.mubr.bf16.mxu1 %v12391_v46  ;;  %17417 = vst [vmem:[#allocation25_spill] sm:$0xff] %v15654_v31 }
 0x64f   : > { %5363 = vmatmul.mubr.bf16.gmra.mrb[40].mxu1 %v12392_v5 }
 0x650   : > { %5372 = vmatprep.mubr.bf16.mxu1 %v12393_v9 }
 0x657   : > { %5373 = vmatmul.mubr.bf16.gmra.mrb[44].mxu1 %v12394_v13 }
 0x658   : > { %5382 = vmatprep.mubr.bf16.mxu1 %v12395_v16 }
 0x65f   : > { %5383 = vmatmul.mubr.bf16.gmra.mrb[48].mxu1 %v12396_v19  ;;  %v12404_v19 = vld [vmem:[%s17209_s29 + $0x1e8] ss:$16 sps:$4 sm:$0xff]  }
 0x660   : > { %5392 = vmatprep.mubr.bf16.mxu1 %v12397_v22 }
 0x667   : > { %5393 = vmatmul.mubr.bf16.gmra.mrb[52].mxu1 %v12398_v47 }
 0x668   : > { %5402 = vmatprep.mubr.bf16.mxu1 %v12399_v17  ;;  %v12405_v17 = vld [vmem:[%s17209_s29 + $0x20c] ss:$16 sps:$4 sm:$0xff]  }
 0x66f   : > { %5403 = vmatmul.mubr.bf16.gmra.mrb[56].mxu1 %v12400_v60 }
 0x670   : > { %5412 = vmatprep.mubr.bf16.mxu1 %v12401_v0 }
 0x677   : > { %5413 = vmatmul.mubr.bf16.gmra.mrb[60].mxu1 %v12402_v14 }
 0x678   : > { %5422 = vmatprep.mubr.bf16.mxu1 %v12403_v4  ;;  %v15665_v4 = vpop.permute.xlu1 %7082 }
 0x67b   : > { %v7249_v15 = vpop.f32.mrb[208].mxu0 }
 0x67c   : > { %v7250_v27 = vadd.f32 %v7249_v15, %v15651_v61  ;;  %v7251_v18 = vpop.f32.mrb[209].mxu0 }
 0x67d   : > { %v7252_v46 = vadd.f32 %v7251_v18, %v15651_v61  ;;  %v7253_v5 = vpop.f32.mrb[210].mxu0  ;;  %v15668_v61 = vpop.permute.xlu0 %7087 }
 0x67e   : > { %v7290_v9 = vmax.f32 %v7250_v27, 0.0  ;;  %v7254_v13 = vadd.f32 %v7253_v5, %v15654_v31  ;;  %v7255_v16 = vpop.f32.mrb[211].mxu0  ;;  %17418 = vst [vmem:[#allocation45_spill] sm:$0xff] %v15668_v61 }
 0x67f   : > { %5423 = vmatmul.mubr.bf16.gmra.mrb[64].mxu1 %v12404_v19  ;;  %v7291_v22 = vmax.f32 %v7252_v46, 0.0  ;;  %v7256_v47 = vadd.f32 %v7255_v16, %v15654_v31 }
 0x680   : > { %5432 = vmatprep.mubr.bf16.mxu1 %v12405_v17  ;;  %v7294_v60 = vmax.f32 %v7254_v13, 0.0 }
 0x681   : > { %v7295_v0 = vmax.f32 %v7256_v47, 0.0  ;;  %v12407_v47 = vld [vmem:[%s17209_s29 + $0x22c] ss:$16 sps:$4 sm:$0xff]  }
 0x682   : > { %v7322_v14 = vpack.c.bf16 %v7294_v60, %v7290_v9  ;;  %v12406_v9 = vld [vmem:[%s17209_s29 + $0x208] ss:$16 sps:$4 sm:$0xff]  }
 0x683   : > { %v7323_v15 = vpack.c.bf16 %v7295_v0, %v7291_v22  ;;  %v7259_v27 = vpop.f32.mrb[212].mxu0 }
 0x684   : > { %v7260_v18 = vadd.f32 %v7259_v27, %v15665_v4  ;;  %v7261_v5 = vpop.f32.mrb[213].mxu0 }
 0x685   : > { %v7262_v46 = vadd.f32 %v7261_v5, %v15665_v4  ;;  %v7263_v16 = vpop.f32.mrb[214].mxu0  ;;  %7497 = vmatprep.subr.bf16.mxu0 %v7323_v15  ;;  %v12410_v5 = vld [vmem:[%s17209_s29 + $0x248] ss:$16 sps:$4 sm:$0xff]  }
 0x686   : > { %v7298_v19 = vmax.f32 %v7260_v18, 0.0  ;;  %v7264_v31 = vadd.f32 %v7263_v16, %v15668_v61  ;;  %v7265_v17 = vpop.f32.mrb[215].mxu0  ;;  %7498 = vmatpush1.bf16.msra.mxu0 %v7322_v14  ;;  %v12408_v14 = vld [vmem:[%s17209_s29 + $0x228] ss:$16 sps:$4 sm:$0xff]   ;;  %v12409_v18 = vld [vmem:[%s17209_s29 + $0x24c] ss:$16 sps:$4 sm:$0xff]  }
 0x687   : > { %5433 = vmatmul.mubr.bf16.gmra.mrb[68].mxu1 %v12406_v9  ;;  %v7299_v13 = vmax.f32 %v7262_v46, 0.0  ;;  %v7266_v22 = vadd.f32 %v7265_v17, %v15668_v61  ;;  %v12412_v46 = vld [vmem:[%s17209_s29 + $0x268] ss:$16 sps:$4 sm:$0xff]  }
 0x688   : > { %5442 = vmatprep.mubr.bf16.mxu1 %v12407_v47  ;;  %v7302_v60 = vmax.f32 %v7264_v31, 0.0  ;;  %v12411_v31 = vld [vmem:[%s17209_s29 + $0x26c] ss:$16 sps:$4 sm:$0xff]  }
 0x689   : > { %v7303_v0 = vmax.f32 %v7266_v22, 0.0 }
 0x68a   : > { %v7326_v15 = vpack.c.bf16 %v7302_v60, %v7298_v19 }
 0x68b   : > { %v7327_v27 = vpack.c.bf16 %v7303_v0, %v7299_v13  ;;  %v15701_v0 = vld [vmem:[%s16875_s6 + $0x4] ss:$8 sps:$4 sm:$0xff]  }
 0x68d   : > { %7499 = vmatprep.subr.bf16.mxu0 %v7327_v27 }
 0x68e   : > { %7500 = vmatpush1.bf16.msra.mxu0 %v7326_v15 }
 0x68f   : > { %5443 = vmatmul.mubr.bf16.gmra.mrb[72].mxu1 %v12408_v14 }
 0x690   : > { %5452 = vmatprep.mubr.bf16.mxu1 %v12409_v18 }
 0x697   : > { %5453 = vmatmul.mubr.bf16.gmra.mrb[76].mxu1 %v12410_v5 }
 0x698   : > { %5462 = vmatprep.mubr.bf16.mxu1 %v12411_v31 }
 0x69f   : > { %5463 = vmatmul.mubr.bf16.gmra.mrb[80].mxu1 %v12412_v46 }
 0x6a0   : > { %6403 = vmatprep.mubr.bf16.mxu1 %v15701_v0 }
 0x6da   : > { %v5274_v16 = vpop.f32.mrb[4].mxu1 }
 0x6db   : > { %v10858_v19 = vadd.f32 %v5274_v16, %v14726_v23  ;;  %v5276_v17 = vpop.f32.mrb[5].mxu1 }
 0x6dc   : > { %v10859_v9 = vadd.f32 %v5276_v17, %v14726_v23  ;;  %v5278_v13 = vpop.f32.mrb[6].mxu1 }
 0x6dd   : > { %v10860_v22 = vadd.f32 %v5278_v13, %v14702_v2  ;;  %v5280_v47 = vpop.f32.mrb[7].mxu1  ;;  %v5939_v15 = vmax.f32 %v10858_v19, 0.0 }
 0x6de   : > { %v10861_v60 = vadd.f32 %v5280_v47, %v14702_v2  ;;  %v5940_v14 = vmax.f32 %v10859_v9, 0.0 }
 0x6df   : > { %v5943_v27 = vmax.f32 %v10860_v22, 0.0 }
 0x6e0   : > { %v5944_v18 = vmax.f32 %v10861_v60, 0.0 }
 0x6e1   : > { %v6099_v5 = vpack.c.bf16 %v5943_v27, %v5939_v15 }
 0x6e2   : > { %v5284_v31 = vpop.f32.mrb[8].mxu1  ;;  %v6100_v23 = vpack.c.bf16 %v5944_v18, %v5940_v14 }
 0x6e3   : > { %v10862_v46 = vadd.f32 %v5284_v31, %v14709_v1  ;;  %v5286_v16 = vpop.f32.mrb[9].mxu1 }
 0x6e4   : > { %v10863_v17 = vadd.f32 %v5286_v16, %v14709_v1  ;;  %v5288_v2 = vpop.f32.mrb[10].mxu1  ;;  %6371 = vmatprep.subr.bf16.mxu1 %v6100_v23 }
 0x6e5   : > { %v10864_v13 = vadd.f32 %v5288_v2, %v14720_v49  ;;  %v5290_v47 = vpop.f32.mrb[11].mxu1  ;;  %6372 = vmatpush1.bf16.msra.mxu1 %v6099_v5  ;;  %v5947_v9 = vmax.f32 %v10862_v46, 0.0 }
 0x6e6   : > { %v10865_v19 = vadd.f32 %v5290_v47, %v14720_v49  ;;  %v5948_v60 = vmax.f32 %v10863_v17, 0.0 }
 0x6e7   : > { %v5951_v22 = vmax.f32 %v10864_v13, 0.0 }
 0x6e8   : > { %v5952_v61 = vmax.f32 %v10865_v19, 0.0 }
 0x6e9   : > { %v6103_v15 = vpack.c.bf16 %v5951_v22, %v5947_v9 }
 0x6ea   : > { %v5294_v27 = vpop.f32.mrb[12].mxu1  ;;  %v6104_v14 = vpack.c.bf16 %v5952_v61, %v5948_v60 }
 0x6eb   : > { %v10866_v18 = vadd.f32 %v5294_v27, %v14724_v41  ;;  %v5296_v31 = vpop.f32.mrb[13].mxu1 }
 0x6ec   : > { %v10867_v1 = vadd.f32 %v5296_v31, %v14724_v41  ;;  %v5298_v16 = vpop.f32.mrb[14].mxu1  ;;  %6373 = vmatprep.subr.bf16.mxu1 %v6104_v14 }
 0x6ed   : > { %v10868_v23 = vadd.f32 %v5298_v16, %v14729_v30  ;;  %v5300_v2 = vpop.f32.mrb[15].mxu1  ;;  %6374 = vmatpush1.bf16.msra.mxu1 %v6103_v15  ;;  %v5955_v5 = vmax.f32 %v10866_v18, 0.0 }
 0x6ee   : > { %v10869_v49 = vadd.f32 %v5300_v2, %v14729_v30  ;;  %v5956_v17 = vmax.f32 %v10867_v1, 0.0 }
 0x6ef   : > { %v5959_v46 = vmax.f32 %v10868_v23, 0.0 }
 0x6f0   : > { %v5960_v13 = vmax.f32 %v10869_v49, 0.0 }
 0x6f1   : > { %v6107_v47 = vpack.c.bf16 %v5959_v46, %v5955_v5 }
 0x6f2   : > { %v5304_v19 = vpop.f32.mrb[16].mxu1  ;;  %v6108_v61 = vpack.c.bf16 %v5960_v13, %v5956_v17 }
 0x6f3   : > { %v10870_v9 = vadd.f32 %v5304_v19, %v14734_v48  ;;  %v5306_v22 = vpop.f32.mrb[17].mxu1 }
 0x6f4   : > { %v10871_v41 = vadd.f32 %v5306_v22, %v14734_v48  ;;  %v5308_v60 = vpop.f32.mrb[18].mxu1  ;;  %6375 = vmatprep.subr.bf16.mxu1 %v6108_v61 }
 0x6f5   : > { %v10872_v27 = vadd.f32 %v5308_v60, %v14743_v33  ;;  %v5310_v14 = vpop.f32.mrb[19].mxu1  ;;  %6376 = vmatpush1.bf16.msra.mxu1 %v6107_v47  ;;  %v5963_v15 = vmax.f32 %v10870_v9, 0.0 }
 0x6f6   : > { %v10873_v30 = vadd.f32 %v5310_v14, %v14743_v33  ;;  %v5964_v31 = vmax.f32 %v10871_v41, 0.0 }
 0x6f7   : > { %v5967_v18 = vmax.f32 %v10872_v27, 0.0 }
 0x6f8   : > { %v5968_v1 = vmax.f32 %v10873_v30, 0.0 }
 0x6f9   : > { %v6111_v16 = vpack.c.bf16 %v5967_v18, %v5963_v15 }
 0x6fa   : > { %v5314_v23 = vpop.f32.mrb[20].mxu1  ;;  %v6112_v2 = vpack.c.bf16 %v5968_v1, %v5964_v31 }
 0x6fb   : > { %v10874_v49 = vadd.f32 %v5314_v23, %v14750_v62  ;;  %v5316_v5 = vpop.f32.mrb[21].mxu1 }
 0x6fc   : > { %v10875_v48 = vadd.f32 %v5316_v5, %v14750_v62  ;;  %v5318_v46 = vpop.f32.mrb[22].mxu1  ;;  %6377 = vmatprep.subr.bf16.mxu1 %v6112_v2 }
 0x6fd   : > { %v10876_v17 = vadd.f32 %v5318_v46, %v14731_v54  ;;  %v5320_v13 = vpop.f32.mrb[23].mxu1  ;;  %6378 = vmatpush1.bf16.msra.mxu1 %v6111_v16  ;;  %v5971_v47 = vmax.f32 %v10874_v49, 0.0 }
 0x6fe   : > { %v10877_v33 = vadd.f32 %v5320_v13, %v14731_v54  ;;  %v5972_v61 = vmax.f32 %v10875_v48, 0.0 }
 0x6ff   : > { %v5975_v19 = vmax.f32 %v10876_v17, 0.0 }
 0x700   : > { %v5976_v9 = vmax.f32 %v10877_v33, 0.0 }
 0x701   : > { %v6115_v22 = vpack.c.bf16 %v5975_v19, %v5971_v47 }
 0x702   : > { %v5324_v41 = vpop.f32.mrb[24].mxu1  ;;  %v6116_v60 = vpack.c.bf16 %v5976_v9, %v5972_v61 }
 0x703   : > { %v10878_v27 = vadd.f32 %v5324_v41, %v14761_v24  ;;  %v5326_v14 = vpop.f32.mrb[25].mxu1 }
 0x704   : > { %v10879_v62 = vadd.f32 %v5326_v14, %v14761_v24  ;;  %v5328_v30 = vpop.f32.mrb[26].mxu1  ;;  %6379 = vmatprep.subr.bf16.mxu1 %v6116_v60 }
 0x705   : > { %v10880_v15 = vadd.f32 %v5328_v30, %v14740_v12  ;;  %v5330_v18 = vpop.f32.mrb[27].mxu1  ;;  %6380 = vmatpush1.bf16.msra.mxu1 %v6115_v22  ;;  %v5979_v31 = vmax.f32 %v10878_v27, 0.0 }
 0x706   : > { %v10881_v54 = vadd.f32 %v5330_v18, %v14740_v12  ;;  %v5980_v16 = vmax.f32 %v10879_v62, 0.0 }
 0x707   : > { %v5983_v1 = vmax.f32 %v10880_v15, 0.0 }
 0x708   : > { %v5984_v23 = vmax.f32 %v10881_v54, 0.0 }
 0x709   : > { %v6119_v2 = vpack.c.bf16 %v5983_v1, %v5979_v31 }
 0x70a   : > { %v5334_v49 = vpop.f32.mrb[28].mxu1  ;;  %v6120_v5 = vpack.c.bf16 %v5984_v23, %v5980_v16 }
 0x70b   : > { %v10882_v48 = vadd.f32 %v5334_v49, %v14769_v8  ;;  %v5336_v46 = vpop.f32.mrb[29].mxu1 }
 0x70c   : > { %v10883_v24 = vadd.f32 %v5336_v46, %v14769_v8  ;;  %v5338_v17 = vpop.f32.mrb[30].mxu1  ;;  %6381 = vmatprep.subr.bf16.mxu1 %v6120_v5 }
 0x70d   : > { %v10884_v13 = vadd.f32 %v5338_v17, %v14746_v29  ;;  %v5340_v33 = vpop.f32.mrb[31].mxu1  ;;  %6382 = vmatpush1.bf16.msra.mxu1 %v6119_v2  ;;  %v5987_v47 = vmax.f32 %v10882_v48, 0.0 }
 0x70e   : > { %v10885_v12 = vadd.f32 %v5340_v33, %v14746_v29  ;;  %v5988_v61 = vmax.f32 %v10883_v24, 0.0 }
 0x70f   : > { %v5991_v19 = vmax.f32 %v10884_v13, 0.0 }
 0x710   : > { %v5992_v9 = vmax.f32 %v10885_v12, 0.0 }
 0x711   : > { %v6123_v22 = vpack.c.bf16 %v5991_v19, %v5987_v47 }
 0x712   : > { %v5344_v41 = vpop.f32.mrb[32].mxu1  ;;  %v6124_v60 = vpack.c.bf16 %v5992_v9, %v5988_v61 }
 0x713   : > { %v10886_v27 = vadd.f32 %v5344_v41, %v14785_v45  ;;  %v5346_v14 = vpop.f32.mrb[33].mxu1 }
 0x714   : > { %v10887_v8 = vadd.f32 %v5346_v14, %v14785_v45  ;;  %v5348_v62 = vpop.f32.mrb[34].mxu1  ;;  %6383 = vmatprep.subr.bf16.mxu1 %v6124_v60 }
 0x715   : > { %v10888_v30 = vadd.f32 %v5348_v62, %v14753_v57  ;;  %v5350_v15 = vpop.f32.mrb[35].mxu1  ;;  %6384 = vmatpush1.bf16.msra.mxu1 %v6123_v22  ;;  %v5995_v18 = vmax.f32 %v10886_v27, 0.0 }
 0x716   : > { %v10889_v29 = vadd.f32 %v5350_v15, %v14753_v57  ;;  %v5996_v31 = vmax.f32 %v10887_v8, 0.0 }
 0x717   : > { %v5999_v54 = vmax.f32 %v10888_v30, 0.0 }
 0x718   : > { %v6000_v1 = vmax.f32 %v10889_v29, 0.0 }
 0x719   : > { %v6127_v16 = vpack.c.bf16 %v5999_v54, %v5995_v18 }
 0x71a   : > { %v5354_v23 = vpop.f32.mrb[36].mxu1  ;;  %v6128_v2 = vpack.c.bf16 %v6000_v1, %v5996_v31 }
 0x71b   : > { %v10890_v49 = vadd.f32 %v5354_v23, %v14796_v20  ;;  %v5356_v5 = vpop.f32.mrb[37].mxu1 }
 0x71c   : > { %v10891_v45 = vadd.f32 %v5356_v5, %v14796_v20  ;;  %v5358_v48 = vpop.f32.mrb[38].mxu1  ;;  %6385 = vmatprep.subr.bf16.mxu1 %v6128_v2 }
 0x71d   : > { %v10892_v46 = vadd.f32 %v5358_v48, %v14765_v59  ;;  %v5360_v24 = vpop.f32.mrb[39].mxu1  ;;  %6386 = vmatpush1.bf16.msra.mxu1 %v6127_v16  ;;  %v6003_v17 = vmax.f32 %v10890_v49, 0.0 }
 0x71e   : > { %v10893_v57 = vadd.f32 %v5360_v24, %v14765_v59  ;;  %v6004_v33 = vmax.f32 %v10891_v45, 0.0 }
 0x71f   : > { %v6007_v13 = vmax.f32 %v10892_v46, 0.0 }
 0x720   : > { %v6008_v12 = vmax.f32 %v10893_v57, 0.0 }
 0x721   : > { %v6131_v47 = vpack.c.bf16 %v6007_v13, %v6003_v17 }
 0x722   : > { %v5364_v19 = vpop.f32.mrb[40].mxu1  ;;  %v6132_v61 = vpack.c.bf16 %v6008_v12, %v6004_v33 }
 0x723   : > { %v10894_v9 = vadd.f32 %v5364_v19, %v14820_v3  ;;  %v5366_v22 = vpop.f32.mrb[41].mxu1 }
 0x724   : > { %v10895_v20 = vadd.f32 %v5366_v22, %v14820_v3  ;;  %v5368_v41 = vpop.f32.mrb[42].mxu1  ;;  %6387 = vmatprep.subr.bf16.mxu1 %v6132_v61 }
 0x725   : > { %v10896_v60 = vadd.f32 %v5368_v41, %v14777_v7  ;;  %v5370_v27 = vpop.f32.mrb[43].mxu1  ;;  %6388 = vmatpush1.bf16.msra.mxu1 %v6131_v47  ;;  %v6011_v14 = vmax.f32 %v10894_v9, 0.0 }
 0x726   : > { %v10897_v59 = vadd.f32 %v5370_v27, %v14777_v7  ;;  %v6012_v62 = vmax.f32 %v10895_v20, 0.0 }
 0x727   : > { %v6015_v8 = vmax.f32 %v10896_v60, 0.0 }
 0x728   : > { %v6016_v30 = vmax.f32 %v10897_v59, 0.0 }
 0x729   : > { %v6135_v15 = vpack.c.bf16 %v6015_v8, %v6011_v14 }
 0x72a   : > { %v5374_v29 = vpop.f32.mrb[44].mxu1  ;;  %v6136_v18 = vpack.c.bf16 %v6016_v30, %v6012_v62 }
 0x72b   : > { %v10898_v54 = vadd.f32 %v5374_v29, %v14828_v50  ;;  %v5376_v31 = vpop.f32.mrb[45].mxu1 }
 0x72c   : > { %v10899_v3 = vadd.f32 %v5376_v31, %v14828_v50  ;;  %v5378_v1 = vpop.f32.mrb[46].mxu1  ;;  %6389 = vmatprep.subr.bf16.mxu1 %v6136_v18 }
 0x72d   : > { %v10900_v16 = vadd.f32 %v5378_v1, %v14790_v63  ;;  %v5380_v23 = vpop.f32.mrb[47].mxu1  ;;  %6390 = vmatpush1.bf16.msra.mxu1 %v6135_v15  ;;  %v6019_v2 = vmax.f32 %v10898_v54, 0.0 }
 0x72e   : > { %v10901_v7 = vadd.f32 %v5380_v23, %v14790_v63  ;;  %v6020_v5 = vmax.f32 %v10899_v3, 0.0 }
 0x72f   : > { %v6023_v49 = vmax.f32 %v10900_v16, 0.0 }
 0x730   : > { %v6024_v45 = vmax.f32 %v10901_v7, 0.0 }
 0x731   : > { %v6139_v48 = vpack.c.bf16 %v6023_v49, %v6019_v2 }
 0x732   : > { %v5384_v46 = vpop.f32.mrb[48].mxu1  ;;  %v6140_v24 = vpack.c.bf16 %v6024_v45, %v6020_v5 }
 0x733   : > { %v10902_v57 = vadd.f32 %v5384_v46, %v14852_v53  ;;  %v5386_v17 = vpop.f32.mrb[49].mxu1 }
 0x734   : > { %v10903_v50 = vadd.f32 %v5386_v17, %v14852_v53  ;;  %v5388_v13 = vpop.f32.mrb[50].mxu1  ;;  %6391 = vmatprep.subr.bf16.mxu1 %v6140_v24 }
 0x735   : > { %v10904_v33 = vadd.f32 %v5388_v13, %v14805_v39  ;;  %v5390_v12 = vpop.f32.mrb[51].mxu1  ;;  %6392 = vmatpush1.bf16.msra.mxu1 %v6139_v48  ;;  %v6027_v47 = vmax.f32 %v10902_v57, 0.0  ;;  %v17419_v57 = vld [vmem:[#allocation71_spill] sm:$0xff] }
 0x736   : > { %v10905_v63 = vadd.f32 %v5390_v12, %v14805_v39  ;;  %v6028_v61 = vmax.f32 %v10903_v50, 0.0 }
 0x737   : > { %v6031_v19 = vmax.f32 %v10904_v33, 0.0  ;;  %v17420_v33 = vld [vmem:[#allocation52_spill] sm:$0xff] }
 0x738   : > { %v6032_v9 = vmax.f32 %v10905_v63, 0.0 }
 0x739   : > { %v6143_v22 = vpack.c.bf16 %v6031_v19, %v6027_v47 }
 0x73a   : > { %v5394_v20 = vpop.f32.mrb[52].mxu1  ;;  %v6144_v41 = vpack.c.bf16 %v6032_v9, %v6028_v61 }
 0x73b   : > { %v10906_v60 = vadd.f32 %v5394_v20, %v14868_v38  ;;  %v5396_v27 = vpop.f32.mrb[53].mxu1 }
 0x73c   : > { %v10907_v53 = vadd.f32 %v5396_v27, %v14868_v38  ;;  %v5398_v59 = vpop.f32.mrb[54].mxu1  ;;  %6393 = vmatprep.subr.bf16.mxu1 %v6144_v41 }
 0x73d   : > { %v10908_v14 = vadd.f32 %v5398_v59, %v14823_v44  ;;  %v5400_v8 = vpop.f32.mrb[55].mxu1  ;;  %6394 = vmatpush1.bf16.msra.mxu1 %v6143_v22  ;;  %v6035_v62 = vmax.f32 %v10906_v60, 0.0  ;;  %v17421_v60 = vld [vmem:[#allocation60_spill] sm:$0xff] }
 0x73e   : > { %v10909_v39 = vadd.f32 %v5400_v8, %v14823_v44  ;;  %v6036_v15 = vmax.f32 %v10907_v53, 0.0  ;;  %v17422_v8 = vld [vmem:[#allocation27_spill] sm:$0xff] }
 0x73f   : > { %v6039_v30 = vmax.f32 %v10908_v14, 0.0 }
 0x740   : > { %v6040_v29 = vmax.f32 %v10909_v39, 0.0 }
 0x741   : > { %v6147_v18 = vpack.c.bf16 %v6039_v30, %v6035_v62 }
 0x742   : > { %v5404_v54 = vpop.f32.mrb[56].mxu1  ;;  %v6148_v31 = vpack.c.bf16 %v6040_v29, %v6036_v15 }
 0x743   : > { %v10910_v3 = vadd.f32 %v5404_v54, %v14889_v32  ;;  %v5406_v1 = vpop.f32.mrb[57].mxu1 }
 0x744   : > { %v10911_v38 = vadd.f32 %v5406_v1, %v14889_v32  ;;  %v5408_v16 = vpop.f32.mrb[58].mxu1  ;;  %6395 = vmatprep.subr.bf16.mxu1 %v6148_v31 }
 0x745   : > { %v10912_v23 = vadd.f32 %v5408_v16, %v14840_v6  ;;  %v5410_v7 = vpop.f32.mrb[59].mxu1  ;;  %6396 = vmatpush1.bf16.msra.mxu1 %v6147_v18  ;;  %v6043_v2 = vmax.f32 %v10910_v3, 0.0 }
 0x746   : > { %v10913_v44 = vadd.f32 %v5410_v7, %v14840_v6  ;;  %v6044_v5 = vmax.f32 %v10911_v38, 0.0  ;;  %v17423_v38 = vld [vmem:[#allocation48_spill] sm:$0xff] }
 0x747   : > { %v6047_v49 = vmax.f32 %v10912_v23, 0.0 }
 0x748   : > { %v6048_v45 = vmax.f32 %v10913_v44, 0.0 }
 0x749   : > { %v6151_v48 = vpack.c.bf16 %v6047_v49, %v6043_v2  ;;  %v15769_v2 = vld [vmem:[%s16875_s6] ss:$8 sps:$4 sm:$0xff]  }
 0x74a   : > { %v5414_v46 = vpop.f32.mrb[60].mxu1  ;;  %v6152_v24 = vpack.c.bf16 %v6048_v45, %v6044_v5  ;;  %v17424_v49 = vld [vmem:[#allocation37_spill] sm:$0xff] }
 0x74b   : > { %v10914_v17 = vadd.f32 %v5414_v46, %v17419_v57  ;;  %v5416_v50 = vpop.f32.mrb[61].mxu1 }
 0x74c   : > { %v10915_v32 = vadd.f32 %v5416_v50, %v17419_v57  ;;  %v5418_v13 = vpop.f32.mrb[62].mxu1  ;;  %6397 = vmatprep.subr.bf16.mxu1 %v6152_v24 }
 0x74d   : > { %v10916_v12 = vadd.f32 %v5418_v13, %v17420_v33  ;;  %v5420_v63 = vpop.f32.mrb[63].mxu1  ;;  %6398 = vmatpush1.bf16.msra.mxu1 %v6151_v48  ;;  %v6051_v47 = vmax.f32 %v10914_v17, 0.0  ;;  %v15775_v48 = vld [vmem:[%s16875_s6 + $0x14] ss:$8 sps:$4 sm:$0xff]   ;;  %v17425_v13 = vld [vmem:[#allocation54_spill] sm:$0xff] }
 0x74e   : > { %v10917_v6 = vadd.f32 %v5420_v63, %v17420_v33  ;;  %v6052_v61 = vmax.f32 %v10915_v32, 0.0 }
 0x74f   : > { %v6055_v19 = vmax.f32 %v10916_v12, 0.0 }
 0x750   : > { %v6056_v9 = vmax.f32 %v10917_v6, 0.0 }
 0x751   : > { %v6155_v22 = vpack.c.bf16 %v6055_v19, %v6051_v47  ;;  %v15792_v19 = vld [vmem:[%s16875_s6 + $0x10] ss:$8 sps:$4 sm:$0xff]  }
 0x752   : > { %v5424_v20 = vpop.f32.mrb[64].mxu1  ;;  %v6156_v41 = vpack.c.bf16 %v6056_v9, %v6052_v61  ;;  %v17426_v61 = vld [vmem:[#allocation41_spill] sm:$0xff] }
 0x753   : > { %v10918_v27 = vadd.f32 %v5424_v20, %v17421_v60  ;;  %v5426_v53 = vpop.f32.mrb[65].mxu1  ;;  %v17427_v20 = vld [vmem:[#allocation26_spill] sm:$0xff] }
 0x754   : > { %v10919_v59 = vadd.f32 %v5426_v53, %v17421_v60  ;;  %v5428_v14 = vpop.f32.mrb[66].mxu1  ;;  %6399 = vmatprep.subr.bf16.mxu1 %v6156_v41 }
 0x755   : > { %v10920_v39 = vadd.f32 %v5428_v14, %v17422_v8  ;;  %v5430_v62 = vpop.f32.mrb[67].mxu1  ;;  %6400 = vmatpush1.bf16.msra.mxu1 %v6155_v22  ;;  %v6059_v15 = vmax.f32 %v10918_v27, 0.0 }
 0x756   : > { %v10921_v30 = vadd.f32 %v5430_v62, %v17422_v8  ;;  %v6060_v18 = vmax.f32 %v10919_v59, 0.0  ;;  %v17428_v8 = vld [vmem:[#allocation9_spill] sm:$0xff] }
 0x757   : > { %v6063_v29 = vmax.f32 %v10920_v39, 0.0 }
 0x758   : > { %v6064_v54 = vmax.f32 %v10921_v30, 0.0 }
 0x759   : > { %v6159_v31 = vpack.c.bf16 %v6063_v29, %v6059_v15  ;;  %v15816_v29 = vld [vmem:[%s16875_s6 + $0x20] ss:$8 sps:$4 sm:$0xff]  }
 0x75a   : > { %v5434_v3 = vpop.f32.mrb[68].mxu1  ;;  %v6160_v1 = vpack.c.bf16 %v6064_v54, %v6060_v18  ;;  %v17429_v54 = vld [vmem:[#allocation57_spill] sm:$0xff] }
 0x75b   : > { %v10922_v16 = vadd.f32 %v5434_v3, %v17423_v38  ;;  %v5436_v23 = vpop.f32.mrb[69].mxu1 }
 0x75c   : > { %v10923_v7 = vadd.f32 %v5436_v23, %v17423_v38  ;;  %v5438_v44 = vpop.f32.mrb[70].mxu1  ;;  %6401 = vmatprep.subr.bf16.mxu1 %v6160_v1  ;;  %v17430_v1 = vld [vmem:[#allocation29_spill] sm:$0xff] }
 0x75d   : > { %v10924_v5 = vadd.f32 %v5438_v44, %v17424_v49  ;;  %v5440_v45 = vpop.f32.mrb[71].mxu1  ;;  %6402 = vmatpush1.bf16.msra.mxu1 %v6159_v31  ;;  %v6067_v24 = vmax.f32 %v10922_v16, 0.0  ;;  %v15823_v31 = vld [vmem:[%s16875_s6 + $0x34] ss:$8 sps:$4 sm:$0xff]   ;;  %v17431_v44 = vld [vmem:[#allocation5_spill] sm:$0xff] }
 0x75e   : > { %v10925_v46 = vadd.f32 %v5440_v45, %v17424_v49  ;;  %6484 = vmatprep.subr.bf16.mxu1 %v15544_v55  ;;  %v6068_v17 = vmax.f32 %v10923_v7, 0.0 }
 0x75f   : > { %v6071_v57 = vmax.f32 %v10924_v5, 0.0  ;;  %v17432_v5 = vld [vmem:[#allocation13_spill] sm:$0xff] }
 0x760   : > { %v6072_v50 = vmax.f32 %v10925_v46, 0.0  ;;  %6404 = vmatmul.mubr.bf16.vlgmr.msra.gmra.mrb[84].mxu1 %v15769_v2 }
 0x761   : > { %v15780_v32 = vpack.c.bf16 %v6071_v57, %v6067_v24  ;;  %6485 = vmatpush1.bf16.msra.mxu1 %v17425_v13  ;;  %6413 = vmatprep.mubr.bf16.mxu1 %v15775_v48 }
 0x762   : > { %v5444_v33 = vpop.f32.mrb[72].mxu1  ;;  %6486 = vmatprep.subr.bf16.mxu1 %v15557_v37  ;;  %v15785_v12 = vpack.c.bf16 %v6072_v50, %v6068_v17  ;;  %v15799_v37 = vld [vmem:[%s16875_s6 + $0x24] ss:$8 sps:$4 sm:$0xff]   ;;  %v11764_v17 = vld [vmem:[%s16875_s6 + $0x30] ss:$8 sps:$4 sm:$0xff]  }
 0x763   : > { %v10926_v63 = vadd.f32 %v5444_v33, %v15218_v42  ;;  %v5446_v55 = vpop.f32.mrb[73].mxu1  ;;  %v17433_v33 = vld [vmem:[#allocation64_spill] sm:$0xff] }
 0x764   : > { %v10927_v6 = vadd.f32 %v5446_v55, %v15218_v42  ;;  %v5448_v47 = vpop.f32.mrb[74].mxu1 }
 0x765   : > { %v10928_v9 = vadd.f32 %v5448_v47, %v17426_v61  ;;  %v5450_v22 = vpop.f32.mrb[75].mxu1  ;;  %6487 = vmatpush1.bf16.msra.mxu1 %v17427_v20  ;;  %v6075_v42 = vmax.f32 %v10926_v63, 0.0  ;;  %v11765_v63 = vld [vmem:[%s16875_s6 + $0x44] ss:$8 sps:$4 sm:$0xff]   ;;  %v17435_v20 = vld [vmem:[#allocation8_spill] sm:$0xff] }
 0x766   : > { %v10929_v41 = vadd.f32 %v5450_v22, %v17426_v61  ;;  %6488 = vmatprep.subr.bf16.mxu1 %v15569_v26  ;;  %v6076_v27 = vmax.f32 %v10927_v6, 0.0  ;;  %v17434_v6 = vld [vmem:[#allocation70_spill] sm:$0xff] }
 0x767   : > { %v6079_v60 = vmax.f32 %v10928_v9, 0.0 }
 0x768   : > { %v6080_v53 = vmax.f32 %v10929_v41, 0.0  ;;  %6414 = vmatmul.mubr.bf16.gmra.mrb[88].mxu1 %v15792_v19  ;;  %v17436_v41 = vld [vmem:[#allocation17_spill] sm:$0xff] }
 0x769   : > { %v15804_v59 = vpack.c.bf16 %v6079_v60, %v6075_v42  ;;  %6489 = vmatpush1.bf16.msra.mxu1 %v15571_v25  ;;  %6423 = vmatprep.mubr.bf16.mxu1 %v15799_v37  ;;  %v17437_v60 = vld [vmem:[#allocation28_spill] sm:$0xff] }
 0x76a   : > { %v5454_v14 = vpop.f32.mrb[76].mxu1  ;;  %6490 = vmatprep.subr.bf16.mxu1 %v17428_v8  ;;  %v15809_v39 = vpack.c.bf16 %v6080_v53, %v6076_v27  ;;  %v11768_v27 = vld [vmem:[%s16875_s6 + $0x54] ss:$8 sps:$4 sm:$0xff]   ;;  %v17438_v53 = vld [vmem:[#allocation69_spill] sm:$0xff] }
 0x76b   : > { %v10930_v62 = vadd.f32 %v5454_v14, %v15240_v36  ;;  %v5456_v26 = vpop.f32.mrb[77].mxu1  ;;  %v17439_v14 = vld [vmem:[#allocation12_spill] sm:$0xff]  ;;  %v17440_v8 = vld [vmem:[#allocation19_spill] sm:$0xff] }
 0x76c   : > { %v10931_v30 = vadd.f32 %v5456_v26, %v15240_v36  ;;  %v5458_v15 = vpop.f32.mrb[78].mxu1  ;;  %v17441_v26 = vld [vmem:[#allocation16_spill] sm:$0xff] }
 0x76d   : > { %v10932_v25 = vadd.f32 %v5458_v15, %v15196_v56  ;;  %v5460_v18 = vpop.f32.mrb[79].mxu1  ;;  %6491 = vmatpush1.bf16.msra.mxu1 %v17429_v54  ;;  %v6083_v36 = vmax.f32 %v10930_v62, 0.0  ;;  %v11770_v62 = vld [vmem:[%s16875_s6 + $0x50] ss:$8 sps:$4 sm:$0xff]   ;;  %v11773_v54 = vld [vmem:[%s16875_s6 + $0x60] ss:$8 sps:$4 sm:$0xff]  }
 0x76e   : > { %v10933_v3 = vadd.f32 %v5460_v18, %v15196_v56  ;;  %6492 = vmatprep.subr.bf16.mxu1 %v17430_v1  ;;  %v6084_v16 = vmax.f32 %v10931_v30, 0.0  ;;  %v11771_v30 = vld [vmem:[%s16875_s6 + $0x64] ss:$8 sps:$4 sm:$0xff]   ;;  %v17442_v15 = vld [vmem:[#allocation79_spill] sm:$0xff] }
 0x76f   : > { %v6087_v38 = vmax.f32 %v10932_v25, 0.0  ;;  %v17443_v25 = vld [vmem:[#allocation32_spill] sm:$0xff]  ;;  %v17444_v18 = vld [vmem:[#allocation82_spill] sm:$0xff] }
 0x770   : > { %v6088_v23 = vmax.f32 %v10933_v3, 0.0  ;;  %6424 = vmatmul.mubr.bf16.gmra.mrb[92].mxu1 %v15816_v29  ;;  %v17445_v3 = vld [vmem:[#allocation21_spill] sm:$0xff]  ;;  %v11774_v1 = vld [vmem:[%s16875_s6 + $0x74] ss:$8 sps:$4 sm:$0xff]  }
 0x771   : > { %v15828_v7 = vpack.c.bf16 %v6087_v38, %v6083_v36  ;;  %6493 = vmatpush1.bf16.msra.mxu1 %v17431_v44  ;;  %6433 = vmatprep.mubr.bf16.mxu1 %v15823_v31  ;;  %v17446_v36 = vld [vmem:[#allocation75_spill] sm:$0xff]  ;;  %v17449_v44 = vld [vmem:[#allocation80_spill] sm:$0xff] }
 0x772   : > { %v5464_v49 = vpop.f32.mrb[80].mxu1  ;;  %6494 = vmatprep.subr.bf16.mxu1 %v17432_v5  ;;  %v15833_v45 = vpack.c.bf16 %v6088_v23, %v6084_v16  ;;  %v17447_v38 = vld [vmem:[#allocation23_spill] sm:$0xff]  ;;  %v17451_v5 = vld [vmem:[#allocation30_spill] sm:$0xff] }
 0x773   : > { %v10934_v56 = vadd.f32 %v5464_v49, %v15263_v58  ;;  %v5466_v46 = vpop.f32.mrb[81].mxu1  ;;  %v17448_v16 = vld [vmem:[#allocation31_spill] sm:$0xff]  ;;  %v17450_v49 = vld [vmem:[#allocation36_spill] sm:$0xff] }
 0x774   : > { %v10935_v24 = vadd.f32 %v5466_v46, %v15263_v58  ;;  %v5468_v57 = vpop.f32.mrb[82].mxu1  ;;  %v11776_v23 = vld [vmem:[%s16875_s6 + $0x70] ss:$8 sps:$4 sm:$0xff]  }
 0x775   : > { %v10936_v50 = vadd.f32 %v5468_v57, %v15227_v11  ;;  %v5470_v13 = vpop.f32.mrb[83].mxu1  ;;  %6495 = vmatpush1.bf16.msra.mxu1 %v17433_v33  ;;  %v6091_v47 = vmax.f32 %v10934_v56, 0.0  ;;  %v17452_v56 = vld [vmem:[#allocation40_spill] sm:$0xff]  ;;  %v17453_v46 = vld [vmem:[#allocation39_spill] sm:$0xff] }
 0x776   : > { %v10937_v55 = vadd.f32 %v5470_v13, %v15227_v11  ;;  %6496 = vmatprep.subr.bf16.mxu1 %v17434_v6  ;;  %v6092_v61 = vmax.f32 %v10935_v24, 0.0  ;;  %v11767_v11 = vld [vmem:[%s16875_s6 + $0x40] ss:$8 sps:$4 sm:$0xff]  }
 0x777   : > { %v6095_v58 = vmax.f32 %v10936_v50, 0.0  ;;  %v17455_v24 = vld [vmem:[#allocation58_spill] sm:$0xff] }
 0x778   : > { %v6096_v9 = vmax.f32 %v10937_v55, 0.0  ;;  %6434 = vmatmul.mubr.bf16.gmra.mrb[96].mxu1 %v11764_v17 }
 0x779   : > { %v15847_v22 = vpack.c.bf16 %v6095_v58, %v6091_v47  ;;  %6497 = vmatpush1.bf16.msra.mxu1 %v17435_v20  ;;  %6443 = vmatprep.mubr.bf16.mxu1 %v11765_v63  ;;  %v17456_v58 = vld [vmem:[#allocation66_spill] sm:$0xff] }
 0x77a   : > { %6498 = vmatprep.subr.bf16.mxu1 %v17436_v41  ;;  %v15851_v42 = vpack.c.bf16 %v6096_v9, %v6092_v61 }
 0x77d   : > { %6499 = vmatpush1.bf16.msra.mxu1 %v17437_v60 }
 0x77e   : > { %6500 = vmatprep.subr.bf16.mxu1 %v17438_v53 }
 0x780   : > { %6444 = vmatmul.mubr.bf16.gmra.mrb[100].mxu1 %v11767_v11 }
 0x781   : > { %6501 = vmatpush1.bf16.msra.mxu1 %v17439_v14  ;;  %6453 = vmatprep.mubr.bf16.mxu1 %v11768_v27 }
 0x782   : > { %6502 = vmatprep.subr.bf16.mxu1 %v17440_v8 }
 0x785   : > { %6503 = vmatpush1.bf16.msra.mxu1 %v17441_v26 }
 0x786   : > { %6504 = vmatprep.subr.bf16.mxu1 %v17442_v15 }
 0x788   : > { %6454 = vmatmul.mubr.bf16.gmra.mrb[104].mxu1 %v11770_v62 }
 0x789   : > { %6505 = vmatpush1.bf16.msra.mxu1 %v17443_v25  ;;  %6463 = vmatprep.mubr.bf16.mxu1 %v11771_v30 }
 0x78a   : > { %6506 = vmatprep.subr.bf16.mxu1 %v17444_v18  ;;  %v17458_v18 = vld [vmem:[#allocation11_spill] sm:$0xff] }
 0x78d   : > { %6507 = vmatpush1.bf16.msra.mxu1 %v17445_v3 }
 0x78e   : > { %6508 = vmatprep.subr.bf16.mxu1 %v17446_v36 }
 0x790   : > { %6464 = vmatmul.mubr.bf16.gmra.mrb[108].mxu1 %v11773_v54 }
 0x791   : > { %6509 = vmatpush1.bf16.msra.mxu1 %v17447_v38  ;;  %6473 = vmatprep.mubr.bf16.mxu1 %v11774_v1  ;;  %v17459_v38 = vld [vmem:[#allocation68_spill] sm:$0xff] }
 0x792   : > { %6510 = vmatprep.subr.bf16.mxu1 %v17448_v16 }
 0x795   : > { %6511 = vmatpush1.bf16.msra.mxu1 %v17449_v44 }
 0x796   : > { %6512 = vmatprep.subr.bf16.mxu1 %v17450_v49 }
 0x798   : > { %6474 = vmatmul.mubr.bf16.gmra.mrb[112].mxu1 %v11776_v23 }
 0x799   : > { %6513 = vmatpush1.bf16.msra.mxu1 %v17451_v5  ;;  %6516 = vmatprep.mubr.bf16.mxu1 %v15701_v0 }
 0x79a   : > { %6514 = vmatprep.subr.bf16.mxu1 %v17452_v56 }
 0x79d   : > { %6515 = vmatpush1.bf16.msra.mxu1 %v17453_v46 }
 0x7a0   : > { %6517 = vmatmul.mubr.bf16.vlgmr.msra.gmra.mrb[116].mxu1 %v15769_v2  ;;  %v17454_v2 = vld [vmem:[#allocation62_spill] sm:$0xff] }
 0x7a1   : > { %6526 = vmatprep.mubr.bf16.mxu1 %v15775_v48 }
 0x7a8   : > { %6527 = vmatmul.mubr.bf16.gmra.mrb[120].mxu1 %v15792_v19 }
 0x7a9   : > { %6536 = vmatprep.mubr.bf16.mxu1 %v15799_v37 }
 0x7b0   : > { %6537 = vmatmul.mubr.bf16.gmra.mrb[124].mxu1 %v15816_v29 }
 0x7b1   : > { %6546 = vmatprep.mubr.bf16.mxu1 %v15823_v31 }
 0x7b8   : > { %6547 = vmatmul.mubr.bf16.gmra.mrb[128].mxu1 %v11764_v17 }
 0x7b9   : > { %6556 = vmatprep.mubr.bf16.mxu1 %v11765_v63 }
 0x7c0   : > { %6557 = vmatmul.mubr.bf16.gmra.mrb[132].mxu1 %v11767_v11  ;;  %v17457_v11 = vld [vmem:[#allocation10_spill] sm:$0xff] }
 0x7c1   : > { %6566 = vmatprep.mubr.bf16.mxu1 %v11768_v27 }
 0x7c8   : > { %6567 = vmatmul.mubr.bf16.gmra.mrb[136].mxu1 %v11770_v62 }
 0x7c9   : > { %6576 = vmatprep.mubr.bf16.mxu1 %v11771_v30 }
 0x7d0   : > { %6577 = vmatmul.mubr.bf16.gmra.mrb[140].mxu1 %v11773_v54 }
 0x7d1   : > { %6586 = vmatprep.mubr.bf16.mxu1 %v11774_v1 }
 0x7d8   : > { %6587 = vmatmul.mubr.bf16.gmra.mrb[144].mxu1 %v11776_v23 }
 0x7d9   : > { %6805 = vmatprep.mubr.bf16.mxu1 %v17415_v28 }
 0x833   : > { %v6405_v0 = vpop.f32.mrb[84].mxu1 }
 0x834   : > { %v6406_v48 = vadd.f32 %v6405_v0, %v17454_v2  ;;  %v6407_v19 = vpop.f32.mrb[85].mxu1 }
 0x835   : > { %v6408_v37 = vadd.f32 %v6407_v19, %v17454_v2  ;;  %v6409_v29 = vpop.f32.mrb[86].mxu1 }
 0x836   : > { %v6410_v31 = vadd.f32 %v6409_v29, %v17455_v24  ;;  %v6411_v57 = vpop.f32.mrb[87].mxu1  ;;  %v6597_v50 = vmax.f32 %v6406_v48, 0.0 }
 0x837   : > { %v6412_v17 = vadd.f32 %v6411_v57, %v17455_v24  ;;  %v6598_v33 = vmax.f32 %v6408_v37, 0.0  ;;  %v17460_v37 = vld [vmem:[#allocation67_spill] sm:$0xff] }
 0x838   : > { %v6601_v13 = vmax.f32 %v6410_v31, 0.0 }
 0x839   : > { %v6602_v63 = vmax.f32 %v6412_v17, 0.0 }
 0x83a   : > { %v6661_v55 = vpack.c.bf16 %v6601_v13, %v6597_v50  ;;  %v17461_v50 = vld [vmem:[#allocation14_spill] sm:$0xff] }
 0x83b   : > { %v6415_v6 = vpop.f32.mrb[88].mxu1  ;;  %v6662_v47 = vpack.c.bf16 %v6602_v63, %v6598_v33 }
 0x83c   : > { %v6416_v61 = vadd.f32 %v6415_v6, %v17456_v58  ;;  %v6417_v9 = vpop.f32.mrb[89].mxu1 }
 0x83d   : > { %v6418_v20 = vadd.f32 %v6417_v9, %v17456_v58  ;;  %v6419_v41 = vpop.f32.mrb[90].mxu1  ;;  %6773 = vmatprep.subr.bf16.mxu1 %v6662_v47 }
 0x83e   : > { %v6420_v60 = vadd.f32 %v6419_v41, %v17457_v11  ;;  %v6421_v27 = vpop.f32.mrb[91].mxu1  ;;  %6774 = vmatpush1.bf16.msra.mxu1 %v6661_v55  ;;  %v6605_v14 = vmax.f32 %v6416_v61, 0.0 }
 0x83f   : > { %v6422_v53 = vadd.f32 %v6421_v27, %v17457_v11  ;;  %v6606_v62 = vmax.f32 %v6418_v20, 0.0 }
 0x840   : > { %v6609_v8 = vmax.f32 %v6420_v60, 0.0  ;;  %v17462_v60 = vld [vmem:[#allocation72_spill] sm:$0xff] }
 0x841   : > { %v6610_v26 = vmax.f32 %v6422_v53, 0.0 }
 0x842   : > { %v6665_v30 = vpack.c.bf16 %v6609_v8, %v6605_v14 }
 0x843   : > { %v6425_v15 = vpop.f32.mrb[92].mxu1  ;;  %v6666_v25 = vpack.c.bf16 %v6610_v26, %v6606_v62  ;;  %v17463_v62 = vld [vmem:[#allocation73_spill] sm:$0xff] }
 0x844   : > { %v6426_v54 = vadd.f32 %v6425_v15, %v17458_v18  ;;  %v6427_v3 = vpop.f32.mrb[93].mxu1 }
 0x845   : > { %v6428_v1 = vadd.f32 %v6427_v3, %v17458_v18  ;;  %v6429_v36 = vpop.f32.mrb[94].mxu1  ;;  %6775 = vmatprep.subr.bf16.mxu1 %v6666_v25 }
 0x846   : > { %v6430_v16 = vadd.f32 %v6429_v36, %v17459_v38  ;;  %v6431_v23 = vpop.f32.mrb[95].mxu1  ;;  %6776 = vmatpush1.bf16.msra.mxu1 %v6665_v30  ;;  %v6613_v49 = vmax.f32 %v6426_v54, 0.0 }
 0x847   : > { %v6432_v44 = vadd.f32 %v6431_v23, %v17459_v38  ;;  %v6614_v56 = vmax.f32 %v6428_v1, 0.0 }
 0x848   : > { %v6617_v5 = vmax.f32 %v6430_v16, 0.0 }
 0x849   : > { %v6618_v46 = vmax.f32 %v6432_v44, 0.0  ;;  %v17464_v44 = vld [vmem:[#allocation78_spill] sm:$0xff] }
 0x84a   : > { %v6669_v0 = vpack.c.bf16 %v6617_v5, %v6613_v49 }
 0x84b   : > { %v6435_v48 = vpop.f32.mrb[96].mxu1  ;;  %v6670_v19 = vpack.c.bf16 %v6618_v46, %v6614_v56 }
 0x84c   : > { %v6436_v29 = vadd.f32 %v6435_v48, %v17460_v37  ;;  %v6437_v31 = vpop.f32.mrb[97].mxu1 }
 0x84d   : > { %v6438_v57 = vadd.f32 %v6437_v31, %v17460_v37  ;;  %v6439_v17 = vpop.f32.mrb[98].mxu1  ;;  %6777 = vmatprep.subr.bf16.mxu1 %v6670_v19 }
 0x84e   : > { %v6440_v13 = vadd.f32 %v6439_v17, %v17461_v50  ;;  %v6441_v33 = vpop.f32.mrb[99].mxu1  ;;  %6778 = vmatpush1.bf16.msra.mxu1 %v6669_v0  ;;  %v6621_v55 = vmax.f32 %v6436_v29, 0.0  ;;  %v17465_v0 = vld [vmem:[#allocation18_spill] sm:$0xff] }
 0x84f   : > { %v6442_v63 = vadd.f32 %v6441_v33, %v17461_v50  ;;  %v6622_v47 = vmax.f32 %v6438_v57, 0.0 }
 0x850   : > { %v6625_v6 = vmax.f32 %v6440_v13, 0.0 }
 0x851   : > { %v6626_v61 = vmax.f32 %v6442_v63, 0.0 }
 0x852   : > { %v6673_v9 = vpack.c.bf16 %v6625_v6, %v6621_v55  ;;  %v17466_v6 = vld [vmem:[#allocation81_spill] sm:$0xff] }
 0x853   : > { %v6445_v20 = vpop.f32.mrb[100].mxu1  ;;  %v6674_v41 = vpack.c.bf16 %v6626_v61, %v6622_v47 }
 0x854   : > { %v6446_v27 = vadd.f32 %v6445_v20, %v17462_v60  ;;  %v6447_v53 = vpop.f32.mrb[101].mxu1 }
 0x855   : > { %v6448_v14 = vadd.f32 %v6447_v53, %v17462_v60  ;;  %v6449_v8 = vpop.f32.mrb[102].mxu1  ;;  %6779 = vmatprep.subr.bf16.mxu1 %v6674_v41  ;;  %v17467_v41 = vld [vmem:[#allocation15_spill] sm:$0xff] }
 0x856   : > { %v6450_v26 = vadd.f32 %v6449_v8, %v17463_v62  ;;  %v6451_v30 = vpop.f32.mrb[103].mxu1  ;;  %6780 = vmatpush1.bf16.msra.mxu1 %v6673_v9  ;;  %v6629_v25 = vmax.f32 %v6446_v27, 0.0 }
 0x857   : > { %v6452_v15 = vadd.f32 %v6451_v30, %v17463_v62  ;;  %v6630_v3 = vmax.f32 %v6448_v14, 0.0 }
 0x858   : > { %v6633_v54 = vmax.f32 %v6450_v26, 0.0 }
 0x859   : > { %v6634_v1 = vmax.f32 %v6452_v15, 0.0 }
 0x85a   : > { %v6677_v36 = vpack.c.bf16 %v6633_v54, %v6629_v25 }
 0x85b   : > { %v6455_v16 = vpop.f32.mrb[104].mxu1  ;;  %v6678_v23 = vpack.c.bf16 %v6634_v1, %v6630_v3  ;;  %v17468_v1 = vld [vmem:[#allocation76_spill] sm:$0xff] }
 0x85c   : > { %v6456_v49 = vadd.f32 %v6455_v16, %v17464_v44  ;;  %v6457_v5 = vpop.f32.mrb[105].mxu1 }
 0x85d   : > { %v6458_v56 = vadd.f32 %v6457_v5, %v17464_v44  ;;  %v6459_v46 = vpop.f32.mrb[106].mxu1  ;;  %6781 = vmatprep.subr.bf16.mxu1 %v6678_v23  ;;  %v17469_v5 = vld [vmem:[#allocation20_spill] sm:$0xff] }
 0x85e   : > { %v6460_v48 = vadd.f32 %v6459_v46, %v17465_v0  ;;  %v6461_v19 = vpop.f32.mrb[107].mxu1  ;;  %6782 = vmatpush1.bf16.msra.mxu1 %v6677_v36  ;;  %v6637_v31 = vmax.f32 %v6456_v49, 0.0 }
 0x85f   : > { %v6462_v29 = vadd.f32 %v6461_v19, %v17465_v0  ;;  %v6638_v17 = vmax.f32 %v6458_v56, 0.0 }
 0x860   : > { %v6641_v57 = vmax.f32 %v6460_v48, 0.0 }
 0x861   : > { %v6642_v13 = vmax.f32 %v6462_v29, 0.0 }
 0x862   : > { %v6681_v33 = vpack.c.bf16 %v6641_v57, %v6637_v31 }
 0x863   : > { %v6465_v63 = vpop.f32.mrb[108].mxu1  ;;  %v6682_v55 = vpack.c.bf16 %v6642_v13, %v6638_v17 }
 0x864   : > { %v6466_v47 = vadd.f32 %v6465_v63, %v17466_v6  ;;  %v6467_v61 = vpop.f32.mrb[109].mxu1 }
 0x865   : > { %v6468_v9 = vadd.f32 %v6467_v61, %v17466_v6  ;;  %v6469_v20 = vpop.f32.mrb[110].mxu1  ;;  %6783 = vmatprep.subr.bf16.mxu1 %v6682_v55 }
 0x866   : > { %v6470_v27 = vadd.f32 %v6469_v20, %v17467_v41  ;;  %v6471_v53 = vpop.f32.mrb[111].mxu1  ;;  %6784 = vmatpush1.bf16.msra.mxu1 %v6681_v33  ;;  %v6645_v8 = vmax.f32 %v6466_v47, 0.0 }
 0x867   : > { %v6472_v14 = vadd.f32 %v6471_v53, %v17467_v41  ;;  %v6646_v30 = vmax.f32 %v6468_v9, 0.0  ;;  %v15936_v9 = vld [vmem:[%s16877_s8] sm:$0xff]  }
 0x868   : > { %v6649_v26 = vmax.f32 %v6470_v27, 0.0 }
 0x869   : > { %v6650_v15 = vmax.f32 %v6472_v14, 0.0 }
 0x86a   : > { %v6685_v25 = vpack.c.bf16 %v6649_v26, %v6645_v8 }
 0x86b   : > { %v6475_v54 = vpop.f32.mrb[112].mxu1  ;;  %v6686_v3 = vpack.c.bf16 %v6650_v15, %v6646_v30 }
 0x86c   : > { %v6476_v36 = vadd.f32 %v6475_v54, %v17468_v1  ;;  %v6477_v16 = vpop.f32.mrb[113].mxu1 }
 0x86d   : > { %v6478_v23 = vadd.f32 %v6477_v16, %v17468_v1  ;;  %v6479_v49 = vpop.f32.mrb[114].mxu1  ;;  %6785 = vmatprep.subr.bf16.mxu1 %v6686_v3 }
 0x86e   : > { %v6480_v56 = vadd.f32 %v6479_v49, %v17469_v5  ;;  %v6481_v46 = vpop.f32.mrb[115].mxu1  ;;  %6786 = vmatpush1.bf16.msra.mxu1 %v6685_v25  ;;  %v6653_v19 = vmax.f32 %v6476_v36, 0.0 }
 0x86f   : > { %v6482_v48 = vadd.f32 %v6481_v46, %v17469_v5  ;;  %v6654_v31 = vmax.f32 %v6478_v23, 0.0 }
 0x870   : > { %v6657_v29 = vmax.f32 %v6480_v56, 0.0 }
 0x871   : > { %v6658_v57 = vmax.f32 %v6482_v48, 0.0 }
 0x872   : > { %v6689_v17 = vpack.c.bf16 %v6657_v29, %v6653_v19 }
 0x873   : > { %v6518_v13 = vpop.f32.mrb[116].mxu1  ;;  %v6690_v33 = vpack.c.bf16 %v6658_v57, %v6654_v31 }
 0x874   : > { %v6519_v63 = vadd.f32 %v6518_v13, %v17454_v2  ;;  %v6520_v55 = vpop.f32.mrb[117].mxu1 }
 0x875   : > { %v6521_v47 = vadd.f32 %v6520_v55, %v17454_v2  ;;  %v6522_v61 = vpop.f32.mrb[118].mxu1  ;;  %6787 = vmatprep.subr.bf16.mxu1 %v6690_v33 }
 0x876   : > { %v6523_v20 = vadd.f32 %v6522_v61, %v17455_v24  ;;  %v6524_v27 = vpop.f32.mrb[119].mxu1  ;;  %6788 = vmatpush1.bf16.msra.mxu1 %v6689_v17  ;;  %v6599_v14 = vmax.f32 %v6519_v63, 0.0 }
 0x877   : > { %v6525_v53 = vadd.f32 %v6524_v27, %v17455_v24  ;;  %v6600_v26 = vmax.f32 %v6521_v47, 0.0  ;;  %v15947_v24 = vld [vmem:[%s16877_s8 + $0x8] sm:$0xff]  }
 0x878   : > { %v6603_v8 = vmax.f32 %v6523_v20, 0.0 }
 0x879   : > { %v6604_v30 = vmax.f32 %v6525_v53, 0.0  ;;  %6806 = vmatmul.mubr.bf16.vlgmr.msra.gmra.mrb[148].mxu1 %v15936_v9 }
 0x87a   : > { %v6663_v2 = vpack.c.bf16 %v6603_v8, %v6599_v14  ;;  %6815 = vmatprep.mubr.bf16.mxu1 %v17415_v28 }
 0x87b   : > { %v6528_v15 = vpop.f32.mrb[120].mxu1  ;;  %v6664_v25 = vpack.c.bf16 %v6604_v30, %v6600_v26 }
 0x87c   : > { %v6529_v54 = vadd.f32 %v6528_v15, %v17456_v58  ;;  %v6530_v3 = vpop.f32.mrb[121].mxu1 }
 0x87d   : > { %v6531_v36 = vadd.f32 %v6530_v3, %v17456_v58  ;;  %v6532_v16 = vpop.f32.mrb[122].mxu1  ;;  %6846 = vmatprep.subr.bf16.mxu1 %v6664_v25 }
 0x87e   : > { %v6533_v23 = vadd.f32 %v6532_v16, %v17457_v11  ;;  %v6534_v49 = vpop.f32.mrb[123].mxu1  ;;  %6847 = vmatpush1.bf16.msra.mxu1 %v6663_v2  ;;  %v6607_v46 = vmax.f32 %v6529_v54, 0.0 }
 0x87f   : > { %v6535_v56 = vadd.f32 %v6534_v49, %v17457_v11  ;;  %v6608_v19 = vmax.f32 %v6531_v36, 0.0  ;;  %v15958_v11 = vld [vmem:[%s16877_s8 + $0x10] sm:$0xff]  }
 0x880   : > { %v6611_v48 = vmax.f32 %v6533_v23, 0.0 }
 0x881   : > { %v6612_v29 = vmax.f32 %v6535_v56, 0.0  ;;  %6816 = vmatmul.mubr.bf16.gmra.mrb[152].mxu1 %v15947_v24 }
 0x882   : > { %v6667_v58 = vpack.c.bf16 %v6611_v48, %v6607_v46  ;;  %6825 = vmatprep.mubr.bf16.mxu1 %v17415_v28 }
 0x883   : > { %v6538_v31 = vpop.f32.mrb[124].mxu1  ;;  %v6668_v57 = vpack.c.bf16 %v6612_v29, %v6608_v19 }
 0x884   : > { %v6539_v17 = vadd.f32 %v6538_v31, %v17458_v18  ;;  %v6540_v13 = vpop.f32.mrb[125].mxu1 }
 0x885   : > { %v6541_v33 = vadd.f32 %v6540_v13, %v17458_v18  ;;  %v6542_v63 = vpop.f32.mrb[126].mxu1  ;;  %6848 = vmatprep.subr.bf16.mxu1 %v6668_v57 }
 0x886   : > { %v6543_v55 = vadd.f32 %v6542_v63, %v17459_v38  ;;  %v6544_v47 = vpop.f32.mrb[127].mxu1  ;;  %6849 = vmatpush1.bf16.msra.mxu1 %v6667_v58  ;;  %v6615_v20 = vmax.f32 %v6539_v17, 0.0 }
 0x887   : > { %v6545_v61 = vadd.f32 %v6544_v47, %v17459_v38  ;;  %v6616_v53 = vmax.f32 %v6541_v33, 0.0  ;;  %v15969_v38 = vld [vmem:[%s16877_s8 + $0x18] sm:$0xff]  }
 0x888   : > { %v6619_v27 = vmax.f32 %v6543_v55, 0.0 }
 0x889   : > { %v6620_v14 = vmax.f32 %v6545_v61, 0.0  ;;  %6826 = vmatmul.mubr.bf16.gmra.mrb[156].mxu1 %v15958_v11 }
 0x88a   : > { %v6671_v18 = vpack.c.bf16 %v6619_v27, %v6615_v20  ;;  %6835 = vmatprep.mubr.bf16.mxu1 %v17415_v28 }
 0x88b   : > { %v6548_v8 = vpop.f32.mrb[128].mxu1  ;;  %v6672_v26 = vpack.c.bf16 %v6620_v14, %v6616_v53 }
 0x88c   : > { %v6549_v30 = vadd.f32 %v6548_v8, %v17460_v37  ;;  %v6550_v2 = vpop.f32.mrb[129].mxu1 }
 0x88d   : > { %v6551_v15 = vadd.f32 %v6550_v2, %v17460_v37  ;;  %v6552_v25 = vpop.f32.mrb[130].mxu1  ;;  %6850 = vmatprep.subr.bf16.mxu1 %v6672_v26 }
 0x88e   : > { %v6553_v54 = vadd.f32 %v6552_v25, %v17461_v50  ;;  %v6554_v3 = vpop.f32.mrb[131].mxu1  ;;  %6851 = vmatpush1.bf16.msra.mxu1 %v6671_v18  ;;  %v6623_v16 = vmax.f32 %v6549_v30, 0.0 }
 0x88f   : > { %v6555_v36 = vadd.f32 %v6554_v3, %v17461_v50  ;;  %v6624_v49 = vmax.f32 %v6551_v15, 0.0 }
 0x890   : > { %v6627_v23 = vmax.f32 %v6553_v54, 0.0 }
 0x891   : > { %v6628_v56 = vmax.f32 %v6555_v36, 0.0  ;;  %6836 = vmatmul.mubr.bf16.gmra.mrb[160].mxu1 %v15969_v38 }
 0x892   : > { %v6675_v37 = vpack.c.bf16 %v6627_v23, %v6623_v16  ;;  %6878 = vmatprep.mubr.bf16.mxu1 %v17415_v28 }
 0x893   : > { %v6558_v46 = vpop.f32.mrb[132].mxu1  ;;  %v6676_v48 = vpack.c.bf16 %v6628_v56, %v6624_v49 }
 0x894   : > { %v6559_v19 = vadd.f32 %v6558_v46, %v17462_v60  ;;  %v6560_v29 = vpop.f32.mrb[133].mxu1 }
 0x895   : > { %v6561_v58 = vadd.f32 %v6560_v29, %v17462_v60  ;;  %v6562_v31 = vpop.f32.mrb[134].mxu1  ;;  %6852 = vmatprep.subr.bf16.mxu1 %v6676_v48 }
 0x896   : > { %v6563_v50 = vadd.f32 %v6562_v31, %v17463_v62  ;;  %v6564_v57 = vpop.f32.mrb[135].mxu1  ;;  %6853 = vmatpush1.bf16.msra.mxu1 %v6675_v37  ;;  %v6631_v13 = vmax.f32 %v6559_v19, 0.0 }
 0x897   : > { %v6565_v17 = vadd.f32 %v6564_v57, %v17463_v62  ;;  %v6632_v63 = vmax.f32 %v6561_v58, 0.0 }
 0x898   : > { %v6635_v33 = vmax.f32 %v6563_v50, 0.0 }
 0x899   : > { %v6636_v55 = vmax.f32 %v6565_v17, 0.0 }
 0x89a   : > { %v6679_v47 = vpack.c.bf16 %v6635_v33, %v6631_v13 }
 0x89b   : > { %v6568_v61 = vpop.f32.mrb[136].mxu1  ;;  %v6680_v20 = vpack.c.bf16 %v6636_v55, %v6632_v63 }
 0x89c   : > { %v6569_v27 = vadd.f32 %v6568_v61, %v17464_v44  ;;  %v6570_v53 = vpop.f32.mrb[137].mxu1 }
 0x89d   : > { %v6571_v60 = vadd.f32 %v6570_v53, %v17464_v44  ;;  %v6572_v14 = vpop.f32.mrb[138].mxu1  ;;  %6854 = vmatprep.subr.bf16.mxu1 %v6680_v20 }
 0x89e   : > { %v6573_v18 = vadd.f32 %v6572_v14, %v17465_v0  ;;  %v6574_v8 = vpop.f32.mrb[139].mxu1  ;;  %6855 = vmatpush1.bf16.msra.mxu1 %v6679_v47  ;;  %v6639_v26 = vmax.f32 %v6569_v27, 0.0 }
 0x89f   : > { %v6575_v62 = vadd.f32 %v6574_v8, %v17465_v0  ;;  %v6640_v2 = vmax.f32 %v6571_v60, 0.0 }
 0x8a0   : > { %v6643_v30 = vmax.f32 %v6573_v18, 0.0  ;;  %v17471_v18 = vld [vmem:[#allocation22_spill] sm:$0xff] }
 0x8a1   : > { %v6644_v15 = vmax.f32 %v6575_v62, 0.0 }
 0x8a2   : > { %v6683_v25 = vpack.c.bf16 %v6643_v30, %v6639_v26 }
 0x8a3   : > { %v6684_v54 = vpack.c.bf16 %v6644_v15, %v6640_v2  ;;  %v6578_v3 = vpop.f32.mrb[140].mxu1 }
 0x8a4   : > { %v6579_v36 = vadd.f32 %v6578_v3, %v17466_v6  ;;  %v6580_v16 = vpop.f32.mrb[141].mxu1 }
 0x8a5   : > { %v6581_v44 = vadd.f32 %v6580_v16, %v17466_v6  ;;  %v6582_v23 = vpop.f32.mrb[142].mxu1  ;;  %6856 = vmatprep.subr.bf16.mxu1 %v6684_v54  ;;  %v17472_v54 = vld [vmem:[#allocation34_spill] sm:$0xff] }
 0x8a6   : > { %v6583_v49 = vadd.f32 %v6582_v23, %v17467_v41  ;;  %v6584_v56 = vpop.f32.mrb[143].mxu1  ;;  %6857 = vmatpush1.bf16.msra.mxu1 %v6683_v25  ;;  %v6647_v37 = vmax.f32 %v6579_v36, 0.0  ;;  %v17473_v23 = vld [vmem:[#allocation74_spill] sm:$0xff] }
 0x8a7   : > { %v6585_v0 = vadd.f32 %v6584_v56, %v17467_v41  ;;  %v6648_v48 = vmax.f32 %v6581_v44, 0.0 }
 0x8a8   : > { %v6651_v46 = vmax.f32 %v6583_v49, 0.0 }
 0x8a9   : > { %v6652_v19 = vmax.f32 %v6585_v0, 0.0 }
 0x8aa   : > { %v6687_v29 = vpack.c.bf16 %v6651_v46, %v6647_v37 }
 0x8ab   : > { %v6688_v58 = vpack.c.bf16 %v6652_v19, %v6648_v48  ;;  %v6588_v31 = vpop.f32.mrb[144].mxu1 }
 0x8ac   : > { %v6589_v50 = vadd.f32 %v6588_v31, %v17468_v1  ;;  %v6590_v57 = vpop.f32.mrb[145].mxu1 }
 0x8ad   : > { %v6591_v6 = vadd.f32 %v6590_v57, %v17468_v1  ;;  %v6592_v17 = vpop.f32.mrb[146].mxu1  ;;  %6858 = vmatprep.subr.bf16.mxu1 %v6688_v58 }
 0x8ae   : > { %v6593_v13 = vadd.f32 %v6592_v17, %v17469_v5  ;;  %v6594_v33 = vpop.f32.mrb[147].mxu1  ;;  %6859 = vmatpush1.bf16.msra.mxu1 %v6687_v29  ;;  %v6655_v63 = vmax.f32 %v6589_v50, 0.0  ;;  %v17474_v50 = vld [vmem:[#allocation38_spill] sm:$0xff] }
 0x8af   : > { %v6595_v41 = vadd.f32 %v6594_v33, %v17469_v5  ;;  %v6656_v47 = vmax.f32 %v6591_v6, 0.0  ;;  %v17470_v5 = vld [vmem:[#allocation33_spill] sm:$0xff] }
 0x8b0   : > { %v6659_v55 = vmax.f32 %v6593_v13, 0.0  ;;  %v17475_v33 = vld [vmem:[#allocation77_spill] sm:$0xff] }
 0x8b1   : > { %v6660_v61 = vmax.f32 %v6595_v41, 0.0 }
 0x8b2   : > { %v6691_v20 = vpack.c.bf16 %v6659_v55, %v6655_v63 }
 0x8b3   : > { %v6692_v27 = vpack.c.bf16 %v6660_v61, %v6656_v47 }
 0x8b5   : > { %6860 = vmatprep.subr.bf16.mxu1 %v6692_v27 }
 0x8b6   : > { %6861 = vmatpush1.bf16.msra.mxu1 %v6691_v20 }
 0x8b9   : > { %6879 = vmatmul.mubr.bf16.vlgmr.msra.gmra.mrb[164].mxu1 %v15936_v9 }
 0x8ba   : > { %6888 = vmatprep.mubr.bf16.mxu1 %v17415_v28 }
 0x8c1   : > { %6889 = vmatmul.mubr.bf16.gmra.mrb[168].mxu1 %v15947_v24 }
 0x8c2   : > { %6898 = vmatprep.mubr.bf16.mxu1 %v17415_v28 }
 0x8c9   : > { %6899 = vmatmul.mubr.bf16.gmra.mrb[172].mxu1 %v15958_v11 }
 0x8ca   : > { %6908 = vmatprep.mubr.bf16.mxu1 %v17415_v28 }
 0x8d1   : > { %6909 = vmatmul.mubr.bf16.gmra.mrb[176].mxu1 %v15969_v38 }
 0x8d2   : > { %7004 = vmatprep.mubr.bf16.mxu1 %v17415_v28 }
 0x94c   : > { %v6807_v1 = vpop.f32.mrb[148].mxu1 }
 0x94d   : > { %v6808_v53 = vadd.f32 %v6807_v1, %v17470_v5  ;;  %v6809_v60 = vpop.f32.mrb[149].mxu1 }
 0x94e   : > { %v6810_v9 = vadd.f32 %v6809_v60, %v17470_v5  ;;  %v6811_v14 = vpop.f32.mrb[150].mxu1 }
 0x94f   : > { %v6812_v8 = vadd.f32 %v6811_v14, %v17471_v18  ;;  %v6813_v24 = vpop.f32.mrb[151].mxu1  ;;  %v6919_v26 = vmax.f32 %v6808_v53, 0.0 }
 0x950   : > { %v6814_v62 = vadd.f32 %v6813_v24, %v17471_v18  ;;  %v6920_v30 = vmax.f32 %v6810_v9, 0.0  ;;  %v17476_v9 = vld [vmem:[#allocation43_spill] sm:$0xff] }
 0x951   : > { %v6923_v11 = vmax.f32 %v6812_v8, 0.0 }
 0x952   : > { %v6924_v2 = vmax.f32 %v6814_v62, 0.0 }
 0x953   : > { %v6951_v15 = vpack.c.bf16 %v6923_v11, %v6919_v26  ;;  %v17477_v26 = vld [vmem:[#allocation35_spill] sm:$0xff] }
 0x954   : > { %v6952_v38 = vpack.c.bf16 %v6924_v2, %v6920_v30  ;;  %v6817_v25 = vpop.f32.mrb[152].mxu1 }
 0x955   : > { %v6818_v3 = vadd.f32 %v6817_v25, %v17472_v54  ;;  %v6819_v36 = vpop.f32.mrb[153].mxu1 }
 0x956   : > { %v6820_v16 = vadd.f32 %v6819_v36, %v17472_v54  ;;  %v6821_v44 = vpop.f32.mrb[154].mxu1  ;;  %6972 = vmatprep.subr.bf16.mxu1 %v6952_v38 }
 0x957   : > { %v6822_v49 = vadd.f32 %v6821_v44, %v17473_v23  ;;  %v6823_v56 = vpop.f32.mrb[155].mxu1  ;;  %6973 = vmatpush1.bf16.msra.mxu1 %v6951_v15  ;;  %v6927_v37 = vmax.f32 %v6818_v3, 0.0  ;;  %v16018_v44 = vld [vmem:[%s16879_s10] sm:$0x3] }
 0x958   : > { %v6824_v0 = vadd.f32 %v6823_v56, %v17473_v23  ;;  %v6928_v48 = vmax.f32 %v6820_v16, 0.0 }
 0x959   : > { %v6931_v46 = vmax.f32 %v6822_v49, 0.0 }
 0x95a   : > { %v6932_v19 = vmax.f32 %v6824_v0, 0.0 }
 0x95b   : > { %v6955_v29 = vpack.c.bf16 %v6931_v46, %v6927_v37 }
 0x95c   : > { %v6956_v58 = vpack.c.bf16 %v6932_v19, %v6928_v48  ;;  %v6827_v31 = vpop.f32.mrb[156].mxu1 }
 0x95d   : > { %v6828_v57 = vadd.f32 %v6827_v31, %v17474_v50  ;;  %v6829_v6 = vpop.f32.mrb[157].mxu1 }
 0x95e   : > { %v6830_v17 = vadd.f32 %v6829_v6, %v17474_v50  ;;  %v6831_v13 = vpop.f32.mrb[158].mxu1  ;;  %6974 = vmatprep.subr.bf16.mxu1 %v6956_v58 }
 0x95f   : > { %v6832_v41 = vadd.f32 %v6831_v13, %v17475_v33  ;;  %v6833_v63 = vpop.f32.mrb[159].mxu1  ;;  %6975 = vmatpush1.bf16.msra.mxu1 %v6955_v29  ;;  %v6935_v47 = vmax.f32 %v6828_v57, 0.0 }
 0x960   : > { %v6834_v55 = vadd.f32 %v6833_v63, %v17475_v33  ;;  %v6936_v20 = vmax.f32 %v6830_v17, 0.0 }
 0x961   : > { %v6939_v61 = vmax.f32 %v6832_v41, 0.0 }
 0x962   : > { %v6940_v27 = vmax.f32 %v6834_v55, 0.0 }
 0x963   : > { %v6959_v1 = vpack.c.bf16 %v6939_v61, %v6935_v47 }
 0x964   : > { %v6960_v53 = vpack.c.bf16 %v6940_v27, %v6936_v20  ;;  %v6837_v60 = vpop.f32.mrb[160].mxu1 }
 0x965   : > { %v6838_v14 = vadd.f32 %v6837_v60, %v17476_v9  ;;  %v6839_v8 = vpop.f32.mrb[161].mxu1 }
 0x966   : > { %v6840_v24 = vadd.f32 %v6839_v8, %v17476_v9  ;;  %v6841_v62 = vpop.f32.mrb[162].mxu1  ;;  %6976 = vmatprep.subr.bf16.mxu1 %v6960_v53 }
 0x967   : > { %v6842_v11 = vadd.f32 %v6841_v62, %v17477_v26  ;;  %v6843_v30 = vpop.f32.mrb[163].mxu1  ;;  %6977 = vmatpush1.bf16.msra.mxu1 %v6959_v1  ;;  %v6943_v15 = vmax.f32 %v6838_v14, 0.0 }
 0x968   : > { %v6844_v2 = vadd.f32 %v6843_v30, %v17477_v26  ;;  %v6944_v25 = vmax.f32 %v6840_v24, 0.0 }
 0x969   : > { %v6947_v38 = vmax.f32 %v6842_v11, 0.0 }
 0x96a   : > { %v6948_v3 = vmax.f32 %v6844_v2, 0.0 }
 0x96b   : > { %v6963_v36 = vpack.c.bf16 %v6947_v38, %v6943_v15 }
 0x96c   : > { %v6964_v16 = vpack.c.bf16 %v6948_v3, %v6944_v25 }
 0x96e   : > { %6978 = vmatprep.subr.bf16.mxu1 %v6964_v16 }
 0x96f   : > { %6979 = vmatpush1.bf16.msra.mxu1 %v6963_v36 }
 0x972   : > { %10630 = vmatmul.mubr.msk.bf16.vlgmr.msra.gmra.mrb[180].mxu1 %vm6968_vm0, %v16018_v44 }
 0x973   : > { %7045 = vmatprep.mubr.bf16.mxu1 %v17415_v28 }
 0x98c   : > { %v6880_v49 = vpop.f32.mrb[164].mxu1 }
 0x98d   : > { %v6881_v56 = vadd.f32 %v6880_v49, %v17470_v5  ;;  %v6882_v0 = vpop.f32.mrb[165].mxu1 }
 0x98e   : > { %v6883_v37 = vadd.f32 %v6882_v0, %v17470_v5  ;;  %v6884_v46 = vpop.f32.mrb[166].mxu1 }
 0x98f   : > { %v6885_v48 = vadd.f32 %v6884_v46, %v17471_v18  ;;  %v6886_v19 = vpop.f32.mrb[167].mxu1  ;;  %v6921_v58 = vmax.f32 %v6881_v56, 0.0 }
 0x990   : > { %v6887_v29 = vadd.f32 %v6886_v19, %v17471_v18  ;;  %v6922_v57 = vmax.f32 %v6883_v37, 0.0 }
 0x991   : > { %v6925_v31 = vmax.f32 %v6885_v48, 0.0 }
 0x992   : > { %v6926_v6 = vmax.f32 %v6887_v29, 0.0 }
 0x993   : > { %v6953_v17 = vpack.c.bf16 %v6925_v31, %v6921_v58 }
 0x994   : > { %v6954_v13 = vpack.c.bf16 %v6926_v6, %v6922_v57  ;;  %v6890_v41 = vpop.f32.mrb[168].mxu1 }
 0x995   : > { %v6891_v63 = vadd.f32 %v6890_v41, %v17472_v54  ;;  %v6892_v55 = vpop.f32.mrb[169].mxu1 }
 0x996   : > { %v6893_v47 = vadd.f32 %v6892_v55, %v17472_v54  ;;  %v6894_v61 = vpop.f32.mrb[170].mxu1  ;;  %7013 = vmatprep.subr.bf16.mxu1 %v6954_v13 }
 0x997   : > { %v6895_v5 = vadd.f32 %v6894_v61, %v17473_v23  ;;  %v6896_v20 = vpop.f32.mrb[171].mxu1  ;;  %7014 = vmatpush1.bf16.msra.mxu1 %v6953_v17  ;;  %v6929_v27 = vmax.f32 %v6891_v63, 0.0 }
 0x998   : > { %v6897_v18 = vadd.f32 %v6896_v20, %v17473_v23  ;;  %v6930_v53 = vmax.f32 %v6893_v47, 0.0 }
 0x999   : > { %v6933_v1 = vmax.f32 %v6895_v5, 0.0 }
 0x99a   : > { %v6934_v60 = vmax.f32 %v6897_v18, 0.0  ;;  %v17482_v18 = vld [vmem:[#allocation51_spill] sm:$0xff] }
 0x99b   : > { %v6957_v14 = vpack.c.bf16 %v6933_v1, %v6929_v27 }
 0x99c   : > { %v6958_v8 = vpack.c.bf16 %v6934_v60, %v6930_v53  ;;  %v6900_v24 = vpop.f32.mrb[172].mxu1 }
 0x99d   : > { %v6901_v62 = vadd.f32 %v6900_v24, %v17474_v50  ;;  %v6902_v11 = vpop.f32.mrb[173].mxu1 }
 0x99e   : > { %v6903_v54 = vadd.f32 %v6902_v11, %v17474_v50  ;;  %v6904_v30 = vpop.f32.mrb[174].mxu1  ;;  %7015 = vmatprep.subr.bf16.mxu1 %v6958_v8 }
 0x99f   : > { %v6905_v2 = vadd.f32 %v6904_v30, %v17475_v33  ;;  %v6906_v15 = vpop.f32.mrb[175].mxu1  ;;  %7016 = vmatpush1.bf16.msra.mxu1 %v6957_v14  ;;  %v6937_v38 = vmax.f32 %v6901_v62, 0.0  ;;  %v17483_v14 = vld [vmem:[#allocation25_spill] sm:$0xff] }
 0x9a0   : > { %v6907_v23 = vadd.f32 %v6906_v15, %v17475_v33  ;;  %v6938_v3 = vmax.f32 %v6903_v54, 0.0 }
 0x9a1   : > { %v6941_v25 = vmax.f32 %v6905_v2, 0.0 }
 0x9a2   : > { %v6942_v36 = vmax.f32 %v6907_v23, 0.0 }
 0x9a3   : > { %v6961_v16 = vpack.c.bf16 %v6941_v25, %v6937_v38 }
 0x9a4   : > { %v6962_v49 = vpack.c.bf16 %v6942_v36, %v6938_v3  ;;  %v6910_v56 = vpop.f32.mrb[176].mxu1  ;;  %v17484_v36 = vld [vmem:[#allocation45_spill] sm:$0xff] }
 0x9a5   : > { %v6911_v0 = vadd.f32 %v6910_v56, %v17476_v9  ;;  %v6912_v37 = vpop.f32.mrb[177].mxu1 }
 0x9a6   : > { %v6913_v50 = vadd.f32 %v6912_v37, %v17476_v9  ;;  %v6914_v46 = vpop.f32.mrb[178].mxu1  ;;  %7017 = vmatprep.subr.bf16.mxu1 %v6962_v49  ;;  %v17479_v9 = vld [vmem:[#allocation42_spill] sm:$0xff] }
 0x9a7   : > { %v6915_v48 = vadd.f32 %v6914_v46, %v17477_v26  ;;  %v6916_v19 = vpop.f32.mrb[179].mxu1  ;;  %7018 = vmatpush1.bf16.msra.mxu1 %v6961_v16  ;;  %v6945_v29 = vmax.f32 %v6911_v0, 0.0 }
 0x9a8   : > { %v6917_v33 = vadd.f32 %v6916_v19, %v17477_v26  ;;  %v6946_v31 = vmax.f32 %v6913_v50, 0.0  ;;  %v7093_v19 = vpop.permute.xlu1 %7092 }
 0x9a9   : > { %v6949_v58 = vmax.f32 %v6915_v48, 0.0 }
 0x9aa   : > { %v6950_v57 = vmax.f32 %v6917_v33, 0.0 }
 0x9ab   : > { %v6965_v6 = vpack.c.bf16 %v6949_v58, %v6945_v29 }
 0x9ac   : > { %v6966_v17 = vpack.c.bf16 %v6950_v57, %v6946_v31  ;;  %v7098_v57 = vpop.permute.xlu0 %7097 }
 0x9ae   : > { %7019 = vmatprep.subr.bf16.mxu1 %v6966_v17 }
 0x9af   : > { %7020 = vmatpush1.bf16.msra.mxu1 %v6965_v6 }
 0x9b0   : > { %7142 = vmatprep.subr.bf16.mxu1 %v15785_v12  ;;  %v17478_v12 = vld [vmem:[#allocation24_spill] sm:$0xff] }
 0x9b2   : > { %10631 = vmatmul.mubr.msk.bf16.vlgmr.msra.gmra.mrb[184].mxu1 %vm6968_vm0, %v16018_v44 }
 0x9b3   : > { %7143 = vmatpush1.bf16.msra.mxu1 %v15780_v32  ;;  %7174 = vmatprep.mubr.bf16.mxu1 %v17415_v28  ;;  %v12413_v32 = vld [vmem:[%s16880_s11] sm:$0xff]  }
 0x9b4   : > { %7144 = vmatprep.subr.bf16.mxu1 %v15809_v39 }
 0x9b7   : > { %7145 = vmatpush1.bf16.msra.mxu1 %v15804_v59  ;;  %v12414_v59 = vld [vmem:[%s16880_s11 + $0x8] sm:$0xff]  }
 0x9b8   : > { %7146 = vmatprep.subr.bf16.mxu1 %v15833_v45 }
 0x9bb   : > { %7147 = vmatpush1.bf16.msra.mxu1 %v15828_v7  ;;  %v17481_v7 = vld [vmem:[#allocation7_spill] sm:$0xff] }
 0x9bc   : > { %7148 = vmatprep.subr.bf16.mxu1 %v15851_v42 }
 0x9bf   : > { %7149 = vmatpush1.bf16.msra.mxu1 %v15847_v22 }
 0x9c0   : > { %10850 = vmatprep.subr.bf16.mxu1 %v17478_v12 }
 0x9c2   : > { %10636 = vmatmul.mubr.msk.bf16.vlgmr.msra.gmra.mrb[188].mxu1 %vm6968_vm0, %v12413_v32 }
 0x9c3   : > { %10854 = vmatpush1.bf16.msra.mxu1 %v17479_v9  ;;  %7184 = vmatprep.mubr.bf16.mxu1 %v17415_v28 }
 0x9c4   : > { %10851 = vmatprep.subr.bf16.mxu1 %v15257_v40  ;;  %v11781_v40 = vld [vmem:[%s16880_s11 + $0x10] sm:$0xff]  }
 0x9c7   : > { %10855 = vmatpush1.bf16.msra.mxu1 %v15253_v21  ;;  %v11782_v21 = vld [vmem:[%s16880_s11 + $0x18] sm:$0xff]  }
 0x9c8   : > { %10852 = vmatprep.subr.bf16.mxu1 %v15272_v34 }
 0x9ca   : > { %10637 = vmatmul.mubr.msk.bf16.gmra.mrb[192].mxu1 %vm6968_vm0, %v12414_v59 }
 0x9cb   : > { %10856 = vmatpush1.bf16.msra.mxu1 %v15275_v35  ;;  %7194 = vmatprep.mubr.bf16.mxu1 %v17415_v28  ;;  %v17480_v35 = vld [vmem:[#allocation6_spill] sm:$0xff] }
 0x9cc   : > { %10853 = vmatprep.subr.bf16.mxu1 %v15288_v52 }
 0x9cf   : > { %10857 = vmatpush1.bf16.msra.mxu1 %v15290_v43 }
 0x9d2   : > { %10638 = vmatmul.mubr.msk.bf16.gmra.mrb[196].mxu1 %vm6968_vm0, %v11781_v40 }
 0x9d3   : > { %7204 = vmatprep.mubr.bf16.mxu1 %v17415_v28 }
 0x9da   : > { %10639 = vmatmul.mubr.msk.bf16.gmra.mrb[200].mxu1 %vm6968_vm0, %v11782_v21 }
 0x9db   : > { %7267 = vmatprep.mubr.bf16.mxu1 %v17415_v28 }
 0x9e2   : > { %10642 = vmatmul.mubr.msk.bf16.vlgmr.msra.gmra.mrb[204].mxu1 %vm6968_vm0, %v11781_v40 }
 0x9e3   : > { %7277 = vmatprep.mubr.bf16.mxu1 %v17415_v28 }
 0x9ea   : > { %10643 = vmatmul.mubr.msk.bf16.gmra.mrb[208].mxu1 %vm6968_vm0, %v11782_v21 }
 0x9eb   : > { %7456 = vmatprep.mubr.bf16.mxu1 %v17415_v28 }
 0xa45   : > { %v7006_v34 = vpop.f32.mrb[180].mxu1 }
 0xa46   : > { %v10040_v52 = vadd.f32 %v7006_v34, %v17480_v35  ;;  %v10088_v43 = vrot.slane %v7006_v34, 4  ;;  %v7008_v39 = vpop.f32.mrb[181].mxu1  ;;  %v7103_v35 = vpop.permute.xlu1 %7102 }
 0xa47   : > { %v10041_v45 = vadd.f32 %v7008_v39, %v17481_v7  ;;  %v10089_v22 = vrot.slane %v7008_v39, 4  ;;  %v7010_v42 = vpop.f32.mrb[182].mxu1 }
 0xa48   : > { %10044 = vst [vmem:[%s14775_s3] sm:$0x7] %v10040_v52  ;;  %10096 = vst [vmem:[%s14775_s3] sm:$0x70] %v10088_v43  ;;  %v7011_v26 = vpop.f32.mrb[183].mxu1 }
 0xa49   : > { %10045 = vst [vmem:[%s14775_s3 + $0x8] sm:$0x7] %v10041_v45  ;;  %10097 = vst [vmem:[%s14775_s3 + $0x8] sm:$0x70] %v10089_v22  ;;  %v7108_v45 = vpop.permute.xlu0 %7107 }
 0xa85   : > { %v7047_v44 = vpop.f32.mrb[184].mxu1 }
 0xa86   : > { %v10042_v13 = vadd.f32 %v7047_v44, %v15516_v10  ;;  %v10090_v41 = vrot.slane %v7047_v44, 4  ;;  %v7049_v63 = vpop.f32.mrb[185].mxu1 }
 0xa87   : > { %v10043_v55 = vadd.f32 %v7049_v63, %v15521_v51  ;;  %v10091_v47 = vrot.slane %v7049_v63, 4  ;;  %v7051_v61 = vpop.f32.mrb[186].mxu1 }
 0xa88   : > { %10046 = vst [vmem:[%s14775_s3 + $0x10] sm:$0x7] %v10042_v13  ;;  %10098 = vst [vmem:[%s14775_s3 + $0x10] sm:$0x70] %v10090_v41  ;;  %v7052_v5 = vpop.f32.mrb[187].mxu1 }
 0xa89   : > { %10047 = vst [vmem:[%s14775_s3 + $0x18] sm:$0x7] %v10043_v55  ;;  %10099 = vst [vmem:[%s14775_s3 + $0x18] sm:$0x70] %v10091_v47 }
 0xa95   : > { %v7176_v20 = vpop.f32.mrb[188].mxu1 }
 0xa96   : > { %v7177_v27 = vadd.f32 %v7176_v20, %v17482_v18  ;;  %v7178_v1 = vpop.f32.mrb[189].mxu1 }
 0xa97   : > { %v7179_v53 = vadd.f32 %v7178_v1, %v17482_v18  ;;  %v7180_v60 = vpop.f32.mrb[190].mxu1 }
 0xa98   : > { %v7181_v10 = vadd.f32 %v7180_v60, %v17483_v14  ;;  %v7182_v8 = vpop.f32.mrb[191].mxu1  ;;  %v7288_v51 = vmax.f32 %v7177_v27, 0.0  ;;  %v11785_v60 = vld [vmem:[%s16882_s13] sm:$0xff]  }
 0xa99   : > { %v7183_v24 = vadd.f32 %v7182_v8, %v17483_v14  ;;  %v7289_v11 = vmax.f32 %v7179_v53, 0.0 }
 0xa9a   : > { %v7292_v62 = vmax.f32 %v7181_v10, 0.0 }
 0xa9b   : > { %v7293_v54 = vmax.f32 %v7183_v24, 0.0 }
 0xa9c   : > { %v7320_v30 = vpack.c.bf16 %v7292_v62, %v7288_v51 }
 0xa9d   : > { %v7321_v2 = vpack.c.bf16 %v7293_v54, %v7289_v11  ;;  %v7186_v15 = vpop.f32.mrb[192].mxu1 }
 0xa9e   : > { %v7187_v23 = vadd.f32 %v7186_v15, %v15665_v4  ;;  %v7188_v38 = vpop.f32.mrb[193].mxu1 }
 0xa9f   : > { %v7189_v25 = vadd.f32 %v7188_v38, %v15665_v4  ;;  %v7190_v3 = vpop.f32.mrb[194].mxu1  ;;  %7424 = vmatprep.subr.bf16.mxu1 %v7321_v2 }
 0xaa0   : > { %v7191_v16 = vadd.f32 %v7190_v3, %v17484_v36  ;;  %v7192_v49 = vpop.f32.mrb[195].mxu1  ;;  %7425 = vmatpush1.bf16.msra.mxu1 %v7320_v30  ;;  %v7296_v0 = vmax.f32 %v7187_v23, 0.0  ;;  %v11786_v3 = vld [vmem:[%s16882_s13 + $0x8] sm:$0xff]  }
 0xaa1   : > { %v7193_v56 = vadd.f32 %v7192_v49, %v17484_v36  ;;  %v7297_v50 = vmax.f32 %v7189_v25, 0.0 }
 0xaa2   : > { %v7300_v37 = vmax.f32 %v7191_v16, 0.0 }
 0xaa3   : > { %v7301_v46 = vmax.f32 %v7193_v56, 0.0 }
 0xaa4   : > { %v7324_v48 = vpack.c.bf16 %v7300_v37, %v7296_v0 }
 0xaa5   : > { %v7325_v33 = vpack.c.bf16 %v7301_v46, %v7297_v50  ;;  %v7196_v29 = vpop.f32.mrb[196].mxu1 }
 0xaa6   : > { %v7197_v58 = vadd.f32 %v7196_v29, %v7093_v19  ;;  %v7198_v31 = vpop.f32.mrb[197].mxu1  ;;  %v7355_v29 = vpop.permute.xlu1 %7354 }
 0xaa7   : > { %v7199_v4 = vadd.f32 %v7198_v31, %v7093_v19  ;;  %v7200_v6 = vpop.f32.mrb[198].mxu1  ;;  %7426 = vmatprep.subr.bf16.mxu1 %v7325_v33  ;;  %v11788_v33 = vld [vmem:[%s16882_s13 + $0x18] sm:$0xff]  }
 0xaa8   : > { %v7201_v17 = vadd.f32 %v7200_v6, %v7098_v57  ;;  %v7202_v12 = vpop.f32.mrb[199].mxu1  ;;  %7427 = vmatpush1.bf16.msra.mxu1 %v7324_v48  ;;  %v7304_v9 = vmax.f32 %v7197_v58, 0.0 }
 0xaa9   : > { %v7203_v32 = vadd.f32 %v7202_v12, %v7098_v57  ;;  %v7305_v40 = vmax.f32 %v7199_v4, 0.0  ;;  %v7360_v4 = vpop.permute.xlu0 %7359 }
 0xaaa   : > { %v7308_v59 = vmax.f32 %v7201_v17, 0.0 }
 0xaab   : > { %v7309_v21 = vmax.f32 %v7203_v32, 0.0 }
 0xaac   : > { %v7328_v34 = vpack.c.bf16 %v7308_v59, %v7304_v9 }
 0xaad   : > { %v7329_v52 = vpack.c.bf16 %v7309_v21, %v7305_v40  ;;  %v7206_v43 = vpop.f32.mrb[200].mxu1 }
 0xaae   : > { %v7207_v39 = vadd.f32 %v7206_v43, %v7103_v35  ;;  %v7208_v7 = vpop.f32.mrb[201].mxu1 }
 0xaaf   : > { %v7209_v22 = vadd.f32 %v7208_v7, %v7103_v35  ;;  %v7210_v42 = vpop.f32.mrb[202].mxu1  ;;  %7428 = vmatprep.subr.bf16.mxu1 %v7329_v52  ;;  %v7365_v52 = vpop.permute.xlu1 %7364 }
 0xab0   : > { %v7211_v26 = vadd.f32 %v7210_v42, %v7108_v45  ;;  %v7212_v44 = vpop.f32.mrb[203].mxu1  ;;  %7429 = vmatpush1.bf16.msra.mxu1 %v7328_v34  ;;  %v7312_v41 = vmax.f32 %v7207_v39, 0.0  ;;  %v16130_v7 = vpop.permute.xlu0 %7369 }
 0xab1   : > { %v7213_v13 = vadd.f32 %v7212_v44, %v7108_v45  ;;  %v7313_v55 = vmax.f32 %v7209_v22, 0.0 }
 0xab2   : > { %v7316_v63 = vmax.f32 %v7211_v26, 0.0 }
 0xab3   : > { %v7317_v47 = vmax.f32 %v7213_v13, 0.0 }
 0xab4   : > { %v7332_v61 = vpack.c.bf16 %v7316_v63, %v7312_v41 }
 0xab5   : > { %v7333_v5 = vpack.c.bf16 %v7317_v47, %v7313_v55  ;;  %v7269_v20 = vpop.f32.mrb[204].mxu1 }
 0xab6   : > { %v7270_v18 = vadd.f32 %v7269_v20, %v7093_v19  ;;  %v7271_v27 = vpop.f32.mrb[205].mxu1  ;;  %v16136_v20 = vpop.permute.xlu1 %7374 }
 0xab7   : > { %v7272_v1 = vadd.f32 %v7271_v27, %v7093_v19  ;;  %v7273_v53 = vpop.f32.mrb[206].mxu1  ;;  %7430 = vmatprep.subr.bf16.mxu1 %v7333_v5  ;;  %v11787_v19 = vld [vmem:[%s16882_s13 + $0x10] sm:$0xff]   ;;  %v16134_v5 = vpop.permute.xlu0 %7379 }
 0xab8   : > { %v7274_v14 = vadd.f32 %v7273_v53, %v7098_v57  ;;  %v7275_v10 = vpop.f32.mrb[207].mxu1  ;;  %7431 = vmatpush1.bf16.msra.mxu1 %v7332_v61  ;;  %v7306_v24 = vmax.f32 %v7270_v18, 0.0 }
 0xab9   : > { %v7276_v8 = vadd.f32 %v7275_v10, %v7098_v57  ;;  %v7307_v62 = vmax.f32 %v7272_v1, 0.0 }
 0xaba   : > { %v7310_v51 = vmax.f32 %v7274_v14, 0.0 }
 0xabb   : > { %v7311_v11 = vmax.f32 %v7276_v8, 0.0  ;;  %10648 = vmatmul.mubr.msk.bf16.vlgmr.msra.gmra.mrb[212].mxu1 %vm6968_vm0, %v11785_v60 }
 0xabc   : > { %v7330_v54 = vpack.c.bf16 %v7310_v51, %v7306_v24  ;;  %7466 = vmatprep.mubr.bf16.mxu1 %v17415_v28 }
 0xabd   : > { %v7331_v30 = vpack.c.bf16 %v7311_v11, %v7307_v62  ;;  %v7279_v2 = vpop.f32.mrb[208].mxu1 }
 0xabe   : > { %v7280_v15 = vadd.f32 %v7279_v2, %v7103_v35  ;;  %v7281_v23 = vpop.f32.mrb[209].mxu1 }
 0xabf   : > { %v7282_v38 = vadd.f32 %v7281_v23, %v7103_v35  ;;  %v7283_v25 = vpop.f32.mrb[210].mxu1  ;;  %7501 = vmatprep.subr.bf16.mxu0 %v7331_v30 }
 0xac0   : > { %v7284_v36 = vadd.f32 %v7283_v25, %v7108_v45  ;;  %v7285_v16 = vpop.f32.mrb[211].mxu1  ;;  %7502 = vmatpush1.bf16.msra.mxu0 %v7330_v54  ;;  %v7314_v56 = vmax.f32 %v7280_v15, 0.0 }
 0xac1   : > { %v7286_v49 = vadd.f32 %v7285_v16, %v7108_v45  ;;  %v7315_v37 = vmax.f32 %v7282_v38, 0.0 }
 0xac2   : > { %v7318_v0 = vmax.f32 %v7284_v36, 0.0 }
 0xac3   : > { %v7319_v50 = vmax.f32 %v7286_v49, 0.0  ;;  %10649 = vmatmul.mubr.msk.bf16.gmra.mrb[216].mxu1 %vm6968_vm0, %v11786_v3 }
 0xac4   : > { %v7334_v46 = vpack.c.bf16 %v7318_v0, %v7314_v56  ;;  %7476 = vmatprep.mubr.bf16.mxu1 %v17415_v28 }
 0xac5   : > { %v7335_v48 = vpack.c.bf16 %v7319_v50, %v7315_v37  ;;  %v16142_v50 = vpop.permute.xlu0 %7389 }
 0xac7   : > { %7503 = vmatprep.subr.bf16.mxu0 %v7335_v48 }
 0xac8   : > { %7504 = vmatpush1.bf16.msra.mxu0 %v7334_v46  ;;  %v7385_v46 = vpop.permute.xlu1 %7384 }
 0xacb   : > { %10650 = vmatmul.mubr.msk.bf16.gmra.mrb[220].mxu1 %vm6968_vm0, %v11787_v19  ;;  %10652 = vmatmul.mubr.msk.bf16.vlgmr.msra.gmra.mrb[216].mxu0 %vm6968_vm0, %v11785_v60 }
 0xacc   : > { %7486 = vmatprep.mubr.bf16.mxu1 %v17415_v28  ;;  %7539 = vmatprep.mubr.bf16.mxu0 %v17415_v28 }
 0xad3   : > { %10651 = vmatmul.mubr.msk.bf16.gmra.mrb[224].mxu1 %vm6968_vm0, %v11788_v33  ;;  %10653 = vmatmul.mubr.msk.bf16.gmra.mrb[220].mxu0 %vm6968_vm0, %v11786_v3 }
 0xad4   : > { %7549 = vmatprep.mubr.bf16.mxu0 %v17415_v28  ;;  %7826 = vmatprep.mubr.bf16.mxu1 %v17415_v28 }
 0xadb   : > { %10654 = vmatmul.mubr.msk.bf16.gmra.mrb[224].mxu0 %vm6968_vm0, %v11787_v19 }
 0xadc   : > { %7559 = vmatprep.mubr.bf16.mxu0 %v17415_v28 }
 0xae3   : > { %10655 = vmatmul.mubr.msk.bf16.gmra.mrb[228].mxu0 %vm6968_vm0, %v11788_v33 }
 0xae4   : > { %7939 = vmatprep.mubr.bf16.mxu0 %v17415_v28 }
 0xb8e   : > { %v7458_v58 = vpop.f32.mrb[212].mxu1 }
 0xb8f   : > { %v7459_v31 = vadd.f32 %v7458_v58, %v7355_v29  ;;  %v7460_v57 = vpop.f32.mrb[213].mxu1 }
 0xb90   : > { %v7461_v6 = vadd.f32 %v7460_v57, %v7355_v29  ;;  %v7462_v17 = vpop.f32.mrb[214].mxu1 }
 0xb91   : > { %v7463_v12 = vadd.f32 %v7462_v17, %v7360_v4  ;;  %v7464_v32 = vpop.f32.mrb[215].mxu1  ;;  %v7570_v59 = vmax.f32 %v7459_v31, 0.0 }
 0xb92   : > { %v7465_v9 = vadd.f32 %v7464_v32, %v7360_v4  ;;  %v7571_v21 = vmax.f32 %v7461_v6, 0.0 }
 0xb93   : > { %v7574_v40 = vmax.f32 %v7463_v12, 0.0 }
 0xb94   : > { %v7575_v34 = vmax.f32 %v7465_v9, 0.0 }
 0xb95   : > { %v7602_v35 = vpack.c.bf16 %v7574_v40, %v7570_v59 }
 0xb96   : > { %v7603_v43 = vpack.c.bf16 %v7575_v34, %v7571_v21  ;;  %v7468_v39 = vpop.f32.mrb[216].mxu1 }
 0xb97   : > { %v7469_v45 = vadd.f32 %v7468_v39, %v7365_v52  ;;  %v7470_v22 = vpop.f32.mrb[217].mxu1 }
 0xb98   : > { %v7471_v42 = vadd.f32 %v7470_v22, %v7365_v52  ;;  %v7472_v26 = vpop.f32.mrb[218].mxu1  ;;  %7794 = vmatprep.subr.bf16.mxu1 %v7603_v43 }
 0xb99   : > { %v7473_v44 = vadd.f32 %v7472_v26, %v16130_v7  ;;  %v7474_v13 = vpop.f32.mrb[219].mxu1  ;;  %7795 = vmatpush1.bf16.msra.mxu1 %v7602_v35  ;;  %v7578_v63 = vmax.f32 %v7469_v45, 0.0 }
 0xb9a   : > { %v7475_v41 = vadd.f32 %v7474_v13, %v16130_v7  ;;  %v7579_v47 = vmax.f32 %v7471_v42, 0.0 }
 0xb9b   : > { %v7582_v55 = vmax.f32 %v7473_v44, 0.0 }
 0xb9c   : > { %v7583_v61 = vmax.f32 %v7475_v41, 0.0 }
 0xb9d   : > { %v7606_v18 = vpack.c.bf16 %v7582_v55, %v7578_v63 }
 0xb9e   : > { %v7607_v27 = vpack.c.bf16 %v7583_v61, %v7579_v47  ;;  %v7478_v1 = vpop.f32.mrb[220].mxu1  ;;  %v7531_v53 = vpop.f32.mrb[216].mxu0 }
 0xb9f   : > { %v7479_v60 = vadd.f32 %v7478_v1, %v16136_v20  ;;  %v7532_v14 = vadd.f32 %v7531_v53, %v7355_v29  ;;  %v7480_v10 = vpop.f32.mrb[221].mxu1  ;;  %v7533_v8 = vpop.f32.mrb[217].mxu0 }
 0xba0   : > { %v7481_v24 = vadd.f32 %v7480_v10, %v16136_v20  ;;  %v7534_v51 = vadd.f32 %v7533_v8, %v7355_v29  ;;  %v7482_v62 = vpop.f32.mrb[222].mxu1  ;;  %v7535_v11 = vpop.f32.mrb[218].mxu0  ;;  %7796 = vmatprep.subr.bf16.mxu1 %v7607_v27 }
 0xba1   : > { %v7483_v54 = vadd.f32 %v7482_v62, %v16134_v5  ;;  %v7536_v30 = vadd.f32 %v7535_v11, %v7360_v4  ;;  %v7484_v2 = vpop.f32.mrb[223].mxu1  ;;  %v7537_v15 = vpop.f32.mrb[219].mxu0  ;;  %7797 = vmatpush1.bf16.msra.mxu1 %v7606_v18  ;;  %v7586_v25 = vmax.f32 %v7479_v60, 0.0  ;;  %v7572_v3 = vmax.f32 %v7532_v14, 0.0 }
 0xba2   : > { %v7485_v23 = vadd.f32 %v7484_v2, %v16134_v5  ;;  %v7538_v38 = vadd.f32 %v7537_v15, %v7360_v4  ;;  %v7587_v49 = vmax.f32 %v7481_v24, 0.0  ;;  %v7573_v56 = vmax.f32 %v7534_v51, 0.0 }
 0xba3   : > { %v7590_v36 = vmax.f32 %v7483_v54, 0.0  ;;  %v7576_v16 = vmax.f32 %v7536_v30, 0.0 }
 0xba4   : > { %v7591_v0 = vmax.f32 %v7485_v23, 0.0  ;;  %v7577_v37 = vmax.f32 %v7538_v38, 0.0 }
 0xba5   : > { %v7610_v48 = vpack.c.bf16 %v7590_v36, %v7586_v25  ;;  %v7604_v19 = vpack.c.bf16 %v7576_v16, %v7572_v3 }
 0xba6   : > { %v7611_v33 = vpack.c.bf16 %v7591_v0, %v7587_v49  ;;  %v7605_v29 = vpack.c.bf16 %v7577_v37, %v7573_v56  ;;  %v7488_v58 = vpop.f32.mrb[224].mxu1  ;;  %v7541_v31 = vpop.f32.mrb[220].mxu0 }
 0xba7   : > { %v7489_v57 = vadd.f32 %v7488_v58, %v7385_v46  ;;  %v7542_v6 = vadd.f32 %v7541_v31, %v7365_v52  ;;  %v7490_v4 = vpop.f32.mrb[225].mxu1  ;;  %v7543_v17 = vpop.f32.mrb[221].mxu0  ;;  %v11796_v58 = vld [vmem:[%s16884_s15 + $0x38] sm:$0xff]  }
 0xba8   : > { %v7491_v12 = vadd.f32 %v7490_v4, %v7385_v46  ;;  %v7544_v32 = vadd.f32 %v7543_v17, %v7365_v52  ;;  %v7492_v9 = vpop.f32.mrb[226].mxu1  ;;  %v7545_v59 = vpop.f32.mrb[222].mxu0  ;;  %7798 = vmatprep.subr.bf16.mxu1 %v7611_v33  ;;  %7907 = vmatprep.subr.bf16.mxu0 %v7605_v29  ;;  %v11794_v33 = vld [vmem:[%s16884_s15 + $0x28] sm:$0xff]   ;;  %v11795_v29 = vld [vmem:[%s16884_s15 + $0x30] sm:$0xff]  }
 0xba9   : > { %v7493_v40 = vadd.f32 %v7492_v9, %v16142_v50  ;;  %v7546_v21 = vadd.f32 %v7545_v59, %v16130_v7  ;;  %v7494_v34 = vpop.f32.mrb[227].mxu1  ;;  %v7547_v35 = vpop.f32.mrb[223].mxu0  ;;  %7799 = vmatpush1.bf16.msra.mxu1 %v7610_v48  ;;  %7908 = vmatpush1.bf16.msra.mxu0 %v7604_v19  ;;  %v7594_v45 = vmax.f32 %v7489_v57, 0.0  ;;  %v7580_v22 = vmax.f32 %v7542_v6, 0.0  ;;  %v11791_v48 = vld [vmem:[%s16884_s15 + $0x10] sm:$0xff]   ;;  %v11793_v19 = vld [vmem:[%s16884_s15 + $0x20] sm:$0xff]  }
 0xbaa   : > { %v7495_v43 = vadd.f32 %v7494_v34, %v16142_v50  ;;  %v7548_v39 = vadd.f32 %v7547_v35, %v16130_v7  ;;  %v7595_v26 = vmax.f32 %v7491_v12, 0.0  ;;  %v7581_v44 = vmax.f32 %v7544_v32, 0.0  ;;  %v11789_v7 = vld [vmem:[%s16884_s15] sm:$0xff]   ;;  %v7653_v31 = vpop.permute.xlu1 %7652  ;;  %v7658_v17 = vpop.permute.xlu0 %7657 }
 0xbab   : > { %v7598_v42 = vmax.f32 %v7493_v40, 0.0  ;;  %v7584_v52 = vmax.f32 %v7546_v21, 0.0 }
 0xbac   : > { %v7599_v13 = vmax.f32 %v7495_v43, 0.0  ;;  %v7585_v41 = vmax.f32 %v7548_v39, 0.0 }
 0xbad   : > { %v7614_v63 = vpack.c.bf16 %v7598_v42, %v7594_v45  ;;  %v7608_v55 = vpack.c.bf16 %v7584_v52, %v7580_v22 }
 0xbae   : > { %v7615_v47 = vpack.c.bf16 %v7599_v13, %v7595_v26  ;;  %v7609_v61 = vpack.c.bf16 %v7585_v41, %v7581_v44  ;;  %v7551_v18 = vpop.f32.mrb[224].mxu0  ;;  %v7663_v45 = vpop.permute.xlu1 %7662 }
 0xbaf   : > { %v7552_v27 = vadd.f32 %v7551_v18, %v16136_v20  ;;  %v7553_v1 = vpop.f32.mrb[225].mxu0  ;;  %v16210_v52 = vpop.permute.xlu0 %7667 }
 0xbb0   : > { %v7554_v53 = vadd.f32 %v7553_v1, %v16136_v20  ;;  %v7555_v60 = vpop.f32.mrb[226].mxu0  ;;  %7800 = vmatprep.subr.bf16.mxu1 %v7615_v47  ;;  %7909 = vmatprep.subr.bf16.mxu0 %v7609_v61 }
 0xbb1   : > { %v7556_v14 = vadd.f32 %v7555_v60, %v16134_v5  ;;  %v7557_v10 = vpop.f32.mrb[227].mxu0  ;;  %7801 = vmatpush1.bf16.msra.mxu1 %v7614_v63  ;;  %7910 = vmatpush1.bf16.msra.mxu0 %v7608_v55  ;;  %v7588_v24 = vmax.f32 %v7552_v27, 0.0 }
 0xbb2   : > { %v7558_v8 = vadd.f32 %v7557_v10, %v16134_v5  ;;  %v7589_v62 = vmax.f32 %v7554_v53, 0.0  ;;  %v11790_v5 = vld [vmem:[%s16884_s15 + $0x8] sm:$0xff]   ;;  %v16216_v60 = vpop.permute.xlu1 %7672 }
 0xbb3   : > { %v7592_v51 = vmax.f32 %v7556_v14, 0.0  ;;  %v16214_v53 = vpop.permute.xlu0 %7677 }
 0xbb4   : > { %v7593_v11 = vmax.f32 %v7558_v8, 0.0  ;;  %10664 = vmatmul.mubr.msk.bf16.vlgmr.msra.gmra.mrb[228].mxu1 %vm6968_vm0, %v11789_v7 }
 0xbb5   : > { %v7612_v20 = vpack.c.bf16 %v7592_v51, %v7588_v24  ;;  %7836 = vmatprep.mubr.bf16.mxu1 %v17415_v28 }
 0xbb6   : > { %v7613_v54 = vpack.c.bf16 %v7593_v11, %v7589_v62  ;;  %v7561_v30 = vpop.f32.mrb[228].mxu0 }
 0xbb7   : > { %v7562_v2 = vadd.f32 %v7561_v30, %v7385_v46  ;;  %v7563_v15 = vpop.f32.mrb[229].mxu0 }
 0xbb8   : > { %v7564_v23 = vadd.f32 %v7563_v15, %v7385_v46  ;;  %v7565_v38 = vpop.f32.mrb[230].mxu0  ;;  %7911 = vmatprep.subr.bf16.mxu0 %v7613_v54 }
 0xbb9   : > { %v7566_v25 = vadd.f32 %v7565_v38, %v16142_v50  ;;  %v7567_v3 = vpop.f32.mrb[231].mxu0  ;;  %7912 = vmatpush1.bf16.msra.mxu0 %v7612_v20  ;;  %v7596_v16 = vmax.f32 %v7562_v2, 0.0 }
 0xbba   : > { %v7568_v36 = vadd.f32 %v7567_v3, %v16142_v50  ;;  %v7597_v56 = vmax.f32 %v7564_v23, 0.0  ;;  %v11792_v50 = vld [vmem:[%s16884_s15 + $0x18] sm:$0xff]  }
 0xbbb   : > { %v7600_v49 = vmax.f32 %v7566_v25, 0.0 }
 0xbbc   : > { %v7601_v0 = vmax.f32 %v7568_v36, 0.0  ;;  %10665 = vmatmul.mubr.msk.bf16.gmra.mrb[232].mxu1 %vm6968_vm0, %v11790_v5 }
 0xbbd   : > { %v7616_v37 = vpack.c.bf16 %v7600_v49, %v7596_v16  ;;  %7846 = vmatprep.mubr.bf16.mxu1 %v17415_v28 }
 0xbbe   : > { %v7617_v46 = vpack.c.bf16 %v7601_v0, %v7597_v56 }
 0xbc0   : > { %7913 = vmatprep.subr.bf16.mxu0 %v7617_v46 }
 0xbc1   : > { %7914 = vmatpush1.bf16.msra.mxu0 %v7616_v37 }
 0xbc4   : > { %10666 = vmatmul.mubr.msk.bf16.gmra.mrb[236].mxu1 %vm6968_vm0, %v11791_v48  ;;  %10672 = vmatmul.mubr.msk.bf16.vlgmr.msra.gmra.mrb[232].mxu0 %vm6968_vm0, %v11789_v7 }
 0xbc5   : > { %7856 = vmatprep.mubr.bf16.mxu1 %v17415_v28  ;;  %7949 = vmatprep.mubr.bf16.mxu0 %v17415_v28 }
 0xbcc   : > { %10667 = vmatmul.mubr.msk.bf16.gmra.mrb[240].mxu1 %vm6968_vm0, %v11792_v50  ;;  %10673 = vmatmul.mubr.msk.bf16.gmra.mrb[236].mxu0 %vm6968_vm0, %v11790_v5 }
 0xbcd   : > { %7866 = vmatprep.mubr.bf16.mxu1 %v17415_v28  ;;  %7959 = vmatprep.mubr.bf16.mxu0 %v17415_v28 }
 0xbd4   : > { %10668 = vmatmul.mubr.msk.bf16.gmra.mrb[244].mxu1 %vm6968_vm0, %v11793_v19  ;;  %10674 = vmatmul.mubr.msk.bf16.gmra.mrb[240].mxu0 %vm6968_vm0, %v11791_v48 }
 0xbd5   : > { %7876 = vmatprep.mubr.bf16.mxu1 %v17415_v28  ;;  %7969 = vmatprep.mubr.bf16.mxu0 %v17415_v28 }
 0xbdc   : > { %10669 = vmatmul.mubr.msk.bf16.gmra.mrb[248].mxu1 %vm6968_vm0, %v11794_v33  ;;  %10675 = vmatmul.mubr.msk.bf16.gmra.mrb[244].mxu0 %vm6968_vm0, %v11792_v50  ;;  %v16222_v50 = vpop.permute.xlu0 %7687 }
 0xbdd   : > { %7886 = vmatprep.mubr.bf16.mxu1 %v17415_v28  ;;  %7979 = vmatprep.mubr.bf16.mxu0 %v17415_v28 }
 0xbe4   : > { %10670 = vmatmul.mubr.msk.bf16.gmra.mrb[252].mxu1 %vm6968_vm0, %v11795_v29  ;;  %10676 = vmatmul.mubr.msk.bf16.gmra.mrb[248].mxu0 %vm6968_vm0, %v11793_v19  ;;  %v16224_v19 = vpop.permute.xlu1 %7682 }
 0xbe5   : > { %7896 = vmatprep.mubr.bf16.mxu1 %v17415_v28  ;;  %7989 = vmatprep.mubr.bf16.mxu0 %v17415_v28 }
 0xbec   : > { %10671 = vmatmul.mubr.msk.bf16.gmra.mrb[0].mxu1 %vm6968_vm0, %v11796_v58  ;;  %10677 = vmatmul.mubr.msk.bf16.gmra.mrb[252].mxu0 %vm6968_vm0, %v11794_v33 }
 0xbed   : > { %7999 = vmatprep.mubr.bf16.mxu0 %v17415_v28  ;;  %8788 = vmatprep.mubr.bf16.mxu1 %v17415_v28 }
 0xbf4   : > { %10678 = vmatmul.mubr.msk.bf16.gmra.mrb[0].mxu0 %vm6968_vm0, %v11795_v29 }
 0xbf5   : > { %8009 = vmatprep.mubr.bf16.mxu0 %v17415_v28 }
 0xbfc   : > { %10679 = vmatmul.mubr.msk.bf16.gmra.mrb[4].mxu0 %vm6968_vm0, %v11796_v58 }
 0xbfd   : > { %9141 = vmatprep.mubr.bf16.mxu0 %v17415_v28 }
 0xc87   : > { %v7828_v57 = vpop.f32.mrb[228].mxu1 }
 0xc88   : > { %v7829_v6 = vadd.f32 %v7828_v57, %v7653_v31  ;;  %v7830_v4 = vpop.f32.mrb[229].mxu1 }
 0xc89   : > { %v7831_v12 = vadd.f32 %v7830_v4, %v7653_v31  ;;  %v7832_v32 = vpop.f32.mrb[230].mxu1 }
 0xc8a   : > { %v7833_v9 = vadd.f32 %v7832_v32, %v7658_v17  ;;  %v7834_v59 = vpop.f32.mrb[231].mxu1  ;;  %v8020_v21 = vmax.f32 %v7829_v6, 0.0 }
 0xc8b   : > { %v7835_v40 = vadd.f32 %v7834_v59, %v7658_v17  ;;  %v8021_v35 = vmax.f32 %v7831_v12, 0.0 }
 0xc8c   : > { %v8024_v34 = vmax.f32 %v7833_v9, 0.0 }
 0xc8d   : > { %v8025_v43 = vmax.f32 %v7835_v40, 0.0 }
 0xc8e   : > { %v8084_v39 = vpack.c.bf16 %v8024_v34, %v8020_v21 }
 0xc8f   : > { %v8085_v22 = vpack.c.bf16 %v8025_v43, %v8021_v35  ;;  %v7838_v42 = vpop.f32.mrb[232].mxu1 }
 0xc90   : > { %v7839_v26 = vadd.f32 %v7838_v42, %v7663_v45  ;;  %v7840_v44 = vpop.f32.mrb[233].mxu1 }
 0xc91   : > { %v7841_v13 = vadd.f32 %v7840_v44, %v7663_v45  ;;  %v7842_v41 = vpop.f32.mrb[234].mxu1  ;;  %8756 = vmatprep.subr.bf16.mxu1 %v8085_v22 }
 0xc92   : > { %v7843_v63 = vadd.f32 %v7842_v41, %v16210_v52  ;;  %v7844_v55 = vpop.f32.mrb[235].mxu1  ;;  %8757 = vmatpush1.bf16.msra.mxu1 %v8084_v39  ;;  %v8028_v61 = vmax.f32 %v7839_v26, 0.0 }
 0xc93   : > { %v7845_v47 = vadd.f32 %v7844_v55, %v16210_v52  ;;  %v8029_v27 = vmax.f32 %v7841_v13, 0.0 }
 0xc94   : > { %v8032_v18 = vmax.f32 %v7843_v63, 0.0 }
 0xc95   : > { %v8033_v1 = vmax.f32 %v7845_v47, 0.0 }
 0xc96   : > { %v8088_v7 = vpack.c.bf16 %v8032_v18, %v8028_v61  ;;  %v16232_v61 = vpop.permute.xlu0 %7697  ;;  %v16234_v18 = vpop.permute.xlu1 %7692 }
 0xc97   : > { %v8089_v14 = vpack.c.bf16 %v8033_v1, %v8029_v27  ;;  %v7848_v10 = vpop.f32.mrb[236].mxu1  ;;  %v7941_v8 = vpop.f32.mrb[232].mxu0 }
 0xc98   : > { %v7849_v24 = vadd.f32 %v7848_v10, %v16216_v60  ;;  %v7942_v51 = vadd.f32 %v7941_v8, %v7653_v31  ;;  %v7850_v62 = vpop.f32.mrb[237].mxu1  ;;  %v7943_v11 = vpop.f32.mrb[233].mxu0 }
 0xc99   : > { %v7851_v20 = vadd.f32 %v7850_v62, %v16216_v60  ;;  %v7944_v54 = vadd.f32 %v7943_v11, %v7653_v31  ;;  %v7852_v30 = vpop.f32.mrb[238].mxu1  ;;  %v7945_v2 = vpop.f32.mrb[234].mxu0  ;;  %8758 = vmatprep.subr.bf16.mxu1 %v8089_v14 }
 0xc9a   : > { %v7853_v15 = vadd.f32 %v7852_v30, %v16214_v53  ;;  %v7946_v23 = vadd.f32 %v7945_v2, %v7658_v17  ;;  %v7854_v38 = vpop.f32.mrb[239].mxu1  ;;  %v7947_v5 = vpop.f32.mrb[235].mxu0  ;;  %8759 = vmatpush1.bf16.msra.mxu1 %v8088_v7  ;;  %v8036_v36 = vmax.f32 %v7849_v24, 0.0  ;;  %v8022_v16 = vmax.f32 %v7942_v51, 0.0 }
 0xc9b   : > { %v7855_v25 = vadd.f32 %v7854_v38, %v16214_v53  ;;  %v7948_v3 = vadd.f32 %v7947_v5, %v7658_v17  ;;  %v8037_v0 = vmax.f32 %v7851_v20, 0.0  ;;  %v8023_v37 = vmax.f32 %v7944_v54, 0.0 }
 0xc9c   : > { %v8040_v49 = vmax.f32 %v7853_v15, 0.0  ;;  %v8026_v56 = vmax.f32 %v7946_v23, 0.0 }
 0xc9d   : > { %v8041_v46 = vmax.f32 %v7855_v25, 0.0  ;;  %v8027_v48 = vmax.f32 %v7948_v3, 0.0 }
 0xc9e   : > { %v8092_v33 = vpack.c.bf16 %v8040_v49, %v8036_v36  ;;  %v8086_v29 = vpack.c.bf16 %v8026_v56, %v8022_v16 }
 0xc9f   : > { %v8093_v58 = vpack.c.bf16 %v8041_v46, %v8037_v0  ;;  %v8087_v31 = vpack.c.bf16 %v8027_v48, %v8023_v37  ;;  %v7858_v57 = vpop.f32.mrb[240].mxu1  ;;  %v7951_v6 = vpop.f32.mrb[236].mxu0 }
 0xca0   : > { %v7859_v4 = vadd.f32 %v7858_v57, %v16224_v19  ;;  %v7952_v17 = vadd.f32 %v7951_v6, %v7663_v45  ;;  %v7860_v12 = vpop.f32.mrb[241].mxu1  ;;  %v7953_v32 = vpop.f32.mrb[237].mxu0 }
 0xca1   : > { %v7861_v9 = vadd.f32 %v7860_v12, %v16224_v19  ;;  %v7954_v59 = vadd.f32 %v7953_v32, %v7663_v45  ;;  %v7862_v40 = vpop.f32.mrb[242].mxu1  ;;  %v7955_v21 = vpop.f32.mrb[238].mxu0  ;;  %8760 = vmatprep.subr.bf16.mxu1 %v8093_v58  ;;  %9109 = vmatprep.subr.bf16.mxu0 %v8087_v31 }
 0xca2   : > { %v7863_v34 = vadd.f32 %v7862_v40, %v16222_v50  ;;  %v7956_v35 = vadd.f32 %v7955_v21, %v16210_v52  ;;  %v7864_v43 = vpop.f32.mrb[243].mxu1  ;;  %v7957_v39 = vpop.f32.mrb[239].mxu0  ;;  %8761 = vmatpush1.bf16.msra.mxu1 %v8092_v33  ;;  %9110 = vmatpush1.bf16.msra.mxu0 %v8086_v29  ;;  %v8044_v26 = vmax.f32 %v7859_v4, 0.0  ;;  %v8030_v44 = vmax.f32 %v7952_v17, 0.0 }
 0xca3   : > { %v7865_v22 = vadd.f32 %v7864_v43, %v16222_v50  ;;  %v7958_v42 = vadd.f32 %v7957_v39, %v16210_v52  ;;  %v8045_v41 = vmax.f32 %v7861_v9, 0.0  ;;  %v8031_v63 = vmax.f32 %v7954_v59, 0.0  ;;  %v16244_v46 = vpop.permute.xlu0 %7707  ;;  %v16246_v48 = vpop.permute.xlu1 %7702 }
 0xca4   : > { %v8048_v13 = vmax.f32 %v7863_v34, 0.0  ;;  %v8034_v45 = vmax.f32 %v7956_v35, 0.0 }
 0xca5   : > { %v8049_v55 = vmax.f32 %v7865_v22, 0.0  ;;  %v8035_v47 = vmax.f32 %v7958_v42, 0.0 }
 0xca6   : > { %v8096_v27 = vpack.c.bf16 %v8048_v13, %v8044_v26  ;;  %v8090_v1 = vpack.c.bf16 %v8034_v45, %v8030_v44 }
 0xca7   : > { %v8097_v7 = vpack.c.bf16 %v8049_v55, %v8045_v41  ;;  %v8091_v14 = vpack.c.bf16 %v8035_v47, %v8031_v63  ;;  %v7868_v10 = vpop.f32.mrb[244].mxu1  ;;  %v7961_v8 = vpop.f32.mrb[240].mxu0 }
 0xca8   : > { %v7869_v52 = vadd.f32 %v7868_v10, %v16234_v18  ;;  %v7962_v24 = vadd.f32 %v7961_v8, %v16216_v60  ;;  %v7870_v51 = vpop.f32.mrb[245].mxu1  ;;  %v7963_v62 = vpop.f32.mrb[241].mxu0 }
 0xca9   : > { %v7871_v11 = vadd.f32 %v7870_v51, %v16234_v18  ;;  %v7964_v20 = vadd.f32 %v7963_v62, %v16216_v60  ;;  %v7872_v54 = vpop.f32.mrb[246].mxu1  ;;  %v7965_v30 = vpop.f32.mrb[242].mxu0  ;;  %8762 = vmatprep.subr.bf16.mxu1 %v8097_v7  ;;  %9111 = vmatprep.subr.bf16.mxu0 %v8091_v14 }
 0xcaa   : > { %v7873_v2 = vadd.f32 %v7872_v54, %v16232_v61  ;;  %v7966_v15 = vadd.f32 %v7965_v30, %v16214_v53  ;;  %v7874_v23 = vpop.f32.mrb[247].mxu1  ;;  %v7967_v38 = vpop.f32.mrb[243].mxu0  ;;  %8763 = vmatpush1.bf16.msra.mxu1 %v8096_v27  ;;  %9112 = vmatpush1.bf16.msra.mxu0 %v8090_v1  ;;  %v8052_v3 = vmax.f32 %v7869_v52, 0.0  ;;  %v8038_v36 = vmax.f32 %v7962_v24, 0.0 }
 0xcab   : > { %v7875_v5 = vadd.f32 %v7874_v23, %v16232_v61  ;;  %v7968_v25 = vadd.f32 %v7967_v38, %v16214_v53  ;;  %v8053_v49 = vmax.f32 %v7871_v11, 0.0  ;;  %v8039_v56 = vmax.f32 %v7964_v20, 0.0  ;;  %v16256_v55 = vpop.permute.xlu0 %7717  ;;  %v16258_v47 = vpop.permute.xlu1 %7712 }
 0xcac   : > { %v8056_v16 = vmax.f32 %v7873_v2, 0.0  ;;  %v8042_v60 = vmax.f32 %v7966_v15, 0.0 }
 0xcad   : > { %v8057_v0 = vmax.f32 %v7875_v5, 0.0  ;;  %v8043_v37 = vmax.f32 %v7968_v25, 0.0 }
 0xcae   : > { %v8100_v33 = vpack.c.bf16 %v8056_v16, %v8052_v3  ;;  %v8094_v29 = vpack.c.bf16 %v8042_v60, %v8038_v36 }
 0xcaf   : > { %v8101_v58 = vpack.c.bf16 %v8057_v0, %v8053_v49  ;;  %v8095_v31 = vpack.c.bf16 %v8043_v37, %v8039_v56  ;;  %v7878_v57 = vpop.f32.mrb[248].mxu1  ;;  %v7971_v6 = vpop.f32.mrb[244].mxu0 }
 0xcb0   : > { %v7879_v53 = vadd.f32 %v7878_v57, %v16246_v48  ;;  %v7972_v4 = vadd.f32 %v7971_v6, %v16224_v19  ;;  %v7880_v17 = vpop.f32.mrb[249].mxu1  ;;  %v7973_v12 = vpop.f32.mrb[245].mxu0 }
 0xcb1   : > { %v7881_v32 = vadd.f32 %v7880_v17, %v16246_v48  ;;  %v7974_v9 = vadd.f32 %v7973_v12, %v16224_v19  ;;  %v7882_v59 = vpop.f32.mrb[250].mxu1  ;;  %v7975_v40 = vpop.f32.mrb[246].mxu0  ;;  %8764 = vmatprep.subr.bf16.mxu1 %v8101_v58  ;;  %9113 = vmatprep.subr.bf16.mxu0 %v8095_v31 }
 0xcb2   : > { %v7883_v21 = vadd.f32 %v7882_v59, %v16244_v46  ;;  %v7976_v34 = vadd.f32 %v7975_v40, %v16222_v50  ;;  %v7884_v35 = vpop.f32.mrb[251].mxu1  ;;  %v7977_v43 = vpop.f32.mrb[247].mxu0  ;;  %8765 = vmatpush1.bf16.msra.mxu1 %v8100_v33  ;;  %9114 = vmatpush1.bf16.msra.mxu0 %v8094_v29  ;;  %v8060_v42 = vmax.f32 %v7879_v53, 0.0  ;;  %v8046_v26 = vmax.f32 %v7972_v4, 0.0 }
 0xcb3   : > { %v7885_v39 = vadd.f32 %v7884_v35, %v16244_v46  ;;  %v7978_v22 = vadd.f32 %v7977_v43, %v16222_v50  ;;  %v8061_v13 = vmax.f32 %v7881_v32, 0.0  ;;  %v8047_v45 = vmax.f32 %v7974_v9, 0.0  ;;  %v16268_v0 = vpop.permute.xlu0 %7727  ;;  %v7723_v37 = vpop.permute.xlu1 %7722 }
 0xcb4   : > { %v8064_v44 = vmax.f32 %v7883_v21, 0.0  ;;  %v8050_v19 = vmax.f32 %v7976_v34, 0.0 }
 0xcb5   : > { %v8065_v41 = vmax.f32 %v7885_v39, 0.0  ;;  %v8051_v63 = vmax.f32 %v7978_v22, 0.0 }
 0xcb6   : > { %v8104_v27 = vpack.c.bf16 %v8064_v44, %v8060_v42  ;;  %v8098_v1 = vpack.c.bf16 %v8050_v19, %v8046_v26 }
 0xcb7   : > { %v8105_v7 = vpack.c.bf16 %v8065_v41, %v8061_v13  ;;  %v8099_v14 = vpack.c.bf16 %v8051_v63, %v8047_v45  ;;  %v7888_v10 = vpop.f32.mrb[252].mxu1  ;;  %v7981_v8 = vpop.f32.mrb[248].mxu0 }
 0xcb8   : > { %v7889_v50 = vadd.f32 %v7888_v10, %v16258_v47  ;;  %v7982_v52 = vadd.f32 %v7981_v8, %v16234_v18  ;;  %v7890_v24 = vpop.f32.mrb[253].mxu1  ;;  %v7983_v51 = vpop.f32.mrb[249].mxu0 }
 0xcb9   : > { %v7891_v62 = vadd.f32 %v7890_v24, %v16258_v47  ;;  %v7984_v11 = vadd.f32 %v7983_v51, %v16234_v18  ;;  %v7892_v20 = vpop.f32.mrb[254].mxu1  ;;  %v7985_v54 = vpop.f32.mrb[250].mxu0  ;;  %8766 = vmatprep.subr.bf16.mxu1 %v8105_v7  ;;  %9115 = vmatprep.subr.bf16.mxu0 %v8099_v14 }
 0xcba   : > { %v7893_v30 = vadd.f32 %v7892_v20, %v16256_v55  ;;  %v7986_v2 = vadd.f32 %v7985_v54, %v16232_v61  ;;  %v7894_v15 = vpop.f32.mrb[255].mxu1  ;;  %v7987_v23 = vpop.f32.mrb[251].mxu0  ;;  %8767 = vmatpush1.bf16.msra.mxu1 %v8104_v27  ;;  %9116 = vmatpush1.bf16.msra.mxu0 %v8098_v1  ;;  %v8068_v25 = vmax.f32 %v7889_v50, 0.0  ;;  %v8054_v3 = vmax.f32 %v7982_v52, 0.0 }
 0xcbb   : > { %v7895_v38 = vadd.f32 %v7894_v15, %v16256_v55  ;;  %v7988_v5 = vadd.f32 %v7987_v23, %v16232_v61  ;;  %v8069_v16 = vmax.f32 %v7891_v62, 0.0  ;;  %v8055_v60 = vmax.f32 %v7984_v11, 0.0 }
 0xcbc   : > { %v8072_v36 = vmax.f32 %v7893_v30, 0.0  ;;  %v8058_v18 = vmax.f32 %v7986_v2, 0.0 }
 0xcbd   : > { %v8073_v49 = vmax.f32 %v7895_v38, 0.0  ;;  %v8059_v56 = vmax.f32 %v7988_v5, 0.0 }
 0xcbe   : > { %v8108_v33 = vpack.c.bf16 %v8072_v36, %v8068_v25  ;;  %v8102_v29 = vpack.c.bf16 %v8058_v18, %v8054_v3  ;;  %v11798_v25 = vld [vmem:[%s16886_s17 + $0x8] sm:$0xff]  }
 0xcbf   : > { %v8109_v58 = vpack.c.bf16 %v8073_v49, %v8069_v16  ;;  %v8103_v31 = vpack.c.bf16 %v8059_v56, %v8055_v60  ;;  %v7898_v57 = vpop.f32.mrb[0].mxu1  ;;  %v7991_v6 = vpop.f32.mrb[252].mxu0 }
 0xcc0   : > { %v7899_v53 = vadd.f32 %v7898_v57, %v7723_v37  ;;  %v7992_v61 = vadd.f32 %v7991_v6, %v16246_v48  ;;  %v7900_v4 = vpop.f32.mrb[1].mxu1  ;;  %v7993_v17 = vpop.f32.mrb[253].mxu0  ;;  %v11804_v57 = vld [vmem:[%s16886_s17 + $0x38] sm:$0xff]   ;;  %v11805_v6 = vld [vmem:[%s16886_s17 + $0x40] sm:$0xff]  }
 0xcc1   : > { %v7901_v12 = vadd.f32 %v7900_v4, %v7723_v37  ;;  %v7994_v32 = vadd.f32 %v7993_v17, %v16246_v48  ;;  %v7902_v9 = vpop.f32.mrb[2].mxu1  ;;  %v7995_v59 = vpop.f32.mrb[254].mxu0  ;;  %8768 = vmatprep.subr.bf16.mxu1 %v8109_v58  ;;  %9117 = vmatprep.subr.bf16.mxu0 %v8103_v31  ;;  %v11802_v58 = vld [vmem:[%s16886_s17 + $0x28] sm:$0xff]   ;;  %v11803_v31 = vld [vmem:[%s16886_s17 + $0x30] sm:$0xff]   ;;  %v11808_v4 = vld [vmem:[%s16886_s17 + $0x58] sm:$0xff]  }
 0xcc2   : > { %v7903_v40 = vadd.f32 %v7902_v9, %v16268_v0  ;;  %v7996_v21 = vadd.f32 %v7995_v59, %v16244_v46  ;;  %v7904_v34 = vpop.f32.mrb[3].mxu1  ;;  %v7997_v35 = vpop.f32.mrb[255].mxu0  ;;  %8769 = vmatpush1.bf16.msra.mxu1 %v8108_v33  ;;  %9118 = vmatpush1.bf16.msra.mxu0 %v8102_v29  ;;  %v8076_v22 = vmax.f32 %v7899_v53, 0.0  ;;  %v8062_v42 = vmax.f32 %v7992_v61, 0.0  ;;  %v11799_v33 = vld [vmem:[%s16886_s17 + $0x10] sm:$0xff]   ;;  %v11801_v29 = vld [vmem:[%s16886_s17 + $0x20] sm:$0xff]  }
 0xcc3   : > { %v7905_v43 = vadd.f32 %v7904_v34, %v16268_v0  ;;  %v7998_v39 = vadd.f32 %v7997_v35, %v16244_v46  ;;  %v8077_v44 = vmax.f32 %v7901_v12, 0.0  ;;  %v8063_v19 = vmax.f32 %v7994_v32, 0.0  ;;  %v11797_v46 = vld [vmem:[%s16886_s17] sm:$0xff]   ;;  %v11806_v53 = vld [vmem:[%s16886_s17 + $0x48] sm:$0xff]   ;;  %v11807_v61 = vld [vmem:[%s16886_s17 + $0x50] sm:$0xff]  }
 0xcc4   : > { %v8080_v26 = vmax.f32 %v7903_v40, 0.0  ;;  %v8066_v48 = vmax.f32 %v7996_v21, 0.0  ;;  %v11809_v17 = vld [vmem:[%s16886_s17 + $0x60] sm:$0xff]   ;;  %v11810_v12 = vld [vmem:[%s16886_s17 + $0x68] sm:$0xff]   ;;  %v11811_v32 = vld [vmem:[%s16886_s17 + $0x70] sm:$0xff]  }
 0xcc5   : > { %v8081_v13 = vmax.f32 %v7905_v43, 0.0  ;;  %v8067_v45 = vmax.f32 %v7998_v39, 0.0  ;;  %v11812_v9 = vld [vmem:[%s16886_s17 + $0x78] sm:$0xff]   ;;  %v11813_v59 = vld [vmem:[%s16886_s17 + $0x80] sm:$0xff]   ;;  %v11814_v40 = vld [vmem:[%s16886_s17 + $0x88] sm:$0xff]  }
 0xcc6   : > { %v8112_v41 = vpack.c.bf16 %v8080_v26, %v8076_v22  ;;  %v8106_v63 = vpack.c.bf16 %v8066_v48, %v8062_v42  ;;  %v11815_v21 = vld [vmem:[%s16886_s17 + $0x90] sm:$0xff]   ;;  %v11816_v34 = vld [vmem:[%s16886_s17 + $0x98] sm:$0xff]   ;;  %v11817_v35 = vld [vmem:[%s16886_s17 + $0xa0] sm:$0xff]  }
 0xcc7   : > { %v8113_v27 = vpack.c.bf16 %v8081_v13, %v8077_v44  ;;  %v8107_v1 = vpack.c.bf16 %v8067_v45, %v8063_v19  ;;  %v8001_v7 = vpop.f32.mrb[0].mxu0  ;;  %v11818_v43 = vld [vmem:[%s16886_s17 + $0xa8] sm:$0xff]   ;;  %v11819_v39 = vld [vmem:[%s16886_s17 + $0xb0] sm:$0xff]   ;;  %v11820_v22 = vld [vmem:[%s16886_s17 + $0xb8] sm:$0xff]   ;;  %v8247_v44 = vpop.permute.xlu1 %8246 }
 0xcc8   : > { %v8002_v14 = vadd.f32 %v8001_v7, %v16258_v47  ;;  %v8003_v10 = vpop.f32.mrb[1].mxu0  ;;  %v11821_v42 = vld [vmem:[%s16886_s17 + $0xc0] sm:$0xff]   ;;  %v11822_v26 = vld [vmem:[%s16886_s17 + $0xc8] sm:$0xff]   ;;  %v11823_v48 = vld [vmem:[%s16886_s17 + $0xd0] sm:$0xff]  }
 0xcc9   : > { %v8004_v8 = vadd.f32 %v8003_v10, %v16258_v47  ;;  %v8005_v50 = vpop.f32.mrb[2].mxu0  ;;  %8770 = vmatprep.subr.bf16.mxu1 %v8113_v27  ;;  %9119 = vmatprep.subr.bf16.mxu0 %v8107_v1 }
 0xcca   : > { %v8006_v52 = vadd.f32 %v8005_v50, %v16256_v55  ;;  %v8007_v24 = vpop.f32.mrb[3].mxu0  ;;  %8771 = vmatpush1.bf16.msra.mxu1 %v8112_v41  ;;  %9120 = vmatpush1.bf16.msra.mxu0 %v8106_v63  ;;  %v8070_v62 = vmax.f32 %v8002_v14, 0.0  ;;  %v16418_v41 = vld [vmem:[%s16886_s17 + $0xd8] sm:$0xff]   ;;  %v8252_v63 = vpop.permute.xlu0 %8251 }
 0xccb   : > { %v8008_v51 = vadd.f32 %v8007_v24, %v16256_v55  ;;  %v8071_v20 = vmax.f32 %v8004_v8, 0.0 }
 0xccc   : > { %v8074_v11 = vmax.f32 %v8006_v52, 0.0 }
 0xccd   : > { %v8075_v54 = vmax.f32 %v8008_v51, 0.0  ;;  %8789 = vmatmul.mubr.bf16.vlgmr.msra.gmra.mrb[4].mxu1 %v11797_v46  ;;  %v16423_v51 = vpop.permute.xlu1 %8256 }
 0xcce   : > { %v8110_v47 = vpack.c.bf16 %v8074_v11, %v8070_v62  ;;  %8798 = vmatprep.mubr.bf16.mxu1 %v17415_v28 }
 0xccf   : > { %v8111_v30 = vpack.c.bf16 %v8075_v54, %v8071_v20  ;;  %v8011_v2 = vpop.f32.mrb[4].mxu0  ;;  %v16425_v20 = vpop.permute.xlu0 %8261 }
 0xcd0   : > { %v8012_v15 = vadd.f32 %v8011_v2, %v7723_v37  ;;  %v8013_v23 = vpop.f32.mrb[5].mxu0 }
 0xcd1   : > { %v8014_v38 = vadd.f32 %v8013_v23, %v7723_v37  ;;  %v8015_v5 = vpop.f32.mrb[6].mxu0  ;;  %9121 = vmatprep.subr.bf16.mxu0 %v8111_v30  ;;  %v16431_v30 = vld [vmem:[%s16886_s17 + $0xe0] sm:$0xff]  }
 0xcd2   : > { %v8016_v55 = vadd.f32 %v8015_v5, %v16268_v0  ;;  %v8017_v3 = vpop.f32.mrb[7].mxu0  ;;  %9122 = vmatpush1.bf16.msra.mxu0 %v8110_v47  ;;  %v8078_v18 = vmax.f32 %v8012_v15, 0.0 }
 0xcd3   : > { %v8018_v36 = vadd.f32 %v8017_v3, %v16268_v0  ;;  %v8079_v60 = vmax.f32 %v8014_v38, 0.0  ;;  %v11800_v0 = vld [vmem:[%s16886_s17 + $0x18] sm:$0xff]  }
 0xcd4   : > { %v8082_v16 = vmax.f32 %v8016_v55, 0.0 }
 0xcd5   : > { %v8083_v49 = vmax.f32 %v8018_v36, 0.0  ;;  %8799 = vmatmul.mubr.bf16.gmra.mrb[8].mxu1 %v11798_v25 }
 0xcd6   : > { %v8114_v56 = vpack.c.bf16 %v8082_v16, %v8078_v18  ;;  %8808 = vmatprep.mubr.bf16.mxu1 %v17415_v28  ;;  %v16439_v18 = vpop.permute.xlu0 %8271  ;;  %v16441_v16 = vpop.permute.xlu1 %8266 }
 0xcd7   : > { %v8115_v37 = vpack.c.bf16 %v8083_v49, %v8079_v60 }
 0xcd9   : > { %9123 = vmatprep.subr.bf16.mxu0 %v8115_v37 }
 0xcda   : > { %9124 = vmatpush1.bf16.msra.mxu0 %v8114_v56 }
 0xcdd   : > { %8809 = vmatmul.mubr.bf16.gmra.mrb[12].mxu1 %v11799_v33  ;;  %9142 = vmatmul.mubr.bf16.vlgmr.msra.gmra.mrb[8].mxu0 %v11797_v46 }
 0xcde   : > { %8818 = vmatprep.mubr.bf16.mxu1 %v17415_v28  ;;  %9151 = vmatprep.mubr.bf16.mxu0 %v17415_v28 }
 0xce5   : > { %8819 = vmatmul.mubr.bf16.gmra.mrb[16].mxu1 %v11800_v0  ;;  %9152 = vmatmul.mubr.bf16.gmra.mrb[12].mxu0 %v11798_v25 }
 0xce6   : > { %8828 = vmatprep.mubr.bf16.mxu1 %v17415_v28  ;;  %9161 = vmatprep.mubr.bf16.mxu0 %v17415_v28 }
 0xced   : > { %8829 = vmatmul.mubr.bf16.gmra.mrb[20].mxu1 %v11801_v29  ;;  %9162 = vmatmul.mubr.bf16.gmra.mrb[16].mxu0 %v11799_v33 }
 0xcee   : > { %8838 = vmatprep.mubr.bf16.mxu1 %v17415_v28  ;;  %9171 = vmatprep.mubr.bf16.mxu0 %v17415_v28 }
 0xcf5   : > { %8839 = vmatmul.mubr.bf16.gmra.mrb[24].mxu1 %v11802_v58  ;;  %9172 = vmatmul.mubr.bf16.gmra.mrb[20].mxu0 %v11800_v0 }
 0xcf6   : > { %8848 = vmatprep.mubr.bf16.mxu1 %v17415_v28  ;;  %9181 = vmatprep.mubr.bf16.mxu0 %v17415_v28 }
 0xcfd   : > { %8849 = vmatmul.mubr.bf16.gmra.mrb[28].mxu1 %v11803_v31  ;;  %9182 = vmatmul.mubr.bf16.gmra.mrb[24].mxu0 %v11801_v29 }
 0xcfe   : > { %8858 = vmatprep.mubr.bf16.mxu1 %v17415_v28  ;;  %9191 = vmatprep.mubr.bf16.mxu0 %v17415_v28 }
 0xd05   : > { %8859 = vmatmul.mubr.bf16.gmra.mrb[32].mxu1 %v11804_v57  ;;  %9192 = vmatmul.mubr.bf16.gmra.mrb[28].mxu0 %v11802_v58 }
 0xd06   : > { %8868 = vmatprep.mubr.bf16.mxu1 %v17415_v28  ;;  %9201 = vmatprep.mubr.bf16.mxu0 %v17415_v28 }
 0xd0d   : > { %8869 = vmatmul.mubr.bf16.gmra.mrb[36].mxu1 %v11805_v6  ;;  %9202 = vmatmul.mubr.bf16.gmra.mrb[32].mxu0 %v11803_v31  ;;  %v16447_v31 = vld [vmem:[%s16886_s17 + $0xe8] sm:$0xff]  }
 0xd0e   : > { %8878 = vmatprep.mubr.bf16.mxu1 %v17415_v28  ;;  %9211 = vmatprep.mubr.bf16.mxu0 %v17415_v28 }
 0xd15   : > { %8879 = vmatmul.mubr.bf16.gmra.mrb[40].mxu1 %v11806_v53  ;;  %9212 = vmatmul.mubr.bf16.gmra.mrb[36].mxu0 %v11804_v57 }
 0xd16   : > { %8888 = vmatprep.mubr.bf16.mxu1 %v17415_v28  ;;  %9221 = vmatprep.mubr.bf16.mxu0 %v17415_v28 }
 0xd1d   : > { %8889 = vmatmul.mubr.bf16.gmra.mrb[44].mxu1 %v11807_v61  ;;  %9222 = vmatmul.mubr.bf16.gmra.mrb[40].mxu0 %v11805_v6 }
 0xd1e   : > { %8898 = vmatprep.mubr.bf16.mxu1 %v17415_v28  ;;  %9231 = vmatprep.mubr.bf16.mxu0 %v17415_v28 }
 0xd25   : > { %8899 = vmatmul.mubr.bf16.gmra.mrb[48].mxu1 %v11808_v4  ;;  %9232 = vmatmul.mubr.bf16.gmra.mrb[44].mxu0 %v11806_v53 }
 0xd26   : > { %8908 = vmatprep.mubr.bf16.mxu1 %v17415_v28  ;;  %9241 = vmatprep.mubr.bf16.mxu0 %v17415_v28 }
 0xd2d   : > { %8909 = vmatmul.mubr.bf16.gmra.mrb[52].mxu1 %v11809_v17  ;;  %9242 = vmatmul.mubr.bf16.gmra.mrb[48].mxu0 %v11807_v61 }
 0xd2e   : > { %8918 = vmatprep.mubr.bf16.mxu1 %v17415_v28  ;;  %9251 = vmatprep.mubr.bf16.mxu0 %v17415_v28 }
 0xd35   : > { %8919 = vmatmul.mubr.bf16.gmra.mrb[56].mxu1 %v11810_v12  ;;  %9252 = vmatmul.mubr.bf16.gmra.mrb[52].mxu0 %v11808_v4 }
 0xd36   : > { %8928 = vmatprep.mubr.bf16.mxu1 %v17415_v28  ;;  %9261 = vmatprep.mubr.bf16.mxu0 %v17415_v28 }
 0xd3d   : > { %8929 = vmatmul.mubr.bf16.gmra.mrb[60].mxu1 %v11811_v32  ;;  %9262 = vmatmul.mubr.bf16.gmra.mrb[56].mxu0 %v11809_v17 }
 0xd3e   : > { %8938 = vmatprep.mubr.bf16.mxu1 %v17415_v28  ;;  %9271 = vmatprep.mubr.bf16.mxu0 %v17415_v28 }
 0xd45   : > { %8939 = vmatmul.mubr.bf16.gmra.mrb[64].mxu1 %v11812_v9  ;;  %9272 = vmatmul.mubr.bf16.gmra.mrb[60].mxu0 %v11810_v12 }
 0xd46   : > { %8948 = vmatprep.mubr.bf16.mxu1 %v17415_v28  ;;  %9281 = vmatprep.mubr.bf16.mxu0 %v17415_v28 }
 0xd4d   : > { %8949 = vmatmul.mubr.bf16.gmra.mrb[68].mxu1 %v11813_v59  ;;  %9282 = vmatmul.mubr.bf16.gmra.mrb[64].mxu0 %v11811_v32 }
 0xd4e   : > { %8958 = vmatprep.mubr.bf16.mxu1 %v17415_v28  ;;  %9291 = vmatprep.mubr.bf16.mxu0 %v17415_v28 }
 0xd55   : > { %8959 = vmatmul.mubr.bf16.gmra.mrb[72].mxu1 %v11814_v40  ;;  %9292 = vmatmul.mubr.bf16.gmra.mrb[68].mxu0 %v11812_v9 }
 0xd56   : > { %8968 = vmatprep.mubr.bf16.mxu1 %v17415_v28  ;;  %9301 = vmatprep.mubr.bf16.mxu0 %v17415_v28 }
 0xd5d   : > { %8969 = vmatmul.mubr.bf16.gmra.mrb[76].mxu1 %v11815_v21  ;;  %9302 = vmatmul.mubr.bf16.gmra.mrb[72].mxu0 %v11813_v59 }
 0xd5e   : > { %8978 = vmatprep.mubr.bf16.mxu1 %v17415_v28  ;;  %9311 = vmatprep.mubr.bf16.mxu0 %v17415_v28 }
 0xd65   : > { %8979 = vmatmul.mubr.bf16.gmra.mrb[80].mxu1 %v11816_v34  ;;  %9312 = vmatmul.mubr.bf16.gmra.mrb[76].mxu0 %v11814_v40  ;;  %v12440_v40 = vmov 1966171168  }
 0xd66   : > { %8988 = vmatprep.mubr.bf16.mxu1 %v17415_v28  ;;  %9321 = vmatprep.mubr.bf16.mxu0 %v17415_v28 }
 0xd6d   : > { %8989 = vmatmul.mubr.bf16.gmra.mrb[84].mxu1 %v11817_v35  ;;  %9322 = vmatmul.mubr.bf16.gmra.mrb[80].mxu0 %v11815_v21  ;;  %v9857_v21 = vunpack.c.l.s4 %v12440_v40 }
 0xd6e   : > { %8998 = vmatprep.mubr.bf16.mxu1 %v17415_v28  ;;  %9331 = vmatprep.mubr.bf16.mxu0 %v17415_v28 }
 0xd75   : > { %8999 = vmatmul.mubr.bf16.gmra.mrb[88].mxu1 %v11818_v43  ;;  %9332 = vmatmul.mubr.bf16.gmra.mrb[84].mxu0 %v11816_v34  ;;  %v9859_v34 = vlaneseq }
 0xd76   : > { %9008 = vmatprep.mubr.bf16.mxu1 %v17415_v28  ;;  %9341 = vmatprep.mubr.bf16.mxu0 %v17415_v28 }
 0xd77   : > { %vm10079_vm1 = vcmp.lt.s32.totalorder %v9859_v34, 512 }
 0xd7d   : > { %9009 = vmatmul.mubr.bf16.gmra.mrb[92].mxu1 %v11819_v39  ;;  %9342 = vmatmul.mubr.bf16.gmra.mrb[88].mxu0 %v11817_v35 }
 0xd7e   : > { %9018 = vmatprep.mubr.bf16.mxu1 %v17415_v28  ;;  %9351 = vmatprep.mubr.bf16.mxu0 %v17415_v28 }
 0xd85   : > { %9019 = vmatmul.mubr.bf16.gmra.mrb[96].mxu1 %v11820_v22  ;;  %9352 = vmatmul.mubr.bf16.gmra.mrb[92].mxu0 %v11818_v43 }
 0xd86   : > { %9028 = vmatprep.mubr.bf16.mxu1 %v17415_v28  ;;  %9361 = vmatprep.mubr.bf16.mxu0 %v17415_v28 }
 0xd8d   : > { %9029 = vmatmul.mubr.bf16.gmra.mrb[100].mxu1 %v11821_v42  ;;  %9362 = vmatmul.mubr.bf16.gmra.mrb[96].mxu0 %v11819_v39 }
 0xd8e   : > { %9038 = vmatprep.mubr.bf16.mxu1 %v17415_v28  ;;  %9371 = vmatprep.mubr.bf16.mxu0 %v17415_v28 }
 0xd95   : > { %9039 = vmatmul.mubr.bf16.gmra.mrb[104].mxu1 %v11822_v26  ;;  %9372 = vmatmul.mubr.bf16.gmra.mrb[100].mxu0 %v11820_v22 }
 0xd96   : > { %9048 = vmatprep.mubr.bf16.mxu1 %v17415_v28  ;;  %9381 = vmatprep.mubr.bf16.mxu0 %v17415_v28 }
 0xd9d   : > { %9049 = vmatmul.mubr.bf16.gmra.mrb[108].mxu1 %v11823_v48  ;;  %9382 = vmatmul.mubr.bf16.gmra.mrb[104].mxu0 %v11821_v42 }
 0xd9e   : > { %9058 = vmatprep.mubr.bf16.mxu1 %v17415_v28  ;;  %9391 = vmatprep.mubr.bf16.mxu0 %v17415_v28 }
 0xda0   : > { %v8790_v19 = vpop.f32.mrb[4].mxu1 }
 0xda1   : > { %v8791_v13 = vadd.f32 %v8790_v19, %v8247_v44  ;;  %v8792_v45 = vpop.f32.mrb[5].mxu1  ;;  %v16456_v19 = vpop.permute.xlu0 %8281 }
 0xda2   : > { %v8793_v27 = vadd.f32 %v8792_v45, %v8247_v44  ;;  %v8794_v1 = vpop.f32.mrb[6].mxu1 }
 0xda3   : > { %v8795_v7 = vadd.f32 %v8794_v1, %v8252_v63  ;;  %v8796_v14 = vpop.f32.mrb[7].mxu1  ;;  %v9462_v8 = vmax.f32 %v8791_v13, 0.0  ;;  %v16458_v13 = vpop.permute.xlu1 %8276 }
 0xda4   : > { %v8797_v10 = vadd.f32 %v8796_v14, %v8252_v63  ;;  %v9463_v46 = vmax.f32 %v8793_v27, 0.0 }
 0xda5   : > { %v9466_v50 = vmax.f32 %v8795_v7, 0.0  ;;  %9059 = vmatmul.mubr.bf16.gmra.mrb[112].mxu1 %v16418_v41  ;;  %9392 = vmatmul.mubr.bf16.gmra.mrb[108].mxu0 %v11822_v26 }
 0xda6   : > { %v9467_v52 = vmax.f32 %v8797_v10, 0.0  ;;  %9068 = vmatprep.mubr.bf16.mxu1 %v17415_v28  ;;  %9401 = vmatprep.mubr.bf16.mxu0 %v17415_v28  ;;  %v9858_v10 = vunpack.c.0.s8 %v9857_v21 }
 0xda7   : > { %v9718_v24 = vpack.c.bf16 %v9466_v50, %v9462_v8  ;;  %v9860_v8 = vshrl.u32 %v9859_v34, 7 }
 0xda8   : > { %v9719_v62 = vpack.c.bf16 %v9467_v52, %v9463_v46  ;;  %v8800_v11 = vpop.f32.mrb[8].mxu1 }
 0xda9   : > { %v8801_v54 = vadd.f32 %v8800_v11, %v16423_v51  ;;  %v8802_v47 = vpop.f32.mrb[9].mxu1 }
 0xdaa   : > { %v8803_v2 = vadd.f32 %v8802_v47, %v16423_v51  ;;  %v8804_v15 = vpop.f32.mrb[10].mxu1  ;;  %9876 = vmatprep.subr.bf16.mxu1 %v9719_v62  ;;  %v16471_v62 = vld.sshfl [vmem:[%s16888_s19] sm:$0x33 pattern:$0x75316420] }
 0xdab   : > { %v8805_v23 = vadd.f32 %v8804_v15, %v16425_v20  ;;  %v8806_v38 = vpop.f32.mrb[11].mxu1  ;;  %9877 = vmatpush1.bf16.msra.mxu1 %v9718_v24  ;;  %v9470_v25 = vmax.f32 %v8801_v54, 0.0 }
 0xdac   : > { %v8807_v5 = vadd.f32 %v8806_v38, %v16425_v20  ;;  %v9471_v3 = vmax.f32 %v8803_v2, 0.0 }
 0xdad   : > { %v9474_v55 = vmax.f32 %v8805_v23, 0.0  ;;  %9069 = vmatmul.mubr.bf16.gmra.mrb[116].mxu1 %v16431_v30  ;;  %9402 = vmatmul.mubr.bf16.gmra.mrb[112].mxu0 %v11823_v48 }
 0xdae   : > { %v9475_v36 = vmax.f32 %v8807_v5, 0.0  ;;  %9078 = vmatprep.mubr.bf16.mxu1 %v17415_v28  ;;  %9411 = vmatprep.mubr.bf16.mxu0 %v17415_v28 }
 0xdaf   : > { %v9722_v60 = vpack.c.bf16 %v9474_v55, %v9470_v25 }
 0xdb0   : > { %v9723_v49 = vpack.c.bf16 %v9475_v36, %v9471_v3  ;;  %v8810_v56 = vpop.f32.mrb[12].mxu1  ;;  %v9143_v37 = vpop.f32.mrb[8].mxu0  ;;  %v9855_v3 = vcombine.high %v16471_v62, %v16471_v62 }
 0xdb1   : > { %v8811_v33 = vadd.f32 %v8810_v56, %v16441_v16  ;;  %v9144_v0 = vadd.f32 %v9143_v37, %v8247_v44  ;;  %v8812_v29 = vpop.f32.mrb[13].mxu1  ;;  %v9145_v58 = vpop.f32.mrb[9].mxu0 }
 0xdb2   : > { %v8813_v57 = vadd.f32 %v8812_v29, %v16441_v16  ;;  %v9146_v6 = vadd.f32 %v9145_v58, %v8247_v44  ;;  %v8814_v53 = vpop.f32.mrb[14].mxu1  ;;  %v9147_v61 = vpop.f32.mrb[10].mxu0  ;;  %9878 = vmatprep.subr.bf16.mxu1 %v9723_v49 }
 0xdb3   : > { %v8815_v4 = vadd.f32 %v8814_v53, %v16439_v18  ;;  %v9148_v17 = vadd.f32 %v9147_v61, %v8252_v63  ;;  %v8816_v12 = vpop.f32.mrb[15].mxu1  ;;  %v9149_v32 = vpop.f32.mrb[11].mxu0  ;;  %9879 = vmatpush1.bf16.msra.mxu1 %v9722_v60  ;;  %v9478_v35 = vmax.f32 %v8811_v33, 0.0  ;;  %v9464_v43 = vmax.f32 %v9144_v0, 0.0 }
 0xdb4   : > { %v8817_v9 = vadd.f32 %v8816_v12, %v16439_v18  ;;  %v9150_v59 = vadd.f32 %v9149_v32, %v8252_v63  ;;  %v9479_v42 = vmax.f32 %v8813_v57, 0.0  ;;  %v9465_v26 = vmax.f32 %v9146_v6, 0.0  ;;  %v16489_v58 = vpop.permute.xlu1 %8286 }
 0xdb5   : > { %v9482_v39 = vmax.f32 %v8815_v4, 0.0  ;;  %v9468_v22 = vmax.f32 %v9148_v17, 0.0  ;;  %9079 = vmatmul.mubr.bf16.gmra.mrb[120].mxu1 %v16447_v31  ;;  %9412 = vmatmul.mubr.bf16.gmra.mrb[116].mxu0 %v16418_v41  ;;  %v16463_v41 = vld [vmem:[%s16886_s17 + $0xf0] sm:$0xff]  }
 0xdb6   : > { %v9483_v48 = vmax.f32 %v8817_v9, 0.0  ;;  %v9469_v44 = vmax.f32 %v9150_v59, 0.0  ;;  %9088 = vmatprep.mubr.bf16.mxu1 %v17415_v28  ;;  %9421 = vmatprep.mubr.bf16.mxu0 %v17415_v28  ;;  %v16496_v59 = vld [vmem:[%s16886_s17 + $0xf8] sm:$0xff]  }
 0xdb7   : > { %v9726_v45 = vpack.c.bf16 %v9482_v39, %v9478_v35  ;;  %v9720_v63 = vpack.c.bf16 %v9468_v22, %v9464_v43 }
 0xdb8   : > { %v9727_v27 = vpack.c.bf16 %v9483_v48, %v9479_v42  ;;  %v9721_v1 = vpack.c.bf16 %v9469_v44, %v9465_v26  ;;  %v8820_v7 = vpop.f32.mrb[16].mxu1  ;;  %v9153_v14 = vpop.f32.mrb[12].mxu0 }
 0xdb9   : > { %v8821_v50 = vadd.f32 %v8820_v7, %v16458_v13  ;;  %v9154_v46 = vadd.f32 %v9153_v14, %v16423_v51  ;;  %v8822_v52 = vpop.f32.mrb[17].mxu1  ;;  %v9155_v24 = vpop.f32.mrb[13].mxu0 }
 0xdba   : > { %v8823_v11 = vadd.f32 %v8822_v52, %v16458_v13  ;;  %v9156_v54 = vadd.f32 %v9155_v24, %v16423_v51  ;;  %v8824_v47 = vpop.f32.mrb[18].mxu1  ;;  %v9157_v2 = vpop.f32.mrb[14].mxu0  ;;  %9880 = vmatprep.subr.bf16.mxu1 %v9727_v27  ;;  %9958 = vmatprep.subr.bf16.mxu0 %v9721_v1  ;;  %v16481_v51 = vsub.s32 %v9858_v10, %v9860_v8 }
 0xdbb   : > { %v8825_v15 = vadd.f32 %v8824_v47, %v16456_v19  ;;  %v9158_v23 = vadd.f32 %v9157_v2, %v16425_v20  ;;  %v8826_v38 = vpop.f32.mrb[19].mxu1  ;;  %v9159_v5 = vpop.f32.mrb[15].mxu0  ;;  %9881 = vmatpush1.bf16.msra.mxu1 %v9726_v45  ;;  %9959 = vmatpush1.bf16.msra.mxu0 %v9720_v63  ;;  %v9486_v36 = vmax.f32 %v8821_v50, 0.0  ;;  %v9472_v60 = vmax.f32 %v9154_v46, 0.0 }
 0xdbc   : > { %v8827_v25 = vadd.f32 %v8826_v38, %v16456_v19  ;;  %v9160_v55 = vadd.f32 %v9159_v5, %v16425_v20  ;;  %v9487_v37 = vmax.f32 %v8823_v11, 0.0  ;;  %v9473_v33 = vmax.f32 %v9156_v54, 0.0  ;;  %v16487_v20 = vpop.permute.xlu0 %8291  ;;  %v16513_v46 = vpop.permute.xlu1 %8296 }
 0xdbd   : > { %v9490_v49 = vmax.f32 %v8825_v15, 0.0  ;;  %v9476_v56 = vmax.f32 %v9158_v23, 0.0  ;;  %9089 = vmatmul.mubr.bf16.gmra.mrb[124].mxu1 %v16463_v41  ;;  %9422 = vmatmul.mubr.bf16.gmra.mrb[120].mxu0 %v16431_v30  ;;  %v16501_v39 = vrot.slane %v9855_v3, %v16481_v51 }
 0xdbe   : > { %v9491_v0 = vmax.f32 %v8827_v25, 0.0  ;;  %v9477_v29 = vmax.f32 %v9160_v55, 0.0  ;;  %9098 = vmatprep.mubr.bf16.mxu1 %v17415_v28  ;;  %9431 = vmatprep.mubr.bf16.mxu0 %v17415_v28 }
 0xdbf   : > { %v9730_v57 = vpack.c.bf16 %v9490_v49, %v9486_v36  ;;  %v9724_v6 = vpack.c.bf16 %v9476_v56, %v9472_v60 }
 0xdc0   : > { %v9731_v53 = vpack.c.bf16 %v9491_v0, %v9487_v37  ;;  %v9725_v61 = vpack.c.bf16 %v9477_v29, %v9473_v33  ;;  %v8830_v4 = vpop.f32.mrb[20].mxu1  ;;  %v9163_v17 = vpop.f32.mrb[16].mxu0 }
 0xdc1   : > { %v8831_v30 = vadd.f32 %v8830_v4, %v16489_v58  ;;  %v9164_v12 = vadd.f32 %v9163_v17, %v16441_v16  ;;  %v8832_v32 = vpop.f32.mrb[21].mxu1  ;;  %v9165_v9 = vpop.f32.mrb[17].mxu0 }
 0xdc2   : > { %v8833_v40 = vadd.f32 %v8832_v32, %v16489_v58  ;;  %v9166_v21 = vadd.f32 %v9165_v9, %v16441_v16  ;;  %v8834_v35 = vpop.f32.mrb[22].mxu1  ;;  %v9167_v43 = vpop.f32.mrb[18].mxu0  ;;  %9882 = vmatprep.subr.bf16.mxu1 %v9731_v53  ;;  %9960 = vmatprep.subr.bf16.mxu0 %v9725_v61 }
 0xdc3   : > { %v8835_v22 = vadd.f32 %v8834_v35, %v16487_v20  ;;  %v9168_v42 = vadd.f32 %v9167_v43, %v16439_v18  ;;  %v8836_v26 = vpop.f32.mrb[23].mxu1  ;;  %v9169_v48 = vpop.f32.mrb[19].mxu0  ;;  %9883 = vmatpush1.bf16.msra.mxu1 %v9730_v57  ;;  %9961 = vmatpush1.bf16.msra.mxu0 %v9724_v6  ;;  %v9494_v16 = vmax.f32 %v8831_v30, 0.0  ;;  %v9480_v63 = vmax.f32 %v9164_v12, 0.0 }
 0xdc4   : > { %v8837_v44 = vadd.f32 %v8836_v26, %v16487_v20  ;;  %v9170_v45 = vadd.f32 %v9169_v48, %v16439_v18  ;;  %v9495_v7 = vmax.f32 %v8833_v40, 0.0  ;;  %v9481_v14 = vmax.f32 %v9166_v21, 0.0  ;;  %v16511_v50 = vpop.permute.xlu0 %8301  ;;  %v16527_v17 = vpop.permute.xlu1 %8306 }
 0xdc5   : > { %v9498_v27 = vmax.f32 %v8835_v22, 0.0  ;;  %v9484_v1 = vmax.f32 %v9168_v42, 0.0  ;;  %9099 = vmatmul.mubr.bf16.gmra.mrb[128].mxu1 %v16496_v59  ;;  %9432 = vmatmul.mubr.bf16.gmra.mrb[124].mxu0 %v16447_v31 }
 0xdc6   : > { %v9499_v10 = vmax.f32 %v8837_v44, 0.0  ;;  %v9485_v8 = vmax.f32 %v9170_v45, 0.0  ;;  %9441 = vmatprep.mubr.bf16.mxu0 %v17415_v28  ;;  %9908 = vmatprep.mubr.bf16.mxu1 %v16501_v39 }
 0xdc7   : > { %v9734_v18 = vpack.c.bf16 %v9498_v27, %v9494_v16  ;;  %v9728_v52 = vpack.c.bf16 %v9484_v1, %v9480_v63 }
 0xdc8   : > { %v9735_v24 = vpack.c.bf16 %v9499_v10, %v9495_v7  ;;  %v9729_v11 = vpack.c.bf16 %v9485_v8, %v9481_v14  ;;  %v8840_v54 = vpop.f32.mrb[24].mxu1  ;;  %v9173_v47 = vpop.f32.mrb[20].mxu0 }
 0xdc9   : > { %v8841_v31 = vadd.f32 %v8840_v54, %v16513_v46  ;;  %v9174_v2 = vadd.f32 %v9173_v47, %v16458_v13  ;;  %v8842_v15 = vpop.f32.mrb[25].mxu1  ;;  %v9175_v23 = vpop.f32.mrb[21].mxu0 }
 0xdca   : > { %v8843_v38 = vadd.f32 %v8842_v15, %v16513_v46  ;;  %v9176_v5 = vadd.f32 %v9175_v23, %v16458_v13  ;;  %v8844_v25 = vpop.f32.mrb[26].mxu1  ;;  %v9177_v55 = vpop.f32.mrb[22].mxu0  ;;  %9884 = vmatprep.subr.bf16.mxu1 %v9735_v24  ;;  %9962 = vmatprep.subr.bf16.mxu0 %v9729_v11 }
 0xdcb   : > { %v8845_v3 = vadd.f32 %v8844_v25, %v16511_v50  ;;  %v9178_v36 = vadd.f32 %v9177_v55, %v16456_v19  ;;  %v8846_v60 = vpop.f32.mrb[27].mxu1  ;;  %v9179_v49 = vpop.f32.mrb[23].mxu0  ;;  %9885 = vmatpush1.bf16.msra.mxu1 %v9734_v18  ;;  %9963 = vmatpush1.bf16.msra.mxu0 %v9728_v52  ;;  %v9502_v33 = vmax.f32 %v8841_v31, 0.0  ;;  %v9488_v0 = vmax.f32 %v9174_v2, 0.0 }
 0xdcc   : > { %v8847_v56 = vadd.f32 %v8846_v60, %v16511_v50  ;;  %v9180_v37 = vadd.f32 %v9179_v49, %v16456_v19  ;;  %v9503_v57 = vmax.f32 %v8843_v38, 0.0  ;;  %v9489_v6 = vmax.f32 %v9176_v5, 0.0  ;;  %v16525_v4 = vpop.permute.xlu0 %8311  ;;  %v16541_v11 = vpop.permute.xlu1 %8316 }
 0xdcd   : > { %v9506_v29 = vmax.f32 %v8845_v3, 0.0  ;;  %v9492_v13 = vmax.f32 %v9178_v36, 0.0  ;;  %9442 = vmatmul.mubr.bf16.gmra.mrb[128].mxu0 %v16463_v41 }
 0xdce   : > { %v9507_v53 = vmax.f32 %v8847_v56, 0.0  ;;  %v9493_v61 = vmax.f32 %v9180_v37, 0.0  ;;  %9451 = vmatprep.mubr.bf16.mxu0 %v17415_v28 }
 0xdcf   : > { %v9738_v30 = vpack.c.bf16 %v9506_v29, %v9502_v33  ;;  %v9732_v12 = vpack.c.bf16 %v9492_v13, %v9488_v0 }
 0xdd0   : > { %v9739_v32 = vpack.c.bf16 %v9507_v53, %v9503_v57  ;;  %v9733_v19 = vpack.c.bf16 %v9493_v61, %v9489_v6  ;;  %v8850_v9 = vpop.f32.mrb[28].mxu1  ;;  %v9183_v40 = vpop.f32.mrb[24].mxu0 }
 0xdd1   : > { %v8851_v21 = vadd.f32 %v8850_v9, %v16527_v17  ;;  %v9184_v41 = vadd.f32 %v9183_v40, %v16489_v58  ;;  %v8852_v35 = vpop.f32.mrb[29].mxu1  ;;  %v9185_v43 = vpop.f32.mrb[25].mxu0 }
 0xdd2   : > { %v8853_v22 = vadd.f32 %v8852_v35, %v16527_v17  ;;  %v9186_v28 = vadd.f32 %v9185_v43, %v16489_v58  ;;  %v8854_v42 = vpop.f32.mrb[30].mxu1  ;;  %v9187_v26 = vpop.f32.mrb[26].mxu0  ;;  %9886 = vmatprep.subr.bf16.mxu1 %v9739_v32  ;;  %9964 = vmatprep.subr.bf16.mxu0 %v9733_v19 }
 0xdd3   : > { %v8855_v48 = vadd.f32 %v8854_v42, %v16525_v4  ;;  %v9188_v44 = vadd.f32 %v9187_v26, %v16487_v20  ;;  %v8856_v45 = vpop.f32.mrb[31].mxu1  ;;  %v9189_v16 = vpop.f32.mrb[27].mxu0  ;;  %9887 = vmatpush1.bf16.msra.mxu1 %v9738_v30  ;;  %9965 = vmatpush1.bf16.msra.mxu0 %v9732_v12  ;;  %v9510_v1 = vmax.f32 %v8851_v21, 0.0  ;;  %v9496_v7 = vmax.f32 %v9184_v41, 0.0 }
 0xdd4   : > { %v8857_v63 = vadd.f32 %v8856_v45, %v16525_v4  ;;  %v9190_v27 = vadd.f32 %v9189_v16, %v16487_v20  ;;  %v9511_v10 = vmax.f32 %v8853_v22, 0.0  ;;  %v9497_v8 = vmax.f32 %v9186_v28, 0.0  ;;  %v16539_v24 = vpop.permute.xlu0 %8321  ;;  %v16553_v32 = vpop.permute.xlu1 %8326 }
 0xdd5   : > { %v9514_v14 = vmax.f32 %v8855_v48, 0.0  ;;  %v9500_v58 = vmax.f32 %v9188_v44, 0.0  ;;  %9452 = vmatmul.mubr.bf16.gmra.mrb[132].mxu0 %v16496_v59 }
 0xdd6   : > { %v9515_v18 = vmax.f32 %v8857_v63, 0.0  ;;  %v9501_v52 = vmax.f32 %v9190_v27, 0.0  ;;  %9990 = vmatprep.mubr.bf16.mxu0 %v16501_v39 }
 0xdd7   : > { %v9742_v54 = vpack.c.bf16 %v9514_v14, %v9510_v1  ;;  %v9736_v47 = vpack.c.bf16 %v9500_v58, %v9496_v7 }
 0xdd8   : > { %v9743_v31 = vpack.c.bf16 %v9515_v18, %v9511_v10  ;;  %v9737_v20 = vpack.c.bf16 %v9501_v52, %v9497_v8  ;;  %v8860_v2 = vpop.f32.mrb[32].mxu1  ;;  %v9193_v15 = vpop.f32.mrb[28].mxu0 }
 0xdd9   : > { %v8861_v23 = vadd.f32 %v8860_v2, %v16541_v11  ;;  %v9194_v59 = vadd.f32 %v9193_v15, %v16513_v46  ;;  %v8862_v38 = vpop.f32.mrb[33].mxu1  ;;  %v9195_v5 = vpop.f32.mrb[29].mxu0 }
 0xdda   : > { %v8863_v25 = vadd.f32 %v8862_v38, %v16541_v11  ;;  %v9196_v55 = vadd.f32 %v9195_v5, %v16513_v46  ;;  %v8864_v3 = vpop.f32.mrb[34].mxu1  ;;  %v9197_v36 = vpop.f32.mrb[30].mxu0  ;;  %9888 = vmatprep.subr.bf16.mxu1 %v9743_v31  ;;  %9966 = vmatprep.subr.bf16.mxu0 %v9737_v20 }
 0xddb   : > { %v8865_v60 = vadd.f32 %v8864_v3, %v16539_v24  ;;  %v9198_v49 = vadd.f32 %v9197_v36, %v16511_v50  ;;  %v8866_v56 = vpop.f32.mrb[35].mxu1  ;;  %v9199_v37 = vpop.f32.mrb[31].mxu0  ;;  %9889 = vmatpush1.bf16.msra.mxu1 %v9742_v54  ;;  %9967 = vmatpush1.bf16.msra.mxu0 %v9736_v47  ;;  %v9518_v29 = vmax.f32 %v8861_v23, 0.0  ;;  %v9504_v13 = vmax.f32 %v9194_v59, 0.0 }
 0xddc   : > { %v8867_v33 = vadd.f32 %v8866_v56, %v16539_v24  ;;  %v9200_v0 = vadd.f32 %v9199_v37, %v16511_v50  ;;  %v9519_v6 = vmax.f32 %v8863_v25, 0.0  ;;  %v9505_v53 = vmax.f32 %v9196_v55, 0.0  ;;  %v16551_v12 = vpop.permute.xlu0 %8331  ;;  %v16565_v31 = vpop.permute.xlu1 %8336 }
 0xddd   : > { %v9522_v57 = vmax.f32 %v8865_v60, 0.0  ;;  %v9508_v46 = vmax.f32 %v9198_v49, 0.0 }
 0xdde   : > { %v9523_v61 = vmax.f32 %v8867_v33, 0.0  ;;  %v9509_v30 = vmax.f32 %v9200_v0, 0.0 }
 0xddf   : > { %v9746_v19 = vpack.c.bf16 %v9522_v57, %v9518_v29  ;;  %v9740_v9 = vpack.c.bf16 %v9508_v46, %v9504_v13 }
 0xde0   : > { %v9747_v40 = vpack.c.bf16 %v9523_v61, %v9519_v6  ;;  %v9741_v21 = vpack.c.bf16 %v9509_v30, %v9505_v53  ;;  %v8870_v41 = vpop.f32.mrb[36].mxu1  ;;  %v9203_v35 = vpop.f32.mrb[32].mxu0 }
 0xde1   : > { %v8871_v50 = vadd.f32 %v8870_v41, %v16553_v32  ;;  %v9204_v43 = vadd.f32 %v9203_v35, %v16527_v17  ;;  %v8872_v22 = vpop.f32.mrb[37].mxu1  ;;  %v9205_v28 = vpop.f32.mrb[33].mxu0 }
 0xde2   : > { %v8873_v42 = vadd.f32 %v8872_v22, %v16553_v32  ;;  %v9206_v26 = vadd.f32 %v9205_v28, %v16527_v17  ;;  %v8874_v48 = vpop.f32.mrb[38].mxu1  ;;  %v9207_v44 = vpop.f32.mrb[34].mxu0  ;;  %9890 = vmatprep.subr.bf16.mxu1 %v9747_v40  ;;  %9968 = vmatprep.subr.bf16.mxu0 %v9741_v21 }
 0xde3   : > { %v8875_v45 = vadd.f32 %v8874_v48, %v16551_v12  ;;  %v9208_v16 = vadd.f32 %v9207_v44, %v16525_v4  ;;  %v8876_v63 = vpop.f32.mrb[39].mxu1  ;;  %v9209_v27 = vpop.f32.mrb[35].mxu0  ;;  %9891 = vmatpush1.bf16.msra.mxu1 %v9746_v19  ;;  %9969 = vmatpush1.bf16.msra.mxu0 %v9740_v9  ;;  %v9526_v14 = vmax.f32 %v8871_v50, 0.0  ;;  %v9512_v58 = vmax.f32 %v9204_v43, 0.0 }
 0xde4   : > { %v8877_v1 = vadd.f32 %v8876_v63, %v16551_v12  ;;  %v9210_v7 = vadd.f32 %v9209_v27, %v16525_v4  ;;  %v9527_v8 = vmax.f32 %v8873_v42, 0.0  ;;  %v9513_v18 = vmax.f32 %v9206_v26, 0.0  ;;  %v16563_v47 = vpop.permute.xlu0 %8341  ;;  %v16577_v40 = vpop.permute.xlu1 %8346 }
 0xde5   : > { %v9530_v10 = vmax.f32 %v8875_v45, 0.0  ;;  %v9516_v17 = vmax.f32 %v9208_v16, 0.0 }
 0xde6   : > { %v9531_v52 = vmax.f32 %v8877_v1, 0.0  ;;  %v9517_v54 = vmax.f32 %v9210_v7, 0.0 }
 0xde7   : > { %v9750_v20 = vpack.c.bf16 %v9530_v10, %v9526_v14  ;;  %v9744_v2 = vpack.c.bf16 %v9516_v17, %v9512_v58 }
 0xde8   : > { %v9751_v15 = vpack.c.bf16 %v9531_v52, %v9527_v8  ;;  %v9745_v23 = vpack.c.bf16 %v9517_v54, %v9513_v18  ;;  %v8880_v59 = vpop.f32.mrb[40].mxu1  ;;  %v9213_v38 = vpop.f32.mrb[36].mxu0 }
 0xde9   : > { %v8881_v4 = vadd.f32 %v8880_v59, %v16565_v31  ;;  %v9214_v5 = vadd.f32 %v9213_v38, %v16541_v11  ;;  %v8882_v25 = vpop.f32.mrb[41].mxu1  ;;  %v9215_v55 = vpop.f32.mrb[37].mxu0 }
 0xdea   : > { %v8883_v3 = vadd.f32 %v8882_v25, %v16565_v31  ;;  %v9216_v36 = vadd.f32 %v9215_v55, %v16541_v11  ;;  %v8884_v60 = vpop.f32.mrb[42].mxu1  ;;  %v9217_v49 = vpop.f32.mrb[38].mxu0  ;;  %9892 = vmatprep.subr.bf16.mxu1 %v9751_v15  ;;  %9970 = vmatprep.subr.bf16.mxu0 %v9745_v23 }
 0xdeb   : > { %v8885_v56 = vadd.f32 %v8884_v60, %v16563_v47  ;;  %v9218_v37 = vadd.f32 %v9217_v49, %v16539_v24  ;;  %v8886_v33 = vpop.f32.mrb[43].mxu1  ;;  %v9219_v0 = vpop.f32.mrb[39].mxu0  ;;  %9893 = vmatpush1.bf16.msra.mxu1 %v9750_v20  ;;  %9971 = vmatpush1.bf16.msra.mxu0 %v9744_v2  ;;  %v9534_v57 = vmax.f32 %v8881_v4, 0.0  ;;  %v9520_v46 = vmax.f32 %v9214_v5, 0.0 }
 0xdec   : > { %v8887_v29 = vadd.f32 %v8886_v33, %v16563_v47  ;;  %v9220_v13 = vadd.f32 %v9219_v0, %v16539_v24  ;;  %v9535_v53 = vmax.f32 %v8883_v3, 0.0  ;;  %v9521_v61 = vmax.f32 %v9216_v36, 0.0  ;;  %v16575_v9 = vpop.permute.xlu0 %8351  ;;  %v16589_v15 = vpop.permute.xlu1 %8356 }
 0xded   : > { %v9538_v6 = vmax.f32 %v8885_v56, 0.0  ;;  %v9524_v11 = vmax.f32 %v9218_v37, 0.0 }
 0xdee   : > { %v9539_v30 = vmax.f32 %v8887_v29, 0.0  ;;  %v9525_v19 = vmax.f32 %v9220_v13, 0.0 }
 0xdef   : > { %v9754_v21 = vpack.c.bf16 %v9538_v6, %v9534_v57  ;;  %v9748_v41 = vpack.c.bf16 %v9524_v11, %v9520_v46 }
 0xdf0   : > { %v9755_v35 = vpack.c.bf16 %v9539_v30, %v9535_v53  ;;  %v9749_v50 = vpack.c.bf16 %v9525_v19, %v9521_v61  ;;  %v8890_v43 = vpop.f32.mrb[44].mxu1  ;;  %v9223_v22 = vpop.f32.mrb[40].mxu0 }
 0xdf1   : > { %v8891_v24 = vadd.f32 %v8890_v43, %v16577_v40  ;;  %v9224_v28 = vadd.f32 %v9223_v22, %v16553_v32  ;;  %v8892_v42 = vpop.f32.mrb[45].mxu1  ;;  %v9225_v26 = vpop.f32.mrb[41].mxu0 }
 0xdf2   : > { %v8893_v48 = vadd.f32 %v8892_v42, %v16577_v40  ;;  %v9226_v44 = vadd.f32 %v9225_v26, %v16553_v32  ;;  %v8894_v45 = vpop.f32.mrb[46].mxu1  ;;  %v9227_v16 = vpop.f32.mrb[42].mxu0  ;;  %9894 = vmatprep.subr.bf16.mxu1 %v9755_v35  ;;  %9972 = vmatprep.subr.bf16.mxu0 %v9749_v50 }
 0xdf3   : > { %v8895_v63 = vadd.f32 %v8894_v45, %v16575_v9  ;;  %v9228_v27 = vadd.f32 %v9227_v16, %v16551_v12  ;;  %v8896_v1 = vpop.f32.mrb[47].mxu1  ;;  %v9229_v7 = vpop.f32.mrb[43].mxu0  ;;  %9895 = vmatpush1.bf16.msra.mxu1 %v9754_v21  ;;  %9973 = vmatpush1.bf16.msra.mxu0 %v9748_v41  ;;  %v9542_v10 = vmax.f32 %v8891_v24, 0.0  ;;  %v9528_v17 = vmax.f32 %v9224_v28, 0.0 }
 0xdf4   : > { %v8897_v14 = vadd.f32 %v8896_v1, %v16575_v9  ;;  %v9230_v58 = vadd.f32 %v9229_v7, %v16551_v12  ;;  %v9543_v18 = vmax.f32 %v8893_v48, 0.0  ;;  %v9529_v52 = vmax.f32 %v9226_v44, 0.0  ;;  %v16587_v2 = vpop.permute.xlu0 %8361  ;;  %v16601_v35 = vpop.permute.xlu1 %8366 }
 0xdf5   : > { %v9546_v8 = vmax.f32 %v8895_v63, 0.0  ;;  %v9532_v32 = vmax.f32 %v9228_v27, 0.0 }
 0xdf6   : > { %v9547_v54 = vmax.f32 %v8897_v14, 0.0  ;;  %v9533_v20 = vmax.f32 %v9230_v58, 0.0 }
 0xdf7   : > { %v9758_v23 = vpack.c.bf16 %v9546_v8, %v9542_v10  ;;  %v9752_v59 = vpack.c.bf16 %v9532_v32, %v9528_v17 }
 0xdf8   : > { %v9759_v38 = vpack.c.bf16 %v9547_v54, %v9543_v18  ;;  %v9753_v4 = vpack.c.bf16 %v9533_v20, %v9529_v52  ;;  %v8900_v5 = vpop.f32.mrb[48].mxu1  ;;  %v9233_v25 = vpop.f32.mrb[44].mxu0 }
 0xdf9   : > { %v8901_v12 = vadd.f32 %v8900_v5, %v16589_v15  ;;  %v9234_v55 = vadd.f32 %v9233_v25, %v16565_v31  ;;  %v8902_v3 = vpop.f32.mrb[49].mxu1  ;;  %v9235_v36 = vpop.f32.mrb[45].mxu0 }
 0xdfa   : > { %v8903_v60 = vadd.f32 %v8902_v3, %v16589_v15  ;;  %v9236_v49 = vadd.f32 %v9235_v36, %v16565_v31  ;;  %v8904_v56 = vpop.f32.mrb[50].mxu1  ;;  %v9237_v37 = vpop.f32.mrb[46].mxu0  ;;  %9896 = vmatprep.subr.bf16.mxu1 %v9759_v38  ;;  %9974 = vmatprep.subr.bf16.mxu0 %v9753_v4 }
 0xdfb   : > { %v8905_v33 = vadd.f32 %v8904_v56, %v16587_v2  ;;  %v9238_v0 = vadd.f32 %v9237_v37, %v16563_v47  ;;  %v8906_v29 = vpop.f32.mrb[51].mxu1  ;;  %v9239_v13 = vpop.f32.mrb[47].mxu0  ;;  %9897 = vmatpush1.bf16.msra.mxu1 %v9758_v23  ;;  %9975 = vmatpush1.bf16.msra.mxu0 %v9752_v59  ;;  %v9550_v6 = vmax.f32 %v8901_v12, 0.0  ;;  %v9536_v11 = vmax.f32 %v9234_v55, 0.0 }
 0xdfc   : > { %v8907_v57 = vadd.f32 %v8906_v29, %v16587_v2  ;;  %v9240_v46 = vadd.f32 %v9239_v13, %v16563_v47  ;;  %v9551_v61 = vmax.f32 %v8903_v60, 0.0  ;;  %v9537_v30 = vmax.f32 %v9236_v49, 0.0  ;;  %v16599_v41 = vpop.permute.xlu0 %8371  ;;  %v16613_v38 = vpop.permute.xlu1 %8376 }
 0xdfd   : > { %v9554_v53 = vmax.f32 %v8905_v33, 0.0  ;;  %v9540_v31 = vmax.f32 %v9238_v0, 0.0 }
 0xdfe   : > { %v9555_v19 = vmax.f32 %v8907_v57, 0.0  ;;  %v9541_v21 = vmax.f32 %v9240_v46, 0.0 }
 0xdff   : > { %v9762_v50 = vpack.c.bf16 %v9554_v53, %v9550_v6  ;;  %v9756_v43 = vpack.c.bf16 %v9540_v31, %v9536_v11 }
 0xe00   : > { %v9763_v22 = vpack.c.bf16 %v9555_v19, %v9551_v61  ;;  %v9757_v24 = vpack.c.bf16 %v9541_v21, %v9537_v30  ;;  %v8910_v28 = vpop.f32.mrb[52].mxu1  ;;  %v9243_v42 = vpop.f32.mrb[48].mxu0 }
 0xe01   : > { %v8911_v47 = vadd.f32 %v8910_v28, %v16601_v35  ;;  %v9244_v26 = vadd.f32 %v9243_v42, %v16577_v40  ;;  %v8912_v48 = vpop.f32.mrb[53].mxu1  ;;  %v9245_v44 = vpop.f32.mrb[49].mxu0 }
 0xe02   : > { %v8913_v45 = vadd.f32 %v8912_v48, %v16601_v35  ;;  %v9246_v16 = vadd.f32 %v9245_v44, %v16577_v40  ;;  %v8914_v63 = vpop.f32.mrb[54].mxu1  ;;  %v9247_v27 = vpop.f32.mrb[50].mxu0  ;;  %9898 = vmatprep.subr.bf16.mxu1 %v9763_v22  ;;  %9976 = vmatprep.subr.bf16.mxu0 %v9757_v24 }
 0xe03   : > { %v8915_v1 = vadd.f32 %v8914_v63, %v16599_v41  ;;  %v9248_v7 = vadd.f32 %v9247_v27, %v16575_v9  ;;  %v8916_v14 = vpop.f32.mrb[55].mxu1  ;;  %v9249_v58 = vpop.f32.mrb[51].mxu0  ;;  %9899 = vmatpush1.bf16.msra.mxu1 %v9762_v50  ;;  %9977 = vmatpush1.bf16.msra.mxu0 %v9756_v43  ;;  %v9558_v8 = vmax.f32 %v8911_v47, 0.0  ;;  %v9544_v32 = vmax.f32 %v9244_v26, 0.0 }
 0xe04   : > { %v8917_v10 = vadd.f32 %v8916_v14, %v16599_v41  ;;  %v9250_v17 = vadd.f32 %v9249_v58, %v16575_v9  ;;  %v9559_v52 = vmax.f32 %v8913_v45, 0.0  ;;  %v9545_v54 = vmax.f32 %v9246_v16, 0.0  ;;  %v16611_v59 = vpop.permute.xlu0 %8381  ;;  %v16625_v22 = vpop.permute.xlu1 %8386 }
 0xe05   : > { %v9562_v18 = vmax.f32 %v8915_v1, 0.0  ;;  %v9548_v40 = vmax.f32 %v9248_v7, 0.0 }
 0xe06   : > { %v9563_v20 = vmax.f32 %v8917_v10, 0.0  ;;  %v9549_v23 = vmax.f32 %v9250_v17, 0.0 }
 0xe07   : > { %v9766_v4 = vpack.c.bf16 %v9562_v18, %v9558_v8  ;;  %v9760_v5 = vpack.c.bf16 %v9548_v40, %v9544_v32 }
 0xe08   : > { %v9767_v25 = vpack.c.bf16 %v9563_v20, %v9559_v52  ;;  %v9761_v12 = vpack.c.bf16 %v9549_v23, %v9545_v54  ;;  %v8920_v55 = vpop.f32.mrb[56].mxu1  ;;  %v9253_v3 = vpop.f32.mrb[52].mxu0 }
 0xe09   : > { %v8921_v9 = vadd.f32 %v8920_v55, %v16613_v38  ;;  %v9254_v36 = vadd.f32 %v9253_v3, %v16589_v15  ;;  %v8922_v60 = vpop.f32.mrb[57].mxu1  ;;  %v9255_v49 = vpop.f32.mrb[53].mxu0 }
 0xe0a   : > { %v8923_v56 = vadd.f32 %v8922_v60, %v16613_v38  ;;  %v9256_v37 = vadd.f32 %v9255_v49, %v16589_v15  ;;  %v8924_v33 = vpop.f32.mrb[58].mxu1  ;;  %v9257_v0 = vpop.f32.mrb[54].mxu0  ;;  %9900 = vmatprep.subr.bf16.mxu1 %v9767_v25  ;;  %9978 = vmatprep.subr.bf16.mxu0 %v9761_v12 }
 0xe0b   : > { %v8925_v29 = vadd.f32 %v8924_v33, %v16611_v59  ;;  %v9258_v13 = vadd.f32 %v9257_v0, %v16587_v2  ;;  %v8926_v57 = vpop.f32.mrb[59].mxu1  ;;  %v9259_v46 = vpop.f32.mrb[55].mxu0  ;;  %9901 = vmatpush1.bf16.msra.mxu1 %v9766_v4  ;;  %9979 = vmatpush1.bf16.msra.mxu0 %v9760_v5  ;;  %v9566_v53 = vmax.f32 %v8921_v9, 0.0  ;;  %v9552_v31 = vmax.f32 %v9254_v36, 0.0 }
 0xe0c   : > { %v8927_v6 = vadd.f32 %v8926_v57, %v16611_v59  ;;  %v9260_v11 = vadd.f32 %v9259_v46, %v16587_v2  ;;  %v9567_v30 = vmax.f32 %v8923_v56, 0.0  ;;  %v9553_v19 = vmax.f32 %v9256_v37, 0.0  ;;  %v16623_v43 = vpop.permute.xlu0 %8391  ;;  %v16637_v25 = vpop.permute.xlu1 %8396 }
 0xe0d   : > { %v9570_v61 = vmax.f32 %v8925_v29, 0.0  ;;  %v9556_v15 = vmax.f32 %v9258_v13, 0.0 }
 0xe0e   : > { %v9571_v21 = vmax.f32 %v8927_v6, 0.0  ;;  %v9557_v50 = vmax.f32 %v9260_v11, 0.0 }
 0xe0f   : > { %v9770_v24 = vpack.c.bf16 %v9570_v61, %v9566_v53  ;;  %v9764_v28 = vpack.c.bf16 %v9556_v15, %v9552_v31 }
 0xe10   : > { %v9771_v42 = vpack.c.bf16 %v9571_v21, %v9567_v30  ;;  %v9765_v47 = vpack.c.bf16 %v9557_v50, %v9553_v19  ;;  %v8930_v26 = vpop.f32.mrb[60].mxu1  ;;  %v9263_v48 = vpop.f32.mrb[56].mxu0 }
 0xe11   : > { %v8931_v2 = vadd.f32 %v8930_v26, %v16625_v22  ;;  %v9264_v44 = vadd.f32 %v9263_v48, %v16601_v35  ;;  %v8932_v45 = vpop.f32.mrb[61].mxu1  ;;  %v9265_v16 = vpop.f32.mrb[57].mxu0 }
 0xe12   : > { %v8933_v63 = vadd.f32 %v8932_v45, %v16625_v22  ;;  %v9266_v27 = vadd.f32 %v9265_v16, %v16601_v35  ;;  %v8934_v1 = vpop.f32.mrb[62].mxu1  ;;  %v9267_v7 = vpop.f32.mrb[58].mxu0  ;;  %9902 = vmatprep.subr.bf16.mxu1 %v9771_v42  ;;  %9980 = vmatprep.subr.bf16.mxu0 %v9765_v47 }
 0xe13   : > { %v8935_v14 = vadd.f32 %v8934_v1, %v16623_v43  ;;  %v9268_v58 = vadd.f32 %v9267_v7, %v16599_v41  ;;  %v8936_v10 = vpop.f32.mrb[63].mxu1  ;;  %v9269_v17 = vpop.f32.mrb[59].mxu0  ;;  %9903 = vmatpush1.bf16.msra.mxu1 %v9770_v24  ;;  %9981 = vmatpush1.bf16.msra.mxu0 %v9764_v28  ;;  %v9574_v18 = vmax.f32 %v8931_v2, 0.0  ;;  %v9560_v40 = vmax.f32 %v9264_v44, 0.0 }
 0xe14   : > { %v8937_v8 = vadd.f32 %v8936_v10, %v16623_v43  ;;  %v9270_v32 = vadd.f32 %v9269_v17, %v16599_v41  ;;  %v9575_v54 = vmax.f32 %v8933_v63, 0.0  ;;  %v9561_v20 = vmax.f32 %v9266_v27, 0.0  ;;  %v16635_v5 = vpop.permute.xlu0 %8401  ;;  %v16649_v42 = vpop.permute.xlu1 %8406 }
 0xe15   : > { %v9578_v52 = vmax.f32 %v8935_v14, 0.0  ;;  %v9564_v35 = vmax.f32 %v9268_v58, 0.0  ;;  %v16657_v10 = vrot.slane %v16471_v62, %v16481_v51  ;;  %v16665_v62 = vcombine.high %v16501_v39, %v16501_v39 }
 0xe16   : > { %v9579_v23 = vmax.f32 %v8937_v8, 0.0  ;;  %v9565_v4 = vmax.f32 %v9270_v32, 0.0 }
 0xe17   : > { %v9774_v12 = vpack.c.bf16 %v9578_v52, %v9574_v18  ;;  %v9768_v55 = vpack.c.bf16 %v9564_v35, %v9560_v40 }
 0xe18   : > { %v9775_v3 = vpack.c.bf16 %v9579_v23, %v9575_v54  ;;  %v9769_v9 = vpack.c.bf16 %v9565_v4, %v9561_v20  ;;  %v8940_v36 = vpop.f32.mrb[64].mxu1  ;;  %v9273_v60 = vpop.f32.mrb[60].mxu0 }
 0xe19   : > { %v8941_v41 = vadd.f32 %v8940_v36, %v16637_v25  ;;  %v9274_v49 = vadd.f32 %v9273_v60, %v16613_v38  ;;  %v8942_v56 = vpop.f32.mrb[65].mxu1  ;;  %v9275_v37 = vpop.f32.mrb[61].mxu0 }
 0xe1a   : > { %v8943_v33 = vadd.f32 %v8942_v56, %v16637_v25  ;;  %v9276_v0 = vadd.f32 %v9275_v37, %v16613_v38  ;;  %v8944_v29 = vpop.f32.mrb[66].mxu1  ;;  %v9277_v13 = vpop.f32.mrb[62].mxu0  ;;  %9904 = vmatprep.subr.bf16.mxu1 %v9775_v3  ;;  %9982 = vmatprep.subr.bf16.mxu0 %v9769_v9 }
 0xe1b   : > { %v8945_v57 = vadd.f32 %v8944_v29, %v16635_v5  ;;  %v9278_v46 = vadd.f32 %v9277_v13, %v16611_v59  ;;  %v8946_v6 = vpop.f32.mrb[67].mxu1  ;;  %v9279_v11 = vpop.f32.mrb[63].mxu0  ;;  %9905 = vmatpush1.bf16.msra.mxu1 %v9774_v12  ;;  %9983 = vmatpush1.bf16.msra.mxu0 %v9768_v55  ;;  %v9582_v61 = vmax.f32 %v8941_v41, 0.0  ;;  %v9568_v15 = vmax.f32 %v9274_v49, 0.0 }
 0xe1c   : > { %v8947_v53 = vadd.f32 %v8946_v6, %v16635_v5  ;;  %v9280_v31 = vadd.f32 %v9279_v11, %v16611_v59  ;;  %v9583_v19 = vmax.f32 %v8943_v33, 0.0  ;;  %v9569_v21 = vmax.f32 %v9276_v0, 0.0  ;;  %v16647_v28 = vpop.permute.xlu0 %8411  ;;  %v16670_v9 = vpop.permute.xlu1 %8416 }
 0xe1d   : > { %v9586_v30 = vmax.f32 %v8945_v57, 0.0  ;;  %v9572_v38 = vmax.f32 %v9278_v46, 0.0 }
 0xe1e   : > { %v9587_v50 = vmax.f32 %v8947_v53, 0.0  ;;  %v9573_v24 = vmax.f32 %v9280_v31, 0.0 }
 0xe1f   : > { %v9778_v47 = vpack.c.bf16 %v9586_v30, %v9582_v61  ;;  %v9772_v26 = vpack.c.bf16 %v9572_v38, %v9568_v15 }
 0xe20   : > { %v9779_v48 = vpack.c.bf16 %v9587_v50, %v9583_v19  ;;  %v9773_v2 = vpack.c.bf16 %v9573_v24, %v9569_v21  ;;  %v8950_v44 = vpop.f32.mrb[68].mxu1  ;;  %v9283_v45 = vpop.f32.mrb[64].mxu0 }
 0xe21   : > { %v8951_v59 = vadd.f32 %v8950_v44, %v16649_v42  ;;  %v9284_v16 = vadd.f32 %v9283_v45, %v16625_v22  ;;  %v8952_v63 = vpop.f32.mrb[69].mxu1  ;;  %v9285_v27 = vpop.f32.mrb[65].mxu0 }
 0xe22   : > { %v8953_v1 = vadd.f32 %v8952_v63, %v16649_v42  ;;  %v9286_v7 = vadd.f32 %v9285_v27, %v16625_v22  ;;  %v8954_v14 = vpop.f32.mrb[70].mxu1  ;;  %v9287_v58 = vpop.f32.mrb[66].mxu0  ;;  %9906 = vmatprep.subr.bf16.mxu1 %v9779_v48  ;;  %9984 = vmatprep.subr.bf16.mxu0 %v9773_v2 }
 0xe23   : > { %v8955_v17 = vadd.f32 %v8954_v14, %v16647_v28  ;;  %v9288_v8 = vadd.f32 %v9287_v58, %v16623_v43  ;;  %v8956_v32 = vpop.f32.mrb[71].mxu1  ;;  %v9289_v18 = vpop.f32.mrb[67].mxu0  ;;  %9907 = vmatpush1.bf16.msra.mxu1 %v9778_v47  ;;  %9985 = vmatpush1.bf16.msra.mxu0 %v9772_v26  ;;  %v9590_v40 = vmax.f32 %v8951_v59, 0.0  ;;  %v9576_v35 = vmax.f32 %v9284_v16, 0.0 }
 0xe24   : > { %v8957_v52 = vadd.f32 %v8956_v32, %v16647_v28  ;;  %v9290_v22 = vadd.f32 %v9289_v18, %v16623_v43  ;;  %v9591_v23 = vmax.f32 %v8953_v1, 0.0  ;;  %v9577_v4 = vmax.f32 %v9286_v7, 0.0  ;;  %v16668_v3 = vpop.permute.xlu0 %8421  ;;  %v16683_v48 = vpop.permute.xlu1 %8426 }
 0xe25   : > { %v9594_v54 = vmax.f32 %v8955_v17, 0.0  ;;  %v9580_v20 = vmax.f32 %v9288_v8, 0.0 }
 0xe26   : > { %v9595_v12 = vmax.f32 %v8957_v52, 0.0  ;;  %v9581_v55 = vmax.f32 %v9290_v22, 0.0  ;;  %9909 = vmatmul.mubr.bf16.vlgmr.msra.gmra.mrb[132].mxu1 %v16657_v10 }
 0xe27   : > { %v9782_v36 = vpack.c.bf16 %v9594_v54, %v9590_v40  ;;  %v9776_v60 = vpack.c.bf16 %v9580_v20, %v9576_v35  ;;  %9949 = vmatprep.mubr.bf16.mxu1 %v16665_v62 }
 0xe28   : > { %v9783_v43 = vpack.c.bf16 %v9595_v12, %v9591_v23  ;;  %v9777_v41 = vpack.c.bf16 %v9581_v55, %v9577_v4  ;;  %v8960_v49 = vpop.f32.mrb[72].mxu1  ;;  %v9293_v56 = vpop.f32.mrb[68].mxu0 }
 0xe29   : > { %v8961_v39 = vadd.f32 %v8960_v49, %v16670_v9  ;;  %v9294_v37 = vadd.f32 %v9293_v56, %v16637_v25  ;;  %v8962_v33 = vpop.f32.mrb[73].mxu1  ;;  %v9295_v0 = vpop.f32.mrb[69].mxu0 }
 0xe2a   : > { %v8963_v29 = vadd.f32 %v8962_v33, %v16670_v9  ;;  %v9296_v13 = vadd.f32 %v9295_v0, %v16637_v25  ;;  %v8964_v57 = vpop.f32.mrb[74].mxu1  ;;  %v9297_v46 = vpop.f32.mrb[70].mxu0  ;;  %9917 = vmatprep.subr.bf16.mxu1 %v9783_v43  ;;  %9986 = vmatprep.subr.bf16.mxu0 %v9777_v41 }
 0xe2b   : > { %v8965_v6 = vadd.f32 %v8964_v57, %v16668_v3  ;;  %v9298_v11 = vadd.f32 %v9297_v46, %v16635_v5  ;;  %v8966_v53 = vpop.f32.mrb[75].mxu1  ;;  %v9299_v31 = vpop.f32.mrb[71].mxu0  ;;  %9918 = vmatpush1.bf16.msra.mxu1 %v9782_v36  ;;  %9987 = vmatpush1.bf16.msra.mxu0 %v9776_v60  ;;  %v9598_v30 = vmax.f32 %v8961_v39, 0.0  ;;  %v9584_v38 = vmax.f32 %v9294_v37, 0.0 }
 0xe2c   : > { %v8967_v61 = vadd.f32 %v8966_v53, %v16668_v3  ;;  %v9300_v15 = vadd.f32 %v9299_v31, %v16635_v5  ;;  %v9599_v21 = vmax.f32 %v8963_v29, 0.0  ;;  %v9585_v50 = vmax.f32 %v9296_v13, 0.0  ;;  %v16681_v26 = vpop.permute.xlu0 %8431  ;;  %v16696_v43 = vpop.permute.xlu1 %8436 }
 0xe2d   : > { %v9602_v19 = vmax.f32 %v8965_v6, 0.0  ;;  %v9588_v25 = vmax.f32 %v9298_v11, 0.0 }
 0xe2e   : > { %v9603_v24 = vmax.f32 %v8967_v61, 0.0  ;;  %v9589_v47 = vmax.f32 %v9300_v15, 0.0 }
 0xe2f   : > { %v9786_v2 = vpack.c.bf16 %v9602_v19, %v9598_v30  ;;  %v9780_v44 = vpack.c.bf16 %v9588_v25, %v9584_v38 }
 0xe30   : > { %v9787_v45 = vpack.c.bf16 %v9603_v24, %v9599_v21  ;;  %v9781_v59 = vpack.c.bf16 %v9589_v47, %v9585_v50  ;;  %v8970_v16 = vpop.f32.mrb[76].mxu1  ;;  %v9303_v63 = vpop.f32.mrb[72].mxu0 }
 0xe31   : > { %v8971_v5 = vadd.f32 %v8970_v16, %v16683_v48  ;;  %v9304_v27 = vadd.f32 %v9303_v63, %v16649_v42  ;;  %v8972_v1 = vpop.f32.mrb[77].mxu1  ;;  %v9305_v7 = vpop.f32.mrb[73].mxu0 }
 0xe32   : > { %v8973_v14 = vadd.f32 %v8972_v1, %v16683_v48  ;;  %v9306_v58 = vadd.f32 %v9305_v7, %v16649_v42  ;;  %v8974_v17 = vpop.f32.mrb[78].mxu1  ;;  %v9307_v8 = vpop.f32.mrb[74].mxu0  ;;  %9919 = vmatprep.subr.bf16.mxu1 %v9787_v45  ;;  %9988 = vmatprep.subr.bf16.mxu0 %v9781_v59 }
 0xe33   : > { %v8975_v32 = vadd.f32 %v8974_v17, %v16681_v26  ;;  %v9308_v18 = vadd.f32 %v9307_v8, %v16647_v28  ;;  %v8976_v40 = vpop.f32.mrb[79].mxu1  ;;  %v9309_v52 = vpop.f32.mrb[75].mxu0  ;;  %9920 = vmatpush1.bf16.msra.mxu1 %v9786_v2  ;;  %9989 = vmatpush1.bf16.msra.mxu0 %v9780_v44  ;;  %v9606_v54 = vmax.f32 %v8971_v5, 0.0  ;;  %v9592_v20 = vmax.f32 %v9304_v27, 0.0 }
 0xe34   : > { %v8977_v22 = vadd.f32 %v8976_v40, %v16681_v26  ;;  %v9310_v35 = vadd.f32 %v9309_v52, %v16647_v28  ;;  %v9607_v4 = vmax.f32 %v8973_v14, 0.0  ;;  %v9593_v12 = vmax.f32 %v9306_v58, 0.0  ;;  %v16694_v60 = vpop.permute.xlu0 %8441  ;;  %v16709_v44 = vpop.permute.xlu1 %8446 }
 0xe35   : > { %v9610_v23 = vmax.f32 %v8975_v32, 0.0  ;;  %v9596_v42 = vmax.f32 %v9308_v18, 0.0 }
 0xe36   : > { %v9611_v55 = vmax.f32 %v8977_v22, 0.0  ;;  %v9597_v36 = vmax.f32 %v9310_v35, 0.0  ;;  %9991 = vmatmul.mubr.bf16.vlgmr.msra.gmra.mrb[136].mxu0 %v16657_v10 }
 0xe37   : > { %v9790_v41 = vpack.c.bf16 %v9610_v23, %v9606_v54  ;;  %v9784_v49 = vpack.c.bf16 %v9596_v42, %v9592_v20  ;;  %10031 = vmatprep.mubr.bf16.mxu0 %v16665_v62 }
 0xe38   : > { %v9791_v56 = vpack.c.bf16 %v9611_v55, %v9607_v4  ;;  %v9785_v28 = vpack.c.bf16 %v9597_v36, %v9593_v12  ;;  %v8980_v39 = vpop.f32.mrb[80].mxu1  ;;  %v9313_v37 = vpop.f32.mrb[76].mxu0 }
 0xe39   : > { %v8981_v33 = vadd.f32 %v8980_v39, %v16696_v43  ;;  %v9314_v0 = vadd.f32 %v9313_v37, %v16670_v9  ;;  %v8982_v29 = vpop.f32.mrb[81].mxu1  ;;  %v9315_v13 = vpop.f32.mrb[77].mxu0 }
 0xe3a   : > { %v8983_v57 = vadd.f32 %v8982_v29, %v16696_v43  ;;  %v9316_v46 = vadd.f32 %v9315_v13, %v16670_v9  ;;  %v8984_v6 = vpop.f32.mrb[82].mxu1  ;;  %v9317_v11 = vpop.f32.mrb[78].mxu0  ;;  %9921 = vmatprep.subr.bf16.mxu1 %v9791_v56  ;;  %9999 = vmatprep.subr.bf16.mxu0 %v9785_v28 }
 0xe3b   : > { %v8985_v62 = vadd.f32 %v8984_v6, %v16694_v60  ;;  %v9318_v53 = vadd.f32 %v9317_v11, %v16668_v3  ;;  %v8986_v31 = vpop.f32.mrb[83].mxu1  ;;  %v9319_v61 = vpop.f32.mrb[79].mxu0  ;;  %9922 = vmatpush1.bf16.msra.mxu1 %v9790_v41  ;;  %10000 = vmatpush1.bf16.msra.mxu0 %v9784_v49  ;;  %v9614_v38 = vmax.f32 %v8981_v33, 0.0  ;;  %v9600_v19 = vmax.f32 %v9314_v0, 0.0 }
 0xe3c   : > { %v8987_v15 = vadd.f32 %v8986_v31, %v16694_v60  ;;  %v9320_v30 = vadd.f32 %v9319_v61, %v16668_v3  ;;  %v9615_v21 = vmax.f32 %v8983_v57, 0.0  ;;  %v9601_v50 = vmax.f32 %v9316_v46, 0.0  ;;  %v16707_v2 = vpop.permute.xlu0 %8451  ;;  %v16721_v49 = vpop.permute.xlu1 %8456 }
 0xe3d   : > { %v9618_v25 = vmax.f32 %v8985_v62, 0.0  ;;  %v9604_v9 = vmax.f32 %v9318_v53, 0.0 }
 0xe3e   : > { %v9619_v24 = vmax.f32 %v8987_v15, 0.0  ;;  %v9605_v47 = vmax.f32 %v9320_v30, 0.0 }
 0xe3f   : > { %v9794_v45 = vpack.c.bf16 %v9618_v25, %v9614_v38  ;;  %v9788_v59 = vpack.c.bf16 %v9604_v9, %v9600_v19 }
 0xe40   : > { %v9795_v16 = vpack.c.bf16 %v9619_v24, %v9615_v21  ;;  %v9789_v63 = vpack.c.bf16 %v9605_v47, %v9601_v50  ;;  %v8990_v5 = vpop.f32.mrb[84].mxu1  ;;  %v9323_v27 = vpop.f32.mrb[80].mxu0 }
 0xe41   : > { %v8991_v3 = vadd.f32 %v8990_v5, %v16709_v44  ;;  %v9324_v1 = vadd.f32 %v9323_v27, %v16683_v48  ;;  %v8992_v7 = vpop.f32.mrb[85].mxu1  ;;  %v9325_v14 = vpop.f32.mrb[81].mxu0 }
 0xe42   : > { %v8993_v58 = vadd.f32 %v8992_v7, %v16709_v44  ;;  %v9326_v17 = vadd.f32 %v9325_v14, %v16683_v48  ;;  %v8994_v8 = vpop.f32.mrb[86].mxu1  ;;  %v9327_v32 = vpop.f32.mrb[82].mxu0  ;;  %9923 = vmatprep.subr.bf16.mxu1 %v9795_v16  ;;  %10001 = vmatprep.subr.bf16.mxu0 %v9789_v63 }
 0xe43   : > { %v8995_v18 = vadd.f32 %v8994_v8, %v16707_v2  ;;  %v9328_v40 = vadd.f32 %v9327_v32, %v16681_v26  ;;  %v8996_v52 = vpop.f32.mrb[87].mxu1  ;;  %v9329_v22 = vpop.f32.mrb[83].mxu0  ;;  %9924 = vmatpush1.bf16.msra.mxu1 %v9794_v45  ;;  %10002 = vmatpush1.bf16.msra.mxu0 %v9788_v59  ;;  %v9622_v20 = vmax.f32 %v8991_v3, 0.0  ;;  %v9608_v23 = vmax.f32 %v9324_v1, 0.0 }
 0xe44   : > { %v8997_v35 = vadd.f32 %v8996_v52, %v16707_v2  ;;  %v9330_v54 = vadd.f32 %v9329_v22, %v16681_v26  ;;  %v9623_v4 = vmax.f32 %v8993_v58, 0.0  ;;  %v9609_v12 = vmax.f32 %v9326_v17, 0.0  ;;  %v16719_v41 = vpop.permute.xlu0 %8461  ;;  %v16733_v59 = vpop.permute.xlu1 %8466 }
 0xe45   : > { %v9626_v42 = vmax.f32 %v8995_v18, 0.0  ;;  %v9612_v48 = vmax.f32 %v9328_v40, 0.0 }
 0xe46   : > { %v9627_v55 = vmax.f32 %v8997_v35, 0.0  ;;  %v9613_v36 = vmax.f32 %v9330_v54, 0.0 }
 0xe47   : > { %v9798_v56 = vpack.c.bf16 %v9626_v42, %v9622_v20  ;;  %v9792_v28 = vpack.c.bf16 %v9612_v48, %v9608_v23 }
 0xe48   : > { %v9799_v39 = vpack.c.bf16 %v9627_v55, %v9623_v4  ;;  %v9793_v37 = vpack.c.bf16 %v9613_v36, %v9609_v12  ;;  %v9000_v33 = vpop.f32.mrb[88].mxu1  ;;  %v9333_v0 = vpop.f32.mrb[84].mxu0 }
 0xe49   : > { %v9001_v26 = vadd.f32 %v9000_v33, %v16721_v49  ;;  %v9334_v29 = vadd.f32 %v9333_v0, %v16696_v43  ;;  %v9002_v13 = vpop.f32.mrb[89].mxu1  ;;  %v9335_v57 = vpop.f32.mrb[85].mxu0 }
 0xe4a   : > { %v9003_v46 = vadd.f32 %v9002_v13, %v16721_v49  ;;  %v9336_v6 = vadd.f32 %v9335_v57, %v16696_v43  ;;  %v9004_v11 = vpop.f32.mrb[90].mxu1  ;;  %v9337_v62 = vpop.f32.mrb[86].mxu0  ;;  %9925 = vmatprep.subr.bf16.mxu1 %v9799_v39  ;;  %10003 = vmatprep.subr.bf16.mxu0 %v9793_v37 }
 0xe4b   : > { %v9005_v53 = vadd.f32 %v9004_v11, %v16719_v41  ;;  %v9338_v31 = vadd.f32 %v9337_v62, %v16694_v60  ;;  %v9006_v61 = vpop.f32.mrb[91].mxu1  ;;  %v9339_v15 = vpop.f32.mrb[87].mxu0  ;;  %9926 = vmatpush1.bf16.msra.mxu1 %v9798_v56  ;;  %10004 = vmatpush1.bf16.msra.mxu0 %v9792_v28  ;;  %v9630_v19 = vmax.f32 %v9001_v26, 0.0  ;;  %v9616_v25 = vmax.f32 %v9334_v29, 0.0 }
 0xe4c   : > { %v9007_v30 = vadd.f32 %v9006_v61, %v16719_v41  ;;  %v9340_v38 = vadd.f32 %v9339_v15, %v16694_v60  ;;  %v9631_v21 = vmax.f32 %v9003_v46, 0.0  ;;  %v9617_v50 = vmax.f32 %v9336_v6, 0.0  ;;  %v16731_v45 = vpop.permute.xlu0 %8471  ;;  %v16745_v28 = vpop.permute.xlu1 %8476 }
 0xe4d   : > { %v9634_v9 = vmax.f32 %v9005_v53, 0.0  ;;  %v9620_v43 = vmax.f32 %v9338_v31, 0.0 }
 0xe4e   : > { %v9635_v24 = vmax.f32 %v9007_v30, 0.0  ;;  %v9621_v47 = vmax.f32 %v9340_v38, 0.0 }
 0xe4f   : > { %v9802_v16 = vpack.c.bf16 %v9634_v9, %v9630_v19  ;;  %v9796_v63 = vpack.c.bf16 %v9620_v43, %v9616_v25 }
 0xe50   : > { %v9803_v5 = vpack.c.bf16 %v9635_v24, %v9631_v21  ;;  %v9797_v27 = vpack.c.bf16 %v9621_v47, %v9617_v50  ;;  %v9010_v3 = vpop.f32.mrb[92].mxu1  ;;  %v9343_v1 = vpop.f32.mrb[88].mxu0 }
 0xe51   : > { %v9011_v60 = vadd.f32 %v9010_v3, %v16733_v59  ;;  %v9344_v7 = vadd.f32 %v9343_v1, %v16709_v44  ;;  %v9012_v14 = vpop.f32.mrb[93].mxu1  ;;  %v9345_v58 = vpop.f32.mrb[89].mxu0 }
 0xe52   : > { %v9013_v17 = vadd.f32 %v9012_v14, %v16733_v59  ;;  %v9346_v8 = vadd.f32 %v9345_v58, %v16709_v44  ;;  %v9014_v32 = vpop.f32.mrb[94].mxu1  ;;  %v9347_v18 = vpop.f32.mrb[90].mxu0  ;;  %9927 = vmatprep.subr.bf16.mxu1 %v9803_v5  ;;  %10005 = vmatprep.subr.bf16.mxu0 %v9797_v27 }
 0xe53   : > { %v9015_v40 = vadd.f32 %v9014_v32, %v16731_v45  ;;  %v9348_v52 = vadd.f32 %v9347_v18, %v16707_v2  ;;  %v9016_v22 = vpop.f32.mrb[95].mxu1  ;;  %v9349_v35 = vpop.f32.mrb[91].mxu0  ;;  %9928 = vmatpush1.bf16.msra.mxu1 %v9802_v16  ;;  %10006 = vmatpush1.bf16.msra.mxu0 %v9796_v63  ;;  %v9638_v23 = vmax.f32 %v9011_v60, 0.0  ;;  %v9624_v42 = vmax.f32 %v9344_v7, 0.0 }
 0xe54   : > { %v9017_v54 = vadd.f32 %v9016_v22, %v16731_v45  ;;  %v9350_v20 = vadd.f32 %v9349_v35, %v16707_v2  ;;  %v9639_v4 = vmax.f32 %v9013_v17, 0.0  ;;  %v9625_v12 = vmax.f32 %v9346_v8, 0.0  ;;  %v16743_v56 = vpop.permute.xlu0 %8481  ;;  %v16757_v63 = vpop.permute.xlu1 %8486 }
 0xe55   : > { %v9642_v48 = vmax.f32 %v9015_v40, 0.0  ;;  %v9628_v44 = vmax.f32 %v9348_v52, 0.0 }
 0xe56   : > { %v9643_v55 = vmax.f32 %v9017_v54, 0.0  ;;  %v9629_v36 = vmax.f32 %v9350_v20, 0.0 }
 0xe57   : > { %v9806_v39 = vpack.c.bf16 %v9642_v48, %v9638_v23  ;;  %v9800_v37 = vpack.c.bf16 %v9628_v44, %v9624_v42 }
 0xe58   : > { %v9807_v33 = vpack.c.bf16 %v9643_v55, %v9639_v4  ;;  %v9801_v0 = vpack.c.bf16 %v9629_v36, %v9625_v12  ;;  %v9020_v26 = vpop.f32.mrb[96].mxu1  ;;  %v9353_v29 = vpop.f32.mrb[92].mxu0 }
 0xe59   : > { %v9021_v2 = vadd.f32 %v9020_v26, %v16745_v28  ;;  %v9354_v13 = vadd.f32 %v9353_v29, %v16721_v49  ;;  %v9022_v57 = vpop.f32.mrb[97].mxu1  ;;  %v9355_v46 = vpop.f32.mrb[93].mxu0 }
 0xe5a   : > { %v9023_v6 = vadd.f32 %v9022_v57, %v16745_v28  ;;  %v9356_v11 = vadd.f32 %v9355_v46, %v16721_v49  ;;  %v9024_v62 = vpop.f32.mrb[98].mxu1  ;;  %v9357_v53 = vpop.f32.mrb[94].mxu0  ;;  %9929 = vmatprep.subr.bf16.mxu1 %v9807_v33  ;;  %10007 = vmatprep.subr.bf16.mxu0 %v9801_v0 }
 0xe5b   : > { %v9025_v31 = vadd.f32 %v9024_v62, %v16743_v56  ;;  %v9358_v61 = vadd.f32 %v9357_v53, %v16719_v41  ;;  %v9026_v15 = vpop.f32.mrb[99].mxu1  ;;  %v9359_v30 = vpop.f32.mrb[95].mxu0  ;;  %9930 = vmatpush1.bf16.msra.mxu1 %v9806_v39  ;;  %10008 = vmatpush1.bf16.msra.mxu0 %v9800_v37  ;;  %v9646_v25 = vmax.f32 %v9021_v2, 0.0  ;;  %v9632_v9 = vmax.f32 %v9354_v13, 0.0 }
 0xe5c   : > { %v9027_v38 = vadd.f32 %v9026_v15, %v16743_v56  ;;  %v9360_v19 = vadd.f32 %v9359_v30, %v16719_v41  ;;  %v9647_v21 = vmax.f32 %v9023_v6, 0.0  ;;  %v9633_v50 = vmax.f32 %v9356_v11, 0.0  ;;  %v16755_v16 = vpop.permute.xlu0 %8491  ;;  %v16769_v37 = vpop.permute.xlu1 %8496 }
 0xe5d   : > { %v9650_v43 = vmax.f32 %v9025_v31, 0.0  ;;  %v9636_v49 = vmax.f32 %v9358_v61, 0.0 }
 0xe5e   : > { %v9651_v24 = vmax.f32 %v9027_v38, 0.0  ;;  %v9637_v47 = vmax.f32 %v9360_v19, 0.0 }
 0xe5f   : > { %v9810_v5 = vpack.c.bf16 %v9650_v43, %v9646_v25  ;;  %v9804_v27 = vpack.c.bf16 %v9636_v49, %v9632_v9 }
 0xe60   : > { %v9811_v3 = vpack.c.bf16 %v9651_v24, %v9647_v21  ;;  %v9805_v1 = vpack.c.bf16 %v9637_v47, %v9633_v50  ;;  %v9030_v60 = vpop.f32.mrb[100].mxu1  ;;  %v9363_v7 = vpop.f32.mrb[96].mxu0 }
 0xe61   : > { %v9031_v41 = vadd.f32 %v9030_v60, %v16757_v63  ;;  %v9364_v14 = vadd.f32 %v9363_v7, %v16733_v59  ;;  %v9032_v58 = vpop.f32.mrb[101].mxu1  ;;  %v9365_v17 = vpop.f32.mrb[97].mxu0 }
 0xe62   : > { %v9033_v8 = vadd.f32 %v9032_v58, %v16757_v63  ;;  %v9366_v32 = vadd.f32 %v9365_v17, %v16733_v59  ;;  %v9034_v18 = vpop.f32.mrb[102].mxu1  ;;  %v9367_v40 = vpop.f32.mrb[98].mxu0  ;;  %9931 = vmatprep.subr.bf16.mxu1 %v9811_v3  ;;  %10009 = vmatprep.subr.bf16.mxu0 %v9805_v1 }
 0xe63   : > { %v9035_v52 = vadd.f32 %v9034_v18, %v16755_v16  ;;  %v9368_v22 = vadd.f32 %v9367_v40, %v16731_v45  ;;  %v9036_v35 = vpop.f32.mrb[103].mxu1  ;;  %v9369_v54 = vpop.f32.mrb[99].mxu0  ;;  %9932 = vmatpush1.bf16.msra.mxu1 %v9810_v5  ;;  %10010 = vmatpush1.bf16.msra.mxu0 %v9804_v27  ;;  %v9654_v42 = vmax.f32 %v9031_v41, 0.0  ;;  %v9640_v48 = vmax.f32 %v9364_v14, 0.0 }
 0xe64   : > { %v9037_v20 = vadd.f32 %v9036_v35, %v16755_v16  ;;  %v9370_v23 = vadd.f32 %v9369_v54, %v16731_v45  ;;  %v9655_v4 = vmax.f32 %v9033_v8, 0.0  ;;  %v9641_v12 = vmax.f32 %v9366_v32, 0.0  ;;  %v16767_v39 = vpop.permute.xlu0 %8501  ;;  %v16781_v27 = vpop.permute.xlu1 %8506 }
 0xe65   : > { %v9658_v44 = vmax.f32 %v9035_v52, 0.0  ;;  %v9644_v59 = vmax.f32 %v9368_v22, 0.0 }
 0xe66   : > { %v9659_v55 = vmax.f32 %v9037_v20, 0.0  ;;  %v9645_v36 = vmax.f32 %v9370_v23, 0.0 }
 0xe67   : > { %v9814_v33 = vpack.c.bf16 %v9658_v44, %v9654_v42  ;;  %v9808_v0 = vpack.c.bf16 %v9644_v59, %v9640_v48 }
 0xe68   : > { %v9815_v26 = vpack.c.bf16 %v9659_v55, %v9655_v4  ;;  %v9809_v29 = vpack.c.bf16 %v9645_v36, %v9641_v12  ;;  %v9040_v2 = vpop.f32.mrb[104].mxu1  ;;  %v9373_v13 = vpop.f32.mrb[100].mxu0 }
 0xe69   : > { %v9041_v45 = vadd.f32 %v9040_v2, %v16769_v37  ;;  %v9374_v57 = vadd.f32 %v9373_v13, %v16745_v28  ;;  %v9042_v46 = vpop.f32.mrb[105].mxu1  ;;  %v9375_v6 = vpop.f32.mrb[101].mxu0 }
 0xe6a   : > { %v9043_v11 = vadd.f32 %v9042_v46, %v16769_v37  ;;  %v9376_v62 = vadd.f32 %v9375_v6, %v16745_v28  ;;  %v9044_v53 = vpop.f32.mrb[106].mxu1  ;;  %v9377_v31 = vpop.f32.mrb[102].mxu0  ;;  %9933 = vmatprep.subr.bf16.mxu1 %v9815_v26  ;;  %10011 = vmatprep.subr.bf16.mxu0 %v9809_v29 }
 0xe6b   : > { %v9045_v61 = vadd.f32 %v9044_v53, %v16767_v39  ;;  %v9378_v15 = vadd.f32 %v9377_v31, %v16743_v56  ;;  %v9046_v30 = vpop.f32.mrb[107].mxu1  ;;  %v9379_v38 = vpop.f32.mrb[103].mxu0  ;;  %9934 = vmatpush1.bf16.msra.mxu1 %v9814_v33  ;;  %10012 = vmatpush1.bf16.msra.mxu0 %v9808_v0  ;;  %v9662_v9 = vmax.f32 %v9041_v45, 0.0  ;;  %v9648_v43 = vmax.f32 %v9374_v57, 0.0 }
 0xe6c   : > { %v9047_v19 = vadd.f32 %v9046_v30, %v16767_v39  ;;  %v9380_v25 = vadd.f32 %v9379_v38, %v16743_v56  ;;  %v9663_v21 = vmax.f32 %v9043_v11, 0.0  ;;  %v9649_v50 = vmax.f32 %v9376_v62, 0.0  ;;  %v16779_v5 = vpop.permute.xlu0 %8511  ;;  %v16793_v0 = vpop.permute.xlu1 %8516 }
 0xe6d   : > { %v9666_v49 = vmax.f32 %v9045_v61, 0.0  ;;  %v9652_v28 = vmax.f32 %v9378_v15, 0.0 }
 0xe6e   : > { %v9667_v24 = vmax.f32 %v9047_v19, 0.0  ;;  %v9653_v47 = vmax.f32 %v9380_v25, 0.0 }
 0xe6f   : > { %v9818_v3 = vpack.c.bf16 %v9666_v49, %v9662_v9  ;;  %v9812_v1 = vpack.c.bf16 %v9652_v28, %v9648_v43 }
 0xe70   : > { %v9819_v60 = vpack.c.bf16 %v9667_v24, %v9663_v21  ;;  %v9813_v7 = vpack.c.bf16 %v9653_v47, %v9649_v50  ;;  %v9050_v41 = vpop.f32.mrb[108].mxu1  ;;  %v9383_v14 = vpop.f32.mrb[104].mxu0 }
 0xe71   : > { %v9051_v56 = vadd.f32 %v9050_v41, %v16781_v27  ;;  %v9384_v58 = vadd.f32 %v9383_v14, %v16757_v63  ;;  %v9052_v17 = vpop.f32.mrb[109].mxu1  ;;  %v9385_v8 = vpop.f32.mrb[105].mxu0 }
 0xe72   : > { %v9053_v32 = vadd.f32 %v9052_v17, %v16781_v27  ;;  %v9386_v18 = vadd.f32 %v9385_v8, %v16757_v63  ;;  %v9054_v40 = vpop.f32.mrb[110].mxu1  ;;  %v9387_v52 = vpop.f32.mrb[106].mxu0  ;;  %9935 = vmatprep.subr.bf16.mxu1 %v9819_v60  ;;  %10013 = vmatprep.subr.bf16.mxu0 %v9813_v7 }
 0xe73   : > { %v9055_v22 = vadd.f32 %v9054_v40, %v16779_v5  ;;  %v9388_v35 = vadd.f32 %v9387_v52, %v16755_v16  ;;  %v9056_v54 = vpop.f32.mrb[111].mxu1  ;;  %v9389_v20 = vpop.f32.mrb[107].mxu0  ;;  %9936 = vmatpush1.bf16.msra.mxu1 %v9818_v3  ;;  %10014 = vmatpush1.bf16.msra.mxu0 %v9812_v1  ;;  %v9670_v48 = vmax.f32 %v9051_v56, 0.0  ;;  %v9656_v44 = vmax.f32 %v9384_v58, 0.0 }
 0xe74   : > { %v9057_v23 = vadd.f32 %v9056_v54, %v16779_v5  ;;  %v9390_v42 = vadd.f32 %v9389_v20, %v16755_v16  ;;  %v9671_v4 = vmax.f32 %v9053_v32, 0.0  ;;  %v9657_v12 = vmax.f32 %v9386_v18, 0.0  ;;  %v16791_v33 = vpop.permute.xlu0 %8521  ;;  %v16805_v1 = vpop.permute.xlu1 %8526 }
 0xe75   : > { %v9674_v59 = vmax.f32 %v9055_v22, 0.0  ;;  %v9660_v63 = vmax.f32 %v9388_v35, 0.0 }
 0xe76   : > { %v9675_v55 = vmax.f32 %v9057_v23, 0.0  ;;  %v9661_v36 = vmax.f32 %v9390_v42, 0.0 }
 0xe77   : > { %v9822_v26 = vpack.c.bf16 %v9674_v59, %v9670_v48  ;;  %v9816_v29 = vpack.c.bf16 %v9660_v63, %v9656_v44 }
 0xe78   : > { %v9823_v2 = vpack.c.bf16 %v9675_v55, %v9671_v4  ;;  %v9817_v13 = vpack.c.bf16 %v9661_v36, %v9657_v12  ;;  %v9060_v45 = vpop.f32.mrb[112].mxu1  ;;  %v9393_v57 = vpop.f32.mrb[108].mxu0 }
 0xe79   : > { %v9061_v16 = vadd.f32 %v9060_v45, %v16793_v0  ;;  %v9394_v46 = vadd.f32 %v9393_v57, %v16769_v37  ;;  %v9062_v6 = vpop.f32.mrb[113].mxu1  ;;  %v9395_v11 = vpop.f32.mrb[109].mxu0 }
 0xe7a   : > { %v9063_v62 = vadd.f32 %v9062_v6, %v16793_v0  ;;  %v9396_v53 = vadd.f32 %v9395_v11, %v16769_v37  ;;  %v9064_v31 = vpop.f32.mrb[114].mxu1  ;;  %v9397_v61 = vpop.f32.mrb[110].mxu0  ;;  %9937 = vmatprep.subr.bf16.mxu1 %v9823_v2  ;;  %10015 = vmatprep.subr.bf16.mxu0 %v9817_v13 }
 0xe7b   : > { %v9065_v15 = vadd.f32 %v9064_v31, %v16791_v33  ;;  %v9398_v30 = vadd.f32 %v9397_v61, %v16767_v39  ;;  %v9066_v38 = vpop.f32.mrb[115].mxu1  ;;  %v9399_v19 = vpop.f32.mrb[111].mxu0  ;;  %9938 = vmatpush1.bf16.msra.mxu1 %v9822_v26  ;;  %10016 = vmatpush1.bf16.msra.mxu0 %v9816_v29  ;;  %v9678_v43 = vmax.f32 %v9061_v16, 0.0  ;;  %v9664_v49 = vmax.f32 %v9394_v46, 0.0 }
 0xe7c   : > { %v9067_v25 = vadd.f32 %v9066_v38, %v16791_v33  ;;  %v9400_v9 = vadd.f32 %v9399_v19, %v16767_v39  ;;  %v9679_v21 = vmax.f32 %v9063_v62, 0.0  ;;  %v9665_v50 = vmax.f32 %v9396_v53, 0.0  ;;  %v16803_v3 = vpop.permute.xlu0 %8531  ;;  %v16817_v29 = vpop.permute.xlu1 %8536 }
 0xe7d   : > { %v9682_v28 = vmax.f32 %v9065_v15, 0.0  ;;  %v9668_v37 = vmax.f32 %v9398_v30, 0.0 }
 0xe7e   : > { %v9683_v24 = vmax.f32 %v9067_v25, 0.0  ;;  %v9669_v47 = vmax.f32 %v9400_v9, 0.0 }
 0xe7f   : > { %v9826_v60 = vpack.c.bf16 %v9682_v28, %v9678_v43  ;;  %v9820_v7 = vpack.c.bf16 %v9668_v37, %v9664_v49 }
 0xe80   : > { %v9827_v41 = vpack.c.bf16 %v9683_v24, %v9679_v21  ;;  %v9821_v14 = vpack.c.bf16 %v9669_v47, %v9665_v50  ;;  %v9070_v56 = vpop.f32.mrb[116].mxu1  ;;  %v9403_v58 = vpop.f32.mrb[112].mxu0 }
 0xe81   : > { %v9071_v39 = vadd.f32 %v9070_v56, %v16805_v1  ;;  %v9404_v17 = vadd.f32 %v9403_v58, %v16781_v27  ;;  %v9072_v8 = vpop.f32.mrb[117].mxu1  ;;  %v9405_v32 = vpop.f32.mrb[113].mxu0 }
 0xe82   : > { %v9073_v18 = vadd.f32 %v9072_v8, %v16805_v1  ;;  %v9406_v40 = vadd.f32 %v9405_v32, %v16781_v27  ;;  %v9074_v52 = vpop.f32.mrb[118].mxu1  ;;  %v9407_v22 = vpop.f32.mrb[114].mxu0  ;;  %9939 = vmatprep.subr.bf16.mxu1 %v9827_v41  ;;  %10017 = vmatprep.subr.bf16.mxu0 %v9821_v14 }
 0xe83   : > { %v9075_v35 = vadd.f32 %v9074_v52, %v16803_v3  ;;  %v9408_v54 = vadd.f32 %v9407_v22, %v16779_v5  ;;  %v9076_v20 = vpop.f32.mrb[119].mxu1  ;;  %v9409_v23 = vpop.f32.mrb[115].mxu0  ;;  %9940 = vmatpush1.bf16.msra.mxu1 %v9826_v60  ;;  %10018 = vmatpush1.bf16.msra.mxu0 %v9820_v7  ;;  %v9686_v44 = vmax.f32 %v9071_v39, 0.0  ;;  %v9672_v59 = vmax.f32 %v9404_v17, 0.0 }
 0xe84   : > { %v9077_v42 = vadd.f32 %v9076_v20, %v16803_v3  ;;  %v9410_v48 = vadd.f32 %v9409_v23, %v16779_v5  ;;  %v9687_v4 = vmax.f32 %v9073_v18, 0.0  ;;  %v9673_v12 = vmax.f32 %v9406_v40, 0.0  ;;  %v16815_v26 = vpop.permute.xlu0 %8541  ;;  %v16829_v7 = vpop.permute.xlu1 %8546 }
 0xe85   : > { %v9690_v63 = vmax.f32 %v9075_v35, 0.0  ;;  %v9676_v27 = vmax.f32 %v9408_v54, 0.0 }
 0xe86   : > { %v9691_v55 = vmax.f32 %v9077_v42, 0.0  ;;  %v9677_v36 = vmax.f32 %v9410_v48, 0.0 }
 0xe87   : > { %v9830_v2 = vpack.c.bf16 %v9690_v63, %v9686_v44  ;;  %v9824_v13 = vpack.c.bf16 %v9676_v27, %v9672_v59 }
 0xe88   : > { %v9831_v45 = vpack.c.bf16 %v9691_v55, %v9687_v4  ;;  %v9825_v57 = vpack.c.bf16 %v9677_v36, %v9673_v12  ;;  %v9080_v16 = vpop.f32.mrb[120].mxu1  ;;  %v9413_v46 = vpop.f32.mrb[116].mxu0 }
 0xe89   : > { %v9081_v5 = vadd.f32 %v9080_v16, %v16817_v29  ;;  %v9414_v6 = vadd.f32 %v9413_v46, %v16793_v0  ;;  %v9082_v11 = vpop.f32.mrb[121].mxu1  ;;  %v9415_v62 = vpop.f32.mrb[117].mxu0 }
 0xe8a   : > { %v9083_v53 = vadd.f32 %v9082_v11, %v16817_v29  ;;  %v9416_v31 = vadd.f32 %v9415_v62, %v16793_v0  ;;  %v9084_v61 = vpop.f32.mrb[122].mxu1  ;;  %v9417_v15 = vpop.f32.mrb[118].mxu0  ;;  %9941 = vmatprep.subr.bf16.mxu1 %v9831_v45  ;;  %10019 = vmatprep.subr.bf16.mxu0 %v9825_v57 }
 0xe8b   : > { %v9085_v30 = vadd.f32 %v9084_v61, %v16815_v26  ;;  %v9418_v38 = vadd.f32 %v9417_v15, %v16791_v33  ;;  %v9086_v19 = vpop.f32.mrb[123].mxu1  ;;  %v9419_v25 = vpop.f32.mrb[119].mxu0  ;;  %9942 = vmatpush1.bf16.msra.mxu1 %v9830_v2  ;;  %10020 = vmatpush1.bf16.msra.mxu0 %v9824_v13  ;;  %v9694_v49 = vmax.f32 %v9081_v5, 0.0  ;;  %v9680_v28 = vmax.f32 %v9414_v6, 0.0 }
 0xe8c   : > { %v9087_v9 = vadd.f32 %v9086_v19, %v16815_v26  ;;  %v9420_v43 = vadd.f32 %v9419_v25, %v16791_v33  ;;  %v9695_v21 = vmax.f32 %v9083_v53, 0.0  ;;  %v9681_v50 = vmax.f32 %v9416_v31, 0.0  ;;  %v16827_v60 = vpop.permute.xlu0 %8551  ;;  %v8557_v13 = vpop.permute.xlu1 %8556 }
 0xe8d   : > { %v9698_v37 = vmax.f32 %v9085_v30, 0.0  ;;  %v9684_v0 = vmax.f32 %v9418_v38, 0.0 }
 0xe8e   : > { %v9699_v24 = vmax.f32 %v9087_v9, 0.0  ;;  %v9685_v47 = vmax.f32 %v9420_v43, 0.0 }
 0xe8f   : > { %v9834_v41 = vpack.c.bf16 %v9698_v37, %v9694_v49  ;;  %v9828_v14 = vpack.c.bf16 %v9684_v0, %v9680_v28 }
 0xe90   : > { %v9835_v56 = vpack.c.bf16 %v9699_v24, %v9695_v21  ;;  %v9829_v58 = vpack.c.bf16 %v9685_v47, %v9681_v50  ;;  %v9090_v39 = vpop.f32.mrb[124].mxu1  ;;  %v9423_v17 = vpop.f32.mrb[120].mxu0 }
 0xe91   : > { %v9091_v33 = vadd.f32 %v9090_v39, %v16829_v7  ;;  %v9424_v8 = vadd.f32 %v9423_v17, %v16805_v1  ;;  %v9092_v32 = vpop.f32.mrb[125].mxu1  ;;  %v9425_v18 = vpop.f32.mrb[121].mxu0 }
 0xe92   : > { %v9093_v40 = vadd.f32 %v9092_v32, %v16829_v7  ;;  %v9426_v52 = vadd.f32 %v9425_v18, %v16805_v1  ;;  %v9094_v22 = vpop.f32.mrb[126].mxu1  ;;  %v9427_v35 = vpop.f32.mrb[122].mxu0  ;;  %9943 = vmatprep.subr.bf16.mxu1 %v9835_v56  ;;  %10021 = vmatprep.subr.bf16.mxu0 %v9829_v58 }
 0xe93   : > { %v9095_v54 = vadd.f32 %v9094_v22, %v16827_v60  ;;  %v9428_v20 = vadd.f32 %v9427_v35, %v16803_v3  ;;  %v9096_v23 = vpop.f32.mrb[127].mxu1  ;;  %v9429_v42 = vpop.f32.mrb[123].mxu0  ;;  %9944 = vmatpush1.bf16.msra.mxu1 %v9834_v41  ;;  %10022 = vmatpush1.bf16.msra.mxu0 %v9828_v14  ;;  %v9702_v59 = vmax.f32 %v9091_v33, 0.0  ;;  %v9688_v63 = vmax.f32 %v9424_v8, 0.0 }
 0xe94   : > { %v9097_v48 = vadd.f32 %v9096_v23, %v16827_v60  ;;  %v9430_v44 = vadd.f32 %v9429_v42, %v16803_v3  ;;  %v9703_v4 = vmax.f32 %v9093_v40, 0.0  ;;  %v9689_v12 = vmax.f32 %v9426_v52, 0.0  ;;  %v16839_v2 = vpop.permute.xlu0 %8561 }
 0xe95   : > { %v9706_v27 = vmax.f32 %v9095_v54, 0.0  ;;  %v9692_v1 = vmax.f32 %v9428_v20, 0.0  ;;  %v9870_v8 = vcombine.high %v16657_v10, %v16657_v10 }
 0xe96   : > { %v9707_v55 = vmax.f32 %v9097_v48, 0.0  ;;  %v9693_v36 = vmax.f32 %v9430_v44, 0.0 }
 0xe97   : > { %v9838_v45 = vpack.c.bf16 %v9706_v27, %v9702_v59  ;;  %v9832_v57 = vpack.c.bf16 %v9692_v1, %v9688_v63 }
 0xe98   : > { %v9839_v16 = vpack.c.bf16 %v9707_v55, %v9703_v4  ;;  %v9833_v46 = vpack.c.bf16 %v9693_v36, %v9689_v12  ;;  %v9100_v5 = vpop.f32.mrb[128].mxu1  ;;  %v9433_v6 = vpop.f32.mrb[124].mxu0 }
 0xe99   : > { %v9101_v11 = vadd.f32 %v9100_v5, %v8557_v13  ;;  %v9434_v3 = vadd.f32 %v9433_v6, %v16817_v29  ;;  %v9102_v62 = vpop.f32.mrb[129].mxu1  ;;  %v9435_v53 = vpop.f32.mrb[125].mxu0 }
 0xe9a   : > { %v9103_v31 = vadd.f32 %v9102_v62, %v8557_v13  ;;  %v9436_v61 = vadd.f32 %v9435_v53, %v16817_v29  ;;  %v9104_v15 = vpop.f32.mrb[130].mxu1  ;;  %v9437_v30 = vpop.f32.mrb[126].mxu0  ;;  %9945 = vmatprep.subr.bf16.mxu1 %v9839_v16  ;;  %10023 = vmatprep.subr.bf16.mxu0 %v9833_v46 }
 0xe9b   : > { %v9105_v38 = vadd.f32 %v9104_v15, %v16839_v2  ;;  %v9438_v19 = vadd.f32 %v9437_v30, %v16815_v26  ;;  %v9106_v25 = vpop.f32.mrb[131].mxu1  ;;  %v9439_v9 = vpop.f32.mrb[127].mxu0  ;;  %9946 = vmatpush1.bf16.msra.mxu1 %v9838_v45  ;;  %10024 = vmatpush1.bf16.msra.mxu0 %v9832_v57  ;;  %v9710_v28 = vmax.f32 %v9101_v11, 0.0  ;;  %v9696_v37 = vmax.f32 %v9434_v3, 0.0 }
 0xe9c   : > { %v9107_v43 = vadd.f32 %v9106_v25, %v16839_v2  ;;  %v9440_v49 = vadd.f32 %v9439_v9, %v16815_v26  ;;  %v9711_v21 = vmax.f32 %v9103_v31, 0.0  ;;  %v9697_v50 = vmax.f32 %v9436_v61, 0.0 }
 0xe9d   : > { %v9714_v0 = vmax.f32 %v9105_v38, 0.0  ;;  %v9700_v29 = vmax.f32 %v9438_v19, 0.0 }
 0xe9e   : > { %v9715_v24 = vmax.f32 %v9107_v43, 0.0  ;;  %v9701_v47 = vmax.f32 %v9440_v49, 0.0 }
 0xe9f   : > { %v9842_v41 = vpack.c.bf16 %v9714_v0, %v9710_v28  ;;  %v9836_v14 = vpack.c.bf16 %v9700_v29, %v9696_v37 }
 0xea0   : > { %v9843_v56 = vpack.c.bf16 %v9715_v24, %v9711_v21  ;;  %v9837_v58 = vpack.c.bf16 %v9701_v47, %v9697_v50  ;;  %v9443_v39 = vpop.f32.mrb[128].mxu0 }
 0xea1   : > { %v9444_v17 = vadd.f32 %v9443_v39, %v16829_v7  ;;  %v9445_v33 = vpop.f32.mrb[129].mxu0 }
 0xea2   : > { %v9446_v26 = vadd.f32 %v9445_v33, %v16829_v7  ;;  %v9447_v32 = vpop.f32.mrb[130].mxu0  ;;  %9947 = vmatprep.subr.bf16.mxu1 %v9843_v56  ;;  %10025 = vmatprep.subr.bf16.mxu0 %v9837_v58 }
 0xea3   : > { %v9448_v18 = vadd.f32 %v9447_v32, %v16827_v60  ;;  %v9449_v40 = vpop.f32.mrb[131].mxu0  ;;  %9948 = vmatpush1.bf16.msra.mxu1 %v9842_v41  ;;  %10026 = vmatpush1.bf16.msra.mxu0 %v9836_v14  ;;  %v9704_v22 = vmax.f32 %v9444_v17, 0.0 }
 0xea4   : > { %v9450_v52 = vadd.f32 %v9449_v40, %v16827_v60  ;;  %v9705_v54 = vmax.f32 %v9446_v26, 0.0 }
 0xea5   : > { %v9708_v35 = vmax.f32 %v9448_v18, 0.0 }
 0xea6   : > { %v9709_v20 = vmax.f32 %v9450_v52, 0.0  ;;  %9950 = vmatmul.mubr.bf16.vlgmr.msra.gmra.mrb[132].mxu1 %v9870_v8 }
 0xea7   : > { %v9840_v23 = vpack.c.bf16 %v9708_v35, %v9704_v22 }
 0xea8   : > { %v9841_v42 = vpack.c.bf16 %v9709_v20, %v9705_v54  ;;  %v9453_v10 = vpop.f32.mrb[132].mxu0 }
 0xea9   : > { %v9454_v48 = vadd.f32 %v9453_v10, %v8557_v13  ;;  %v9455_v7 = vpop.f32.mrb[133].mxu0 }
 0xeaa   : > { %v9456_v44 = vadd.f32 %v9455_v7, %v8557_v13  ;;  %v9457_v59 = vpop.f32.mrb[134].mxu0  ;;  %10027 = vmatprep.subr.bf16.mxu0 %v9841_v42 }
 0xeab   : > { %v9458_v63 = vadd.f32 %v9457_v59, %v16839_v2  ;;  %v9459_v27 = vpop.f32.mrb[135].mxu0  ;;  %10028 = vmatpush1.bf16.msra.mxu0 %v9840_v23  ;;  %v9712_v60 = vmax.f32 %v9454_v48, 0.0 }
 0xeac   : > { %v9460_v1 = vadd.f32 %v9459_v27, %v16839_v2  ;;  %v9713_v12 = vmax.f32 %v9456_v44, 0.0 }
 0xead   : > { %v9716_v4 = vmax.f32 %v9458_v63, 0.0 }
 0xeae   : > { %v9717_v55 = vmax.f32 %v9460_v1, 0.0 }
 0xeaf   : > { %v9844_v36 = vpack.c.bf16 %v9716_v4, %v9712_v60 }
 0xeb0   : > { %v9845_v45 = vpack.c.bf16 %v9717_v55, %v9713_v12 }
 0xeb2   : > { %10029 = vmatprep.subr.bf16.mxu0 %v9845_v45 }
 0xeb3   : > { %10030 = vmatpush1.bf16.msra.mxu0 %v9844_v36 }
 0xeb6   : > { %10032 = vmatmul.mubr.bf16.vlgmr.msra.gmra.mrb[136].mxu0 %v9870_v8 }
 0xf79   : > { %v9951_v57 = vpop.f32.mrb[132].mxu1 }
 0xf7a   : > { %v9953_v13 = vpop.f32.mrb[133].mxu1 }
 0xf7b   : > { %v10052_v16 = vcombine.low %v9951_v57, %v9953_v13  ;;  %v9955_v46 = vpop.f32.mrb[134].mxu1 }
 0xf7c   : > { %v9956_v5 = vpop.f32.mrb[135].mxu1 }
 0xf7d   : > { %v10060_v53 = vrot.slane %v10052_v16, %v16481_v51 }
 0xf89   : > { %v10033_v6 = vpop.f32.mrb[136].mxu0 }
 0xf8a   : > { %v10035_v11 = vpop.f32.mrb[137].mxu0 }
 0xf8b   : > { %v10053_v3 = vcombine.low %v10033_v6, %v10035_v11  ;;  %v10037_v62 = vpop.f32.mrb[138].mxu0 }
 0xf8c   : > { %v10038_v2 = vpop.f32.mrb[139].mxu0 }
 0xf8d   : > { %v10067_v31 = vrot.slane %v10053_v3, %v16481_v51 }
 0xf8f   : > { %v10068_v61 = vcombine.low %v10060_v53, %v10067_v31 }
 0xf91   : > { %v10075_v15 = vrot.slane %v10068_v61, %v16481_v51 }
 0xf93   : > { %10713 = vst.msk [vmem:[%s14775_s3 + $0x3] ss:$8 sm:$0xf] %vm10079_vm1, %v10075_v15 }
 0xf94 PF: > { %s17485_s24 = sld [smem:[#allocation3_spill]]  ;;  %s17486_s2 = sld [smem:[#allocation2_spill]] }
 0xf95   : > { %s17487_s25 = sld [smem:[#allocation4_spill]] }
 0xf9a   : > { %s32_s26 = sadd.s32 1, %s17485_s24  }
 0xf9b   : > { %p29_p5 = scmp.ge.s32.totalorder %s32_s26, 4  }
 0xf9d   :  { %31 = sbr.rel (!%p29_p5) target bundleno = 8 (0x8), region = 152 }

</bundles_post_ra>
